<compile_context>
chip_gen: v5e
topology: v5e:2x2
jax: 0.10.0
libtpu: 0.0.40
codegen_flags: <defaults>
</compile_context>

<pallas_src>
import functools

import jax
import jax.numpy as jnp
from jax.experimental import pallas as pl
from jax.experimental.pallas import tpu as pltpu

LN_EPS = 1e-5          # torch.nn.LayerNorm default
MODRELU_EPS = 1e-8


def fftnet_kernel(x_ref, fwd_ref, invc_ref, invs_ref, proj_ref,
                  g_in_ref, b_in_ref,
                  w1_ref, b1_ref, w2_ref, b2_ref,
                  base_ref, modb_ref,
                  g_out_ref, b_out_ref,
                  o_ref, *, f_pad, fast):
    """One batch tile.  x_ref is a (S, N) slab, N = Bt*D (batch-major, channel-minor)."""
    x = x_ref[...]                        # (S, N)
    proj = proj_ref[...]                  # (N, N) block-diag group-mean projector

    def group_layernorm(v, gamma, beta):
        # Per-(row, batch) mean/var over each channel group of width D, done as
        # lane-dense MXU matmuls so the whole layer stays in the packed layout.
        mu = jnp.dot(v, proj, preferred_element_type=jnp.float32)
        var = jnp.dot((v - mu) * (v - mu), proj, preferred_element_type=jnp.float32)
        return (v - mu) * jax.lax.rsqrt(var + LN_EPS) * gamma + beta

    # ---- input LayerNorm -----------------------------------------------------
    xn = group_layernorm(x, g_in_ref[...], b_in_ref[...])

    # ---- FourierTransform: real-input DFT, half spectrum, one fused matmul ----
    # fwd = [COS; SIN] (2*Fp, S); spec[:Fp] = Re X_k, spec[Fp:] = -Im X_k.
    cdt = fwd_ref.dtype                    # float32, or bfloat16 in fast mode
    spec = jnp.dot(fwd_ref[...], xn.astype(cdt),
                   preferred_element_type=jnp.float32)           # (2*Fp, N)

    # ---- AdaptiveSpectralFilter (block-diag weights => batched across tile) ---
    ctx = jnp.mean(xn, axis=0, keepdims=True)                    # (1, N)
    h = jnp.dot(ctx, w1_ref[...], preferred_element_type=jnp.float32) + b1_ref[...]
    h = jax.nn.gelu(h)
    delta = jnp.dot(h, w2_ref[...], preferred_element_type=jnp.float32) + b2_ref[...]
    filt = base_ref[...] + delta                                  # (1, N), real

    sr = spec[:f_pad] * filt               #  Re X_k * filter
    si = spec[f_pad:] * filt               # -Im X_k * filter

    # ---- ModReLU ---------------------------------------------------------------
    mag = jnp.sqrt(sr * sr + si * si)
    scale = jnp.maximum(mag + modb_ref[...], 0.0) * pl.reciprocal(
        mag + MODRELU_EPS, approx=fast)
    sr = sr * scale
    si = si * scale

    # ---- InverseFourierTransform: real IDFT from the half spectrum -------------
    # out_n = sum_k (w_k/S) [Re X_k cos(2*pi*k*n/S) - Im X_k sin(2*pi*k*n/S)]
    out = (jnp.dot(invc_ref[...], sr.astype(cdt), preferred_element_type=jnp.float32)
           + jnp.dot(invs_ref[...], si.astype(cdt), preferred_element_type=jnp.float32))

    # ---- dropout (identity, eval) + residual + output LayerNorm ----------------
    out = out + x
    o_ref[...] = group_layernorm(out, g_out_ref[...], b_out_ref[...])


def _pick_batch_tile(batch, dim, lane_target=256):
    """Smallest divisor Bt of `batch` with Bt*dim >= lane_target and a multiple of 128."""
    for bt in range(1, batch + 1):
        if batch % bt == 0 and bt * dim >= lane_target and (bt * dim) % 128 == 0:
            return bt
    return batch          # fallback: one grid step, block == full array dims (always legal)


def fftnet_layer(x, params, *, fast=False, lane_target=256):
    """FFTNetLayer forward.  x: (B, S, D) float32.  params: dict (see __main__)."""
    B, S, D = x.shape
    H = params["w1"].shape[1]

    Bt = _pick_batch_tile(B, D, lane_target)
    NB = B // Bt
    N = Bt * D                      # lane width of one tile
    HT = Bt * H

    # ---- real-FFT bases: half spectrum, rows padded to a sublane multiple ------
    F = S // 2 + 1
    Fp = ((F + 7) // 8) * 8
    k = jnp.arange(Fp, dtype=jnp.int32)
    n = jnp.arange(S, dtype=jnp.int32)
    # exact integer (k*n) mod S before casting to float (valid up to S ~ 46000).
    ang = (2.0 * jnp.pi / S) * ((k[:, None] * n[None, :]) % S).astype(jnp.float32)
    valid = (k < F).astype(jnp.float32)[:, None]
    cos_f = jnp.cos(ang) * valid                    # (Fp, S)
    sin_f = jnp.sin(ang) * valid
    fwd = jnp.concatenate([cos_f, sin_f], axis=0)   # (2*Fp, S): fused forward basis

    w = jnp.full((Fp,), 2.0, jnp.float32)           # conjugate-symmetry fold weights
    w = w.at[0].set(1.0)
    if S % 2 == 0:
        w = w.at[S // 2].set(1.0)
    w = w * (k < F).astype(jnp.float32)
    invc = (cos_f * (w[:, None] / S)).T             # (S, Fp)
    invs = (sin_f * (w[:, None] / S)).T             # (S, Fp)

    basis_dtype = jnp.bfloat16 if fast else jnp.float32
    fwd, invc, invs = (m.astype(basis_dtype) for m in (fwd, invc, invs))

    # ---- packed-layout parameter plumbing ---------------------------------------
    eye_bt = jnp.eye(Bt, dtype=jnp.float32)
    proj = jnp.kron(eye_bt, jnp.full((D, D), 1.0 / D, jnp.float32))   # (N, N)
    w1_bd = jnp.kron(eye_bt, params["w1"].astype(jnp.float32))        # (N, HT)
    w2_bd = jnp.kron(eye_bt, params["w2"].astype(jnp.float32))        # (HT, N)

    tile_d = lambda v: jnp.tile(jnp.reshape(v, (1, -1)), (1, Bt))     # (1,D) -> (1,N)
    g_in_t, b_in_t = tile_d(params["g_in"]), tile_d(params["b_in"])
    g_out_t, b_out_t = tile_d(params["g_out"]), tile_d(params["b_out"])
    base_t, modb_t = tile_d(params["base"]), tile_d(params["mod_b"])
    b2_t = tile_d(params["b2"])
    b1_t = jnp.tile(jnp.reshape(params["b1"], (1, -1)), (1, Bt))      # (1, HT)

    # pack (B, S, D) -> (S, B*D): seq on the contraction axis, batch*channel on lanes.
    x2 = jnp.transpose(x, (1, 0, 2)).reshape(S, B * D)

    const = lambda a: pl.BlockSpec(a.shape, lambda b: (0, 0))
    # NOTE: constant-index inputs are revisited (DMA skipped after step 0) but still
    # double-buffered.  # TODO(synk): single-buffer the big bases (pl.Buffered(1) or
    # memory_space=pl.ANY + one-time DMA) for very large S on v7x (64 MiB VMEM).

    itemsize = 2 if fast else 4
    vmem_est = (2 * (4 * 2 * S * N                                   # x/out blocks
                     + itemsize * (fwd.size + invc.size + invs.size)
                     + 4 * (proj.size + w1_bd.size + w2_bd.size)
                     + 4 * (7 * N + HT))
                + 16 * 4 * S * max(N, 2 * Fp))                        # kernel temporaries
    vmem_limit = int(min(max(vmem_est, 32 * 1024 * 1024), 64 * 1024 * 1024))

    out2 = pl.pallas_call(
        functools.partial(fftnet_kernel, f_pad=Fp, fast=fast),
        out_shape=jax.ShapeDtypeStruct((S, B * D), jnp.float32),
        grid=(NB,),
        in_specs=[
            pl.BlockSpec((S, N), lambda b: (0, b)),                   # x (packed)
            const(fwd), const(invc), const(invs), const(proj),
            const(g_in_t), const(b_in_t),
            const(w1_bd), const(b1_t), const(w2_bd), const(b2_t),
            const(base_t), const(modb_t),
            const(g_out_t), const(b_out_t),
        ],
        out_specs=pl.BlockSpec((S, N), lambda b: (0, b)),
        compiler_params=pltpu.CompilerParams(
            dimension_semantics=("parallel",),        # megacore splits batch tiles (v7x)
            vmem_limit_bytes=vmem_limit),
    )(x2, fwd, invc, invs, proj,
      g_in_t, b_in_t, w1_bd, b1_t, w2_bd, b2_t,
      base_t, modb_t, g_out_t, b_out_t)

    return out2.reshape(S, B, D).transpose(1, 0, 2)


# ----------------------------- pure-JAX reference --------------------------------
def _layernorm_ref(v, gamma, beta):
    mu = jnp.mean(v, axis=-1, keepdims=True)
    var = jnp.mean((v - mu) ** 2, axis=-1, keepdims=True)
    return (v - mu) * jax.lax.rsqrt(var + LN_EPS) * gamma + beta


def fftnet_reference(x, params):
    g_in, b_in = params["g_in"][0], params["b_in"][0]
    g_out, b_out = params["g_out"][0], params["b_out"][0]
    w1, b1 = params["w1"], params["b1"][0]
    w2, b2 = params["w2"], params["b2"][0]
    base, mod_b = params["base"][0], params["mod_b"][0]

    xn = _layernorm_ref(x, g_in, b_in)
    f = jnp.fft.fft(xn, axis=1)
    ctx = xn.mean(axis=1)                                   # (B, D)
    delta = jax.nn.gelu(ctx @ w1 + b1) @ w2 + b2            # (B, D)
    filt = base + delta[:, None, :]                         # (B, 1, D)
    f = f * filt
    mag = jnp.abs(f)
    scale = jnp.maximum(mag + mod_b, 0.0) / (mag + MODRELU_EPS)
    f = f * scale
    out = jnp.fft.ifft(f, axis=1).real
    out = out + x
    return _layernorm_ref(out, g_out, b_out)


if __name__ == "__main__":
    B, S, D, H = 8, 128, 64, 128    # -> Bt=4, N=256 lanes, grid=(2,)

    key = jax.random.PRNGKey(0)
    kx, k1, k2, kb = jax.random.split(key, 4)

    x = jax.random.normal(kx, (B, S, D), dtype=jnp.float32)

    params = {
        # LayerNorms
        "g_in": jnp.ones((1, D), jnp.float32),
        "b_in": jnp.zeros((1, D), jnp.float32),
        "g_out": jnp.ones((1, D), jnp.float32),
        "b_out": jnp.zeros((1, D), jnp.float32),
        # AdaptiveSpectralFilter MLP (D -> H -> D) + base filter
        "w1": jax.random.normal(k1, (D, H), jnp.float32) * (1.0 / jnp.sqrt(D)),
        "b1": jnp.zeros((1, H), jnp.float32),
        "w2": jax.random.normal(k2, (H, D), jnp.float32) * (1.0 / jnp.sqrt(H)),
        "b2": jnp.zeros((1, D), jnp.float32),
        "base": jnp.ones((1, D), jnp.float32),
        # ModReLU bias
        "mod_b": jax.random.uniform(kb, (1, D), jnp.float32, minval=-0.1, maxval=0.0),
    }

    ref = fftnet_reference(x, params)

    # Accurate f32 path.
    out = jax.block_until_ready(fftnet_layer(x, params, fast=False))
    assert out.shape == (B, S, D)
    assert bool(jnp.all(jnp.isfinite(out)))
    assert bool(jnp.allclose(out, ref, rtol=2e-3, atol=2e-3)), (
        f"f32 max diff {float(jnp.max(jnp.abs(out - ref)))}")

    # Fast path (bf16 DFT bases + approx EUP reciprocal), looser tolerance.
    out_fast = jax.block_until_ready(fftnet_layer(x, params, fast=True))
    assert bool(jnp.all(jnp.isfinite(out_fast)))
    assert bool(jnp.allclose(out_fast, ref, rtol=5e-2, atol=5e-2)), (
        f"fast max diff {float(jnp.max(jnp.abs(out_fast - ref)))}")

    print("KERNEL_OK")
</pallas_src>

<mosaic_0001>
module attributes {stable_mosaic.version = 11 : i64} {
  func.func @fftnet_kernel(%arg0: i32, %arg1: memref<128x256xf32, #tpu.memory_space<vmem>>, %arg2: memref<144x128xf32, #tpu.memory_space<vmem>>, %arg3: memref<128x72xf32, #tpu.memory_space<vmem>>, %arg4: memref<128x72xf32, #tpu.memory_space<vmem>>, %arg5: memref<256x256xf32, #tpu.memory_space<vmem>>, %arg6: memref<1x256xf32, #tpu.memory_space<vmem>>, %arg7: memref<1x256xf32, #tpu.memory_space<vmem>>, %arg8: memref<256x512xf32, #tpu.memory_space<vmem>>, %arg9: memref<1x512xf32, #tpu.memory_space<vmem>>, %arg10: memref<512x256xf32, #tpu.memory_space<vmem>>, %arg11: memref<1x256xf32, #tpu.memory_space<vmem>>, %arg12: memref<1x256xf32, #tpu.memory_space<vmem>>, %arg13: memref<1x256xf32, #tpu.memory_space<vmem>>, %arg14: memref<1x256xf32, #tpu.memory_space<vmem>>, %arg15: memref<1x256xf32, #tpu.memory_space<vmem>>, %arg16: memref<128x256xf32, #tpu.memory_space<vmem>>) attributes {dimension_semantics = [#tpu.dimension_semantics<parallel>], iteration_bounds = array<i64: 2>, scalar_prefetch = 0 : i64, scratch_operands = 0 : i64, tpu.core_type = #tpu.core_type<tc>, window_params = [{transform_indices = @transform_0, window_bounds = array<i64: 128, 256>}, {pipeline_mode = #tpu.pipeline_mode<synchronous>, transform_indices = @transform_1, window_bounds = array<i64: 144, 128>}, {pipeline_mode = #tpu.pipeline_mode<synchronous>, transform_indices = @transform_2, window_bounds = array<i64: 128, 72>}, {pipeline_mode = #tpu.pipeline_mode<synchronous>, transform_indices = @transform_3, window_bounds = array<i64: 128, 72>}, {pipeline_mode = #tpu.pipeline_mode<synchronous>, transform_indices = @transform_4, window_bounds = array<i64: 256, 256>}, {pipeline_mode = #tpu.pipeline_mode<synchronous>, transform_indices = @transform_5, window_bounds = array<i64: 1, 256>}, {pipeline_mode = #tpu.pipeline_mode<synchronous>, transform_indices = @transform_6, window_bounds = array<i64: 1, 256>}, {pipeline_mode = #tpu.pipeline_mode<synchronous>, transform_indices = @transform_7, window_bounds = array<i64: 256, 512>}, {pipeline_mode = #tpu.pipeline_mode<synchronous>, transform_indices = @transform_8, window_bounds = array<i64: 1, 512>}, {pipeline_mode = #tpu.pipeline_mode<synchronous>, transform_indices = @transform_9, window_bounds = array<i64: 512, 256>}, {pipeline_mode = #tpu.pipeline_mode<synchronous>, transform_indices = @transform_10, window_bounds = array<i64: 1, 256>}, {pipeline_mode = #tpu.pipeline_mode<synchronous>, transform_indices = @transform_11, window_bounds = array<i64: 1, 256>}, {pipeline_mode = #tpu.pipeline_mode<synchronous>, transform_indices = @transform_12, window_bounds = array<i64: 1, 256>}, {pipeline_mode = #tpu.pipeline_mode<synchronous>, transform_indices = @transform_13, window_bounds = array<i64: 1, 256>}, {pipeline_mode = #tpu.pipeline_mode<synchronous>, transform_indices = @transform_14, window_bounds = array<i64: 1, 256>}, {transform_indices = @transform_15, window_bounds = array<i64: 128, 256>}]} {
    %c0 = arith.constant 0 : index
    %c0_0 = arith.constant 0 : index
    %0 = vector.load %arg1[%c0, %c0_0] : memref<128x256xf32, #tpu.memory_space<vmem>>, vector<128x256xf32>
    %c0_1 = arith.constant 0 : index
    %c0_2 = arith.constant 0 : index
    %1 = vector.load %arg5[%c0_1, %c0_2] : memref<256x256xf32, #tpu.memory_space<vmem>>, vector<256x256xf32>
    %c0_3 = arith.constant 0 : index
    %c0_4 = arith.constant 0 : index
    %2 = vector.load %arg6[%c0_3, %c0_4] : memref<1x256xf32, #tpu.memory_space<vmem>>, vector<1x256xf32>
    %c0_5 = arith.constant 0 : index
    %c0_6 = arith.constant 0 : index
    %3 = vector.load %arg7[%c0_5, %c0_6] : memref<1x256xf32, #tpu.memory_space<vmem>>, vector<1x256xf32>
    %cst = arith.constant dense<0.000000e+00> : vector<128x256xf32>
    %4 = tpu.matmul %0, %1, %cst {dimension_numbers = #tpu.dot_dimension_numbers<[1], [0], [0], [1], [0, 0, 1, 1], [], []>} : vector<128x256xf32>, vector<256x256xf32>, vector<128x256xf32> -> vector<128x256xf32>
    %5 = arith.subf %0, %4 : vector<128x256xf32>
    %6 = arith.subf %0, %4 : vector<128x256xf32>
    %7 = arith.mulf %5, %6 : vector<128x256xf32>
    %cst_7 = arith.constant dense<0.000000e+00> : vector<128x256xf32>
    %8 = tpu.matmul %7, %1, %cst_7 {dimension_numbers = #tpu.dot_dimension_numbers<[1], [0], [0], [1], [0, 0, 1, 1], [], []>} : vector<128x256xf32>, vector<256x256xf32>, vector<128x256xf32> -> vector<128x256xf32>
    %9 = arith.subf %0, %4 : vector<128x256xf32>
    %cst_8 = arith.constant 9.99999974E-6 : f32
    %10 = vector.broadcast %cst_8 : f32 to vector<128x256xf32>
    %11 = arith.addf %8, %10 : vector<128x256xf32>
    %12 = math.rsqrt %11 : vector<128x256xf32>
    %13 = arith.mulf %9, %12 : vector<128x256xf32>
    %14 = vector.broadcast %2 : vector<1x256xf32> to vector<128x256xf32>
    %15 = arith.mulf %13, %14 : vector<128x256xf32>
    %16 = vector.broadcast %3 : vector<1x256xf32> to vector<128x256xf32>
    %17 = arith.addf %15, %16 : vector<128x256xf32>
    %c0_9 = arith.constant 0 : index
    %c0_10 = arith.constant 0 : index
    %18 = vector.load %arg2[%c0_9, %c0_10] : memref<144x128xf32, #tpu.memory_space<vmem>>, vector<144x128xf32>
    %cst_11 = arith.constant dense<0.000000e+00> : vector<144x256xf32>
    %19 = tpu.matmul %18, %17, %cst_11 {dimension_numbers = #tpu.dot_dimension_numbers<[1], [0], [0], [1], [0, 0, 1, 1], [], []>} : vector<144x128xf32>, vector<128x256xf32>, vector<144x256xf32> -> vector<144x256xf32>
    %cst_12 = arith.constant dense<0.000000e+00> : vector<256xf32>
    %20 = vector.multi_reduction <add>, %17, %cst_12 [0] : vector<128x256xf32> to vector<256xf32>
    %21 = vector.shape_cast %20 : vector<256xf32> to vector<1x256xf32>
    %cst_13 = arith.constant 1.280000e+02 : f32
    %22 = vector.broadcast %cst_13 : f32 to vector<1x256xf32>
    %23 = arith.divf %21, %22 : vector<1x256xf32>
    %c0_14 = arith.constant 0 : index
    %c0_15 = arith.constant 0 : index
    %24 = vector.load %arg8[%c0_14, %c0_15] : memref<256x512xf32, #tpu.memory_space<vmem>>, vector<256x512xf32>
    %cst_16 = arith.constant dense<0.000000e+00> : vector<1x512xf32>
    %25 = tpu.matmul %23, %24, %cst_16 {dimension_numbers = #tpu.dot_dimension_numbers<[1], [0], [0], [1], [0, 0, 1, 1], [], []>} : vector<1x256xf32>, vector<256x512xf32>, vector<1x512xf32> -> vector<1x512xf32>
    %c0_17 = arith.constant 0 : index
    %c0_18 = arith.constant 0 : index
    %26 = vector.load %arg9[%c0_17, %c0_18] : memref<1x512xf32, #tpu.memory_space<vmem>>, vector<1x512xf32>
    %27 = arith.addf %25, %26 : vector<1x512xf32>
    %28 = arith.mulf %27, %27 : vector<1x512xf32>
    %29 = arith.mulf %27, %28 : vector<1x512xf32>
    %cst_19 = arith.constant 4.471500e-02 : f32
    %30 = vector.broadcast %cst_19 : f32 to vector<1x512xf32>
    %31 = arith.mulf %30, %29 : vector<1x512xf32>
    %32 = arith.addf %27, %31 : vector<1x512xf32>
    %cst_20 = arith.constant 0.797884583 : f32
    %33 = vector.broadcast %cst_20 : f32 to vector<1x512xf32>
    %34 = arith.mulf %33, %32 : vector<1x512xf32>
    %35 = math.tanh %34 : vector<1x512xf32>
    %cst_21 = arith.constant 1.000000e+00 : f32
    %36 = vector.broadcast %cst_21 : f32 to vector<1x512xf32>
    %37 = arith.addf %36, %35 : vector<1x512xf32>
    %cst_22 = arith.constant 5.000000e-01 : f32
    %38 = vector.broadcast %cst_22 : f32 to vector<1x512xf32>
    %39 = arith.mulf %38, %37 : vector<1x512xf32>
    %40 = arith.mulf %27, %39 : vector<1x512xf32>
    %c0_23 = arith.constant 0 : index
    %c0_24 = arith.constant 0 : index
    %41 = vector.load %arg10[%c0_23, %c0_24] : memref<512x256xf32, #tpu.memory_space<vmem>>, vector<512x256xf32>
    %cst_25 = arith.constant dense<0.000000e+00> : vector<1x256xf32>
    %42 = tpu.matmul %40, %41, %cst_25 {dimension_numbers = #tpu.dot_dimension_numbers<[1], [0], [0], [1], [0, 0, 1, 1], [], []>} : vector<1x512xf32>, vector<512x256xf32>, vector<1x256xf32> -> vector<1x256xf32>
    %c0_26 = arith.constant 0 : index
    %c0_27 = arith.constant 0 : index
    %43 = vector.load %arg11[%c0_26, %c0_27] : memref<1x256xf32, #tpu.memory_space<vmem>>, vector<1x256xf32>
    %44 = arith.addf %42, %43 : vector<1x256xf32>
    %c0_28 = arith.constant 0 : index
    %c0_29 = arith.constant 0 : index
    %45 = vector.load %arg12[%c0_28, %c0_29] : memref<1x256xf32, #tpu.memory_space<vmem>>, vector<1x256xf32>
    %46 = arith.addf %45, %44 : vector<1x256xf32>
    %47 = vector.extract_strided_slice %19 {offsets = [0, 0], sizes = [72, 256], strides = [1, 1]} : vector<144x256xf32> to vector<72x256xf32>
    %48 = vector.broadcast %46 : vector<1x256xf32> to vector<72x256xf32>
    %49 = arith.mulf %47, %48 : vector<72x256xf32>
    %50 = vector.extract_strided_slice %19 {offsets = [72, 0], sizes = [72, 256], strides = [1, 1]} : vector<144x256xf32> to vector<72x256xf32>
    %51 = vector.broadcast %46 : vector<1x256xf32> to vector<72x256xf32>
    %52 = arith.mulf %50, %51 : vector<72x256xf32>
    %53 = arith.mulf %49, %49 : vector<72x256xf32>
    %54 = arith.mulf %52, %52 : vector<72x256xf32>
    %55 = arith.addf %53, %54 : vector<72x256xf32>
    %56 = math.sqrt %55 : vector<72x256xf32>
    %c0_30 = arith.constant 0 : index
    %c0_31 = arith.constant 0 : index
    %57 = vector.load %arg13[%c0_30, %c0_31] : memref<1x256xf32, #tpu.memory_space<vmem>>, vector<1x256xf32>
    %58 = vector.broadcast %57 : vector<1x256xf32> to vector<72x256xf32>
    %59 = arith.addf %56, %58 : vector<72x256xf32>
    %cst_32 = arith.constant 0.000000e+00 : f32
    %60 = vector.broadcast %cst_32 : f32 to vector<72x256xf32>
    %61 = arith.maximumf %59, %60 : vector<72x256xf32>
    %cst_33 = arith.constant 9.99999993E-9 : f32
    %62 = vector.broadcast %cst_33 : f32 to vector<72x256xf32>
    %63 = arith.addf %56, %62 : vector<72x256xf32>
    %64 = tpu.reciprocal %63 : vector<72x256xf32> -> vector<72x256xf32>
    %65 = arith.mulf %61, %64 : vector<72x256xf32>
    %66 = arith.mulf %49, %65 : vector<72x256xf32>
    %67 = arith.mulf %52, %65 : vector<72x256xf32>
    %c0_34 = arith.constant 0 : index
    %c0_35 = arith.constant 0 : index
    %68 = vector.load %arg3[%c0_34, %c0_35] : memref<128x72xf32, #tpu.memory_space<vmem>>, vector<128x72xf32>
    %cst_36 = arith.constant dense<0.000000e+00> : vector<128x256xf32>
    %69 = tpu.matmul %68, %66, %cst_36 {dimension_numbers = #tpu.dot_dimension_numbers<[1], [0], [0], [1], [0, 0, 1, 1], [], []>} : vector<128x72xf32>, vector<72x256xf32>, vector<128x256xf32> -> vector<128x256xf32>
    %c0_37 = arith.constant 0 : index
    %c0_38 = arith.constant 0 : index
    %70 = vector.load %arg4[%c0_37, %c0_38] : memref<128x72xf32, #tpu.memory_space<vmem>>, vector<128x72xf32>
    %cst_39 = arith.constant dense<0.000000e+00> : vector<128x256xf32>
    %71 = tpu.matmul %70, %67, %cst_39 {dimension_numbers = #tpu.dot_dimension_numbers<[1], [0], [0], [1], [0, 0, 1, 1], [], []>} : vector<128x72xf32>, vector<72x256xf32>, vector<128x256xf32> -> vector<128x256xf32>
    %72 = arith.addf %69, %71 : vector<128x256xf32>
    %73 = arith.addf %72, %0 : vector<128x256xf32>
    %c0_40 = arith.constant 0 : index
    %c0_41 = arith.constant 0 : index
    %74 = vector.load %arg14[%c0_40, %c0_41] : memref<1x256xf32, #tpu.memory_space<vmem>>, vector<1x256xf32>
    %c0_42 = arith.constant 0 : index
    %c0_43 = arith.constant 0 : index
    %75 = vector.load %arg15[%c0_42, %c0_43] : memref<1x256xf32, #tpu.memory_space<vmem>>, vector<1x256xf32>
    %cst_44 = arith.constant dense<0.000000e+00> : vector<128x256xf32>
    %76 = tpu.matmul %73, %1, %cst_44 {dimension_numbers = #tpu.dot_dimension_numbers<[1], [0], [0], [1], [0, 0, 1, 1], [], []>} : vector<128x256xf32>, vector<256x256xf32>, vector<128x256xf32> -> vector<128x256xf32>
    %77 = arith.subf %73, %76 : vector<128x256xf32>
    %78 = arith.subf %73, %76 : vector<128x256xf32>
    %79 = arith.mulf %77, %78 : vector<128x256xf32>
    %cst_45 = arith.constant dense<0.000000e+00> : vector<128x256xf32>
    %80 = tpu.matmul %79, %1, %cst_45 {dimension_numbers = #tpu.dot_dimension_numbers<[1], [0], [0], [1], [0, 0, 1, 1], [], []>} : vector<128x256xf32>, vector<256x256xf32>, vector<128x256xf32> -> vector<128x256xf32>
    %81 = arith.subf %73, %76 : vector<128x256xf32>
    %cst_46 = arith.constant 9.99999974E-6 : f32
    %82 = vector.broadcast %cst_46 : f32 to vector<128x256xf32>
    %83 = arith.addf %80, %82 : vector<128x256xf32>
    %84 = math.rsqrt %83 : vector<128x256xf32>
    %85 = arith.mulf %81, %84 : vector<128x256xf32>
    %86 = vector.broadcast %74 : vector<1x256xf32> to vector<128x256xf32>
    %87 = arith.mulf %85, %86 : vector<128x256xf32>
    %88 = vector.broadcast %75 : vector<1x256xf32> to vector<128x256xf32>
    %89 = arith.addf %87, %88 : vector<128x256xf32>
    %c0_47 = arith.constant 0 : index
    %c0_48 = arith.constant 0 : index
    %90 = vector.load %arg16[%c0_47, %c0_48] : memref<128x256xf32, #tpu.memory_space<vmem>>, vector<128x256xf32>
    tpu.vector_store %arg16[%c0_47, %c0_48], %89 {strides = array<i32>} : memref<128x256xf32, #tpu.memory_space<vmem>>, vector<128x256xf32>,
    return
  }
  func.func @transform_0(%arg0: i32) -> (i32, i32) {
    %c0_i32 = arith.constant 0 : i32
    %c0_i32_0 = arith.constant 0 : i32
    return %c0_i32, %arg0 : i32, i32
  }
  func.func @transform_1(%arg0: i32) -> (i32, i32) {
    %c0_i32 = arith.constant 0 : i32
    %c0_i32_0 = arith.constant 0 : i32
    %c0_i32_1 = arith.constant 0 : i32
    return %c0_i32, %c0_i32_0 : i32, i32
  }
  func.func @transform_2(%arg0: i32) -> (i32, i32) {
    %c0_i32 = arith.constant 0 : i32
    %c0_i32_0 = arith.constant 0 : i32
    %c0_i32_1 = arith.constant 0 : i32
    return %c0_i32, %c0_i32_0 : i32, i32
  }
  func.func @transform_3(%arg0: i32) -> (i32, i32) {
    %c0_i32 = arith.constant 0 : i32
    %c0_i32_0 = arith.constant 0 : i32
    %c0_i32_1 = arith.constant 0 : i32
    return %c0_i32, %c0_i32_0 : i32, i32
  }
  func.func @transform_4(%arg0: i32) -> (i32, i32) {
    %c0_i32 = arith.constant 0 : i32
    %c0_i32_0 = arith.constant 0 : i32
    %c0_i32_1 = arith.constant 0 : i32
    return %c0_i32, %c0_i32_0 : i32, i32
  }
  func.func @transform_5(%arg0: i32) -> (i32, i32) {
    %c0_i32 = arith.constant 0 : i32
    %c0_i32_0 = arith.constant 0 : i32
    %c0_i32_1 = arith.constant 0 : i32
    return %c0_i32, %c0_i32_0 : i32, i32
  }
  func.func @transform_6(%arg0: i32) -> (i32, i32) {
    %c0_i32 = arith.constant 0 : i32
    %c0_i32_0 = arith.constant 0 : i32
    %c0_i32_1 = arith.constant 0 : i32
    return %c0_i32, %c0_i32_0 : i32, i32
  }
  func.func @transform_7(%arg0: i32) -> (i32, i32) {
    %c0_i32 = arith.constant 0 : i32
    %c0_i32_0 = arith.constant 0 : i32
    %c0_i32_1 = arith.constant 0 : i32
    return %c0_i32, %c0_i32_0 : i32, i32
  }
  func.func @transform_8(%arg0: i32) -> (i32, i32) {
    %c0_i32 = arith.constant 0 : i32
    %c0_i32_0 = arith.constant 0 : i32
    %c0_i32_1 = arith.constant 0 : i32
    return %c0_i32, %c0_i32_0 : i32, i32
  }
  func.func @transform_9(%arg0: i32) -> (i32, i32) {
    %c0_i32 = arith.constant 0 : i32
    %c0_i32_0 = arith.constant 0 : i32
    %c0_i32_1 = arith.constant 0 : i32
    return %c0_i32, %c0_i32_0 : i32, i32
  }
  func.func @transform_10(%arg0: i32) -> (i32, i32) {
    %c0_i32 = arith.constant 0 : i32
    %c0_i32_0 = arith.constant 0 : i32
    %c0_i32_1 = arith.constant 0 : i32
    return %c0_i32, %c0_i32_0 : i32, i32
  }
  func.func @transform_11(%arg0: i32) -> (i32, i32) {
    %c0_i32 = arith.constant 0 : i32
    %c0_i32_0 = arith.constant 0 : i32
    %c0_i32_1 = arith.constant 0 : i32
    return %c0_i32, %c0_i32_0 : i32, i32
  }
  func.func @transform_12(%arg0: i32) -> (i32, i32) {
    %c0_i32 = arith.constant 0 : i32
    %c0_i32_0 = arith.constant 0 : i32
    %c0_i32_1 = arith.constant 0 : i32
    return %c0_i32, %c0_i32_0 : i32, i32
  }
  func.func @transform_13(%arg0: i32) -> (i32, i32) {
    %c0_i32 = arith.constant 0 : i32
    %c0_i32_0 = arith.constant 0 : i32
    %c0_i32_1 = arith.constant 0 : i32
    return %c0_i32, %c0_i32_0 : i32, i32
  }
  func.func @transform_14(%arg0: i32) -> (i32, i32) {
    %c0_i32 = arith.constant 0 : i32
    %c0_i32_0 = arith.constant 0 : i32
    %c0_i32_1 = arith.constant 0 : i32
    return %c0_i32, %c0_i32_0 : i32, i32
  }
  func.func @transform_15(%arg0: i32) -> (i32, i32) {
    %c0_i32 = arith.constant 0 : i32
    %c0_i32_0 = arith.constant 0 : i32
    return %c0_i32, %arg0 : i32, i32
  }
}

</mosaic_0001>

<bundles_post_ra>
// kernel: tpu_custom_call.1
= control target key start
LH: loop header
LB: loop body
LE: loop exit
PB: predicated region body
PF: predicated region fallthrough
CT: control target
= control target key end

     0   :  { %s9114_s0 = inlined_call_operand.hbm [shape: f32[128,512], index: 0, kind: input, shape index: {}]   ;;  %s9115_s1 = inlined_call_operand.vmem [shape: f32[144,128], index: 1, kind: input, shape index: {}]   ;;  %s9116_s2 = inlined_call_operand.vmem [shape: f32[128,72], index: 2, kind: input, shape index: {}]   ;;  %s9117_s3 = inlined_call_operand.vmem [shape: f32[128,72], index: 3, kind: input, shape index: {}]   ;;  %s9118_s4 = inlined_call_operand.hbm [shape: f32[256,256], index: 4, kind: input, shape index: {}]   ;;  %s9119_s5 = inlined_call_operand.vmem [shape: f32[1,256], index: 5, kind: input, shape index: {}]   ;;  %s9120_s6 = inlined_call_operand.vmem [shape: f32[1,256], index: 6, kind: input, shape index: {}]   ;;  %s9121_s7 = inlined_call_operand.hbm [shape: f32[256,512], index: 7, kind: input, shape index: {}]   ;;  %s9122_s8 = inlined_call_operand.vmem [shape: f32[1,512], index: 8, kind: input, shape index: {}]   ;;  %s9123_s9 = inlined_call_operand.hbm [shape: f32[512,256], index: 9, kind: input, shape index: {}]   ;;  %s9124_s10 = inlined_call_operand.vmem [shape: f32[1,256], index: 10, kind: input, shape index: {}]   ;;  %s9125_s11 = inlined_call_operand.vmem [shape: f32[1,256], index: 11, kind: input, shape index: {}]   ;;  %s9126_s12 = inlined_call_operand.vmem [shape: f32[1,256], index: 12, kind: input, shape index: {}]   ;;  %s9127_s13 = inlined_call_operand.vmem [shape: f32[1,256], index: 13, kind: input, shape index: {}]   ;;  %s9128_s14 = inlined_call_operand.vmem [shape: f32[1,256], index: 14, kind: input, shape index: {}]   ;;  %s9129_s15 = inlined_call_operand.hbm [shape: f32[128,512], index: 15, kind: output, shape index: {}]  }
   0x1   :  { %9163 = sst [smem:[#allocation37_spill]] %s9118_s4 }
   0x2   :  { %9164 = sst [smem:[#allocation38_spill]] %s9121_s7 }
   0x3   :  { %9165 = sst [smem:[#allocation39_spill]] %s9123_s9 }
   0x4   :  { %9166 = sst [smem:[#allocation40_spill]] %s9127_s13 }
   0x5   :  { %9167 = sst [smem:[#allocation41_spill]] %s9128_s14 }
   0x6   :  { %9168 = sst [smem:[#allocation42_spill]] %s9129_s15 }
   0x7   :  { %20 = vsyncpa [#allocation3], 0 }
   0x8   :  { %22 = vsyncpa [#allocation3 + $0x1], 0 }
   0x9   :  { %23 = vsyncpa [#allocation6], 0 }
   0xa   :  { %24 = vsyncpa [#allocation9], 0 }
   0xb   :  { %25 = vsyncpa [#allocation4], 0 }
   0xc   :  { %27 = vsyncpa [#allocation4 + $0x1], 0  ;;  %s5578_s18 = smov 0   ;;  %s5580_s19 = smov 0  }
   0xd   :  { %s5582_s20 = smov 0   ;;  %s5584_s21 = smov 0  }
   0xe LB: > { %9169 = sst [smem:[#allocation15_spill]] %s5473_s18  ;;  %s5599_s22 = sadd.s32 4294967295, %s5485_s21   ;;  %s5485_s21 = sphi %s5584_s21, %s9338_s21   ;;  %s5481_s20 = sphi %s5582_s20, %s9335_s20   ;;  %s5477_s19 = sphi %s5580_s19, %s9337_s19   ;;  %s5473_s18 = sphi %s5578_s18, %s9336_s18  }
   0xf   : > { %9170 = sst [smem:[#allocation16_spill]] %s5481_s20  ;;  %s4782_s23 = sadd.s32 4294967294, %s5485_s21  }
  0x10   : > { %p53_p0 = scmp.ne.s32.totalorder %s5477_s19, %s5473_s18  ;;  %p54_p1 = scmp.eq.s32.totalorder %s5599_s22, 0 }
  0x11   : > { %p371_p2 = scmp.eq.s32.totalorder %s5599_s22, 1  ;;  %p377_p3 = scmp.eq.s32.totalorder %s4782_s23, 1 }
  0x12   : > { %p5608_p4 = por %p54_p1, %p53_p0  ;;  %p4783_p5 = scmp.ge.s32.totalorder %s5485_s21, 1 }
  0x13   : > { %p5613_p6 = por %p377_p3, %p53_p0  ;;  %p384_p7 = scmp.lt.s32.totalorder %s5485_s21, 3 }
  0x14   : > { %s9174_s4 = sld [smem:[#allocation37_spill]]  ;;  %s5487_s30 = smov [#allocation5]  }
  0x15   : > { %s9172_s25 = scalar_select %p5613_p6, 1, 0 }
  0x16   : > { %p5621_p8 = pnand %p4783_p5, %p384_p7  ;;  %s406_s16 = sshll.u32 %s5487_s30, 4  ;;  %s407_s16 = int_to_ptr.vmem [resolvable:$true] %s406_s16 }
  0x17   : > { %9173 = sst [smem:[#allocation17_spill]] %s9172_s25  ;;  %s9135_s25 = smov 16  }
  0x18   : > { %p4916_p9 = pneg %p5621_p8  ;;  %s9177_s7 = sld [smem:[#allocation38_spill]] }
  0x19   : > { %s5490_s30 = smov [#allocation7]   ;;  %s9133_s23 = smov 512  }
  0x1a   : > { %s404_s28 = sshll.u32 %s9174_s4, 4  ;;  %p5629_p10 = pnand %p4916_p9, %p54_p1  ;;  %s405_s28 = int_to_ptr.hbm [resolvable:$true] %s404_s28 }
  0x1b   : > { %s9134_s4 = smov 256   ;;  %s426_s18 = sshll.u32 %s5490_s30, 4  ;;  %s427_s18 = int_to_ptr.vmem [resolvable:$true] %s426_s18 }
  0x1c   : > { %4919 = dma.hbm_to_vmem [thread:$0]  (!%p5629_p10), %s405_s28, 8192, %s407_s16, [#allocation6], %s9134_s4, %s9134_s4, %s9135_s25  }
  0x1d   : > { %s5492_s26 = smov 32   ;;  %s9178_s9 = sld [smem:[#allocation39_spill]] }
  0x1e   : > { %s424_s27 = sshll.u32 %s9177_s7, 4  ;;  %s5493_s16 = smov [#allocation8]   ;;  %s425_s27 = int_to_ptr.hbm [resolvable:$true] %s424_s27 }
  0x1f   : > { %4922 = dma.hbm_to_vmem [thread:$0]  (!%p5629_p10), %s425_s27, 16384, %s427_s18, [#allocation6], %s9133_s23, %s9133_s23, %s5492_s26  }
  0x20   : > { %s443_s30 = sshll.u32 %s5493_s16, 4  ;;  %s5655_s14 = sadd.s32 1, %s5485_s21   ;;  %s444_s30 = int_to_ptr.vmem [resolvable:$true] %s443_s30 }
  0x21   : > { %s37_s13 = ssub.s32 %s5485_s21, %s5655_s14  ;;  %s40_s18 = sadd.s32 1, %s5481_s20 }
  0x22   : > { %p38_p12 = scmp.eq.s32.totalorder %s37_s13, 0  ;;  %p47_p13 = scmp.ne.s32.totalorder %s5481_s20, %s5477_s19 }
  0x23   : > { %s441_s28 = sshll.u32 %s9178_s9, 4  ;;  %p48_p0 = scmp.eq.s32.totalorder %s5485_s21, 0  ;;  %s442_s28 = int_to_ptr.hbm [resolvable:$true] %s441_s28 }
  0x24   : > { %4925 = dma.hbm_to_vmem [thread:$0]  (!%p5629_p10), %s442_s28, 16384, %s444_s30, [#allocation9], %s9134_s4, %s9134_s4, %s9135_s25  }
  0x25   : > { %s5664_s7 = scalar_select %p38_p12, %s5481_s20, %s40_s18  }
  0x26   : > { %p5668_p3 = por %p371_p2, %p47_p13  ;;  %p4937_p5 = scmp.lt.s32.totalorder %s5485_s21, 2 }
  0x27   : > { %9179 = sst [smem:[#allocation18_spill]] %s5664_s7  ;;  %s472_s17 = sand.u32 1, %s5481_s20  }
  0x28   : > { %s4866_s27 = sshll.u32 %s5485_s21, 4  ;;  %p49_p7 = por %p48_p0, %p47_p13 }
  0x29   : > { %s4788_s26 = sshll.u32 %s472_s17, 8  ;;  %s481_s30 = scalar_lea.hbm %s9114_s0, %s4866_s27 }
  0x2a   : > { %s482_s23 = sshll.u32 %s481_s30, 4  ;;  %s476_s13 = scalar_lea.vmem [#allocation2], %s4788_s26  ;;  %s483_s23 = int_to_ptr.hbm [resolvable:$true] %s482_s23 }
  0x2b   : > { %s484_s4 = sshll.u32 %s476_s13, 4  ;;  %p5678_p9 = pnand %p4937_p5, %p49_p7  ;;  %s485_s4 = int_to_ptr.vmem [resolvable:$true] %s484_s4 }
  0x2c   : > { %s473_s25 = scalar_lea.sflag [#allocation3], %s472_s17  ;;  %s5381_s9 = sshra.s32 %s483_s23, 4  ;;  %s5382_s9 = int_to_ptr.hbm [resolvable:$true] %s5381_s9 }
  0x2d   : > { %s5383_s7 = scalar_lea.hbm %s5382_s9, 256  ;;  %p5385_p10 = pneg %p5678_p9 }
  0x2e   : > { %p5384_p2 = scmp.ne.s32.totalorder %s5382_s9, %s5383_s7  ;;  %s5388_s26 = scalar_lea.hbm %s9114_s0, 512 }
  0x2f   : > { %p5389_p0 = scmp.lt.s32.totalorder %s5382_s9, %s9114_s0  ;;  %p5390_p5 = scmp.lt.s32.totalorder %s5388_s26, %s5383_s7 }
  0x30   : > { %p5386_p12 = pnand %p5385_p10, %p5384_p2 }
  0x31   : > { %p5391_p7 = por %p5390_p5, %p5389_p0 }
  0x32   : > { %p5387_p13 = pneg %p5386_p12 }
  0x34   : > { %p5392_p11 = pnand %p5391_p7, %p5387_p13 }
  0x36   : > { %5395 = shalt.err (!%p5392_p11)
}
  0x37   : > { %s9182_s17 = smov 16   ;;  %s9183_s13 = smov 256  }
  0x38   : > { %s9184_s20 = smov 512   ;;  %496 = sbr.rel (%p5621_p8) target bundleno = 1651 (0x673), region = 80 }
  0x39   : > { %4929 = dma.hbm_to_vmem [thread:$0]  (!%p5678_p9), %s483_s23, 4096, %s485_s4, %s473_s25, %s9184_s20, %s9183_s13, %s9182_s17  }
  0x3d   : > { %s5698_s27 = sand.u32 1, %s5477_s19  }
  0x3e   : > { %s4792_s9 = sshll.u32 %s5698_s27, 8  ;;  %s499_s7 = scalar_lea.sflag [#allocation3], %s5698_s27 }
  0x3f   : > { %s5704_s28 = scalar_lea.vmem [#allocation2], %s4792_s9 }
  0x40   : > { %5456 = dma.done.wait (%p5608_p4), %s499_s7, 4096  }
  0x41   : > { %5458 = vsyncadd (%p5608_p4), %s499_s7, 4294963200 }
  0x42   : > { %5460 = dma.done.wait (%p54_p1), [#allocation6], 24576  }
  0x43   : > { %5462 = vsyncadd (%p54_p1), [#allocation6], 4294942720 }
  0x44   : > { %5464 = dma.done.wait (%p54_p1), [#allocation9], 16384  }
  0x45   : > { %5466 = vsyncadd (%p54_p1), [#allocation9], 4294950912  ;;  %v5718_v0 = vld [vmem:[#allocation5 + $0xf8] sm:$0xff]  ;;  %v5722_v2 = vld [vmem:[#allocation5 + $0xe8] sm:$0xff]  ;;  %s9328_s30 = sld [smem:[#allocation40_spill]]  ;;  %s8784_s4 = scalar_lea.vmem [#allocation10], %s4792_s9 }
  0x46   : > { %v5720_v1 = vld [vmem:[#allocation5 + $0x1f8] sm:$0xff]  ;;  %795 = vmatpush.msra.mxu2 %v5718_v0  ;;  %v5726_v3 = vld [vmem:[#allocation5 + $0x1e8] sm:$0xff]  ;;  %v5728_v4 = vld [vmem:[#allocation5 + $0xf0] sm:$0xff]  ;;  %s9329_s7 = sld [smem:[#allocation41_spill]]  ;;  %s4867_s9 = sshll.u32 %s5599_s22, 4 }
  0x47   : > { %860 = vmatpush.msra.mxu3 %v5720_v1  ;;  %v5730_v5 = vld [vmem:[#allocation5 + $0x1f0] sm:$0xff]  ;;  %665 = vmatpush.msra.mxu0 %v5728_v4  ;;  %v5734_v6 = vld [vmem:[#allocation5 + $0xd8] sm:$0xff]  ;;  %v5738_v8 = vld [vmem:[#allocation5 + $0xe0] sm:$0xff]  ;;  %s9330_s25 = sld [smem:[#allocation42_spill]]  ;;  %s4677_s23 = sshll.u32 %s8784_s4, 4  ;;  %s4678_s23 = int_to_ptr.vmem [resolvable:$true] %s4677_s23 }
  0x48   : > { %730 = vmatpush.msra.mxu1 %v5730_v5  ;;  %v5736_v7 = vld [vmem:[#allocation5 + $0x1d8] sm:$0xff]  ;;  %796 = vmatpush.msra.mxu2 %v5722_v2  ;;  %v5742_v9 = vld [vmem:[#allocation5 + $0x1e0] sm:$0xff]  ;;  %v5744_v10 = vld [vmem:[#allocation5 + $0xc8] sm:$0xff]  ;;  %s4665_s18 = scalar_lea.sflag [#allocation4], %s5698_s27 }
  0x49   : > { %861 = vmatpush.msra.mxu3 %v5726_v3  ;;  %666 = vmatpush.msra.mxu0 %v5738_v8  ;;  %v5748_v11 = vld [vmem:[#allocation5 + $0x1c8] sm:$0xff]  ;;  %v5750_v12 = vld [vmem:[#allocation5 + $0xd0] sm:$0xff]  ;;  %v5756_v14 = vld [vmem:[#allocation5 + $0xc0] sm:$0xff] }
  0x4a   : > { %731 = vmatpush.msra.mxu1 %v5742_v9  ;;  %v5752_v13 = vld [vmem:[#allocation5 + $0x1d0] sm:$0xff]  ;;  %797 = vmatpush.msra.mxu2 %v5734_v6  ;;  %v5758_v15 = vld [vmem:[#allocation5 + $0x1c0] sm:$0xff]  ;;  %v5762_v16 = vld [vmem:[#allocation5 + $0xb8] sm:$0xff] }
  0x4b   : > { %862 = vmatpush.msra.mxu3 %v5736_v7  ;;  %667 = vmatpush.msra.mxu0 %v5750_v12  ;;  %v5764_v17 = vld [vmem:[#allocation5 + $0x1b8] sm:$0xff]  ;;  %v5768_v18 = vld [vmem:[#allocation5 + $0xb0] sm:$0xff]  ;;  %v5774_v20 = vld [vmem:[#allocation5 + $0xa8] sm:$0xff] }
  0x4c   : > { %732 = vmatpush.msra.mxu1 %v5752_v13  ;;  %798 = vmatpush.msra.mxu2 %v5744_v10  ;;  %v5770_v19 = vld [vmem:[#allocation5 + $0x1b0] sm:$0xff]  ;;  %v5776_v21 = vld [vmem:[#allocation5 + $0x1a8] sm:$0xff]  ;;  %v5780_v22 = vld [vmem:[#allocation5 + $0xa0] sm:$0xff] }
  0x4d   : > { %863 = vmatpush.msra.mxu3 %v5748_v11  ;;  %668 = vmatpush.msra.mxu0 %v5756_v14  ;;  %v5782_v23 = vld [vmem:[#allocation5 + $0x1a0] sm:$0xff]  ;;  %v5786_v24 = vld [vmem:[#allocation5 + $0x98] sm:$0xff]  ;;  %v5792_v26 = vld [vmem:[#allocation5 + $0x90] sm:$0xff]  ;;  %s4676_s29 = scalar_lea.hbm %s9330_s25, %s4867_s9  ;;  %s5431_s17 = scalar_lea.hbm %s9330_s25, 512 }
  0x4e   : > { %733 = vmatpush.msra.mxu1 %v5758_v15  ;;  %799 = vmatpush.msra.mxu2 %v5762_v16  ;;  %v5788_v25 = vld [vmem:[#allocation5 + $0x198] sm:$0xff]  ;;  %v5794_v27 = vld [vmem:[#allocation5 + $0x190] sm:$0xff]  ;;  %v5798_v28 = vld [vmem:[#allocation5 + $0x88] sm:$0xff]  ;;  %s4679_s22 = sshll.u32 %s4676_s29, 4  ;;  %s4680_s22 = int_to_ptr.hbm [resolvable:$true] %s4679_s22 }
  0x4f   : > { %864 = vmatpush.msra.mxu3 %v5764_v17  ;;  %669 = vmatpush.msra.mxu0 %v5768_v18  ;;  %v5800_v29 = vld [vmem:[#allocation5 + $0x188] sm:$0xff]  ;;  %v5804_v30 = vld [vmem:[#allocation5 + $0x80] sm:$0xff]  ;;  %v5810_v32 = vld [vmem:[#allocation5 + $0x78] sm:$0xff]  ;;  %s5425_s26 = sshra.s32 %s4680_s22, 4  ;;  %s5426_s26 = int_to_ptr.hbm [resolvable:$true] %s5425_s26 }
  0x50   : > { %734 = vmatpush.msra.mxu1 %v5770_v19  ;;  %800 = vmatpush.msra.mxu2 %v5774_v20  ;;  %v5806_v31 = vld [vmem:[#allocation5 + $0x180] sm:$0xff]  ;;  %v5812_v33 = vld [vmem:[#allocation5 + $0x178] sm:$0xff]  ;;  %v5816_v34 = vld [vmem:[#allocation5 + $0x70] sm:$0xff]  ;;  %p5432_p11 = scmp.lt.s32.totalorder %s5426_s26, %s9330_s25 }
  0x51   : > { %865 = vmatpush.msra.mxu3 %v5776_v21  ;;  %670 = vmatpush.msra.mxu0 %v5780_v22  ;;  %v5818_v35 = vld [vmem:[#allocation5 + $0x170] sm:$0xff]  ;;  %v5822_v36 = vld [vmem:[#allocation5 + $0x68] sm:$0xff]  ;;  %v5828_v38 = vld [vmem:[#allocation5 + $0x60] sm:$0xff] }
  0x52   : > { %735 = vmatpush.msra.mxu1 %v5782_v23  ;;  %801 = vmatpush.msra.mxu2 %v5786_v24  ;;  %v5824_v37 = vld [vmem:[#allocation5 + $0x168] sm:$0xff]  ;;  %v5830_v39 = vld [vmem:[#allocation5 + $0x160] sm:$0xff]  ;;  %v5834_v40 = vld [vmem:[#allocation5 + $0x58] sm:$0xff] }
  0x53   : > { %866 = vmatpush.msra.mxu3 %v5788_v25  ;;  %671 = vmatpush.msra.mxu0 %v5792_v26  ;;  %v5836_v41 = vld [vmem:[#allocation5 + $0x158] sm:$0xff]  ;;  %v5840_v42 = vld [vmem:[#allocation5 + $0x50] sm:$0xff]  ;;  %v5846_v44 = vld [vmem:[#allocation5 + $0x48] sm:$0xff] }
  0x54   : > { %736 = vmatpush.msra.mxu1 %v5794_v27  ;;  %802 = vmatpush.msra.mxu2 %v5798_v28  ;;  %v5842_v43 = vld [vmem:[#allocation5 + $0x150] sm:$0xff]  ;;  %v5848_v45 = vld [vmem:[#allocation5 + $0x148] sm:$0xff]  ;;  %v5852_v46 = vld [vmem:[#allocation5 + $0x40] sm:$0xff] }
  0x55   : > { %867 = vmatpush.msra.mxu3 %v5800_v29  ;;  %672 = vmatpush.msra.mxu0 %v5804_v30  ;;  %v5854_v47 = vld [vmem:[#allocation5 + $0x140] sm:$0xff]  ;;  %v5858_v48 = vld [vmem:[#allocation5 + $0x38] sm:$0xff]  ;;  %v5864_v50 = vld [vmem:[#allocation5 + $0x30] sm:$0xff] }
  0x56   : > { %737 = vmatpush.msra.mxu1 %v5806_v31  ;;  %803 = vmatpush.msra.mxu2 %v5810_v32  ;;  %v5860_v49 = vld [vmem:[#allocation5 + $0x138] sm:$0xff]  ;;  %v5866_v51 = vld [vmem:[#allocation5 + $0x130] sm:$0xff]  ;;  %v5870_v52 = vld [vmem:[#allocation5 + $0x28] sm:$0xff] }
  0x57   : > { %868 = vmatpush.msra.mxu3 %v5812_v33  ;;  %673 = vmatpush.msra.mxu0 %v5816_v34  ;;  %v5872_v53 = vld [vmem:[#allocation5 + $0x128] sm:$0xff]  ;;  %v5876_v54 = vld [vmem:[#allocation5 + $0x20] sm:$0xff]  ;;  %v5882_v56 = vld [vmem:[#allocation5 + $0x18] sm:$0xff] }
  0x58   : > { %738 = vmatpush.msra.mxu1 %v5818_v35  ;;  %804 = vmatpush.msra.mxu2 %v5822_v36  ;;  %9185 = vst [vmem:[#allocation19_spill] sm:$0xff] %v5872_v53  ;;  %v5878_v55 = vld [vmem:[#allocation5 + $0x120] sm:$0xff]  ;;  %v5884_v57 = vld [vmem:[#allocation5 + $0x118] sm:$0xff]  ;;  %v5888_v58 = vld [vmem:[#allocation5 + $0x10] sm:$0xff] }
  0x59   : > { %869 = vmatpush.msra.mxu3 %v5824_v37  ;;  %674 = vmatpush.msra.mxu0 %v5828_v38  ;;  %9186 = vst [vmem:[#allocation20_spill] sm:$0xff] %v5878_v55  ;;  %v5890_v59 = vld [vmem:[#allocation5 + $0x110] sm:$0xff]  ;;  %v5894_v60 = vld [vmem:[#allocation5 + $0x8] sm:$0xff]  ;;  %v5901_v62 = vld [vmem:[%s5704_s28] sm:$0xff] }
  0x5a   : > { %739 = vmatpush.msra.mxu1 %v5830_v39  ;;  %805 = vmatpush.msra.mxu2 %v5834_v40  ;;  %9187 = vst [vmem:[#allocation21_spill] sm:$0xff] %v5884_v57  ;;  %v5896_v61 = vld [vmem:[#allocation5 + $0x108] sm:$0xff] }
  0x5b   : > { %870 = vmatpush.msra.mxu3 %v5836_v41  ;;  %675 = vmatpush.msra.mxu0 %v5840_v42  ;;  %9188 = vst [vmem:[#allocation22_spill] sm:$0xff] %v5896_v61  ;;  %v5904_v63 = vld [vmem:[%s5704_s28 + $0x8] sm:$0xff] }
  0x5c   : > { %740 = vmatpush.msra.mxu1 %v5842_v43  ;;  %806 = vmatpush.msra.mxu2 %v5846_v44 }
  0x5d   : > { %871 = vmatpush.msra.mxu3 %v5848_v45  ;;  %676 = vmatpush.msra.mxu0 %v5852_v46 }
  0x5e   : > { %741 = vmatpush.msra.mxu1 %v5854_v47  ;;  %807 = vmatpush.msra.mxu2 %v5858_v48 }
  0x5f   : > { %872 = vmatpush.msra.mxu3 %v5860_v49  ;;  %677 = vmatpush.msra.mxu0 %v5864_v50 }
  0x60   : > { %742 = vmatpush.msra.mxu1 %v5866_v51  ;;  %808 = vmatpush.msra.mxu2 %v5870_v52 }
  0x61   : > { %873 = vmatpush.msra.mxu3 %v5872_v53  ;;  %678 = vmatpush.msra.mxu0 %v5876_v54  ;;  %v5908_v53 = vld [vmem:[#allocation5] sm:$0xff] }
  0x62   : > { %743 = vmatpush.msra.mxu1 %v5878_v55  ;;  %809 = vmatpush.msra.mxu2 %v5882_v56  ;;  %v5910_v55 = vld [vmem:[#allocation5 + $0x100] sm:$0xff] }
  0x63   : > { %874 = vmatpush.msra.mxu3 %v5884_v57  ;;  %679 = vmatpush.msra.mxu0 %v5888_v58  ;;  %v5928_v57 = vld [vmem:[%s5704_s28 + $0x18] sm:$0xff] }
  0x64   : > { %744 = vmatpush.msra.mxu1 %v5890_v59  ;;  %810 = vmatpush.msra.mxu2 %v5894_v60 }
  0x65   : > { %875 = vmatpush.msra.mxu3 %v5896_v61  ;;  %811 = vmatmul.f32.vlgmr.msra.gmra.mxu2 %v5901_v62  ;;  %v5925_v61 = vld [vmem:[%s5704_s28 + $0x10] sm:$0xff] }
  0x66   : > { %876 = vmatmul.f32.vlgmr.msra.gmra.mxu3 %v5904_v63  ;;  %680 = vmatpush.msra.mxu0 %v5908_v53 }
  0x67   : > { %745 = vmatpush.msra.mxu1 %v5910_v55  ;;  %681 = vmatmul.f32.vlgmr.msra.gmra.mxu0 %v5901_v62 }
  0x68   : > { %746 = vmatmul.f32.vlgmr.msra.gmra.mxu1 %v5904_v63  ;;  %1119 = vmatpush.msrb.mxu2 %v5718_v0  ;;  %v5947_v0 = vld [vmem:[%s5704_s28 + $0x20] sm:$0xff] }
  0x69   : > { %1184 = vmatpush.msrb.mxu3 %v5720_v1  ;;  %989 = vmatpush.msrb.mxu0 %v5728_v4  ;;  %v5950_v1 = vld [vmem:[%s5704_s28 + $0x28] sm:$0xff]  ;;  %v5991_v4 = vld [vmem:[%s5704_s28 + $0x40] sm:$0xff] }
  0x6a   : > { %1054 = vmatpush.msrb.mxu1 %v5730_v5  ;;  %1120 = vmatpush.msrb.mxu2 %v5722_v2  ;;  %v5969_v2 = vld [vmem:[%s5704_s28 + $0x30] sm:$0xff]  ;;  %v5994_v5 = vld [vmem:[%s5704_s28 + $0x48] sm:$0xff] }
  0x6b   : > { %1185 = vmatpush.msrb.mxu3 %v5726_v3  ;;  %990 = vmatpush.msrb.mxu0 %v5738_v8  ;;  %v5972_v3 = vld [vmem:[%s5704_s28 + $0x38] sm:$0xff]  ;;  %v9189_v8 = vld [vmem:[#allocation20_spill] sm:$0xff] }
  0x6c   : > { %1055 = vmatpush.msrb.mxu1 %v5742_v9  ;;  %1121 = vmatpush.msrb.mxu2 %v5734_v6  ;;  %v6013_v6 = vld [vmem:[%s5704_s28 + $0x50] sm:$0xff]  ;;  %v9190_v9 = vld [vmem:[#allocation19_spill] sm:$0xff] }
  0x6d   : > { %1186 = vmatpush.msrb.mxu3 %v5736_v7  ;;  %814 = vmatmul.f32.gmra.mxu2 %v5925_v61  ;;  %v6016_v7 = vld [vmem:[%s5704_s28 + $0x58] sm:$0xff] }
  0x6e   : > { %879 = vmatmul.f32.gmra.mxu3 %v5928_v57  ;;  %991 = vmatpush.msrb.mxu0 %v5750_v12  ;;  %v6037_v12 = vld [vmem:[%s5704_s28 + $0x68] sm:$0xff] }
  0x6f   : > { %1056 = vmatpush.msrb.mxu1 %v5752_v13  ;;  %684 = vmatmul.f32.gmra.mxu0 %v5925_v61  ;;  %v9192_v13 = vld [vmem:[#allocation22_spill] sm:$0xff] }
  0x70   : > { %749 = vmatmul.f32.gmra.mxu1 %v5928_v57  ;;  %1122 = vmatpush.msrb.mxu2 %v5744_v10  ;;  %v9191_v10 = vld [vmem:[#allocation21_spill] sm:$0xff] }
  0x71   : > { %1187 = vmatpush.msrb.mxu3 %v5748_v11  ;;  %992 = vmatpush.msrb.mxu0 %v5756_v14  ;;  %v6034_v11 = vld [vmem:[%s5704_s28 + $0x60] sm:$0xff]  ;;  %v6045_v14 = vld [vmem:[%s5704_s28 + $0x70] sm:$0xff] }
  0x72   : > { %1057 = vmatpush.msrb.mxu1 %v5758_v15  ;;  %1123 = vmatpush.msrb.mxu2 %v5762_v16  ;;  %v6048_v15 = vld [vmem:[%s5704_s28 + $0x78] sm:$0xff]  ;;  %v6055_v16 = vld [vmem:[%s5704_s28 + $0x80] sm:$0xff] }
  0x73   : > { %1188 = vmatpush.msrb.mxu3 %v5764_v17  ;;  %993 = vmatpush.msrb.mxu0 %v5768_v18  ;;  %v6058_v17 = vld [vmem:[%s5704_s28 + $0x88] sm:$0xff]  ;;  %v6065_v18 = vld [vmem:[%s5704_s28 + $0x90] sm:$0xff] }
  0x74   : > { %1058 = vmatpush.msrb.mxu1 %v5770_v19  ;;  %1124 = vmatpush.msrb.mxu2 %v5774_v20  ;;  %v6068_v19 = vld [vmem:[%s5704_s28 + $0x98] sm:$0xff]  ;;  %v6075_v20 = vld [vmem:[%s5704_s28 + $0xa0] sm:$0xff] }
  0x75   : > { %1189 = vmatpush.msrb.mxu3 %v5776_v21  ;;  %817 = vmatmul.f32.gmra.mxu2 %v5947_v0  ;;  %v6078_v21 = vld [vmem:[%s5704_s28 + $0xa8] sm:$0xff] }
  0x76   : > { %882 = vmatmul.f32.gmra.mxu3 %v5950_v1  ;;  %994 = vmatpush.msrb.mxu0 %v5780_v22  ;;  %v6085_v22 = vld [vmem:[%s5704_s28 + $0xb0] sm:$0xff] }
  0x77   : > { %1059 = vmatpush.msrb.mxu1 %v5782_v23  ;;  %687 = vmatmul.f32.gmra.mxu0 %v5947_v0  ;;  %v6088_v23 = vld [vmem:[%s5704_s28 + $0xb8] sm:$0xff] }
  0x78   : > { %752 = vmatmul.f32.gmra.mxu1 %v5950_v1  ;;  %1125 = vmatpush.msrb.mxu2 %v5786_v24  ;;  %v6095_v24 = vld [vmem:[%s5704_s28 + $0xc0] sm:$0xff] }
  0x79   : > { %995 = vmatpush.msrb.mxu0 %v5792_v26  ;;  %1190 = vmatpush.msrb.mxu3 %v5788_v25  ;;  %v6098_v25 = vld [vmem:[%s5704_s28 + $0xc8] sm:$0xff]  ;;  %v6105_v26 = vld [vmem:[%s5704_s28 + $0xd0] sm:$0xff] }
  0x7a   : > { %1060 = vmatpush.msrb.mxu1 %v5794_v27  ;;  %1126 = vmatpush.msrb.mxu2 %v5798_v28  ;;  %v6108_v27 = vld [vmem:[%s5704_s28 + $0xd8] sm:$0xff]  ;;  %v6115_v28 = vld [vmem:[%s5704_s28 + $0xe0] sm:$0xff] }
  0x7b   : > { %996 = vmatpush.msrb.mxu0 %v5804_v30  ;;  %1191 = vmatpush.msrb.mxu3 %v5800_v29  ;;  %v6118_v29 = vld [vmem:[%s5704_s28 + $0xe8] sm:$0xff]  ;;  %v6125_v30 = vld [vmem:[%s5704_s28 + $0xf0] sm:$0xff] }
  0x7c   : > { %1061 = vmatpush.msrb.mxu1 %v5806_v31  ;;  %1127 = vmatpush.msrb.mxu2 %v5810_v32  ;;  %v6128_v31 = vld [vmem:[%s5704_s28 + $0xf8] sm:$0xff] }
  0x7d   : > { %997 = vmatpush.msrb.mxu0 %v5816_v34  ;;  %820 = vmatmul.f32.gmra.mxu2 %v5969_v2 }
  0x7e   : > { %885 = vmatmul.f32.gmra.mxu3 %v5972_v3  ;;  %1062 = vmatpush.msrb.mxu1 %v5818_v35 }
  0x7f   : > { %998 = vmatpush.msrb.mxu0 %v5828_v38  ;;  %1128 = vmatpush.msrb.mxu2 %v5822_v36 }
  0x80   : > { %690 = vmatmul.f32.gmra.mxu0 %v5969_v2  ;;  %755 = vmatmul.f32.gmra.mxu1 %v5972_v3 }
  0x81   : > { %1192 = vmatpush.msrb.mxu3 %v5812_v33  ;;  %999 = vmatpush.msrb.mxu0 %v5840_v42 }
  0x82   : > { %1063 = vmatpush.msrb.mxu1 %v5830_v39  ;;  %1129 = vmatpush.msrb.mxu2 %v5834_v40 }
  0x83   : > { %1193 = vmatpush.msrb.mxu3 %v5824_v37  ;;  %1000 = vmatpush.msrb.mxu0 %v5852_v46 }
  0x84   : > { %1064 = vmatpush.msrb.mxu1 %v5842_v43  ;;  %1130 = vmatpush.msrb.mxu2 %v5846_v44 }
  0x85   : > { %1194 = vmatpush.msrb.mxu3 %v5836_v41  ;;  %823 = vmatmul.f32.gmra.mxu2 %v5991_v4 }
  0x86   : > { %888 = vmatmul.f32.gmra.mxu3 %v5994_v5  ;;  %1001 = vmatpush.msrb.mxu0 %v5864_v50 }
  0x87   : > { %1065 = vmatpush.msrb.mxu1 %v5854_v47  ;;  %1131 = vmatpush.msrb.mxu2 %v5858_v48 }
  0x88   : > { %693 = vmatmul.f32.gmra.mxu0 %v5991_v4  ;;  %758 = vmatmul.f32.gmra.mxu1 %v5994_v5 }
  0x89   : > { %1195 = vmatpush.msrb.mxu3 %v5848_v45  ;;  %1002 = vmatpush.msrb.mxu0 %v5876_v54 }
  0x8a   : > { %1066 = vmatpush.msrb.mxu1 %v5866_v51  ;;  %1132 = vmatpush.msrb.mxu2 %v5870_v52 }
  0x8b   : > { %1196 = vmatpush.msrb.mxu3 %v5860_v49  ;;  %1003 = vmatpush.msrb.mxu0 %v5888_v58 }
  0x8c   : > { %1067 = vmatpush.msrb.mxu1 %v9189_v8  ;;  %1133 = vmatpush.msrb.mxu2 %v5882_v56 }
  0x8d   : > { %1197 = vmatpush.msrb.mxu3 %v9190_v9  ;;  %826 = vmatmul.f32.gmra.mxu2 %v6013_v6 }
  0x8e   : > { %891 = vmatmul.f32.gmra.mxu3 %v6016_v7  ;;  %1004 = vmatpush.msrb.mxu0 %v5908_v53 }
  0x8f   : > { %1068 = vmatpush.msrb.mxu1 %v5890_v59  ;;  %1134 = vmatpush.msrb.mxu2 %v5894_v60 }
  0x90   : > { %696 = vmatmul.f32.gmra.mxu0 %v6013_v6  ;;  %761 = vmatmul.f32.gmra.mxu1 %v6016_v7 }
  0x91   : > { %1198 = vmatpush.msrb.mxu3 %v9191_v10  ;;  %1069 = vmatpush.msrb.mxu1 %v5910_v55 }
  0x93   : > { %1199 = vmatpush.msrb.mxu3 %v9192_v13 }
  0x95   : > { %829 = vmatmul.f32.gmra.mxu2 %v6034_v11 }
  0x96   : > { %894 = vmatmul.f32.gmra.mxu3 %v6037_v12 }
  0x98   : > { %699 = vmatmul.f32.gmra.mxu0 %v6034_v11  ;;  %764 = vmatmul.f32.gmra.mxu1 %v6037_v12 }
  0x9d   : > { %832 = vmatmul.f32.gmra.mxu2 %v6045_v14 }
  0x9e   : > { %897 = vmatmul.f32.gmra.mxu3 %v6048_v15 }
  0xa0   : > { %702 = vmatmul.f32.gmra.mxu0 %v6045_v14  ;;  %767 = vmatmul.f32.gmra.mxu1 %v6048_v15 }
  0xa5   : > { %835 = vmatmul.f32.gmra.mxu2 %v6055_v16 }
  0xa6   : > { %900 = vmatmul.f32.gmra.mxu3 %v6058_v17 }
  0xa8   : > { %705 = vmatmul.f32.gmra.mxu0 %v6055_v16  ;;  %770 = vmatmul.f32.gmra.mxu1 %v6058_v17 }
  0xad   : > { %838 = vmatmul.f32.gmra.mxu2 %v6065_v18 }
  0xae   : > { %903 = vmatmul.f32.gmra.mxu3 %v6068_v19 }
  0xb0   : > { %708 = vmatmul.f32.gmra.mxu0 %v6065_v18  ;;  %773 = vmatmul.f32.gmra.mxu1 %v6068_v19 }
  0xb5   : > { %841 = vmatmul.f32.gmra.mxu2 %v6075_v20 }
  0xb6   : > { %906 = vmatmul.f32.gmra.mxu3 %v6078_v21 }
  0xb8   : > { %711 = vmatmul.f32.gmra.mxu0 %v6075_v20  ;;  %776 = vmatmul.f32.gmra.mxu1 %v6078_v21 }
  0xbd   : > { %844 = vmatmul.f32.gmra.mxu2 %v6085_v22 }
  0xbe   : > { %909 = vmatmul.f32.gmra.mxu3 %v6088_v23 }
  0xc0   : > { %714 = vmatmul.f32.gmra.mxu0 %v6085_v22  ;;  %779 = vmatmul.f32.gmra.mxu1 %v6088_v23 }
  0xc5   : > { %847 = vmatmul.f32.gmra.mxu2 %v6095_v24 }
  0xc6   : > { %912 = vmatmul.f32.gmra.mxu3 %v6098_v25 }
  0xc8   : > { %717 = vmatmul.f32.gmra.mxu0 %v6095_v24  ;;  %782 = vmatmul.f32.gmra.mxu1 %v6098_v25 }
  0xcd   : > { %850 = vmatmul.f32.gmra.mxu2 %v6105_v26 }
  0xce   : > { %915 = vmatmul.f32.gmra.mxu3 %v6108_v27 }
  0xd0   : > { %720 = vmatmul.f32.gmra.mxu0 %v6105_v26  ;;  %785 = vmatmul.f32.gmra.mxu1 %v6108_v27 }
  0xd5   : > { %853 = vmatmul.f32.gmra.mxu2 %v6115_v28 }
  0xd6   : > { %918 = vmatmul.f32.gmra.mxu3 %v6118_v29 }
  0xd8   : > { %723 = vmatmul.f32.gmra.mxu0 %v6115_v28  ;;  %788 = vmatmul.f32.gmra.mxu1 %v6118_v29 }
  0xdd   : > { %856 = vmatmul.f32.gmra.mxu2 %v6125_v30 }
  0xde   : > { %921 = vmatmul.f32.gmra.mxu3 %v6128_v31 }
  0xe0   : > { %726 = vmatmul.f32.gmra.mxu0 %v6125_v30  ;;  %791 = vmatmul.f32.gmra.mxu1 %v6128_v31 }
  0xe4   : > { %v682_v32 = vpop.f32.mrf.mxu0 }
  0xe5   : > { %v747_v33 = vpop.f32.mrf.mxu1 }
  0xe6   : > { %v748_v34 = vadd.f32 %v747_v33, %v682_v32 }
  0xe8   : > { %v6135_v35 = vsub.f32 %v5901_v62, %v748_v34  ;;  %v812_v36 = vpop.f32.mrf.mxu2 }
  0xe9   : > { %v877_v37 = vpop.f32.mrf.mxu3 }
  0xea   : > { %v878_v38 = vadd.f32 %v877_v37, %v812_v36  ;;  %v957_v39 = vmul.f32 %v6135_v35, %v6135_v35 }
  0xec   : > { %v6140_v40 = vsub.f32 %v5904_v63, %v878_v38  ;;  %1005 = vmatmul.f32.vlgmr.msrb.gmra.mxu0 %v957_v39  ;;  %1135 = vmatmul.f32.vlgmr.msrb.gmra.mxu2 %v957_v39  ;;  %v685_v41 = vpop.f32.mrf.mxu0 }
  0xed   : > { %v750_v42 = vpop.f32.mrf.mxu1 }
  0xee   : > { %v751_v43 = vadd.f32 %v750_v42, %v685_v41  ;;  %v958_v44 = vmul.f32 %v6140_v40, %v6140_v40 }
  0xf0   : > { %1070 = vmatmul.f32.vlgmr.msrb.gmra.mxu1 %v958_v44  ;;  %1200 = vmatmul.f32.vlgmr.msrb.gmra.mxu3 %v958_v44  ;;  %v6145_v45 = vsub.f32 %v5925_v61, %v751_v43  ;;  %v815_v46 = vpop.f32.mrf.mxu2 }
  0xf1   : > { %v880_v47 = vpop.f32.mrf.mxu3 }
  0xf2   : > { %v881_v48 = vadd.f32 %v880_v47, %v815_v46  ;;  %v959_v49 = vmul.f32 %v6145_v45, %v6145_v45 }
  0xf4   : > { %1008 = vmatmul.f32.gmra.mxu0 %v959_v49  ;;  %1138 = vmatmul.f32.gmra.mxu2 %v959_v49  ;;  %v6150_v50 = vsub.f32 %v5928_v57, %v881_v48  ;;  %v688_v51 = vpop.f32.mrf.mxu0 }
  0xf5   : > { %v753_v52 = vpop.f32.mrf.mxu1 }
  0xf6   : > { %v754_v53 = vadd.f32 %v753_v52, %v688_v51  ;;  %v960_v54 = vmul.f32 %v6150_v50, %v6150_v50 }
  0xf8   : > { %1073 = vmatmul.f32.gmra.mxu1 %v960_v54  ;;  %1203 = vmatmul.f32.gmra.mxu3 %v960_v54  ;;  %v6155_v55 = vsub.f32 %v5947_v0, %v754_v53  ;;  %v818_v56 = vpop.f32.mrf.mxu2 }
  0xf9   : > { %v883_v58 = vpop.f32.mrf.mxu3 }
  0xfa   : > { %v884_v59 = vadd.f32 %v883_v58, %v818_v56  ;;  %v961_v60 = vmul.f32 %v6155_v55, %v6155_v55 }
  0xfc   : > { %1011 = vmatmul.f32.gmra.mxu0 %v961_v60  ;;  %1141 = vmatmul.f32.gmra.mxu2 %v961_v60  ;;  %v6160_v57 = vsub.f32 %v5950_v1, %v884_v59 }
  0xfd   : > { %v691_v61 = vpop.f32.mrf.mxu0  ;;  %v756_v62 = vpop.f32.mrf.mxu1 }
  0xfe   : > { %v757_v63 = vadd.f32 %v756_v62, %v691_v61  ;;  %v962_v8 = vmul.f32 %v6160_v57, %v6160_v57 }
 0x100   : > { %1076 = vmatmul.f32.gmra.mxu1 %v962_v8  ;;  %1206 = vmatmul.f32.gmra.mxu3 %v962_v8  ;;  %v6165_v0 = vsub.f32 %v5969_v2, %v757_v63  ;;  %v821_v9 = vpop.f32.mrf.mxu2 }
 0x101   : > { %v886_v10 = vpop.f32.mrf.mxu3 }
 0x102   : > { %v887_v13 = vadd.f32 %v886_v10, %v821_v9  ;;  %v963_v32 = vmul.f32 %v6165_v0, %v6165_v0 }
 0x104   : > { %1014 = vmatmul.f32.gmra.mxu0 %v963_v32  ;;  %1144 = vmatmul.f32.gmra.mxu2 %v963_v32  ;;  %v6170_v1 = vsub.f32 %v5972_v3, %v887_v13 }
 0x105   : > { %v694_v33 = vpop.f32.mrf.mxu0  ;;  %v759_v34 = vpop.f32.mrf.mxu1 }
 0x106   : > { %v760_v36 = vadd.f32 %v759_v34, %v694_v33  ;;  %v964_v37 = vmul.f32 %v6170_v1, %v6170_v1 }
 0x108   : > { %1079 = vmatmul.f32.gmra.mxu1 %v964_v37  ;;  %1209 = vmatmul.f32.gmra.mxu3 %v964_v37  ;;  %v6175_v2 = vsub.f32 %v5991_v4, %v760_v36  ;;  %v824_v38 = vpop.f32.mrf.mxu2 }
 0x109   : > { %v889_v39 = vpop.f32.mrf.mxu3 }
 0x10a   : > { %v890_v41 = vadd.f32 %v889_v39, %v824_v38  ;;  %v965_v42 = vmul.f32 %v6175_v2, %v6175_v2 }
 0x10c   : > { %1017 = vmatmul.f32.gmra.mxu0 %v965_v42  ;;  %1147 = vmatmul.f32.gmra.mxu2 %v965_v42  ;;  %v6180_v3 = vsub.f32 %v5994_v5, %v890_v41 }
 0x10d   : > { %v697_v43 = vpop.f32.mrf.mxu0  ;;  %v762_v44 = vpop.f32.mrf.mxu1 }
 0x10e   : > { %v763_v46 = vadd.f32 %v762_v44, %v697_v43  ;;  %v966_v47 = vmul.f32 %v6180_v3, %v6180_v3 }
 0x110   : > { %1082 = vmatmul.f32.gmra.mxu1 %v966_v47  ;;  %1212 = vmatmul.f32.gmra.mxu3 %v966_v47  ;;  %v6185_v4 = vsub.f32 %v6013_v6, %v763_v46  ;;  %v827_v48 = vpop.f32.mrf.mxu2 }
 0x111   : > { %v892_v49 = vpop.f32.mrf.mxu3 }
 0x112   : > { %v893_v51 = vadd.f32 %v892_v49, %v827_v48  ;;  %v967_v52 = vmul.f32 %v6185_v4, %v6185_v4 }
 0x114   : > { %1020 = vmatmul.f32.gmra.mxu0 %v967_v52  ;;  %1150 = vmatmul.f32.gmra.mxu2 %v967_v52  ;;  %v6190_v5 = vsub.f32 %v6016_v7, %v893_v51 }
 0x115   : > { %v700_v53 = vpop.f32.mrf.mxu0  ;;  %v765_v54 = vpop.f32.mrf.mxu1 }
 0x116   : > { %v766_v56 = vadd.f32 %v765_v54, %v700_v53  ;;  %v968_v58 = vmul.f32 %v6190_v5, %v6190_v5 }
 0x118   : > { %1085 = vmatmul.f32.gmra.mxu1 %v968_v58  ;;  %1215 = vmatmul.f32.gmra.mxu3 %v968_v58  ;;  %v6195_v6 = vsub.f32 %v6034_v11, %v766_v56  ;;  %v830_v59 = vpop.f32.mrf.mxu2 }
 0x119   : > { %v895_v60 = vpop.f32.mrf.mxu3 }
 0x11a   : > { %v896_v61 = vadd.f32 %v895_v60, %v830_v59  ;;  %v969_v62 = vmul.f32 %v6195_v6, %v6195_v6 }
 0x11c   : > { %1023 = vmatmul.f32.gmra.mxu0 %v969_v62  ;;  %1153 = vmatmul.f32.gmra.mxu2 %v969_v62  ;;  %v6200_v7 = vsub.f32 %v6037_v12, %v896_v61 }
 0x11d   : > { %v703_v63 = vpop.f32.mrf.mxu0  ;;  %v768_v8 = vpop.f32.mrf.mxu1 }
 0x11e   : > { %v769_v9 = vadd.f32 %v768_v8, %v703_v63  ;;  %v970_v10 = vmul.f32 %v6200_v7, %v6200_v7 }
 0x120   : > { %1088 = vmatmul.f32.gmra.mxu1 %v970_v10  ;;  %1218 = vmatmul.f32.gmra.mxu3 %v970_v10  ;;  %v6205_v11 = vsub.f32 %v6045_v14, %v769_v9  ;;  %v833_v13 = vpop.f32.mrf.mxu2 }
 0x121   : > { %v898_v32 = vpop.f32.mrf.mxu3 }
 0x122   : > { %v899_v33 = vadd.f32 %v898_v32, %v833_v13  ;;  %v971_v34 = vmul.f32 %v6205_v11, %v6205_v11 }
 0x124   : > { %1026 = vmatmul.f32.gmra.mxu0 %v971_v34  ;;  %1156 = vmatmul.f32.gmra.mxu2 %v971_v34  ;;  %v6210_v12 = vsub.f32 %v6048_v15, %v899_v33 }
 0x125   : > { %v706_v36 = vpop.f32.mrf.mxu0  ;;  %v771_v37 = vpop.f32.mrf.mxu1 }
 0x126   : > { %v772_v38 = vadd.f32 %v771_v37, %v706_v36  ;;  %v972_v39 = vmul.f32 %v6210_v12, %v6210_v12 }
 0x128   : > { %v6215_v14 = vsub.f32 %v6055_v16, %v772_v38  ;;  %1091 = vmatmul.f32.gmra.mxu1 %v972_v39  ;;  %1221 = vmatmul.f32.gmra.mxu3 %v972_v39  ;;  %v836_v41 = vpop.f32.mrf.mxu2 }
 0x129   : > { %v901_v42 = vpop.f32.mrf.mxu3 }
 0x12a   : > { %v902_v43 = vadd.f32 %v901_v42, %v836_v41  ;;  %v973_v44 = vmul.f32 %v6215_v14, %v6215_v14 }
 0x12c   : > { %v6220_v15 = vsub.f32 %v6058_v17, %v902_v43  ;;  %1029 = vmatmul.f32.gmra.mxu0 %v973_v44  ;;  %1159 = vmatmul.f32.gmra.mxu2 %v973_v44 }
 0x12d   : > { %v709_v46 = vpop.f32.mrf.mxu0  ;;  %v774_v47 = vpop.f32.mrf.mxu1 }
 0x12e   : > { %v775_v48 = vadd.f32 %v774_v47, %v709_v46  ;;  %v974_v16 = vmul.f32 %v6220_v15, %v6220_v15 }
 0x130   : > { %v6225_v49 = vsub.f32 %v6065_v18, %v775_v48  ;;  %1094 = vmatmul.f32.gmra.mxu1 %v974_v16  ;;  %1224 = vmatmul.f32.gmra.mxu3 %v974_v16  ;;  %v839_v51 = vpop.f32.mrf.mxu2 }
 0x131   : > { %v904_v52 = vpop.f32.mrf.mxu3 }
 0x132   : > { %v905_v53 = vadd.f32 %v904_v52, %v839_v51  ;;  %v975_v17 = vmul.f32 %v6225_v49, %v6225_v49 }
 0x134   : > { %v6230_v54 = vsub.f32 %v6068_v19, %v905_v53  ;;  %1032 = vmatmul.f32.gmra.mxu0 %v975_v17  ;;  %1162 = vmatmul.f32.gmra.mxu2 %v975_v17 }
 0x135   : > { %v712_v56 = vpop.f32.mrf.mxu0  ;;  %v777_v58 = vpop.f32.mrf.mxu1 }
 0x136   : > { %v778_v59 = vadd.f32 %v777_v58, %v712_v56  ;;  %v976_v18 = vmul.f32 %v6230_v54, %v6230_v54 }
 0x138   : > { %v6235_v60 = vsub.f32 %v6075_v20, %v778_v59  ;;  %1097 = vmatmul.f32.gmra.mxu1 %v976_v18  ;;  %1227 = vmatmul.f32.gmra.mxu3 %v976_v18  ;;  %v842_v61 = vpop.f32.mrf.mxu2 }
 0x139   : > { %v907_v62 = vpop.f32.mrf.mxu3 }
 0x13a   : > { %v908_v63 = vadd.f32 %v907_v62, %v842_v61  ;;  %v977_v19 = vmul.f32 %v6235_v60, %v6235_v60 }
 0x13c   : > { %v6240_v8 = vsub.f32 %v6078_v21, %v908_v63  ;;  %1035 = vmatmul.f32.gmra.mxu0 %v977_v19  ;;  %1165 = vmatmul.f32.gmra.mxu2 %v977_v19 }
 0x13d   : > { %v715_v9 = vpop.f32.mrf.mxu0  ;;  %v780_v10 = vpop.f32.mrf.mxu1 }
 0x13e   : > { %v781_v13 = vadd.f32 %v780_v10, %v715_v9  ;;  %v978_v20 = vmul.f32 %v6240_v8, %v6240_v8 }
 0x140   : > { %v6245_v32 = vsub.f32 %v6085_v22, %v781_v13  ;;  %1100 = vmatmul.f32.gmra.mxu1 %v978_v20  ;;  %1230 = vmatmul.f32.gmra.mxu3 %v978_v20  ;;  %v845_v33 = vpop.f32.mrf.mxu2 }
 0x141   : > { %v910_v34 = vpop.f32.mrf.mxu3 }
 0x142   : > { %v911_v36 = vadd.f32 %v910_v34, %v845_v33  ;;  %v979_v21 = vmul.f32 %v6245_v32, %v6245_v32 }
 0x144   : > { %v6250_v37 = vsub.f32 %v6088_v23, %v911_v36  ;;  %1038 = vmatmul.f32.gmra.mxu0 %v979_v21  ;;  %1168 = vmatmul.f32.gmra.mxu2 %v979_v21 }
 0x145   : > { %v718_v38 = vpop.f32.mrf.mxu0  ;;  %v783_v39 = vpop.f32.mrf.mxu1 }
 0x146   : > { %9193 = vst [vmem:[#allocation20_spill] sm:$0xff] %v6250_v37  ;;  %v784_v41 = vadd.f32 %v783_v39, %v718_v38  ;;  %v980_v22 = vmul.f32 %v6250_v37, %v6250_v37 }
 0x148   : > { %v6255_v42 = vsub.f32 %v6095_v24, %v784_v41  ;;  %1103 = vmatmul.f32.gmra.mxu1 %v980_v22  ;;  %1233 = vmatmul.f32.gmra.mxu3 %v980_v22  ;;  %v848_v43 = vpop.f32.mrf.mxu2 }
 0x149   : > { %v913_v44 = vpop.f32.mrf.mxu3 }
 0x14a   : > { %v914_v46 = vadd.f32 %v913_v44, %v848_v43  ;;  %v981_v23 = vmul.f32 %v6255_v42, %v6255_v42 }
 0x14c   : > { %v6260_v47 = vsub.f32 %v6098_v25, %v914_v46  ;;  %1041 = vmatmul.f32.gmra.mxu0 %v981_v23  ;;  %1171 = vmatmul.f32.gmra.mxu2 %v981_v23 }
 0x14d   : > { %v721_v48 = vpop.f32.mrf.mxu0  ;;  %v786_v16 = vpop.f32.mrf.mxu1 }
 0x14e   : > { %9194 = vst [vmem:[#allocation19_spill] sm:$0xff] %v6260_v47  ;;  %v787_v51 = vadd.f32 %v786_v16, %v721_v48  ;;  %v982_v24 = vmul.f32 %v6260_v47, %v6260_v47 }
 0x150   : > { %v6265_v52 = vsub.f32 %v6105_v26, %v787_v51  ;;  %1106 = vmatmul.f32.gmra.mxu1 %v982_v24  ;;  %1236 = vmatmul.f32.gmra.mxu3 %v982_v24  ;;  %v851_v53 = vpop.f32.mrf.mxu2 }
 0x151   : > { %v916_v17 = vpop.f32.mrf.mxu3 }
 0x152   : > { %v917_v56 = vadd.f32 %v916_v17, %v851_v53  ;;  %v983_v25 = vmul.f32 %v6265_v52, %v6265_v52 }
 0x154   : > { %v6270_v58 = vsub.f32 %v6108_v27, %v917_v56  ;;  %1044 = vmatmul.f32.gmra.mxu0 %v983_v25  ;;  %1174 = vmatmul.f32.gmra.mxu2 %v983_v25 }
 0x155   : > { %v724_v59 = vpop.f32.mrf.mxu0  ;;  %v789_v18 = vpop.f32.mrf.mxu1 }
 0x156   : > { %9195 = vst [vmem:[#allocation21_spill] sm:$0xff] %v6270_v58  ;;  %v790_v61 = vadd.f32 %v789_v18, %v724_v59  ;;  %v984_v26 = vmul.f32 %v6270_v58, %v6270_v58 }
 0x158   : > { %v6275_v62 = vsub.f32 %v6115_v28, %v790_v61  ;;  %1109 = vmatmul.f32.gmra.mxu1 %v984_v26  ;;  %1239 = vmatmul.f32.gmra.mxu3 %v984_v26  ;;  %v854_v63 = vpop.f32.mrf.mxu2 }
 0x159   : > { %v919_v19 = vpop.f32.mrf.mxu3 }
 0x15a   : > { %9196 = vst [vmem:[#allocation22_spill] sm:$0xff] %v6275_v62  ;;  %v920_v9 = vadd.f32 %v919_v19, %v854_v63  ;;  %v985_v27 = vmul.f32 %v6275_v62, %v6275_v62 }
 0x15c   : > { %v6280_v10 = vsub.f32 %v6118_v29, %v920_v9  ;;  %1047 = vmatmul.f32.gmra.mxu0 %v985_v27  ;;  %1177 = vmatmul.f32.gmra.mxu2 %v985_v27 }
 0x15d   : > { %v727_v13 = vpop.f32.mrf.mxu0  ;;  %v792_v20 = vpop.f32.mrf.mxu1 }
 0x15e   : > { %9197 = vst [vmem:[#allocation23_spill] sm:$0xff] %v6280_v10  ;;  %v793_v33 = vadd.f32 %v792_v20, %v727_v13  ;;  %v986_v28 = vmul.f32 %v6280_v10, %v6280_v10 }
 0x160   : > { %v6285_v34 = vsub.f32 %v6125_v30, %v793_v33  ;;  %1112 = vmatmul.f32.gmra.mxu1 %v986_v28  ;;  %1242 = vmatmul.f32.gmra.mxu3 %v986_v28  ;;  %v857_v36 = vpop.f32.mrf.mxu2 }
 0x161   : > { %v922_v21 = vpop.f32.mrf.mxu3 }
 0x162   : > { %9198 = vst [vmem:[#allocation24_spill] sm:$0xff] %v6285_v34  ;;  %v923_v38 = vadd.f32 %v922_v21, %v857_v36  ;;  %v987_v29 = vmul.f32 %v6285_v34, %v6285_v34 }
 0x164   : > { %v6290_v39 = vsub.f32 %v6128_v31, %v923_v38  ;;  %1050 = vmatmul.f32.gmra.mxu0 %v987_v29  ;;  %1180 = vmatmul.f32.gmra.mxu2 %v987_v29 }
 0x166   : > { %9199 = vst [vmem:[#allocation25_spill] sm:$0xff] %v6290_v39  ;;  %v988_v41 = vmul.f32 %v6290_v39, %v6290_v39 }
 0x168   : > { %1115 = vmatmul.f32.gmra.mxu1 %v988_v41  ;;  %1245 = vmatmul.f32.gmra.mxu3 %v988_v41 }
 0x169   : > { %v1006_v30 = vpop.f32.mrf.mxu0 }
 0x16a   : > { %v1007_v46 = vadd.f32 1e-05, %v1006_v30 }
 0x16d   : > { %v1071_v22 = vpop.f32.mrf.mxu1 }
 0x16e   : > { %v6294_v24 = vadd.f32 %v1071_v22, %v1007_v46 }
 0x16f   : > { %v1136_v43 = vpop.f32.mrf.mxu2 }
 0x170   : > { %v1137_v23 = vadd.f32 1e-05, %v1136_v43  ;;  %4985 = vrsqrt.f32 %v6294_v24  ;;  %vm1255_vm0 = vweird.f32 %v6294_v24 }
 0x171   : > { %v1009_v44 = vpop.f32.mrf.mxu0 }
 0x172   : > { %v1010_v16 = vadd.f32 1e-05, %v1009_v44 }
 0x173   : > { %v1201_v48 = vpop.f32.mrf.mxu3 }
 0x174   : > { %v6296_v31 = vadd.f32 %v1201_v48, %v1137_v23 }
 0x175   : > { %v1074_v51 = vpop.f32.mrf.mxu1 }
 0x176   : > { %v6298_v17 = vadd.f32 %v1074_v51, %v1010_v16  ;;  %4987 = vrsqrt.f32 %v6296_v31  ;;  %v6303_v63 = vpop.eup %4985  ;;  %vm1265_vm5 = vweird.f32 %v6296_v31 }
 0x177   : > { %v1139_v53 = vpop.f32.mrf.mxu2  ;;  %v1250_v21 = vmul.f32 %v6303_v63, %v6294_v24  ;;  %vm1256_vm1 = vweird.f32 %v6303_v63 }
 0x178   : > { %4989 = vrsqrt.f32 %v6298_v17  ;;  %v1140_v59 = vadd.f32 1e-05, %v1139_v53  ;;  %vm6372_vm4 = vmor %vm1255_vm0, %vm1256_vm1  ;;  %vm1275_vm7 = vweird.f32 %v6298_v17 }
 0x179   : > { %v1012_v56 = vpop.f32.mrf.mxu0  ;;  %v1251_v44 = vmul.f32 %v6303_v63, %v1250_v21 }
 0x17a   : > { %v1013_v18 = vadd.f32 1e-05, %v1012_v56 }
 0x17b   : > { %v1204_v25 = vpop.f32.mrf.mxu3 }
 0x17c   : > { %v6305_v19 = vadd.f32 %v1204_v25, %v1140_v59  ;;  %v6307_v9 = vpop.eup %4987  ;;  %v1252_v59 = vmul.f32 0.5, %v1251_v44 }
 0x17d   : > { %v1077_v61 = vpop.f32.mrf.mxu1  ;;  %v1260_v38 = vmul.f32 %v6307_v9, %v6296_v31  ;;  %vm1266_vm2 = vweird.f32 %v6307_v9 }
 0x17e   : > { %v6309_v27 = vadd.f32 %v1077_v61, %v1013_v18  ;;  %v6311_v33 = vpop.eup %4989  ;;  %4991 = vrsqrt.f32 %v6305_v19  ;;  %vm6385_vm6 = vmor %vm1265_vm5, %vm1266_vm2  ;;  %vm1285_vm9 = vweird.f32 %v6305_v19 }
 0x17f   : > { %v1142_v26 = vpop.f32.mrf.mxu2  ;;  %v1270_v29 = vmul.f32 %v6311_v33, %v6298_v17  ;;  %v1261_v46 = vmul.f32 %v6307_v9, %v1260_v38  ;;  %vm1276_vm3 = vweird.f32 %v6311_v33 }
 0x180   : > { %v1143_v13 = vadd.f32 1e-05, %v1142_v26  ;;  %4993 = vrsqrt.f32 %v6309_v27  ;;  %vm6406_vm8 = vmor %vm1275_vm7, %vm1276_vm3  ;;  %vm1295_vm11 = vweird.f32 %v6309_v27 }
 0x181   : > { %v1015_v20 = vpop.f32.mrf.mxu0  ;;  %v1271_v23 = vmul.f32 %v6311_v33, %v1270_v29  ;;  %v1262_v18 = vmul.f32 0.5, %v1261_v46 }
 0x182   : > { %v1016_v28 = vadd.f32 1e-05, %v1015_v20 }
 0x183   : > { %v1207_v36 = vpop.f32.mrf.mxu3  ;;  %v1272_v61 = vmul.f32 0.5, %v1271_v23 }
 0x184   : > { %v6321_v41 = vadd.f32 %v1207_v36, %v1143_v13  ;;  %v6329_v16 = vpop.eup %4991 }
 0x185   : > { %v1080_v30 = vpop.f32.mrf.mxu1  ;;  %v1280_v26 = vmul.f32 %v6329_v16, %v6305_v19  ;;  %v1273_v44 = vsub.f32 1.5, %v1272_v61  ;;  %v663_v61 = vld [vmem:[%s9119_s5] sm:$0x3]  ;;  %vm1286_vm10 = vweird.f32 %v6329_v16 }
 0x186   : > { %v6323_v22 = vadd.f32 %v1080_v30, %v1016_v28  ;;  %4995 = vrsqrt.f32 %v6321_v41  ;;  %v6332_v53 = vpop.eup %4993  ;;  %v1253_v30 = vsub.f32 1.5, %v1252_v59  ;;  %v6402_v62 = vperm.slane %v663_v61, 1  ;;  %vm6448_vm13 = vmor %vm1285_vm9, %vm1286_vm10 }
 0x187   : > { %v1145_v43 = vpop.f32.mrf.mxu2  ;;  %v1290_v20 = vmul.f32 %v6332_v53, %v6309_v27  ;;  %v1281_v46 = vmul.f32 %v6329_v16, %v1280_v26  ;;  %vm1296_vm12 = vweird.f32 %v6332_v53  ;;  %vm1305_vm14 = vweird.f32 %v6321_v41 }
 0x188   : > { %4997 = vrsqrt.f32 %v6323_v22  ;;  %v1146_v51 = vadd.f32 1e-05, %v1145_v43  ;;  %v1263_v43 = vsub.f32 1.5, %v1262_v18  ;;  %v1254_v26 = vmul.f32 %v6303_v63, %v1253_v30  ;;  %vm6462_vm15 = vmor %vm1295_vm11, %vm1296_vm12 }
 0x189   : > { %v1018_v48 = vpop.f32.mrf.mxu0  ;;  %vm1315_vm3 = vweird.f32 %v6323_v22 }
 0x18a   : > { %v1019_v56 = vadd.f32 1e-05, %v1018_v48  ;;  %v1291_v48 = vmul.f32 %v6332_v53, %v1290_v20 }
 0x18b   : > { %v1210_v25 = vpop.f32.mrf.mxu3 }
 0x18c   : > { %v6338_v28 = vadd.f32 %v1210_v25, %v1146_v51  ;;  %v6340_v36 = vpop.eup %4995 }
 0x18d   : > { %v1083_v13 = vpop.f32.mrf.mxu1  ;;  %v1300_v39 = vmul.f32 %v6340_v36, %v6321_v41  ;;  %vm1306_vm0 = vweird.f32 %v6340_v36 }
 0x18e   : > { %v6342_v21 = vadd.f32 %v1083_v13, %v1019_v56  ;;  %v6344_v29 = vpop.eup %4997  ;;  %4999 = vrsqrt.f32 %v6338_v28  ;;  %v1264_v13 = vmul.f32 %v6307_v9, %v1263_v43  ;;  %vm6483_vm2 = vmor %vm1305_vm14, %vm1306_vm0  ;;  %vm1325_vm5 = vweird.f32 %v6338_v28 }
 0x18f   : > { %v1148_v38 = vpop.f32.mrf.mxu2  ;;  %v1310_v56 = vmul.f32 %v6344_v29, %v6323_v22  ;;  %v1301_v34 = vmul.f32 %v6340_v36, %v1300_v39  ;;  %vm1316_vm1 = vweird.f32 %v6344_v29 }
 0x190   : > { %v1149_v51 = vadd.f32 1e-05, %v1148_v38  ;;  %5001 = vrsqrt.f32 %v6342_v21  ;;  %v664_v38 = vld [vmem:[%s9120_s6] sm:$0x3]  ;;  %v1268_v47 = vsel %vm6385_vm6, %v6307_v9, %v1264_v13 }
 0x191   : > { %v1021_v23 = vpop.f32.mrf.mxu0  ;;  %v1311_v43 = vmul.f32 %v6344_v29, %v1310_v56  ;;  %v6397_v56 = vperm.slane %v664_v38, 0  ;;  %v6416_v39 = vperm.slane %v664_v38, 1  ;;  %v1570_v38 = vmul.f32 %v1268_v47, %v6140_v40 }
 0x192   : > { %v1022_v59 = vadd.f32 1e-05, %v1021_v23  ;;  %v1274_v23 = vmul.f32 %v6311_v33, %v1273_v44  ;;  %v6381_v44 = vperm.slane %v663_v61, 0 }
 0x193   : > { %v1213_v25 = vpop.f32.mrf.mxu3  ;;  %v1312_v30 = vmul.f32 0.5, %v1311_v43 }
 0x194   : > { %v6356_v18 = vadd.f32 %v1213_v25, %v1149_v51  ;;  %v1282_v51 = vmul.f32 0.5, %v1281_v46  ;;  %v1292_v25 = vmul.f32 0.5, %v1291_v48  ;;  %v6379_v58 = vpop.eup %4999  ;;  %v1258_v48 = vsel %vm6372_vm4, %v6303_v63, %v1254_v26  ;;  %vm6500_vm4 = vmor %vm1315_vm3, %vm1316_vm1 }
 0x195   : > { %v1086_v20 = vpop.f32.mrf.mxu1  ;;  %v1320_v9 = vmul.f32 %v6379_v58, %v6338_v28  ;;  %vm1326_vm6 = vweird.f32 %v6379_v58 }
 0x196   : > { %5003 = vrsqrt.f32 %v6356_v18  ;;  %v6390_v24 = vadd.f32 %v1086_v20, %v1022_v59  ;;  %v6392_v46 = vpop.eup %5001  ;;  %v1278_v59 = vsel %vm6406_vm8, %v6311_v33, %v1274_v23  ;;  %v1283_v63 = vsub.f32 1.5, %v1282_v51  ;;  %vm6546_vm9 = vmor %vm1325_vm5, %vm1326_vm6 }
 0x197   : > { %v1151_v10 = vpop.f32.mrf.mxu2  ;;  %v1293_v26 = vsub.f32 1.5, %v1292_v25  ;;  %v1302_v20 = vmul.f32 0.5, %v1301_v34  ;;  %v1330_v37 = vmul.f32 %v6392_v46, %v6342_v21  ;;  %v1569_v34 = vmul.f32 %v1258_v48, %v6135_v35 }
 0x198   : > { %v1152_v31 = vadd.f32 1e-05, %v1151_v10  ;;  %5005 = vrsqrt.f32 %v6390_v24  ;;  %v1571_v23 = vmul.f32 %v1278_v59, %v6145_v45  ;;  %v1284_v25 = vmul.f32 %v6329_v16, %v1283_v63 }
 0x199   : > { %v1024_v10 = vpop.f32.mrf.mxu0  ;;  %v1321_v35 = vmul.f32 %v6379_v58, %v1320_v9  ;;  %v1331_v48 = vmul.f32 %v6392_v46, %v1330_v37  ;;  %v1606_v63 = vmul.f32 %v6381_v44, %v1569_v34  ;;  %vm1336_vm7 = vweird.f32 %v6392_v46 }
 0x19a   : > { %v1025_v61 = vadd.f32 1e-05, %v1024_v10  ;;  %v1303_v10 = vsub.f32 1.5, %v1302_v20  ;;  %v1607_v20 = vmul.f32 %v6402_v62, %v1570_v38  ;;  %vm1335_vm8 = vweird.f32 %v6342_v21 }
 0x19b   : > { %v1216_v13 = vpop.f32.mrf.mxu3  ;;  %v1332_v38 = vmul.f32 0.5, %v1331_v48  ;;  %vm6560_vm10 = vmor %vm1335_vm8, %vm1336_vm7  ;;  %vm1345_vm12 = vweird.f32 %v6356_v18 }
 0x19c   : > { %v6421_v17 = vadd.f32 %v1216_v13, %v1152_v31  ;;  %v6423_v33 = vpop.eup %5003  ;;  %v1294_v31 = vmul.f32 %v6332_v53, %v1293_v26  ;;  %v1313_v13 = vsub.f32 1.5, %v1312_v30  ;;  %v1288_v30 = vsel %vm6448_vm13, %v6329_v16, %v1284_v25 }
 0x19d   : > { %v1089_v51 = vpop.f32.mrf.mxu1  ;;  %v1340_v59 = vmul.f32 %v6423_v33, %v6356_v18  ;;  %v1304_v34 = vmul.f32 %v6340_v36, %v1303_v10  ;;  %v6494_v48 = vadd.f32 %v6416_v39, %v1607_v20  ;;  %vm1346_vm11 = vweird.f32 %v6423_v33 }
 0x19e   : > { %v6432_v43 = vadd.f32 %v1089_v51, %v1025_v61  ;;  %5007 = vrsqrt.f32 %v6421_v17  ;;  %v6440_v47 = vpop.eup %5005  ;;  %v1608_v61 = vmul.f32 %v6381_v44, %v1571_v23  ;;  %v1298_v9 = vsel %vm6462_vm15, %v6332_v53, %v1294_v31  ;;  %vm6587_vm14 = vmor %vm1345_vm12, %vm1346_vm11 }
 0x19f   : > { %v1154_v45 = vpop.f32.mrf.mxu2  ;;  %v1314_v16 = vmul.f32 %v6344_v29, %v1313_v13  ;;  %v1322_v23 = vmul.f32 0.5, %v1321_v35  ;;  %v1341_v27 = vmul.f32 %v6423_v33, %v1340_v59  ;;  %v1350_v25 = vmul.f32 %v6440_v47, %v6390_v24  ;;  %9212 = vst [vmem:[#allocation26_spill] sm:$0xff] %v6494_v48 }
 0x1a0   : > { %v1155_v40 = vadd.f32 1e-05, %v1154_v45  ;;  %5009 = vrsqrt.f32 %v6432_v43  ;;  %v6479_v26 = vadd.f32 %v6397_v56, %v1608_v61  ;;  %v6491_v35 = vadd.f32 %v6397_v56, %v1606_v63 }
 0x1a1   : > { %v1027_v37 = vpop.f32.mrf.mxu0  ;;  %v1572_v59 = vmul.f32 %v1288_v30, %v6150_v50  ;;  %v1573_v41 = vmul.f32 %v1298_v9, %v6155_v55  ;;  %v1308_v63 = vsel %vm6483_vm2, %v6340_v36, %v1304_v34  ;;  %v1318_v61 = vsel %vm6500_vm4, %v6344_v29, %v1314_v16 }
 0x1a2   : > { %v1028_v31 = vadd.f32 1e-05, %v1027_v37  ;;  %v1323_v37 = vsub.f32 1.5, %v1322_v23  ;;  %v1333_v55 = vsub.f32 1.5, %v1332_v38  ;;  %v1342_v20 = vmul.f32 0.5, %v1341_v27 }
 0x1a3   : > { %v1219_v51 = vpop.f32.mrf.mxu3  ;;  %v1351_v30 = vmul.f32 %v6440_v47, %v1350_v25  ;;  %v1835_v19 = vadd.f32 %v6479_v26, %v6491_v35  ;;  %v1609_v16 = vmul.f32 %v6402_v62, %v1572_v59  ;;  %v1610_v23 = vmul.f32 %v6381_v44, %v1573_v41 }
 0x1a4   : > { %v6476_v45 = vadd.f32 %v1219_v51, %v1155_v40  ;;  %v6488_v13 = vpop.eup %5007  ;;  %v1574_v27 = vmul.f32 %v1308_v63, %v6160_v57  ;;  %v1575_v25 = vmul.f32 %v1318_v61, %v6165_v0  ;;  %v1324_v53 = vmul.f32 %v6379_v58, %v1323_v37 }
 0x1a5   : > { %v1092_v10 = vpop.f32.mrf.mxu1  ;;  %v1360_v36 = vmul.f32 %v6488_v13, %v6421_v17  ;;  %v1343_v59 = vsub.f32 1.5, %v1342_v20  ;;  %v1352_v40 = vmul.f32 0.5, %v1351_v30  ;;  %v6539_v61 = vadd.f32 %v6416_v39, %v1609_v16 }
 0x1a6   : > { %v6504_v22 = vpop.eup %5009  ;;  %5011 = vrsqrt.f32 %v6476_v45  ;;  %v6519_v9 = vadd.f32 %v1092_v10, %v1028_v31  ;;  %v1334_v10 = vmul.f32 %v6392_v46, %v1333_v55  ;;  %v6542_v37 = vadd.f32 %v6397_v56, %v1610_v23 }
 0x1a7   : > { %v1157_v50 = vpop.f32.mrf.mxu2  ;;  %v1370_v51 = vmul.f32 %v6504_v22, %v6432_v43  ;;  %v1361_v41 = vmul.f32 %v6488_v13, %v1360_v36  ;;  %9215 = vst [vmem:[#allocation27_spill] sm:$0xff] %v6539_v61  ;;  %v1611_v20 = vmul.f32 %v6402_v62, %v1574_v27  ;;  %v1612_v30 = vmul.f32 %v6381_v44, %v1575_v25 }
 0x1a8   : > { %v1158_v34 = vadd.f32 1e-05, %v1157_v50  ;;  %5013 = vrsqrt.f32 %v6519_v9  ;;  %v1328_v36 = vsel %vm6546_vm9, %v6379_v58, %v1324_v53  ;;  %v1344_v16 = vmul.f32 %v6423_v33, %v1343_v59 }
 0x1a9   : > { %v1030_v29 = vpop.f32.mrf.mxu0  ;;  %v1371_v21 = vmul.f32 %v6504_v22, %v1370_v51  ;;  %v1353_v23 = vsub.f32 1.5, %v1352_v40  ;;  %v1362_v51 = vmul.f32 0.5, %v1361_v41  ;;  %v1856_v25 = vadd.f32 %v6539_v61, %v6494_v48  ;;  %v1946_v41 = vld [vmem:[#allocation7 + $0x1e0] sm:$0xff] }
 0x1aa   : > { %v1031_v38 = vadd.f32 1e-05, %v1030_v29  ;;  %v1338_v29 = vsel %vm6560_vm10, %v6392_v46, %v1334_v10  ;;  %v1576_v10 = vmul.f32 %v1328_v36, %v6170_v1  ;;  %vm1355_vm13 = vweird.f32 %v6390_v24  ;;  %2024 = vmatpush.msra.mxu2 %v1946_v41 }
 0x1ab   : > { %v1222_v31 = vpop.f32.mrf.mxu3  ;;  %v1372_v53 = vmul.f32 0.5, %v1371_v21  ;;  %v1577_v59 = vmul.f32 %v1338_v29, %v6175_v2  ;;  %v6583_v50 = vadd.f32 %v6416_v39, %v1611_v20  ;;  %v1354_v21 = vmul.f32 %v6440_v47, %v1353_v23 }
 0x1ac   : > { %v6534_v57 = vadd.f32 %v1222_v31, %v1158_v34  ;;  %v6536_v63 = vpop.eup %5011  ;;  %vm1356_vm15 = vweird.f32 %v6440_v47  ;;  %v6596_v2 = vadd.f32 %v6397_v56, %v1612_v30  ;;  %v1363_v20 = vsub.f32 1.5, %v1362_v51 }
 0x1ad   : > { %v1095_v0 = vpop.f32.mrf.mxu1  ;;  %v1380_v58 = vmul.f32 %v6536_v63, %v6476_v45  ;;  %9220 = vst [vmem:[#allocation28_spill] sm:$0xff] %v6583_v50  ;;  %vm1365_vm0 = vweird.f32 %v6421_v17  ;;  %v1373_v23 = vsub.f32 1.5, %v1372_v53  ;;  %vm6617_vm1 = vmor %vm1355_vm13, %vm1356_vm15  ;;  %vm1366_vm2 = vweird.f32 %v6488_v13 }
 0x1ae   : > { %v6551_v55 = vadd.f32 %v1095_v0, %v1031_v38  ;;  %v6576_v31 = vpop.eup %5013  ;;  %v1836_v0 = vadd.f32 %v1835_v19, %v6542_v37  ;;  %v1348_v19 = vsel %vm6587_vm14, %v6423_v33, %v1344_v16  ;;  %v1613_v33 = vmul.f32 %v6402_v62, %v1576_v10  ;;  %vm6648_vm4 = vmor %vm1365_vm0, %vm1366_vm2 }
 0x1af   : > { %v1160_v34 = vpop.f32.mrf.mxu2  ;;  %v1381_v36 = vmul.f32 %v6536_v63, %v1380_v58  ;;  %v1614_v16 = vmul.f32 %v6381_v44, %v1577_v59  ;;  %v1358_v10 = vsel %vm6617_vm1, %v6440_v47, %v1354_v21  ;;  %v1364_v24 = vmul.f32 %v6488_v13, %v1363_v20 }
 0x1b0   : > { %5015 = vrsqrt.f32 %v6551_v55  ;;  %v1161_v38 = vadd.f32 1e-05, %v1160_v34  ;;  %v1942_v34 = vld [vmem:[#allocation7 + $0x1c0] sm:$0xff]  ;;  %vm1376_vm3 = vweird.f32 %v6504_v22  ;;  %v1579_v51 = vmul.f32 %v1358_v10, %v6185_v4 }
 0x1b1   : > { %5017 = vrsqrt.f32 %v6534_v57  ;;  %v1033_v27 = vpop.f32.mrf.mxu0  ;;  %2025 = vmatpush.msra.mxu2 %v1942_v34  ;;  %v1382_v59 = vmul.f32 0.5, %v1381_v36  ;;  %v1934_v34 = vld [vmem:[#allocation7 + $0x180] sm:$0xff]  ;;  %v1837_v48 = vadd.f32 %v1836_v0, %v6596_v2  ;;  %v1857_v61 = vadd.f32 %v1856_v25, %v6583_v50 }
 0x1b2   : > { %v1034_v46 = vadd.f32 1e-05, %v1033_v27  ;;  %v1930_v36 = vld [vmem:[#allocation7 + $0x160] sm:$0xff]  ;;  %vm1375_vm5 = vweird.f32 %v6432_v43  ;;  %v1368_v0 = vsel %vm6648_vm4, %v6488_v13, %v1364_v24  ;;  %vm1385_vm7 = vweird.f32 %v6476_v45 }
 0x1b3   : > { %v1225_v40 = vpop.f32.mrf.mxu3  ;;  %vm6662_vm6 = vmor %vm1375_vm5, %vm1376_vm3  ;;  %v2002_v10 = vld [vmem:[#allocation7 + $0x3a0] sm:$0xff]  ;;  %vm1395_vm8 = vweird.f32 %v6519_v9  ;;  %vm1386_vm9 = vweird.f32 %v6536_v63  ;;  %vm1396_vm11 = vweird.f32 %v6576_v31  ;;  %vm1405_vm12 = vweird.f32 %v6534_v57 }
 0x1b4   : > { %v6593_v1 = vadd.f32 %v1225_v40, %v1161_v38  ;;  %v1390_v38 = vmul.f32 %v6576_v31, %v6519_v9  ;;  %v1578_v40 = vmul.f32 %v1348_v19, %v6180_v3  ;;  %v1374_v3 = vmul.f32 %v6504_v22, %v1373_v23  ;;  %v1998_v4 = vld [vmem:[#allocation7 + $0x380] sm:$0xff]  ;;  %vm6704_vm10 = vmor %vm1385_vm7, %vm1386_vm9 }
 0x1b5   : > { %v1098_v28 = vpop.f32.mrf.mxu1  ;;  %v6641_v23 = vadd.f32 %v6416_v39, %v1613_v33  ;;  %v1383_v33 = vsub.f32 1.5, %v1382_v59  ;;  %v1616_v59 = vmul.f32 %v6381_v44, %v1579_v51  ;;  %v1990_v50 = vld [vmem:[#allocation7 + $0x340] sm:$0xff]  ;;  %vm1415_vm13 = vweird.f32 %v6551_v55  ;;  %vm6745_vm15 = vmor %vm1395_vm8, %vm1396_vm11 }
 0x1b6   : > { %v6602_v29 = vpop.eup %5015  ;;  %v6607_v27 = vadd.f32 %v1098_v28, %v1034_v46  ;;  %5019 = vrsqrt.f32 %v6593_v1  ;;  %v1938_v46 = vld [vmem:[#allocation7 + $0x1a0] sm:$0xff]  ;;  %v1391_v19 = vmul.f32 %v6576_v31, %v1390_v38  ;;  %v1615_v38 = vmul.f32 %v6402_v62, %v1578_v40 }
 0x1b7   : > { %v6609_v30 = vpop.eup %5017  ;;  %v1410_v58 = vmul.f32 %v6602_v29, %v6551_v55  ;;  %v1163_v53 = vpop.f32.mrf.mxu2  ;;  %2026 = vmatpush.msra.mxu2 %v1938_v46  ;;  %v2010_v28 = vld [vmem:[#allocation7 + $0x3e0] sm:$0xff]  ;;  %v1378_v13 = vsel %vm6662_vm6, %v6504_v22, %v1374_v3  ;;  %v1580_v22 = vmul.f32 %v1368_v0, %v6190_v5  ;;  %vm1416_vm14 = vweird.f32 %v6602_v29 }
 0x1b8   : > { %5021 = vrsqrt.f32 %v6607_v27  ;;  %v1164_v41 = vadd.f32 1e-05, %v1163_v53  ;;  %v1400_v47 = vmul.f32 %v6609_v30, %v6534_v57  ;;  %2044 = vmatpush.msra.mxu3 %v2010_v28  ;;  %v2006_v53 = vld [vmem:[#allocation7 + $0x3c0] sm:$0xff]  ;;  %v1392_v24 = vmul.f32 0.5, %v1391_v19  ;;  %vm6760_vm1 = vmor %vm1415_vm13, %vm1416_vm14 }
 0x1b9   : > { %v1036_v18 = vpop.f32.mrf.mxu0  ;;  %2027 = vmatpush.msra.mxu2 %v1934_v34  ;;  %v1411_v20 = vmul.f32 %v6602_v29, %v1410_v58  ;;  %v1926_v40 = vld [vmem:[#allocation7 + $0x140] sm:$0xff]  ;;  %v6688_v19 = vadd.f32 %v6416_v39, %v1615_v38  ;;  %vm1406_vm0 = vweird.f32 %v6609_v30  ;;  %vm1425_vm2 = vweird.f32 %v6593_v1 }
 0x1ba   : > { %v1037_v21 = vadd.f32 1e-05, %v1036_v18  ;;  %2045 = vmatpush.msra.mxu3 %v2006_v53  ;;  %v1401_v28 = vmul.f32 %v6609_v30, %v1400_v47  ;;  %v1922_v53 = vld [vmem:[#allocation7 + $0x120] sm:$0xff]  ;;  %v1581_v47 = vmul.f32 %v1378_v13, %v6195_v6  ;;  %v1393_v17 = vsub.f32 1.5, %v1392_v24  ;;  %vm6782_vm3 = vmor %vm1405_vm12, %vm1406_vm0 }
 0x1bb   : > { %v1228_v46 = vpop.f32.mrf.mxu3  ;;  %2028 = vmatpush.msra.mxu2 %v1930_v36  ;;  %v1994_v0 = vld [vmem:[#allocation7 + $0x360] sm:$0xff]  ;;  %v6695_v6 = vadd.f32 %v6397_v56, %v1616_v59  ;;  %v1858_v13 = vadd.f32 %v1857_v61, %v6641_v23  ;;  %vm1435_vm4 = vweird.f32 %v6607_v27 }
 0x1bc   : > { %v6653_v58 = vadd.f32 %v1228_v46, %v1164_v41  ;;  %v6655_v25 = vpop.eup %5019  ;;  %v6668_v41 = vadd.f32 %v6397_v56, %v1614_v16  ;;  %2046 = vmatpush.msra.mxu3 %v2002_v10  ;;  %v1412_v46 = vmul.f32 0.5, %v1411_v20  ;;  %v1918_v20 = vld [vmem:[#allocation7 + $0x100] sm:$0xff] }
 0x1bd   : > { %v1101_v43 = vpop.f32.mrf.mxu1  ;;  %2029 = vmatpush.msra.mxu2 %v1926_v40  ;;  %v1420_v3 = vmul.f32 %v6655_v25, %v6593_v1  ;;  %vm1426_vm6 = vweird.f32 %v6655_v25 }
 0x1be   : > { %v6670_v18 = vpop.eup %5021  ;;  %v6676_v34 = vadd.f32 %v1101_v43, %v1037_v21  ;;  %5023 = vrsqrt.f32 %v6653_v58  ;;  %2047 = vmatpush.msra.mxu3 %v1998_v4  ;;  %v1384_v21 = vmul.f32 %v6536_v63, %v1383_v33  ;;  %v1402_v43 = vmul.f32 0.5, %v1401_v28  ;;  %v1914_v4 = vld [vmem:[#allocation7 + $0xe0] sm:$0xff]  ;;  %vm6830_vm9 = vmor %vm1425_vm2, %vm1426_vm6 }
 0x1bf   : > { %v1430_v16 = vmul.f32 %v6670_v18, %v6607_v27  ;;  %v1166_v36 = vpop.f32.mrf.mxu2  ;;  %2030 = vmatpush.msra.mxu2 %v1922_v53  ;;  %v1413_v53 = vsub.f32 1.5, %v1412_v46  ;;  %v1838_v33 = vadd.f32 %v1837_v48, %v6668_v41  ;;  %v1421_v48 = vmul.f32 %v6655_v25, %v1420_v3  ;;  %v1910_v46 = vld [vmem:[#allocation7 + $0xc0] sm:$0xff] }
 0x1c0   : > { %5025 = vrsqrt.f32 %v6676_v34  ;;  %v1167_v51 = vadd.f32 1e-05, %v1166_v36  ;;  %2048 = vmatpush.msra.mxu3 %v1994_v0  ;;  %v1617_v36 = vmul.f32 %v6402_v62, %v1580_v22  ;;  %v1388_v45 = vsel %vm6704_vm10, %v6536_v63, %v1384_v21 }
 0x1c1   : > { %v1039_v5 = vpop.f32.mrf.mxu0  ;;  %v1431_v40 = vmul.f32 %v6670_v18, %v1430_v16  ;;  %2031 = vmatpush.msra.mxu2 %v1918_v20  ;;  %v1986_v16 = vld [vmem:[#allocation7 + $0x320] sm:$0xff]  ;;  %v1618_v22 = vmul.f32 %v6381_v44, %v1581_v47  ;;  %v1403_v3 = vsub.f32 1.5, %v1402_v43  ;;  %v6729_v63 = vmul.f32 %v6602_v29, %v1413_v53 }
 0x1c2   : > { %v1040_v10 = vadd.f32 1e-05, %v1039_v5  ;;  %2049 = vmatpush.msra.mxu3 %v1990_v50  ;;  %v6721_v5 = vadd.f32 %v1858_v13, %v6688_v19  ;;  %v1394_v50 = vmul.f32 %v6576_v31, %v1393_v17  ;;  %v6735_v13 = vadd.f32 %v1838_v33, %v6695_v6 }
 0x1c3   : > { %v1231_v38 = vpop.f32.mrf.mxu3  ;;  %2032 = vmatpush.msra.mxu2 %v1914_v4  ;;  %v1432_v0 = vmul.f32 0.5, %v1431_v40  ;;  %v1422_v17 = vmul.f32 0.5, %v1421_v48  ;;  %v1902_v48 = vld [vmem:[#allocation7 + $0x80] sm:$0xff]  ;;  %v1418_v53 = vsel %vm6760_vm1, %v6602_v29, %v6729_v63  ;;  %vm1436_vm5 = vweird.f32 %v6670_v18 }
 0x1c4   : > { %v6712_v61 = vpop.eup %5023  ;;  %v6717_v28 = vadd.f32 %v1231_v38, %v1167_v51  ;;  %2050 = vmatpush.msra.mxu3 %v1986_v16  ;;  %v1906_v51 = vld [vmem:[#allocation7 + $0xa0] sm:$0xff]  ;;  %v1398_v9 = vsel %vm6745_vm15, %v6576_v31, %v1394_v50  ;;  %vm6811_vm7 = vmor %vm1435_vm4, %vm1436_vm5  ;;  %vm1455_vm10 = vweird.f32 %v6676_v34  ;;  %vm1445_vm13 = vweird.f32 %v6653_v58 }
 0x1c5   : > { %v1104_v59 = vpop.f32.mrf.mxu1  ;;  %2033 = vmatpush.msra.mxu2 %v1910_v46  ;;  %v1982_v38 = vld [vmem:[#allocation7 + $0x300] sm:$0xff]  ;;  %v1440_v43 = vmul.f32 %v6712_v61, %v6653_v58  ;;  %v1404_v46 = vmul.f32 %v6609_v30, %v1403_v3  ;;  %v1423_v31 = vsub.f32 1.5, %v1422_v17  ;;  %vm1446_vm11 = vweird.f32 %v6712_v61  ;;  %v1995_v58 = vld [vmem:[#allocation7 + $0x368] sm:$0xff] }
 0x1c6   : > { %v6723_v20 = vpop.eup %5025  ;;  %v6726_v4 = vadd.f32 %v1104_v59, %v1040_v10  ;;  %2051 = vmatpush.msra.mxu3 %v1982_v38  ;;  %v1582_v10 = vmul.f32 %v1388_v45, %v6200_v7  ;;  %v1978_v59 = vld [vmem:[#allocation7 + $0x2e0] sm:$0xff]  ;;  %v1433_v7 = vsub.f32 1.5, %v1432_v0  ;;  %v6769_v38 = vadd.f32 %v6416_v39, %v1617_v36  ;;  %vm6888_vm15 = vmor %vm1445_vm13, %vm1446_vm11 }
 0x1c7   : > { %v1450_v47 = vmul.f32 %v6723_v20, %v6676_v34  ;;  %v1169_v21 = vpop.f32.mrf.mxu2  ;;  %2034 = vmatpush.msra.mxu2 %v1906_v51  ;;  %v1898_v0 = vld [vmem:[#allocation7 + $0x60] sm:$0xff]  ;;  %v6766_v51 = vadd.f32 %v6397_v56, %v1618_v22  ;;  %v1441_v50 = vmul.f32 %v6712_v61, %v1440_v43  ;;  %v1424_v16 = vmul.f32 %v6655_v25, %v1423_v31 }
 0x1c8   : > { %5027 = vrsqrt.f32 %v6726_v4  ;;  %v1170_v40 = vadd.f32 1e-05, %v1169_v21  ;;  %2052 = vmatpush.msra.mxu3 %v1978_v59  ;;  %v1974_v21 = vld [vmem:[#allocation7 + $0x2c0] sm:$0xff]  ;;  %v1434_v63 = vmul.f32 %v6670_v18, %v1433_v7  ;;  %vm1456_vm8 = vweird.f32 %v6723_v20 }
 0x1c9   : > { %v1451_v33 = vmul.f32 %v6723_v20, %v1450_v47  ;;  %5029 = vrsqrt.f32 %v6717_v28  ;;  %v1042_v24 = vpop.f32.mrf.mxu0  ;;  %2035 = vmatpush.msra.mxu2 %v1902_v48  ;;  %v1894_v17 = vld [vmem:[#allocation7 + $0x40] sm:$0xff]  ;;  %v1408_v48 = vsel %vm6782_vm3, %v6609_v30, %v1404_v46  ;;  %v1840_v31 = vadd.f32 %v6735_v13, %v6766_v51  ;;  %vm6852_vm12 = vmor %vm1455_vm10, %vm1456_vm8  ;;  %v1939_v46 = vld [vmem:[#allocation7 + $0x1a8] sm:$0xff] }
 0x1ca   : > { %v1043_v45 = vadd.f32 1e-05, %v1042_v24  ;;  %2053 = vmatpush.msra.mxu3 %v1974_v21  ;;  %v1970_v43 = vld [vmem:[#allocation7 + $0x2a0] sm:$0xff]  ;;  %vm1475_vm14 = vweird.f32 %v6726_v4  ;;  %vm1465_vm0 = vweird.f32 %v6717_v28 }
 0x1cb   : > { %v1452_v47 = vmul.f32 0.5, %v1451_v33  ;;  %v1234_v3 = vpop.f32.mrf.mxu3  ;;  %2036 = vmatpush.msra.mxu2 %v1898_v0  ;;  %v1619_v33 = vmul.f32 %v6402_v62, %v1582_v10  ;;  %v1890_v7 = vld [vmem:[#allocation7 + $0x20] sm:$0xff] }
 0x1cc   : > { %v6772_v55 = vadd.f32 %v1234_v3, %v1170_v40  ;;  %v1583_v40 = vmul.f32 %v1398_v9, %v6205_v11  ;;  %2054 = vmatpush.msra.mxu3 %v1970_v43  ;;  %v1966_v9 = vld [vmem:[#allocation7 + $0x280] sm:$0xff] }
 0x1cd   : > { %v1107_v36 = vpop.f32.mrf.mxu1  ;;  %v1453_v57 = vsub.f32 1.5, %v1452_v47  ;;  %2037 = vmatpush.msra.mxu2 %v1894_v17  ;;  %v1442_v47 = vmul.f32 0.5, %v1441_v50  ;;  %v1962_v0 = vld [vmem:[#allocation7 + $0x260] sm:$0xff]  ;;  %v1584_v50 = vmul.f32 %v1408_v48, %v6210_v12  ;;  %v1438_v17 = vsel %vm6811_vm7, %v6670_v18, %v1434_v63 }
 0x1ce   : > { %v6790_v29 = vpop.eup %5027  ;;  %v6793_v24 = vadd.f32 %v1107_v36, %v1043_v45  ;;  %5031 = vrsqrt.f32 %v6772_v55  ;;  %v1585_v45 = vmul.f32 %v1418_v53, %v6215_v14  ;;  %2055 = vmatpush.msra.mxu3 %v1966_v9  ;;  %v1886_v14 = vld [vmem:[#allocation7] sm:$0xff]  ;;  %v1620_v21 = vmul.f32 %v6381_v44, %v1583_v40  ;;  %v1947_v36 = vld [vmem:[#allocation7 + $0x1e8] sm:$0xff] }
 0x1cf   : > { %v6798_v59 = vpop.eup %5029  ;;  %v1470_v11 = vmul.f32 %v6790_v29, %v6726_v4  ;;  %v1172_v10 = vpop.f32.mrf.mxu2  ;;  %2038 = vmatpush.msra.mxu2 %v1890_v7  ;;  %v1454_v53 = vmul.f32 %v6723_v20, %v1453_v57  ;;  %v1958_v40 = vld [vmem:[#allocation7 + $0x240] sm:$0xff]  ;;  %v6837_v48 = vadd.f32 %v6416_v39, %v1619_v33  ;;  %v1860_v18 = vadd.f32 %v6721_v5, %v6769_v38 }
 0x1d0   : > { %5033 = vrsqrt.f32 %v6793_v24  ;;  %v1173_v30 = vadd.f32 1e-05, %v1172_v10  ;;  %v1460_v27 = vmul.f32 %v6798_v59, %v6717_v28  ;;  %2056 = vmatpush.msra.mxu3 %v1962_v0  ;;  %v1622_v57 = vmul.f32 %v6381_v44, %v1585_v45  ;;  %v1943_v10 = vld [vmem:[#allocation7 + $0x1c8] sm:$0xff]  ;;  %v1954_v34 = vld [vmem:[#allocation7 + $0x220] sm:$0xff] }
 0x1d1   : > { %v1045_v3 = vpop.f32.mrf.mxu0  ;;  %2039 = vmatpush.msra.mxu2 %v1886_v14  ;;  %v1471_v12 = vmul.f32 %v6790_v29, %v1470_v11  ;;  %v1443_v63 = vsub.f32 1.5, %v1442_v47  ;;  %v1428_v11 = vsel %vm6830_vm9, %v6655_v25, %v1424_v16  ;;  %v1587_v9 = vmul.f32 %v1438_v17, %v6225_v49  ;;  %v2011_v17 = vld [vmem:[#allocation7 + $0x3e8] sm:$0xff] }
 0x1d2   : > { %v1046_v22 = vadd.f32 1e-05, %v1045_v3  ;;  %2057 = vmatpush.msra.mxu3 %v1958_v40  ;;  %v6858_v45 = vadd.f32 %v6397_v56, %v1620_v21  ;;  %v1621_v25 = vmul.f32 %v6402_v62, %v1584_v50  ;;  %v1461_v47 = vmul.f32 %v6798_v59, %v1460_v27  ;;  %v1950_v21 = vld [vmem:[#allocation7 + $0x200] sm:$0xff] }
 0x1d3   : > { %v1237_v43 = vpop.f32.mrf.mxu3  ;;  %2064 = vmatpush.msrb.mxu2 %v1947_v36  ;;  %v1458_v3 = vsel %vm6852_vm12, %v6723_v20, %v1454_v53  ;;  %v1472_v49 = vmul.f32 0.5, %v1471_v12  ;;  %v6873_v50 = vadd.f32 %v6397_v56, %v1622_v57  ;;  %v1586_v27 = vmul.f32 %v1428_v11, %v6220_v15  ;;  %v1935_v53 = vld [vmem:[#allocation7 + $0x188] sm:$0xff] }
 0x1d4   : > { %v6842_v1 = vadd.f32 %v1237_v43, %v1173_v30  ;;  %v6847_v7 = vpop.eup %5031  ;;  %2058 = vmatpush.msra.mxu3 %v1954_v34  ;;  %v1589_v12 = vmul.f32 %v1458_v3, %v6235_v60  ;;  %v1624_v15 = vmul.f32 %v6381_v44, %v1587_v9  ;;  %v1841_v43 = vadd.f32 %v1840_v31, %v6858_v45  ;;  %v2003_v3 = vld [vmem:[#allocation7 + $0x3a8] sm:$0xff] }
 0x1d5   : > { %v1110_v5 = vpop.f32.mrf.mxu1  ;;  %2065 = vmatpush.msrb.mxu2 %v1943_v10  ;;  %v1480_v36 = vmul.f32 %v6847_v7, %v6772_v55  ;;  %v1462_v40 = vmul.f32 0.5, %v1461_v47  ;;  %v2007_v10 = vld [vmem:[#allocation7 + $0x3c8] sm:$0xff]  ;;  %v1861_v11 = vadd.f32 %v1860_v18, %v6837_v48  ;;  %v1473_v33 = vsub.f32 1.5, %v1472_v49 }
 0x1d6   : > { %v6861_v16 = vpop.eup %5033  ;;  %5035 = vrsqrt.f32 %v6842_v1  ;;  %v6865_v30 = vadd.f32 %v1110_v5, %v1046_v22  ;;  %v1444_v22 = vmul.f32 %v6712_v61, %v1443_v63  ;;  %2059 = vmatpush.msra.mxu3 %v1950_v21  ;;  %v1931_v63 = vld [vmem:[#allocation7 + $0x168] sm:$0xff]  ;;  %v1842_v31 = vadd.f32 %v1841_v43, %v6873_v50 }
 0x1d7   : > { %v1490_v14 = vmul.f32 %v6861_v16, %v6793_v24  ;;  %v1175_v0 = vpop.f32.mrf.mxu2  ;;  %2066 = vmatpush.msrb.mxu2 %v1939_v46  ;;  %v6895_v34 = vadd.f32 %v6416_v39, %v1621_v25  ;;  %v1481_v18 = vmul.f32 %v6847_v7, %v1480_v36  ;;  %v1927_v46 = vld [vmem:[#allocation7 + $0x148] sm:$0xff]  ;;  %vm1466_vm1 = vweird.f32 %v6798_v59 }
 0x1d8   : > { %5037 = vrsqrt.f32 %v6865_v30  ;;  %v1176_v20 = vadd.f32 1e-05, %v1175_v0  ;;  %2084 = vmatpush.msrb.mxu3 %v2011_v17  ;;  %v1448_v49 = vsel %vm6888_vm15, %v6712_v61, %v1444_v22  ;;  %v1626_v21 = vmul.f32 %v6381_v44, %v1589_v12  ;;  %v1999_v22 = vld [vmem:[#allocation7 + $0x388] sm:$0xff]  ;;  %vm6959_vm7 = vmor %vm1465_vm0, %vm1466_vm1 }
 0x1d9   : > { %v1048_v13 = vpop.f32.mrf.mxu0  ;;  %2067 = vmatpush.msrb.mxu2 %v1935_v53  ;;  %v1491_v60 = vmul.f32 %v6861_v16, %v1490_v14  ;;  %v1623_v14 = vmul.f32 %v6402_v62, %v1586_v27  ;;  %v6912_v36 = vadd.f32 %v6397_v56, %v1624_v15  ;;  %v1463_v53 = vsub.f32 1.5, %v1462_v40  ;;  %v1923_v27 = vld [vmem:[#allocation7 + $0x128] sm:$0xff] }
 0x1da   : > { %v1049_v57 = vadd.f32 1e-05, %v1048_v13  ;;  %2085 = vmatpush.msrb.mxu3 %v2007_v10  ;;  %vm1476_vm2 = vweird.f32 %v6790_v29  ;;  %v1474_v17 = vmul.f32 %v6790_v29, %v1473_v33  ;;  %v1588_v15 = vmul.f32 %v1448_v49, %v6230_v54  ;;  %v1919_v10 = vld [vmem:[#allocation7 + $0x108] sm:$0xff] }
 0x1db   : > { %v1240_v5 = vpop.f32.mrf.mxu3  ;;  %2068 = vmatpush.msrb.mxu2 %v1931_v63  ;;  %v1492_v13 = vmul.f32 0.5, %v1491_v60  ;;  %v1482_v40 = vmul.f32 0.5, %v1481_v18  ;;  %vm1495_vm3 = vweird.f32 %v6793_v24  ;;  %v1843_v54 = vadd.f32 %v1842_v31, %v6912_v36  ;;  %vm6937_vm4 = vmor %vm1475_vm14, %vm1476_vm2 }
 0x1dc   : > { %v6897_v9 = vpop.eup %5035  ;;  %v6901_v47 = vadd.f32 %v1240_v5, %v1176_v20  ;;  %2086 = vmatpush.msrb.mxu3 %v2003_v3  ;;  %v1915_v5 = vld [vmem:[#allocation7 + $0xe8] sm:$0xff]  ;;  %v6929_v3 = vadd.f32 %v6397_v56, %v1626_v21  ;;  %v1464_v18 = vmul.f32 %v6798_v59, %v1463_v53  ;;  %vm1485_vm5 = vweird.f32 %v6772_v55 }
 0x1dd   : > { %v1500_v25 = vmul.f32 %v6897_v9, %v6842_v1  ;;  %v1113_v0 = vpop.f32.mrf.mxu1  ;;  %2069 = vmatpush.msrb.mxu2 %v1927_v46  ;;  %v1991_v46 = vld [vmem:[#allocation7 + $0x348] sm:$0xff]  ;;  %v6943_v21 = vadd.f32 %v6416_v39, %v1623_v14  ;;  %v1862_v31 = vadd.f32 %v1861_v11, %v6895_v34  ;;  %v1478_v4 = vsel %vm6937_vm4, %v6790_v29, %v1474_v17 }
 0x1de   : > { %v6914_v20 = vpop.eup %5037  ;;  %5039 = vrsqrt.f32 %v6901_v47  ;;  %v6918_v61 = vadd.f32 %v1113_v0, %v1049_v57  ;;  %2087 = vmatpush.msrb.mxu3 %v1999_v22  ;;  %v1911_v0 = vld [vmem:[#allocation7 + $0xc8] sm:$0xff]  ;;  %v1493_v22 = vsub.f32 1.5, %v1492_v13  ;;  %vm1486_vm6 = vweird.f32 %v6847_v7 }
 0x1df   : > { %v1510_v12 = vmul.f32 %v6914_v20, %v6865_v30  ;;  %v1178_v43 = vpop.f32.mrf.mxu2  ;;  %2070 = vmatpush.msrb.mxu2 %v1923_v27  ;;  %v1501_v63 = vmul.f32 %v6897_v9, %v1500_v25  ;;  %v1987_v27 = vld [vmem:[#allocation7 + $0x328] sm:$0xff]  ;;  %vm1496_vm8 = vweird.f32 %v6861_v16  ;;  %vm1505_vm9 = vweird.f32 %v6842_v1  ;;  %vm7009_vm13 = vmor %vm1485_vm5, %vm1486_vm6 }
 0x1e0   : > { %5041 = vrsqrt.f32 %v6918_v61  ;;  %v1179_v57 = vadd.f32 1e-05, %v1178_v43  ;;  %2088 = vmatpush.msrb.mxu3 %v1995_v58  ;;  %v1625_v43 = vmul.f32 %v6402_v62, %v1588_v15  ;;  %v1483_v58 = vsub.f32 1.5, %v1482_v40  ;;  %v1907_v11 = vld [vmem:[#allocation7 + $0xa8] sm:$0xff]  ;;  %vm6993_vm12 = vmor %vm1495_vm3, %vm1496_vm8 }
 0x1e1   : > { %v1511_v33 = vmul.f32 %v6914_v20, %v1510_v12  ;;  %v1051_v60 = vpop.f32.mrf.mxu0  ;;  %2071 = vmatpush.msrb.mxu2 %v1919_v10  ;;  %v1502_v14 = vmul.f32 0.5, %v1501_v63  ;;  %v1983_v13 = vld [vmem:[#allocation7 + $0x308] sm:$0xff]  ;;  %v6967_v40 = vadd.f32 %v1843_v54, %v6929_v3  ;;  %v1468_v49 = vsel %vm6959_vm7, %v6798_v59, %v1464_v18 }
 0x1e2   : > { %v1052_v25 = vadd.f32 1e-05, %v1051_v60  ;;  %2089 = vmatpush.msrb.mxu3 %v1991_v46  ;;  %v1591_v46 = vmul.f32 %v1478_v4, %v6245_v32  ;;  %vm1515_vm10 = vweird.f32 %v6865_v30  ;;  %v1899_v4 = vld [vmem:[#allocation7 + $0x68] sm:$0xff]  ;;  %vm1516_vm11 = vweird.f32 %v6914_v20 }
 0x1e3   : > { %v1512_v53 = vmul.f32 0.5, %v1511_v33  ;;  %v1243_v12 = vpop.f32.mrf.mxu3  ;;  %2072 = vmatpush.msrb.mxu2 %v1915_v5  ;;  %v1979_v5 = vld [vmem:[#allocation7 + $0x2e8] sm:$0xff]  ;;  %vm1506_vm14 = vweird.f32 %v6897_v9  ;;  %vm7024_vm15 = vmor %vm1515_vm10, %vm1516_vm11  ;;  %vm1535_vm0 = vweird.f32 %v6918_v61  ;;  %vm1525_vm4 = vweird.f32 %v6901_v47 }
 0x1e4   : > { %v6950_v10 = vpop.eup %5039  ;;  %v6953_v60 = vadd.f32 %v1243_v12, %v1179_v57  ;;  %2090 = vmatpush.msrb.mxu3 %v1987_v27  ;;  %v1903_v57 = vld [vmem:[#allocation7 + $0x88] sm:$0xff]  ;;  %v1503_v12 = vsub.f32 1.5, %v1502_v14  ;;  %v1628_v14 = vmul.f32 %v6381_v44, %v1591_v46  ;;  %vm7049_vm2 = vmor %vm1505_vm9, %vm1506_vm14 }
 0x1e5   : > { %v1513_v29 = vsub.f32 1.5, %v1512_v53  ;;  %v1520_v17 = vmul.f32 %v6950_v10, %v6901_v47  ;;  %v1116_v15 = vpop.f32.mrf.mxu1  ;;  %2073 = vmatpush.msrb.mxu2 %v1911_v0  ;;  %v1494_v0 = vmul.f32 %v6861_v16, %v1493_v22  ;;  %v1975_v59 = vld [vmem:[#allocation7 + $0x2c8] sm:$0xff]  ;;  %vm1526_vm3 = vweird.f32 %v6950_v10 }
 0x1e6   : > { %v6969_v63 = vpop.eup %5041  ;;  %5043 = vrsqrt.f32 %v6953_v60  ;;  %v6973_v28 = vadd.f32 %v1116_v15, %v1052_v25  ;;  %2091 = vmatpush.msrb.mxu3 %v1983_v13  ;;  %v1484_v25 = vmul.f32 %v6847_v7, %v1483_v58  ;;  %v1971_v13 = vld [vmem:[#allocation7 + $0x2a8] sm:$0xff]  ;;  %v7003_v15 = vadd.f32 %v1862_v31, %v6943_v21  ;;  %vm7073_vm6 = vmor %vm1525_vm4, %vm1526_vm3 }
 0x1e7   : > { %v1521_v54 = vmul.f32 %v6950_v10, %v1520_v17  ;;  %v1530_v27 = vmul.f32 %v6969_v63, %v6918_v61  ;;  %v1181_v53 = vpop.f32.mrf.mxu2  ;;  %2074 = vmatpush.msrb.mxu2 %v1907_v11  ;;  %v1514_v18 = vmul.f32 %v6914_v20, %v1513_v29  ;;  %v1895_v11 = vld [vmem:[#allocation7 + $0x48] sm:$0xff]  ;;  %v1590_v29 = vmul.f32 %v1468_v49, %v6240_v8 }
 0x1e8   : > { %5045 = vrsqrt.f32 %v6973_v28  ;;  %v1182_v32 = vadd.f32 1e-05, %v1181_v53  ;;  %2092 = vmatpush.msrb.mxu3 %v1979_v5  ;;  %v7000_v17 = vadd.f32 %v6416_v39, %v1625_v43  ;;  %v1498_v8 = vsel %vm6993_vm12, %v6861_v16, %v1494_v0  ;;  %v1967_v16 = vld [vmem:[#allocation7 + $0x288] sm:$0xff] }
 0x1e9   : > { %v1522_v22 = vmul.f32 0.5, %v1521_v54  ;;  %v1531_v33 = vmul.f32 %v6969_v63, %v1530_v27  ;;  %2075 = vmatpush.msrb.mxu2 %v1903_v57  ;;  %v1504_v43 = vmul.f32 %v6897_v9, %v1503_v12  ;;  %v1891_v54 = vld [vmem:[#allocation7 + $0x28] sm:$0xff]  ;;  %v1488_v0 = vsel %vm7009_vm13, %v6847_v7, %v1484_v25 }
 0x1ea   : > { %2093 = vmatpush.msrb.mxu3 %v1975_v59  ;;  %vm1536_vm1 = vweird.f32 %v6969_v63  ;;  %v1518_v53 = vsel %vm7024_vm15, %v6914_v20, %v1514_v18  ;;  %v1593_v7 = vmul.f32 %v1498_v8, %v6255_v42  ;;  %v1887_v25 = vld [vmem:[#allocation7 + $0x8] sm:$0xff]  ;;  %v1627_v58 = vmul.f32 %v6402_v62, %v1590_v29 }
 0x1eb   : > { %v1523_v57 = vsub.f32 1.5, %v1522_v22  ;;  %v1532_v5 = vmul.f32 0.5, %v1531_v33  ;;  %v1246_v46 = vpop.f32.mrf.mxu3  ;;  %2076 = vmatpush.msrb.mxu2 %v1899_v4  ;;  %v1963_v4 = vld [vmem:[#allocation7 + $0x268] sm:$0xff]  ;;  %vm1537_vm5 = vmor %vm1535_vm0, %vm1536_vm1  ;;  %v1595_v42 = vmul.f32 %v1518_v53, %v6265_v52  ;;  %v1508_v47 = vsel %vm7049_vm2, %v6897_v9, %v1504_v43  ;;  %v9260_v52 = vld [vmem:[#allocation22_spill] sm:$0xff] }
 0x1ec   : > { %v7017_v31 = vpop.eup %5043  ;;  %v7029_v49 = vadd.f32 %v1246_v46, %v1182_v32  ;;  %2094 = vmatpush.msrb.mxu3 %v1971_v13  ;;  %v9257_v1 = vld [vmem:[#allocation20_spill] sm:$0xff]  ;;  %v1630_v29 = vmul.f32 %v6381_v44, %v1593_v7  ;;  %vm1545_vm8 = vweird.f32 %v6953_v60  ;;  %vm1555_vm11 = vweird.f32 %v6973_v28 }
 0x1ed   : > { %v1533_v27 = vsub.f32 1.5, %v1532_v5  ;;  %v1540_v30 = vmul.f32 %v7017_v31, %v6953_v60  ;;  %2077 = vmatpush.msrb.mxu2 %v1895_v11  ;;  %v1524_v32 = vmul.f32 %v6950_v10, %v1523_v57  ;;  %v1592_v33 = vmul.f32 %v1488_v0, %v9257_v1  ;;  %v1959_v46 = vld [vmem:[#allocation7 + $0x248] sm:$0xff] }
 0x1ee   : > { %v7040_v12 = vpop.eup %5045  ;;  %5047 = vrsqrt.f32 %v7029_v49  ;;  %2095 = vmatpush.msrb.mxu3 %v1967_v16  ;;  %v7080_v5 = vadd.f32 %v6397_v56, %v1628_v14  ;;  %vm1546_vm7 = vweird.f32 %v7017_v31  ;;  %v9261_v16 = vld [vmem:[#allocation19_spill] sm:$0xff]  ;;  %v1667_v60 = vadd.f32 %v6397_v56, %v1630_v29  ;;  %v1951_v59 = vld [vmem:[#allocation7 + $0x208] sm:$0xff] }
 0x1ef   : > { %v1534_v20 = vmul.f32 %v6969_v63, %v1533_v27  ;;  %v1541_v18 = vmul.f32 %v7017_v31, %v1540_v30  ;;  %v1550_v22 = vmul.f32 %v7040_v12, %v6973_v28  ;;  %2078 = vmatpush.msrb.mxu2 %v1891_v54  ;;  %v1528_v43 = vsel %vm7073_vm6, %v6950_v10, %v1524_v32  ;;  %v1955_v27 = vld [vmem:[#allocation7 + $0x228] sm:$0xff]  ;;  %vm1547_vm10 = vmor %vm1545_vm8, %vm1546_vm7  ;;  %v9262_v32 = vld [vmem:[#allocation21_spill] sm:$0xff] }
 0x1f0   : > { %2096 = vmatpush.msrb.mxu3 %v1963_v4  ;;  %v1632_v54 = vmul.f32 %v6381_v44, %v1595_v42  ;;  %v1594_v14 = vmul.f32 %v1508_v47, %v9261_v16  ;;  %v1629_v0 = vmul.f32 %v6402_v62, %v1592_v33  ;;  %vm1556_vm9 = vweird.f32 %v7040_v12  ;;  %v9263_v33 = vld [vmem:[#allocation23_spill] sm:$0xff]  ;;  %v9264_v61 = vld [vmem:[#allocation24_spill] sm:$0xff] }
 0x1f1   : > { %v1542_v11 = vmul.f32 0.5, %v1541_v18  ;;  %v1551_v13 = vmul.f32 %v7040_v12, %v1550_v22  ;;  %v1538_v24 = vsel %vm1537_vm5, %v6969_v63, %v1534_v20  ;;  %2079 = vmatpush.msrb.mxu2 %v1887_v25  ;;  %v5494_v63 = vmov 128.0   ;;  %vm1557_vm12 = vmor %vm1555_vm11, %vm1556_vm9 }
 0x1f2   : > { %v1597_v57 = vmul.f32 %v1538_v24, %v9260_v52  ;;  %5049 = vrcp.f32 %v5494_v63  ;;  %2097 = vmatpush.msrb.mxu3 %v1959_v46  ;;  %v1596_v25 = vmul.f32 %v1528_v43, %v9262_v32  ;;  %v7099_v4 = vadd.f32 %v6416_v39, %v1627_v58 }
 0x1f3   : > { %v1543_v8 = vsub.f32 1.5, %v1542_v11  ;;  %v1552_v9 = vmul.f32 0.5, %v1551_v13  ;;  %v1669_v1 = vadd.f32 %v6397_v56, %v1632_v54  ;;  %v1631_v58 = vmul.f32 %v6402_v62, %v1594_v14 }
 0x1f4   : > { %v5048_v55 = vpop.eup %5047  ;;  %2098 = vmatpush.msrb.mxu3 %v1955_v27  ;;  %v1634_v10 = vmul.f32 %v6381_v44, %v1597_v57  ;;  %v1845_v13 = vadd.f32 %v6967_v40, %v7080_v5  ;;  %v1666_v47 = vadd.f32 %v6416_v39, %v1629_v0  ;;  %v1633_v29 = vmul.f32 %v6402_v62, %v1596_v25 }
 0x1f5   : > { %v1544_v30 = vmul.f32 %v7017_v31, %v1543_v8  ;;  %v1553_v53 = vsub.f32 1.5, %v1552_v9  ;;  %v1560_v7 = vmul.f32 %v5048_v55, %v7029_v49  ;;  %vm1566_vm13 = vweird.f32 %v5048_v55 }
 0x1f6   : > { %2099 = vmatpush.msrb.mxu3 %v1951_v59  ;;  %v1671_v57 = vadd.f32 %v6397_v56, %v1634_v10  ;;  %v1846_v63 = vadd.f32 %v1845_v13, %v1667_v60  ;;  %v1668_v43 = vadd.f32 %v6416_v39, %v1631_v58  ;;  %vm1565_vm14 = vweird.f32 %v7029_v49 }
 0x1f7   : > { %v1554_v20 = vmul.f32 %v7040_v12, %v1553_v53  ;;  %v1561_v18 = vmul.f32 %v5048_v55, %v1560_v7  ;;  %v1548_v22 = vsel %vm1547_vm10, %v7017_v31, %v1544_v30  ;;  %v1864_v31 = vadd.f32 %v7003_v15, %v7000_v17  ;;  %vm1567_vm15 = vmor %vm1565_vm14, %vm1566_vm13  ;;  %v9265_v7 = vld [vmem:[#allocation25_spill] sm:$0xff] }
 0x1f8   : > { %v5050_v42 = vpop.eup %5049  ;;  %v1598_v11 = vmul.f32 %v1548_v22, %v9263_v33  ;;  %v1847_v54 = vadd.f32 %v1846_v63, %v1669_v1  ;;  %v1670_v14 = vadd.f32 %v6416_v39, %v1633_v29  ;;  %v1908_v29 = vld [vmem:[#allocation7 + $0xb0] sm:$0xff]  ;;  %vm2518_vm1 = vcmask 1040384  }
 0x1f9   : > { %v1558_v24 = vsel %vm1557_vm12, %v7040_v12, %v1554_v20  ;;  %v1562_v28 = vmul.f32 0.5, %v1561_v18  ;;  %v1878_v8 = vmul.f32 128.0, %v5050_v42  ;;  %v1865_v40 = vadd.f32 %v1864_v31, %v7099_v4  ;;  %v1984_v63 = vld [vmem:[#allocation7 + $0x310] sm:$0xff] }
 0x1fa   : > { %v1599_v52 = vmul.f32 %v1558_v24, %v9264_v61  ;;  %v1635_v9 = vmul.f32 %v6402_v62, %v1598_v11  ;;  %v1848_v0 = vadd.f32 %v1847_v54, %v1671_v57  ;;  %vm1882_vm0 = vweird.f32 %v5050_v42  ;;  %v1948_v61 = vld [vmem:[#allocation7 + $0x1f0] sm:$0xff] }
 0x1fb   : > { %v1563_v46 = vsub.f32 1.5, %v1562_v28  ;;  %v1866_v27 = vadd.f32 %v1865_v40, %v1666_v47  ;;  %v1879_v53 = vsub.f32 1.0, %v1878_v8  ;;  %v1980_v8 = vld [vmem:[#allocation7 + $0x2f0] sm:$0xff] }
 0x1fc   : > { %v1636_v12 = vmul.f32 %v6381_v44, %v1599_v52  ;;  %v1672_v44 = vadd.f32 %v6416_v39, %v1635_v9  ;;  %v1992_v52 = vld [vmem:[#allocation7 + $0x350] sm:$0xff] }
 0x1fd   : > { %v1564_v15 = vmul.f32 %v5048_v55, %v1563_v46  ;;  %v1867_v25 = vadd.f32 %v1866_v27, %v1668_v43  ;;  %v1880_v18 = vmul.f32 %v5050_v42, %v1879_v53  ;;  %v1904_v46 = vld [vmem:[#allocation7 + $0x90] sm:$0xff]  ;;  %v1949_v27 = vld [vmem:[#allocation7 + $0x1f8] sm:$0xff] }
 0x1fe   : > { %v1673_v16 = vadd.f32 %v6397_v56, %v1636_v12  ;;  %v1900_v40 = vld [vmem:[#allocation7 + $0x70] sm:$0xff]  ;;  %v1945_v53 = vld [vmem:[#allocation7 + $0x1d8] sm:$0xff] }
 0x1ff   : > { %v1568_v30 = vsel %vm1567_vm15, %v5048_v55, %v1564_v15  ;;  %v1868_v20 = vadd.f32 %v1867_v25, %v1670_v14  ;;  %v1881_v58 = vadd.f32 %v5050_v42, %v1880_v18  ;;  %v1976_v12 = vld [vmem:[#allocation7 + $0x2d0] sm:$0xff]  ;;  %v1937_v25 = vld [vmem:[#allocation7 + $0x198] sm:$0xff] }
 0x200   : > { %v1600_v10 = vmul.f32 %v1568_v30, %v9265_v7  ;;  %1693 = vmatpush.msra.mxu0 %v1673_v16  ;;  %v1849_v32 = vadd.f32 %v1848_v0, %v1673_v16  ;;  %v1896_v9 = vld [vmem:[#allocation7 + $0x50] sm:$0xff]  ;;  %v1676_v16 = vld [vmem:[%s9115_s1 + $0x8] sm:$0xff]  ;;  %v1929_v18 = vld [vmem:[#allocation7 + $0x158] sm:$0xff] }
 0x201   : > { %v1869_v33 = vadd.f32 %v1868_v20, %v1672_v44  ;;  %v1883_v28 = vsel %vm1882_vm0, %v5050_v42, %v1881_v58  ;;  %v1944_v42 = vld [vmem:[#allocation7 + $0x1d0] sm:$0xff]  ;;  %v2009_v20 = vld [vmem:[#allocation7 + $0x3d8] sm:$0xff] }
 0x202   : > { %1694 = vmatpush.msra.mxu0 %v1671_v57  ;;  %v1637_v59 = vmul.f32 %v6402_v62, %v1600_v10  ;;  %v1850_v49 = vrot.slane %v1849_v32, 4  ;;  %v1912_v57 = vld [vmem:[#allocation7 + $0xd0] sm:$0xff]  ;;  %v1941_v10 = vld [vmem:[#allocation7 + $0x1b8] sm:$0xff] }
 0x203   : > { %v1892_v54 = vld [vmem:[#allocation7 + $0x30] sm:$0xff]  ;;  %v1997_v58 = vld [vmem:[#allocation7 + $0x378] sm:$0xff] }
 0x204   : > { %1695 = vmatpush.msra.mxu0 %v1669_v1  ;;  %v1674_v56 = vadd.f32 %v6416_v39, %v1637_v59  ;;  %v1851_v22 = vadd.f32 %v1850_v49, %v1849_v32  ;;  %v1968_v15 = vld [vmem:[#allocation7 + $0x290] sm:$0xff]  ;;  %v2013_v59 = vld [vmem:[#allocation7 + $0x3f8] sm:$0xff] }
 0x205   : > { %v1964_v0 = vld [vmem:[#allocation7 + $0x270] sm:$0xff]  ;;  %v1933_v49 = vld [vmem:[#allocation7 + $0x178] sm:$0xff] }
 0x206   : > { %1696 = vmatpush.msra.mxu0 %v1667_v60  ;;  %1764 = vmatpush.msra.mxu1 %v1674_v56  ;;  %v1852_v55 = vrot.slane %v1851_v22, 2  ;;  %v1870_v11 = vadd.f32 %v1869_v33, %v1674_v56  ;;  %v1960_v30 = vld [vmem:[#allocation7 + $0x250] sm:$0xff]  ;;  %v2005_v56 = vld [vmem:[#allocation7 + $0x3b8] sm:$0xff] }
 0x207   : > { %v1956_v7 = vld [vmem:[#allocation7 + $0x230] sm:$0xff]  ;;  %v1925_v33 = vld [vmem:[#allocation7 + $0x138] sm:$0xff] }
 0x208   : > { %1697 = vmatpush.msra.mxu0 %v7080_v5  ;;  %1765 = vmatpush.msra.mxu1 %v1672_v44  ;;  %v1853_v13 = vadd.f32 %v1852_v55, %v1851_v22  ;;  %v1871_v24 = vrot.slane %v1870_v11, 4  ;;  %v1952_v44 = vld [vmem:[#allocation7 + $0x210] sm:$0xff]  ;;  %v1678_v22 = vld [vmem:[%s9115_s1 + $0x18] sm:$0xff] }
 0x209   : > { %v1677_v32 = vld [vmem:[%s9115_s1 + $0x10] sm:$0xff]  ;;  %v2001_v55 = vld [vmem:[#allocation7 + $0x398] sm:$0xff] }
 0x20a   : > { %1698 = vmatpush.msra.mxu0 %v6929_v3  ;;  %1766 = vmatpush.msra.mxu1 %v1670_v14  ;;  %v1854_v62 = vrot.slane %v1853_v13, 1  ;;  %v1872_v1 = vadd.f32 %v1871_v24, %v1870_v11  ;;  %v1888_v14 = vld [vmem:[#allocation7 + $0x10] sm:$0xff]  ;;  %v1921_v11 = vld [vmem:[#allocation7 + $0x118] sm:$0xff] }
 0x20b   : > { %v1993_v24 = vld [vmem:[#allocation7 + $0x358] sm:$0xff] }
 0x20c   : > { %1699 = vmatpush.msra.mxu0 %v6912_v36  ;;  %1767 = vmatpush.msra.mxu1 %v1668_v43  ;;  %v1855_v39 = vadd.f32 %v1854_v62, %v1853_v13  ;;  %v1873_v60 = vrot.slane %v1872_v1, 2  ;;  %v1972_v43 = vld [vmem:[#allocation7 + $0x2b0] sm:$0xff]  ;;  %v1917_v13 = vld [vmem:[#allocation7 + $0xf8] sm:$0xff] }
 0x20d   : > { %v1913_v62 = vld [vmem:[#allocation7 + $0xd8] sm:$0xff] }
 0x20e   : > { %1700 = vmatpush.msra.mxu0 %v6873_v50  ;;  %1768 = vmatpush.msra.mxu1 %v1666_v47  ;;  %v7133_v31 = vmul.f32 %v1883_v28, %v1855_v39  ;;  %v1874_v5 = vadd.f32 %v1873_v60, %v1872_v1  ;;  %v1940_v50 = vld [vmem:[#allocation7 + $0x1b0] sm:$0xff]  ;;  %v1989_v1 = vld [vmem:[#allocation7 + $0x338] sm:$0xff] }
 0x20f   : > { %v1909_v39 = vld [vmem:[#allocation7 + $0xb8] sm:$0xff] }
 0x210   : > { %1701 = vmatpush.msra.mxu0 %v6858_v45  ;;  %1769 = vmatpush.msra.mxu1 %v7099_v4  ;;  %v1875_v3 = vrot.slane %v1874_v5, 1  ;;  %v1936_v45 = vld [vmem:[#allocation7 + $0x190] sm:$0xff]  ;;  %v1985_v60 = vld [vmem:[#allocation7 + $0x318] sm:$0xff] }
 0x211   : > { %2040 = vmatmul.f32.vlgmr.msra.gmra.mxu2 %v7133_v31  ;;  %v2012_v4 = vld [vmem:[#allocation7 + $0x3f0] sm:$0xff] }
 0x212   : > { %2104 = vmatpush.msra.mxu2 %v1948_v61  ;;  %1702 = vmatpush.msra.mxu0 %v6766_v51  ;;  %v1876_v36 = vadd.f32 %v1875_v3, %v1874_v5  ;;  %v2008_v51 = vld [vmem:[#allocation7 + $0x3d0] sm:$0xff]  ;;  %v1905_v5 = vld [vmem:[#allocation7 + $0x98] sm:$0xff] }
 0x213   : > { %1770 = vmatpush.msra.mxu1 %v7000_v17  ;;  %v1932_v17 = vld [vmem:[#allocation7 + $0x170] sm:$0xff]  ;;  %v1981_v61 = vld [vmem:[#allocation7 + $0x2f8] sm:$0xff] }
 0x214   : > { %2105 = vmatpush.msra.mxu2 %v1944_v42  ;;  %1703 = vmatpush.msra.mxu0 %v6695_v6  ;;  %v7141_v47 = vmul.f32 %v1883_v28, %v1876_v36  ;;  %v2004_v6 = vld [vmem:[#allocation7 + $0x3b0] sm:$0xff]  ;;  %v1679_v28 = vld [vmem:[%s9115_s1 + $0x20] sm:$0xff]  ;;  %v1901_v36 = vld [vmem:[#allocation7 + $0x78] sm:$0xff] }
 0x215   : > { %1771 = vmatpush.msra.mxu1 %v6943_v21  ;;  %v1928_v21 = vld [vmem:[#allocation7 + $0x150] sm:$0xff] }
 0x216   : > { %2106 = vmatpush.msra.mxu2 %v1940_v50  ;;  %1704 = vmatpush.msra.mxu0 %v6668_v41  ;;  %v2000_v41 = vld [vmem:[#allocation7 + $0x390] sm:$0xff]  ;;  %v1977_v50 = vld [vmem:[#allocation7 + $0x2d8] sm:$0xff] }
 0x217   : > { %1772 = vmatpush.msra.mxu1 %v6895_v34  ;;  %2060 = vmatmul.f32.vlgmr.msra.gmra.mxu3 %v7141_v47  ;;  %v1924_v34 = vld [vmem:[#allocation7 + $0x130] sm:$0xff] }
 0x218   : > { %2107 = vmatpush.msra.mxu2 %v1936_v45  ;;  %2124 = vmatpush.msra.mxu3 %v2012_v4  ;;  %v2314_v3 = vld [vmem:[#allocation8 + $0x2f0] sm:$0xff]  ;;  %v1897_v45 = vld [vmem:[#allocation7 + $0x58] sm:$0xff] }
 0x219   : > { %1705 = vmatpush.msra.mxu0 %v6596_v2  ;;  %1773 = vmatpush.msra.mxu1 %v6837_v48  ;;  %v1920_v2 = vld [vmem:[#allocation7 + $0x110] sm:$0xff]  ;;  %v1973_v4 = vld [vmem:[#allocation7 + $0x2b8] sm:$0xff] }
 0x21a   : > { %2080 = vmatmul.f32.vlgmr.msrb.gmra.mxu2 %v7133_v31  ;;  %2125 = vmatpush.msra.mxu3 %v2008_v51  ;;  %v1996_v48 = vld [vmem:[#allocation7 + $0x370] sm:$0xff]  ;;  %v1680_v51 = vld [vmem:[%s9115_s1 + $0x28] sm:$0xff] }
 0x21b   : > { %2108 = vmatpush.msra.mxu2 %v1932_v17  ;;  %1706 = vmatpush.msra.mxu0 %v6542_v37  ;;  %v1916_v37 = vld [vmem:[#allocation7 + $0xf0] sm:$0xff]  ;;  %v1893_v17 = vld [vmem:[#allocation7 + $0x38] sm:$0xff] }
 0x21c   : > { %1774 = vmatpush.msra.mxu1 %v6769_v38  ;;  %2126 = vmatpush.msra.mxu3 %v2004_v6  ;;  %v9266_v38 = vld [vmem:[#allocation28_spill] sm:$0xff]  ;;  %v2346_v42 = vld [vmem:[#allocation8 + $0x3f0] sm:$0xff]  ;;  %v1969_v6 = vld [vmem:[#allocation7 + $0x298] sm:$0xff] }
 0x21d   : > { %2109 = vmatpush.msra.mxu2 %v1928_v21  ;;  %1707 = vmatpush.msra.mxu0 %v6479_v26  ;;  %v1988_v26 = vld [vmem:[#allocation7 + $0x330] sm:$0xff]  ;;  %v1889_v21 = vld [vmem:[#allocation7 + $0x18] sm:$0xff] }
 0x21e   : > { %1775 = vmatpush.msra.mxu1 %v6688_v19  ;;  %2127 = vmatpush.msra.mxu3 %v2000_v41  ;;  %v9267_v19 = vld [vmem:[#allocation27_spill] sm:$0xff]  ;;  %v1965_v41 = vld [vmem:[#allocation7 + $0x278] sm:$0xff] }
 0x21f   : > { %2110 = vmatpush.msra.mxu2 %v1924_v34  ;;  %1708 = vmatpush.msra.mxu0 %v6491_v35  ;;  %v1675_v35 = vld [vmem:[%s9115_s1] sm:$0xff] }
 0x220   : > { %1776 = vmatpush.msra.mxu1 %v6641_v23  ;;  %2100 = vmatmul.f32.vlgmr.msrb.gmra.mxu3 %v7141_v47  ;;  %v9268_v23 = vld [vmem:[#allocation26_spill] sm:$0xff]  ;;  %v2312_v34 = vld [vmem:[#allocation8 + $0x2e0] sm:$0xff] }
 0x221   : > { %2111 = vmatpush.msra.mxu2 %v1920_v2  ;;  %2128 = vmatpush.msra.mxu3 %v1996_v48  ;;  %v1961_v2 = vld [vmem:[#allocation7 + $0x258] sm:$0xff]  ;;  %v2250_v48 = vld [vmem:[#allocation8 + $0xf0] sm:$0xff] }
 0x222   : > { %1777 = vmatpush.msra.mxu1 %v9266_v38  ;;  %1709 = vmatmul.f32.vlgmr.msra.gmra.mxu0 %v1675_v35  ;;  %v2248_v38 = vld [vmem:[#allocation8 + $0xe0] sm:$0xff] }
 0x223   : > { %2112 = vmatpush.msra.mxu2 %v1916_v37  ;;  %2129 = vmatpush.msra.mxu3 %v1992_v52  ;;  %v2344_v37 = vld [vmem:[#allocation8 + $0x3e0] sm:$0xff]  ;;  %v1957_v52 = vld [vmem:[#allocation7 + $0x238] sm:$0xff] }
 0x224   : > { %1778 = vmatpush.msra.mxu1 %v9267_v19  ;;  %2394 = vmatpush.msrb.mxu0 %v2314_v3  ;;  %v2246_v19 = vld [vmem:[#allocation8 + $0xd0] sm:$0xff]  ;;  %v2283_v3 = vld [vmem:[#allocation8 + $0x1f8] sm:$0xff] }
 0x225   : > { %2113 = vmatpush.msra.mxu2 %v1912_v57  ;;  %2130 = vmatpush.msra.mxu3 %v1988_v26  ;;  %v1681_v57 = vld [vmem:[%s9115_s1 + $0x30] sm:$0xff]  ;;  %v1953_v26 = vld [vmem:[#allocation7 + $0x218] sm:$0xff] }
 0x226   : > { %1779 = vmatpush.msra.mxu1 %v9268_v23  ;;  %2395 = vmatpush.msrb.mxu0 %v2312_v34  ;;  %v2240_v23 = vld [vmem:[#allocation8 + $0xa0] sm:$0xff] }
 0x227   : > { %2114 = vmatpush.msra.mxu2 %v1908_v29  ;;  %2131 = vmatpush.msra.mxu3 %v1984_v63  ;;  %v2244_v29 = vld [vmem:[#allocation8 + $0xc0] sm:$0xff]  ;;  %v2282_v63 = vld [vmem:[#allocation8 + $0x1f0] sm:$0xff] }
 0x228   : > { %1780 = vmatmul.f32.vlgmr.msra.gmra.mxu1 %v1675_v35  ;;  %v2280_v35 = vld [vmem:[#allocation8 + $0x1e0] sm:$0xff] }
 0x229   : > { %2115 = vmatpush.msra.mxu2 %v1904_v46  ;;  %2132 = vmatpush.msra.mxu3 %v1980_v8  ;;  %v2278_v46 = vld [vmem:[#allocation8 + $0x1d0] sm:$0xff]  ;;  %v1682_v8 = vld [vmem:[%s9115_s1 + $0x38] sm:$0xff]  ;;  %v2300_v34 = vld [vmem:[#allocation8 + $0x280] sm:$0xff] }
 0x22a   : > { %1712 = vmatmul.f32.gmra.mxu0 %v1676_v16  ;;  %2414 = vmatpush.msrb.mxu1 %v2346_v42  ;;  %v7206_v42 = vld [vmem:[%s9122_s8] sm:$0xf] }
 0x22b   : > { %2116 = vmatpush.msra.mxu2 %v1900_v40  ;;  %2133 = vmatpush.msra.mxu3 %v1976_v12  ;;  %v2238_v40 = vld [vmem:[#allocation8 + $0x90] sm:$0xff]  ;;  %v2276_v12 = vld [vmem:[#allocation8 + $0x1c0] sm:$0xff] }
 0x22c   : > { %2415 = vmatpush.msrb.mxu1 %v2344_v37 }
 0x22d   : > { %2117 = vmatpush.msra.mxu2 %v1896_v9  ;;  %2134 = vmatpush.msra.mxu3 %v1972_v43  ;;  %v2236_v9 = vld [vmem:[#allocation8 + $0x80] sm:$0xff]  ;;  %v2234_v43 = vld [vmem:[#allocation8 + $0x70] sm:$0xff] }
 0x22f   : > { %2118 = vmatpush.msra.mxu2 %v1892_v54  ;;  %2135 = vmatpush.msra.mxu3 %v1968_v15  ;;  %v2272_v54 = vld [vmem:[#allocation8 + $0x1a0] sm:$0xff] }
 0x230   : > { %1783 = vmatmul.f32.gmra.mxu1 %v1676_v16  ;;  %v2232_v15 = vld [vmem:[#allocation8 + $0x60] sm:$0xff]  ;;  %v2270_v16 = vld [vmem:[#allocation8 + $0x190] sm:$0xff] }
 0x231   : > { %2119 = vmatpush.msra.mxu2 %v1888_v14  ;;  %2136 = vmatpush.msra.mxu3 %v1964_v0  ;;  %v1683_v14 = vld [vmem:[%s9115_s1 + $0x40] sm:$0xff]  ;;  %v2230_v0 = vld [vmem:[#allocation8 + $0x50] sm:$0xff] }
 0x232   : > { %2120 = vmatmul.f32.vlgmr.msra.gmra.mxu2 %v7133_v31  ;;  %1715 = vmatmul.f32.gmra.mxu0 %v1677_v32 }
 0x233   : > { %2144 = vmatpush.msrb.mxu2 %v1949_v27  ;;  %2137 = vmatpush.msra.mxu3 %v1960_v30  ;;  %v1684_v27 = vld [vmem:[%s9115_s1 + $0x48] sm:$0xff]  ;;  %v1685_v30 = vld [vmem:[%s9115_s1 + $0x50] sm:$0xff] }
 0x235   : > { %2145 = vmatpush.msrb.mxu2 %v1945_v53  ;;  %2138 = vmatpush.msra.mxu3 %v1956_v7  ;;  %v2228_v53 = vld [vmem:[#allocation8 + $0x40] sm:$0xff] }
 0x236   : > { %v2268_v7 = vld [vmem:[#allocation8 + $0x180] sm:$0xff] }
 0x237   : > { %2146 = vmatpush.msrb.mxu2 %v1941_v10  ;;  %2139 = vmatpush.msra.mxu3 %v1952_v44  ;;  %v2226_v10 = vld [vmem:[#allocation8 + $0x30] sm:$0xff] }
 0x238   : > { %2140 = vmatmul.f32.vlgmr.msra.gmra.mxu3 %v7141_v47  ;;  %1786 = vmatmul.f32.gmra.mxu1 %v1677_v32  ;;  %v2266_v44 = vld [vmem:[#allocation8 + $0x170] sm:$0xff] }
 0x239   : > { %2147 = vmatpush.msrb.mxu2 %v1937_v25  ;;  %2164 = vmatpush.msrb.mxu3 %v2013_v59  ;;  %v2310_v32 = vld [vmem:[#allocation8 + $0x2d0] sm:$0xff]  ;;  %v2224_v25 = vld [vmem:[#allocation8 + $0x20] sm:$0xff] }
 0x23a   : > { %1718 = vmatmul.f32.gmra.mxu0 %v1678_v22  ;;  %v2342_v59 = vld [vmem:[#allocation8 + $0x3d0] sm:$0xff] }
 0x23b   : > { %2148 = vmatpush.msrb.mxu2 %v1933_v49  ;;  %2165 = vmatpush.msrb.mxu3 %v2009_v20  ;;  %v2264_v49 = vld [vmem:[#allocation8 + $0x160] sm:$0xff]  ;;  %v2222_v20 = vld [vmem:[#allocation8 + $0x10] sm:$0xff] }
 0x23c   : > { %2396 = vmatpush.msrb.mxu0 %v2310_v32  ;;  %2416 = vmatpush.msrb.mxu1 %v2342_v59  ;;  %v2225_v32 = vld [vmem:[#allocation8 + $0x28] sm:$0xff] }
 0x23d   : > { %2149 = vmatpush.msrb.mxu2 %v1929_v18  ;;  %2166 = vmatpush.msrb.mxu3 %v2005_v56  ;;  %v2262_v18 = vld [vmem:[#allocation8 + $0x150] sm:$0xff]  ;;  %v1686_v56 = vld [vmem:[%s9115_s1 + $0x58] sm:$0xff] }
 0x23f   : > { %2150 = vmatpush.msrb.mxu2 %v1925_v33  ;;  %2167 = vmatpush.msrb.mxu3 %v2001_v55  ;;  %v2260_v33 = vld [vmem:[#allocation8 + $0x140] sm:$0xff]  ;;  %v2251_v55 = vld [vmem:[#allocation8 + $0xf8] sm:$0xff] }
 0x240   : > { %1789 = vmatmul.f32.gmra.mxu1 %v1678_v22  ;;  %v2220_v22 = vld [vmem:[#allocation8] sm:$0xff] }
 0x241   : > { %2151 = vmatpush.msrb.mxu2 %v1921_v11  ;;  %2168 = vmatpush.msrb.mxu3 %v1997_v58  ;;  %v2258_v11 = vld [vmem:[#allocation8 + $0x130] sm:$0xff]  ;;  %v2249_v58 = vld [vmem:[#allocation8 + $0xe8] sm:$0xff] }
 0x242   : > { %1721 = vmatmul.f32.gmra.mxu0 %v1679_v28 }
 0x243   : > { %2152 = vmatpush.msrb.mxu2 %v1917_v13  ;;  %2169 = vmatpush.msrb.mxu3 %v1993_v24  ;;  %v2256_v13 = vld [vmem:[#allocation8 + $0x120] sm:$0xff]  ;;  %v2247_v24 = vld [vmem:[#allocation8 + $0xd8] sm:$0xff] }
 0x245   : > { %2153 = vmatpush.msrb.mxu2 %v1913_v62  ;;  %2170 = vmatpush.msrb.mxu3 %v1989_v1  ;;  %v2254_v62 = vld [vmem:[#allocation8 + $0x110] sm:$0xff]  ;;  %v2308_v1 = vld [vmem:[#allocation8 + $0x2c0] sm:$0xff] }
 0x246   : > { %2397 = vmatpush.msrb.mxu0 %v2308_v1  ;;  %v2315_v1 = vld [vmem:[#allocation8 + $0x2f8] sm:$0xff] }
 0x247   : > { %2154 = vmatpush.msrb.mxu2 %v1909_v39  ;;  %2171 = vmatpush.msrb.mxu3 %v1985_v60  ;;  %v2245_v39 = vld [vmem:[#allocation8 + $0xc8] sm:$0xff]  ;;  %v2252_v60 = vld [vmem:[#allocation8 + $0x100] sm:$0xff] }
 0x248   : > { %1792 = vmatmul.f32.gmra.mxu1 %v1679_v28  ;;  %v1687_v28 = vld [vmem:[%s9115_s1 + $0x60] sm:$0xff] }
 0x249   : > { %2155 = vmatpush.msrb.mxu2 %v1905_v5  ;;  %2172 = vmatpush.msrb.mxu3 %v1981_v61  ;;  %v2306_v5 = vld [vmem:[#allocation8 + $0x2b0] sm:$0xff]  ;;  %v2243_v61 = vld [vmem:[#allocation8 + $0xb8] sm:$0xff] }
 0x24a   : > { %1724 = vmatmul.f32.gmra.mxu0 %v1680_v51 }
 0x24b   : > { %2156 = vmatpush.msrb.mxu2 %v1901_v36  ;;  %2173 = vmatpush.msrb.mxu3 %v1977_v50  ;;  %v2304_v36 = vld [vmem:[#allocation8 + $0x2a0] sm:$0xff]  ;;  %v2241_v50 = vld [vmem:[#allocation8 + $0xa8] sm:$0xff] }
 0x24c   : > { %2398 = vmatpush.msrb.mxu0 %v2306_v5  ;;  %v2257_v5 = vld [vmem:[#allocation8 + $0x128] sm:$0xff] }
 0x24d   : > { %2157 = vmatpush.msrb.mxu2 %v1897_v45  ;;  %2174 = vmatpush.msrb.mxu3 %v1973_v4  ;;  %v2281_v45 = vld [vmem:[#allocation8 + $0x1e8] sm:$0xff]  ;;  %v2016_v4 = vperm.slane %v7206_v42, 0 }
 0x24e   : > { %2399 = vmatpush.msrb.mxu0 %v2304_v36 }
 0x24f   : > { %2158 = vmatpush.msrb.mxu2 %v1893_v17  ;;  %2175 = vmatpush.msrb.mxu3 %v1969_v6  ;;  %v2302_v17 = vld [vmem:[#allocation8 + $0x290] sm:$0xff]  ;;  %v2239_v6 = vld [vmem:[#allocation8 + $0x98] sm:$0xff] }
 0x250   : > { %1795 = vmatmul.f32.gmra.mxu1 %v1680_v51  ;;  %2400 = vmatpush.msrb.mxu0 %v2302_v17  ;;  %v1691_v17 = vld [vmem:[%s9115_s1 + $0x80] sm:$0xff] }
 0x251   : > { %2159 = vmatpush.msrb.mxu2 %v1889_v21  ;;  %2176 = vmatpush.msrb.mxu3 %v1965_v41  ;;  %v2279_v21 = vld [vmem:[#allocation8 + $0x1d8] sm:$0xff]  ;;  %v1688_v41 = vld [vmem:[%s9115_s1 + $0x68] sm:$0xff] }
 0x252   : > { %2160 = vmatmul.f32.vlgmr.msrb.gmra.mxu2 %v7133_v31  ;;  %1727 = vmatmul.f32.gmra.mxu0 %v1681_v57  ;;  %v2242_v31 = vld [vmem:[#allocation8 + $0xb0] sm:$0xff] }
 0x253   : > { %2177 = vmatpush.msrb.mxu3 %v1961_v2  ;;  %2354 = vmatpush.msra.mxu2 %v2250_v48  ;;  %v2237_v2 = vld [vmem:[#allocation8 + $0x88] sm:$0xff] }
 0x254   : > { %2401 = vmatpush.msrb.mxu0 %v2300_v34  ;;  %v2277_v48 = vld [vmem:[#allocation8 + $0x1c8] sm:$0xff] }
 0x255   : > { %2178 = vmatpush.msrb.mxu3 %v1957_v52  ;;  %2355 = vmatpush.msra.mxu2 %v2248_v38  ;;  %v2298_v52 = vld [vmem:[#allocation8 + $0x270] sm:$0xff]  ;;  %v2235_v38 = vld [vmem:[#allocation8 + $0x78] sm:$0xff] }
 0x256   : > { %2402 = vmatpush.msrb.mxu0 %v2298_v52  ;;  %v2303_v52 = vld [vmem:[#allocation8 + $0x298] sm:$0xff] }
 0x257   : > { %2179 = vmatpush.msrb.mxu3 %v1953_v26  ;;  %2356 = vmatpush.msra.mxu2 %v2246_v19 }
 0x258   : > { %2180 = vmatmul.f32.vlgmr.msrb.gmra.mxu3 %v7141_v47  ;;  %1798 = vmatmul.f32.gmra.mxu1 %v1681_v57  ;;  %v2274_v47 = vld [vmem:[#allocation8 + $0x1b0] sm:$0xff]  ;;  %v2275_v57 = vld [vmem:[#allocation8 + $0x1b8] sm:$0xff] }
 0x259   : > { %2357 = vmatpush.msra.mxu2 %v2244_v29  ;;  %2374 = vmatpush.msra.mxu3 %v2282_v63  ;;  %v2340_v29 = vld [vmem:[#allocation8 + $0x3c0] sm:$0xff]  ;;  %v2338_v63 = vld [vmem:[#allocation8 + $0x3b0] sm:$0xff] }
 0x25a   : > { %1730 = vmatmul.f32.gmra.mxu0 %v1682_v8  ;;  %2417 = vmatpush.msrb.mxu1 %v2340_v29  ;;  %v2301_v29 = vld [vmem:[#allocation8 + $0x288] sm:$0xff] }
 0x25b   : > { %2358 = vmatpush.msra.mxu2 %v2242_v31  ;;  %2375 = vmatpush.msra.mxu3 %v2280_v35  ;;  %v2296_v31 = vld [vmem:[#allocation8 + $0x260] sm:$0xff]  ;;  %v2233_v35 = vld [vmem:[#allocation8 + $0x68] sm:$0xff] }
 0x25c   : > { %2403 = vmatpush.msrb.mxu0 %v2296_v31  ;;  %2418 = vmatpush.msrb.mxu1 %v2338_v63 }
 0x25d   : > { %2359 = vmatpush.msra.mxu2 %v2240_v23  ;;  %2376 = vmatpush.msra.mxu3 %v2278_v46  ;;  %v2273_v23 = vld [vmem:[#allocation8 + $0x1a8] sm:$0xff]  ;;  %v2294_v46 = vld [vmem:[#allocation8 + $0x250] sm:$0xff] }
 0x25e   : > { %2404 = vmatpush.msrb.mxu0 %v2294_v46  ;;  %v2299_v46 = vld [vmem:[#allocation8 + $0x278] sm:$0xff] }
 0x25f   : > { %2360 = vmatpush.msra.mxu2 %v2238_v40  ;;  %2377 = vmatpush.msra.mxu3 %v2276_v12  ;;  %v2231_v40 = vld [vmem:[#allocation8 + $0x58] sm:$0xff] }
 0x260   : > { %1801 = vmatmul.f32.gmra.mxu1 %v1682_v8  ;;  %v2271_v12 = vld [vmem:[#allocation8 + $0x198] sm:$0xff] }
 0x261   : > { %2361 = vmatpush.msra.mxu2 %v2236_v9  ;;  %2378 = vmatpush.msra.mxu3 %v2274_v47  ;;  %v2017_v9 = vperm.slane %v7206_v42, 1  ;;  %v1689_v47 = vld [vmem:[%s9115_s1 + $0x70] sm:$0xff] }
 0x262   : > { %1733 = vmatmul.f32.gmra.mxu0 %v1683_v14 }
 0x263   : > { %2362 = vmatpush.msra.mxu2 %v2234_v43  ;;  %2379 = vmatpush.msra.mxu3 %v2272_v54  ;;  %v2292_v43 = vld [vmem:[#allocation8 + $0x240] sm:$0xff]  ;;  %v2229_v54 = vld [vmem:[#allocation8 + $0x48] sm:$0xff] }
 0x264   : > { %2405 = vmatpush.msrb.mxu0 %v2292_v43 }
 0x265   : > { %2363 = vmatpush.msra.mxu2 %v2232_v15  ;;  %2380 = vmatpush.msra.mxu3 %v2270_v16 }
 0x267   : > { %2364 = vmatpush.msra.mxu2 %v2230_v0  ;;  %2381 = vmatpush.msra.mxu3 %v2268_v7  ;;  %v2336_v0 = vld [vmem:[#allocation8 + $0x3a0] sm:$0xff]  ;;  %v2267_v7 = vld [vmem:[#allocation8 + $0x178] sm:$0xff] }
 0x268   : > { %1804 = vmatmul.f32.gmra.mxu1 %v1683_v14  ;;  %v2269_v14 = vld [vmem:[#allocation8 + $0x188] sm:$0xff] }
 0x269   : > { %2365 = vmatpush.msra.mxu2 %v2228_v53  ;;  %2382 = vmatpush.msra.mxu3 %v2266_v44 }
 0x26a   : > { %1736 = vmatmul.f32.gmra.mxu0 %v1684_v27  ;;  %2419 = vmatpush.msrb.mxu1 %v2336_v0 }
 0x26b   : > { %2366 = vmatpush.msra.mxu2 %v2226_v10  ;;  %2383 = vmatpush.msra.mxu3 %v2264_v49  ;;  %v2288_v10 = vld [vmem:[#allocation8 + $0x220] sm:$0xff]  ;;  %v2265_v49 = vld [vmem:[#allocation8 + $0x168] sm:$0xff] }
 0x26d   : > { %2367 = vmatpush.msra.mxu2 %v2224_v25  ;;  %2384 = vmatpush.msra.mxu3 %v2262_v18 }
 0x26f   : > { %2368 = vmatpush.msra.mxu2 %v2222_v20  ;;  %2385 = vmatpush.msra.mxu3 %v2260_v33  ;;  %v2263_v33 = vld [vmem:[#allocation8 + $0x158] sm:$0xff] }
 0x270   : > { %1807 = vmatmul.f32.gmra.mxu1 %v1684_v27  ;;  %v2290_v27 = vld [vmem:[#allocation8 + $0x230] sm:$0xff] }
 0x271   : > { %2369 = vmatpush.msra.mxu2 %v2220_v22  ;;  %2386 = vmatpush.msra.mxu3 %v2258_v11  ;;  %v2223_v22 = vld [vmem:[#allocation8 + $0x18] sm:$0xff] }
 0x272   : > { %1739 = vmatmul.f32.gmra.mxu0 %v1685_v30  ;;  %v1690_v11 = vld [vmem:[%s9115_s1 + $0x78] sm:$0xff] }
 0x273   : > { %2434 = vmatpush.msrb.mxu2 %v2251_v55  ;;  %2387 = vmatpush.msra.mxu3 %v2256_v13  ;;  %v2221_v13 = vld [vmem:[#allocation8 + $0x8] sm:$0xff] }
 0x274   : > { %2406 = vmatpush.msrb.mxu0 %v2290_v27  ;;  %v2293_v27 = vld [vmem:[#allocation8 + $0x248] sm:$0xff] }
 0x275   : > { %2435 = vmatpush.msrb.mxu2 %v2249_v58  ;;  %2388 = vmatpush.msra.mxu3 %v2254_v62  ;;  %v2284_v58 = vld [vmem:[#allocation8 + $0x200] sm:$0xff]  ;;  %v2261_v62 = vld [vmem:[#allocation8 + $0x148] sm:$0xff] }
 0x276   : > { %2407 = vmatpush.msrb.mxu0 %v2288_v10 }
 0x277   : > { %2436 = vmatpush.msrb.mxu2 %v2247_v24  ;;  %2389 = vmatpush.msra.mxu3 %v2252_v60  ;;  %v2313_v60 = vld [vmem:[#allocation8 + $0x2e8] sm:$0xff] }
 0x278   : > { %1810 = vmatmul.f32.gmra.mxu1 %v1685_v30  ;;  %v2227_v30 = vld [vmem:[#allocation8 + $0x38] sm:$0xff] }
 0x279   : > { %2437 = vmatpush.msrb.mxu2 %v2245_v39  ;;  %2454 = vmatpush.msrb.mxu3 %v2283_v3  ;;  %v2311_v3 = vld [vmem:[#allocation8 + $0x2d8] sm:$0xff] }
 0x27a   : > { %1742 = vmatmul.f32.gmra.mxu0 %v1686_v56 }
 0x27b   : > { %2438 = vmatpush.msrb.mxu2 %v2243_v61  ;;  %2455 = vmatpush.msrb.mxu3 %v2281_v45 }
 0x27d   : > { %2439 = vmatpush.msrb.mxu2 %v2241_v50  ;;  %2456 = vmatpush.msrb.mxu3 %v2279_v21  ;;  %v2255_v50 = vld [vmem:[#allocation8 + $0x118] sm:$0xff] }
 0x27f   : > { %2440 = vmatpush.msrb.mxu2 %v2239_v6  ;;  %2457 = vmatpush.msrb.mxu3 %v2277_v48  ;;  %v2253_v6 = vld [vmem:[#allocation8 + $0x108] sm:$0xff]  ;;  %v2334_v48 = vld [vmem:[#allocation8 + $0x390] sm:$0xff] }
 0x280   : > { %1813 = vmatmul.f32.gmra.mxu1 %v1686_v56  ;;  %v2286_v56 = vld [vmem:[#allocation8 + $0x210] sm:$0xff] }
 0x281   : > { %2441 = vmatpush.msrb.mxu2 %v2237_v2  ;;  %2458 = vmatpush.msrb.mxu3 %v2275_v57  ;;  %v2305_v2 = vld [vmem:[#allocation8 + $0x2a8] sm:$0xff] }
 0x282   : > { %1745 = vmatmul.f32.gmra.mxu0 %v1687_v28  ;;  %2420 = vmatpush.msrb.mxu1 %v2334_v48 }
 0x283   : > { %2442 = vmatpush.msrb.mxu2 %v2235_v38  ;;  %2459 = vmatpush.msrb.mxu3 %v2273_v23  ;;  %v2330_v38 = vld [vmem:[#allocation8 + $0x370] sm:$0xff] }
 0x284   : > { %2408 = vmatpush.msrb.mxu0 %v2286_v56  ;;  %v2285_v56 = vld [vmem:[#allocation8 + $0x208] sm:$0xff] }
 0x285   : > { %2443 = vmatpush.msrb.mxu2 %v2233_v35  ;;  %2460 = vmatpush.msrb.mxu3 %v2271_v12  ;;  %v2328_v35 = vld [vmem:[#allocation8 + $0x360] sm:$0xff] }
 0x286   : > { %2409 = vmatpush.msrb.mxu0 %v2284_v58 }
 0x287   : > { %2444 = vmatpush.msrb.mxu2 %v2231_v40  ;;  %2461 = vmatpush.msrb.mxu3 %v2269_v14  ;;  %v2326_v40 = vld [vmem:[#allocation8 + $0x350] sm:$0xff] }
 0x288   : > { %1816 = vmatmul.f32.gmra.mxu1 %v1687_v28  ;;  %v2259_v28 = vld [vmem:[#allocation8 + $0x138] sm:$0xff]  ;;  %2474 = vmatpush.msra.mxu0 %v2315_v1  ;;  %v2322_v14 = vld [vmem:[#allocation8 + $0x330] sm:$0xff] }
 0x289   : > { %2445 = vmatpush.msrb.mxu2 %v2229_v54  ;;  %2462 = vmatpush.msrb.mxu3 %v2267_v7  ;;  %v2324_v54 = vld [vmem:[#allocation8 + $0x340] sm:$0xff]  ;;  %v2291_v7 = vld [vmem:[#allocation8 + $0x238] sm:$0xff] }
 0x28a   : > { %1748 = vmatmul.f32.gmra.mxu0 %v1688_v41  ;;  %v2339_v1 = vld [vmem:[#allocation8 + $0x3b8] sm:$0xff] }
 0x28b   : > { %2446 = vmatpush.msrb.mxu2 %v2227_v30  ;;  %2463 = vmatpush.msrb.mxu3 %v2265_v49  ;;  %v2320_v30 = vld [vmem:[#allocation8 + $0x320] sm:$0xff]  ;;  %v2287_v49 = vld [vmem:[#allocation8 + $0x218] sm:$0xff] }
 0x28c   : > { %2475 = vmatpush.msra.mxu0 %v2313_v60 }
 0x28d   : > { %2447 = vmatpush.msrb.mxu2 %v2225_v32  ;;  %2464 = vmatpush.msrb.mxu3 %v2263_v33  ;;  %v2289_v32 = vld [vmem:[#allocation8 + $0x228] sm:$0xff] }
 0x28e   : > { %2476 = vmatpush.msra.mxu0 %v2311_v3  ;;  %v2345_v33 = vld [vmem:[#allocation8 + $0x3e8] sm:$0xff] }
 0x28f   : > { %2448 = vmatpush.msrb.mxu2 %v2223_v22  ;;  %2465 = vmatpush.msrb.mxu3 %v2261_v62  ;;  %v2347_v22 = vld [vmem:[#allocation8 + $0x3f8] sm:$0xff]  ;;  %v2333_v3 = vld [vmem:[#allocation8 + $0x388] sm:$0xff] }
 0x290   : > { %1819 = vmatmul.f32.gmra.mxu1 %v1688_v41  ;;  %v2307_v41 = vld [vmem:[#allocation8 + $0x2b8] sm:$0xff] }
 0x291   : > { %2449 = vmatpush.msrb.mxu2 %v2221_v13  ;;  %2466 = vmatpush.msrb.mxu3 %v2259_v28  ;;  %v2341_v13 = vld [vmem:[#allocation8 + $0x3c8] sm:$0xff] }
 0x292   : > { %1751 = vmatmul.f32.gmra.mxu0 %v1689_v47 }
 0x293   : > { %2467 = vmatpush.msrb.mxu3 %v2257_v5  ;;  %v2335_v5 = vld [vmem:[#allocation8 + $0x398] sm:$0xff] }
 0x294   : > { %v2041_v51 = vpop.f32.mrf.mxu2 }
 0x295   : > { %v2042_v37 = vadd.f32 %v2041_v51, %v2016_v4  ;;  %v2309_v51 = vld [vmem:[#allocation8 + $0x2c8] sm:$0xff]  ;;  %2468 = vmatpush.msrb.mxu3 %v2255_v50 }
 0x296   : > { %2477 = vmatpush.msra.mxu0 %v2309_v51  ;;  %v2329_v51 = vld [vmem:[#allocation8 + $0x368] sm:$0xff] }
 0x297   : > { %2469 = vmatpush.msrb.mxu3 %v2253_v6  ;;  %v2327_v6 = vld [vmem:[#allocation8 + $0x358] sm:$0xff] }
 0x298   : > { %1822 = vmatmul.f32.gmra.mxu1 %v1689_v47  ;;  %2478 = vmatpush.msra.mxu0 %v2307_v41 }
 0x29a   : > { %v2061_v26 = vpop.f32.mrf.mxu3  ;;  %1754 = vmatmul.f32.gmra.mxu0 %v1690_v11 }
 0x29b   : > { %v7212_v19 = vadd.f32 %v2061_v26, %v2042_v37  ;;  %v2332_v37 = vld [vmem:[#allocation8 + $0x380] sm:$0xff]  ;;  %2479 = vmatpush.msra.mxu0 %v2305_v2  ;;  %v2018_v26 = vperm.slane %v7206_v42, 2  ;;  %v2325_v2 = vld [vmem:[#allocation8 + $0x348] sm:$0xff] }
 0x29c   : > { %2421 = vmatpush.msrb.mxu1 %v2332_v37  ;;  %v2323_v37 = vld [vmem:[#allocation8 + $0x338] sm:$0xff] }
 0x29d   : > { %v2184_v8 = vmul.f32 %v7212_v19, %v7212_v19  ;;  %v2081_v16 = vpop.f32.mrf.mxu2  ;;  %2480 = vmatpush.msra.mxu0 %v2303_v52 }
 0x29e   : > { %v2082_v44 = vadd.f32 %v2081_v16, %v2017_v9  ;;  %2422 = vmatpush.msrb.mxu1 %v2330_v38  ;;  %v2297_v9 = vld [vmem:[#allocation8 + $0x268] sm:$0xff]  ;;  %v2295_v16 = vld [vmem:[#allocation8 + $0x258] sm:$0xff] }
 0x29f   : > { %v2188_v15 = vmul.f32 %v2184_v8, %v7212_v19  ;;  %v7239_v23 = vpop.f32.mrf.mxu0  ;;  %2481 = vmatpush.msra.mxu0 %v2301_v29  ;;  %v2321_v38 = vld [vmem:[#allocation8 + $0x328] sm:$0xff] }
 0x2a0   : > { %1825 = vmatmul.f32.gmra.mxu1 %v1690_v11  ;;  %9269 = vst [vmem:[#allocation20_spill] sm:$0xff] %v7239_v23 }
 0x2a1   : > { %v2192_v53 = vmul.f32 0.044715, %v2188_v15  ;;  %2423 = vmatpush.msrb.mxu1 %v2328_v35  ;;  %2482 = vmatpush.msra.mxu0 %v2299_v46 }
 0x2a2   : > { %1757 = vmatmul.f32.gmra.mxu0 %v1691_v17 }
 0x2a3   : > { %v2196_v25 = vadd.f32 %v2192_v53, %v7212_v19  ;;  %v2101_v59 = vpop.f32.mrf.mxu3  ;;  %2424 = vmatpush.msrb.mxu1 %v2326_v40  ;;  %2483 = vmatpush.msra.mxu0 %v2297_v9 }
 0x2a4   : > { %v7222_v20 = vadd.f32 %v2101_v59, %v2082_v44  ;;  %v2318_v59 = vld [vmem:[#allocation8 + $0x310] sm:$0xff] }
 0x2a5   : > { %v2200_v18 = vmul.f32 0.7978846, %v2196_v25  ;;  %2425 = vmatpush.msrb.mxu1 %v2324_v54  ;;  %2484 = vmatpush.msra.mxu0 %v2295_v16  ;;  %v7246_v58 = vpop.f32.mrf.mxu1 }
 0x2a6   : > { %v2185_v55 = vmul.f32 %v7222_v20, %v7222_v20  ;;  %9272 = vst [vmem:[#allocation21_spill] sm:$0xff] %v7246_v58 }
 0x2a7   : > { %5051 = vtanh.f32 %v2200_v18  ;;  %2426 = vmatpush.msrb.mxu1 %v2322_v14  ;;  %2485 = vmatpush.msra.mxu0 %v2293_v27  ;;  %v7242_v44 = vpop.f32.mrf.mxu0  ;;  %v2316_v18 = vld [vmem:[#allocation8 + $0x300] sm:$0xff] }
 0x2a8   : > { %v2189_v24 = vmul.f32 %v2185_v55, %v7222_v20  ;;  %1828 = vmatmul.f32.gmra.mxu1 %v1691_v17  ;;  %9270 = vst [vmem:[#allocation22_spill] sm:$0xff] %v7242_v44  ;;  %v2343_v55 = vld [vmem:[#allocation8 + $0x3d8] sm:$0xff] }
 0x2a9   : > { %2427 = vmatpush.msrb.mxu1 %v2320_v30  ;;  %2486 = vmatpush.msra.mxu0 %v2291_v7 }
 0x2aa   : > { %v2193_v39 = vmul.f32 0.044715, %v2189_v24 }
 0x2ab   : > { %2487 = vmatpush.msra.mxu0 %v2289_v32  ;;  %2428 = vmatpush.msrb.mxu1 %v2318_v59 }
 0x2ac   : > { %v2197_v61 = vadd.f32 %v2193_v39, %v7222_v20  ;;  %v2337_v39 = vld [vmem:[#allocation8 + $0x3a8] sm:$0xff] }
 0x2ad   : > { %v5052_v36 = vpop.eup %5051  ;;  %2488 = vmatpush.msra.mxu0 %v2287_v49  ;;  %2429 = vmatpush.msrb.mxu1 %v2316_v18 }
 0x2ae   : > { %v2208_v45 = vadd.f32 1.0, %v5052_v36  ;;  %v2201_v4 = vmul.f32 0.7978846, %v2197_v61  ;;  %v7248_v61 = vpop.f32.mrf.mxu1  ;;  %v2019_v36 = vperm.slane %v7206_v42, 3 }
 0x2af   : > { %2489 = vmatpush.msra.mxu0 %v2285_v56  ;;  %2494 = vmatpush.msra.mxu1 %v2347_v22  ;;  %v7244_v11 = vpop.f32.mrf.mxu0  ;;  %9273 = vst [vmem:[#allocation23_spill] sm:$0xff] %v7248_v61 }
 0x2b0   : > { %v2212_v21 = vmul.f32 0.5, %v2208_v45  ;;  %5053 = vtanh.f32 %v2201_v4  ;;  %9271 = vst [vmem:[#allocation19_spill] sm:$0xff] %v7244_v11  ;;  %v2331_v45 = vld [vmem:[#allocation8 + $0x378] sm:$0xff] }
 0x2b1   : > { %2495 = vmatpush.msra.mxu1 %v2345_v33 }
 0x2b2   : > { %v2216_v34 = vmul.f32 %v2212_v21, %v7212_v19  ;;  %v1692_v19 = vld [vmem:[%s9115_s1 + $0x88] sm:$0xff] }
 0x2b3   : > { %1760 = vmatmul.f32.gmra.mxu0 %v1692_v19  ;;  %1831 = vmatmul.f32.gmra.mxu1 %v1692_v19 }
 0x2b4   : > { %2370 = vmatmul.f32.vlgmr.msra.gmra.mxu2 %v2216_v34  ;;  %2496 = vmatpush.msra.mxu1 %v2343_v55 }
 0x2b5   : > { %v2121_v31 = vpop.f32.mrf.mxu2 }
 0x2b6   : > { %v5054_v57 = vpop.eup %5053  ;;  %v2122_v12 = vadd.f32 %v2121_v31, %v2018_v26  ;;  %2497 = vmatpush.msra.mxu1 %v2341_v13  ;;  %v2319_v26 = vld [vmem:[#allocation8 + $0x318] sm:$0xff]  ;;  %v2317_v31 = vld [vmem:[#allocation8 + $0x308] sm:$0xff] }
 0x2b7   : > { %v2209_v63 = vadd.f32 1.0, %v5054_v57  ;;  %v7251_v50 = vpop.f32.mrf.mxu0 }
 0x2b8   : > { %2498 = vmatpush.msra.mxu1 %v2339_v1 }
 0x2b9   : > { %v2213_v8 = vmul.f32 0.5, %v2209_v63 }
 0x2ba   : > { %2499 = vmatpush.msra.mxu1 %v2337_v39 }
 0x2bb   : > { %v2217_v47 = vmul.f32 %v2213_v8, %v7222_v20  ;;  %v2141_v43 = vpop.f32.mrf.mxu3 }
 0x2bc   : > { %v2142_v15 = vadd.f32 %v2141_v43, %v2122_v12  ;;  %2450 = vmatmul.f32.vlgmr.msrb.gmra.mxu2 %v2216_v34  ;;  %2500 = vmatpush.msra.mxu1 %v2335_v5  ;;  %v7253_v34 = vpop.f32.mrf.mxu1 }
 0x2bd   : > { %2390 = vmatmul.f32.vlgmr.msra.gmra.mxu3 %v2217_v47  ;;  %9274 = vst [vmem:[#allocation24_spill] sm:$0xff] %v7253_v34 }
 0x2be   : > { %v2186_v0 = vmul.f32 %v2142_v15, %v2142_v15  ;;  %2501 = vmatpush.msra.mxu1 %v2333_v3 }
 0x2bf   : > { %v7255_v52 = vpop.f32.mrf.mxu0 }
 0x2c0   : > { %v2190_v53 = vmul.f32 %v2186_v0, %v2142_v15  ;;  %2502 = vmatpush.msra.mxu1 %v2331_v45 }
 0x2c2   : > { %v2194_v10 = vmul.f32 0.044715, %v2190_v53  ;;  %2503 = vmatpush.msra.mxu1 %v2329_v51 }
 0x2c4   : > { %v2198_v25 = vadd.f32 %v2194_v10, %v2142_v15  ;;  %2504 = vmatpush.msra.mxu1 %v2327_v6  ;;  %v7257_v63 = vpop.f32.mrf.mxu1 }
 0x2c5   : > { %2470 = vmatmul.f32.vlgmr.msrb.gmra.mxu3 %v2217_v47 }
 0x2c6   : > { %v2202_v20 = vmul.f32 0.7978846, %v2198_v25  ;;  %2505 = vmatpush.msra.mxu1 %v2325_v2 }
 0x2c7   : > { %v7259_v35 = vpop.f32.mrf.mxu0 }
 0x2c8   : > { %5055 = vtanh.f32 %v2202_v20  ;;  %2506 = vmatpush.msra.mxu1 %v2323_v37 }
 0x2ca   : > { %2507 = vmatpush.msra.mxu1 %v2321_v38 }
 0x2cc   : > { %2508 = vmatpush.msra.mxu1 %v2319_v26  ;;  %v7261_v46 = vpop.f32.mrf.mxu1 }
 0x2ce   : > { %v5056_v24 = vpop.eup %5055  ;;  %2509 = vmatpush.msra.mxu1 %v2317_v31 }
 0x2cf   : > { %v2210_v62 = vadd.f32 1.0, %v5056_v24  ;;  %v7263_v47 = vpop.f32.mrf.mxu0 }
 0x2d1   : > { %v2214_v28 = vmul.f32 0.5, %v2210_v62 }
 0x2d3   : > { %v2218_v60 = vmul.f32 %v2214_v28, %v2142_v15 }
 0x2d4   : > { %v7265_v43 = vpop.f32.mrf.mxu1 }
 0x2d5   : > { %2410 = vmatmul.f32.vlgmr.msrb.gmra.mxu0 %v2218_v60  ;;  %v2161_v4 = vpop.f32.mrf.mxu2 }
 0x2d6   : > { %v2162_v17 = vadd.f32 %v2161_v4, %v2019_v36 }
 0x2d7   : > { %v1731_v15 = vpop.f32.mrf.mxu0 }
 0x2db   : > { %v2181_v21 = vpop.f32.mrf.mxu3 }
 0x2dc   : > { %v2182_v41 = vadd.f32 %v2181_v21, %v2162_v17  ;;  %v7267_v54 = vpop.f32.mrf.mxu1 }
 0x2dd   : > { %2490 = vmatmul.f32.vlgmr.msra.gmra.mxu0 %v2218_v60  ;;  %v2348_v60 = vld [vmem:[%s9124_s10] sm:$0x3] }
 0x2de   : > { %v2187_v48 = vmul.f32 %v2182_v41, %v2182_v41  ;;  %v2351_v5 = vperm.slane %v2348_v60, 1  ;;  %v2350_v45 = vperm.slane %v2348_v60, 0 }
 0x2df   : > { %v1734_v14 = vpop.f32.mrf.mxu0 }
 0x2e0   : > { %v2191_v42 = vmul.f32 %v2187_v48, %v2182_v41 }
 0x2e2   : > { %v2195_v57 = vmul.f32 0.044715, %v2191_v42 }
 0x2e4   : > { %v2199_v29 = vadd.f32 %v2195_v57, %v2182_v41  ;;  %v1802_v16 = vpop.f32.mrf.mxu1  ;;  %v2514_v57 = vld [vmem:[%s9125_s11] sm:$0x3] }
 0x2e6   : > { %v2203_v19 = vmul.f32 0.7978846, %v2199_v29 }
 0x2e7   : > { %v7269_v27 = vpop.f32.mrf.mxu0 }
 0x2e8   : > { %5057 = vtanh.f32 %v2203_v19  ;;  %9275 = vst [vmem:[#allocation25_spill] sm:$0xff] %v7269_v27 }
 0x2ec   : > { %v1805_v0 = vpop.f32.mrf.mxu1 }
 0x2ee   : > { %v5058_v8 = vpop.eup %5057 }
 0x2ef   : > { %v2211_v40 = vadd.f32 1.0, %v5058_v8  ;;  %v7273_v53 = vpop.f32.mrf.mxu0 }
 0x2f0   : > { %9277 = vst [vmem:[#allocation27_spill] sm:$0xff] %v7273_v53 }
 0x2f1   : > { %v2215_v12 = vmul.f32 0.5, %v2211_v40 }
 0x2f3   : > { %v2219_v9 = vmul.f32 %v2215_v12, %v2182_v41 }
 0x2f4   : > { %v7271_v30 = vpop.f32.mrf.mxu1 }
 0x2f5   : > { %2430 = vmatmul.f32.vlgmr.msrb.gmra.mxu1 %v2219_v9  ;;  %9276 = vst [vmem:[#allocation28_spill] sm:$0xff] %v7271_v30 }
 0x2f7   : > { %v7277_v10 = vpop.f32.mrf.mxu0 }
 0x2f8   : > { %9279 = vst [vmem:[#allocation29_spill] sm:$0xff] %v7277_v10 }
 0x2fc   : > { %v7275_v7 = vpop.f32.mrf.mxu1 }
 0x2fd   : > { %2510 = vmatmul.f32.vlgmr.msra.gmra.mxu1 %v2219_v9  ;;  %9278 = vst [vmem:[#allocation26_spill] sm:$0xff] %v7275_v7 }
 0x2ff   : > { %v7281_v25 = vpop.f32.mrf.mxu0 }
 0x304   : > { %v7279_v32 = vpop.f32.mrf.mxu1 }
 0x305   : > { %9280 = vst [vmem:[#allocation30_spill] sm:$0xff] %v7279_v32 }
 0x307   : > { %v7285_v49 = vpop.f32.mrf.mxu0 }
 0x30c   : > { %v7283_v59 = vpop.f32.mrf.mxu1 }
 0x30d   : > { %9281 = vst [vmem:[#allocation31_spill] sm:$0xff] %v7283_v59 }
 0x30f   : > { %v7289_v18 = vpop.f32.mrf.mxu0 }
 0x314   : > { %v7287_v20 = vpop.f32.mrf.mxu1 }
 0x317   : > { %v1755_v22 = vpop.f32.mrf.mxu0 }
 0x31c   : > { %v7291_v56 = vpop.f32.mrf.mxu1 }
 0x31f   : > { %v1758_v55 = vpop.f32.mrf.mxu0 }
 0x324   : > { %v1826_v33 = vpop.f32.mrf.mxu1 }
 0x32c   : > { %v1829_v13 = vpop.f32.mrf.mxu1 }
 0x330   : > { %v1761_v24 = vpop.f32.mrf.mxu0 }
 0x334   : > { %v1832_v1 = vpop.f32.mrf.mxu1 }
 0x337   : > { %v2371_v62 = vpop.f32.mrf.mxu2 }
 0x338   : > { %v2372_v6 = vadd.f32 %v2371_v62, %v2350_v45 }
 0x33f   : > { %v2451_v3 = vpop.f32.mrf.mxu2 }
 0x340   : > { %v2391_v28 = vpop.f32.mrf.mxu3  ;;  %v2452_v51 = vadd.f32 %v2451_v3, %v2351_v5 }
 0x341   : > { %v2392_v41 = vadd.f32 %v2391_v28, %v2372_v6 }
 0x348   : > { %v2471_v4 = vpop.f32.mrf.mxu3 }
 0x349   : > { %v2472_v21 = vadd.f32 %v2471_v4, %v2452_v51 }
 0x352   : > { %v2411_v39 = vpop.f32.mrf.mxu0 }
 0x353   : > { %v2412_v37 = vadd.f32 %v2411_v39, %v2392_v41 }
 0x35a   : > { %v2491_v17 = vpop.f32.mrf.mxu0 }
 0x35b   : > { %v2492_v2 = vadd.f32 %v2491_v17, %v2472_v21 }
 0x372   : > { %v2431_v36 = vpop.f32.mrf.mxu1 }
 0x373   : > { %v2432_v38 = vadd.f32 %v2431_v36, %v2412_v37 }
 0x37a   : > { %v2511_v48 = vpop.f32.mrf.mxu1 }
 0x37b   : > { %v2512_v42 = vadd.f32 %v2511_v48, %v2492_v2 }
 0x37d   : > { %v2517_v26 = vrot.slane %v2512_v42, 7 }
 0x37f   : > { %v2519_v29 = vsel %vm2518_vm1, %v2432_v38, %v2517_v26 }
 0x380   : > { %v2521_v31 = vadd.f32 %v2519_v29, %v2514_v57 }
 0x382   : > { %v7299_v19 = vperm.slane %v2521_v31, 0  ;;  %v7301_v8 = vperm.slane %v2521_v31, 1 }
 0x384   : > { %v7304_v40 = vmul.f32 %v7299_v19, %v1734_v14  ;;  %v7307_v12 = vmul.f32 %v7299_v19, %v1761_v24  ;;  %v7310_v9 = vmul.f32 %v7301_v8, %v1805_v0  ;;  %v7313_v62 = vmul.f32 %v7301_v8, %v1832_v1 }
 0x385   : > { %v7316_v28 = vmul.f32 %v7299_v19, %v1731_v15  ;;  %v7319_v39 = vmul.f32 %v7299_v19, %v1758_v55  ;;  %v7322_v60 = vmul.f32 %v7301_v8, %v1802_v16  ;;  %v7325_v14 = vmul.f32 %v7301_v8, %v1829_v13 }
 0x386   : > { %v2579_v24 = vmul.f32 %v7304_v40, %v7304_v40  ;;  %v2597_v0 = vmul.f32 %v7307_v12, %v7307_v12  ;;  %v2580_v1 = vmul.f32 %v7310_v9, %v7310_v9  ;;  %v2598_v15 = vmul.f32 %v7313_v62, %v7313_v62 }
 0x387   : > { %v2577_v55 = vmul.f32 %v7316_v28, %v7316_v28  ;;  %v2595_v16 = vmul.f32 %v7319_v39, %v7319_v39  ;;  %v2578_v3 = vmul.f32 %v7322_v60, %v7322_v60  ;;  %v2596_v36 = vmul.f32 %v7325_v14, %v7325_v14 }
 0x388   : > { %v7339_v13 = vadd.f32 %v2597_v0, %v2579_v24  ;;  %v7341_v5 = vadd.f32 %v2598_v15, %v2580_v1  ;;  %v7351_v4 = vmul.f32 %v7299_v19, %v7263_v47  ;;  %v7354_v51 = vmul.f32 %v7299_v19, %v1755_v22 }
 0x389   : > { %v7347_v45 = vadd.f32 %v2595_v16, %v2577_v55  ;;  %v7358_v17 = vmul.f32 %v7301_v8, %v7267_v54  ;;  %v7362_v6 = vmul.f32 %v7301_v8, %v1826_v33  ;;  %v7366_v21 = vadd.f32 %v2596_v36, %v2578_v3  ;;  %v2833_v33 = vld [vmem:[%s9126_s12] sm:$0x3] }
 0x38a   : > { %5059 = vrsqrt.f32 %v7339_v13  ;;  %v2575_v47 = vmul.f32 %v7351_v4, %v7351_v4  ;;  %v2593_v22 = vmul.f32 %v7354_v51, %v7354_v51  ;;  %v7385_v26 = vperm.slane %v2833_v33, 0 }
 0x38b   : > { %5061 = vrsqrt.f32 %v7341_v5  ;;  %v2576_v54 = vmul.f32 %v7358_v17, %v7358_v17  ;;  %v2594_v41 = vmul.f32 %v7362_v6, %v7362_v6  ;;  %v7389_v24 = vperm.slane %v2833_v33, 1 }
 0x38c   : > { %5063 = vrsqrt.f32 %v7347_v45  ;;  %v7380_v48 = vadd.f32 %v2593_v22, %v2575_v47  ;;  %vm2816_vm2 = vcmp.eq.f32.partialorder %v7339_v13, inf  ;;  %v2819_v1 = vand.u32 2147483648, %v7339_v13 }
 0x38d   : > { %5065 = vrsqrt.f32 %v7366_v21  ;;  %v7382_v37 = vadd.f32 %v2594_v41, %v2576_v54  ;;  %v7397_v55 = vmul.f32 %v7299_v19, %v7259_v35  ;;  %vm2818_vm3 = vcmp.eq.f32.partialorder %v7339_v13, 0.0 }
 0x38e   : > { %5067 = vrsqrt.f32 %v7380_v48  ;;  %vm2828_vm4 = vcmp.eq.f32.partialorder %v7341_v5, inf  ;;  %v7403_v47 = vmul.f32 %v7299_v19, %v7289_v18  ;;  %vm2830_vm5 = vcmp.eq.f32.partialorder %v7341_v5, 0.0 }
 0x38f   : > { %5069 = vrsqrt.f32 %v7382_v37  ;;  %9282 = vst [vmem:[#allocation32_spill] sm:$0xff] %v7397_v55  ;;  %v2831_v54 = vand.u32 2147483648, %v7341_v5  ;;  %vm2792_vm6 = vcmp.eq.f32.partialorder %v7347_v45, inf  ;;  %vm2794_vm7 = vcmp.eq.f32.partialorder %v7347_v45, 0.0 }
 0x390   : > { %v5060_v2 = vpop.eup %5059  ;;  %9283 = vst [vmem:[#allocation33_spill] sm:$0xff] %v7403_v47  ;;  %vm2804_vm8 = vcmp.eq.f32.partialorder %v7366_v21, inf  ;;  %vm2806_vm9 = vcmp.eq.f32.partialorder %v7366_v21, 0.0  ;;  %v7454_v61 = vmul.f32 %v7299_v19, %v7255_v52  ;;  %vm2768_vm10 = vcmp.eq.f32.partialorder %v7380_v48, inf }
 0x391   : > { %v5062_v42 = vpop.eup %5061  ;;  %v2810_v38 = vmul.f32 %v5060_v2, %v7339_v13  ;;  %vm2770_vm11 = vcmp.eq.f32.partialorder %v7380_v48, 0.0  ;;  %vm2780_vm0 = vcmp.eq.f32.partialorder %v7382_v37, inf }
 0x392   : > { %v5064_v57 = vpop.eup %5063  ;;  %v2822_v29 = vmul.f32 %v5062_v42, %v7341_v5  ;;  %9286 = vst [vmem:[#allocation36_spill] sm:$0xff] %v7454_v61 }
 0x393   : > { %v2811_v31 = vmul.f32 %v5060_v2, %v2810_v38  ;;  %v2786_v0 = vmul.f32 %v5064_v57, %v7347_v45  ;;  %v5066_v16 = vpop.eup %5065  ;;  %v7411_v38 = vmul.f32 %v7301_v8, %v7265_v43  ;;  %v2591_v43 = vmul.f32 %v7403_v47, %v7403_v47 }
 0x394   : > { %v2823_v15 = vmul.f32 %v5062_v42, %v2822_v29  ;;  %v2798_v41 = vmul.f32 %v5066_v16, %v7366_v21  ;;  %v7413_v29 = vpop.eup %5067 }
 0x395   : > { %v2812_v3 = vmul.f32 0.5, %v2811_v31  ;;  %v2787_v36 = vmul.f32 %v5064_v57, %v2786_v0  ;;  %9284 = vst [vmem:[#allocation34_spill] sm:$0xff] %v7411_v38  ;;  %v2573_v0 = vmul.f32 %v7397_v55, %v7397_v55  ;;  %v7421_v30 = vpop.eup %5069  ;;  %v2762_v58 = vmul.f32 %v7413_v29, %v7380_v48 }
 0x396   : > { %v2824_v22 = vmul.f32 0.5, %v2823_v15  ;;  %v2799_v18 = vmul.f32 %v5066_v16, %v2798_v41  ;;  %v7419_v15 = vmul.f32 %v7301_v8, %v7291_v56 }
 0x397   : > { %v2813_v35 = vsub.f32 1.5, %v2812_v3  ;;  %v2788_v33 = vmul.f32 0.5, %v2787_v36 }
 0x398   : > { %v2825_v31 = vsub.f32 1.5, %v2824_v22  ;;  %9285 = vst [vmem:[#allocation35_spill] sm:$0xff] %v7419_v15  ;;  %v2795_v22 = vand.u32 2147483648, %v7347_v45  ;;  %v2800_v41 = vmul.f32 0.5, %v2799_v18 }
 0x399   : > { %v2814_v3 = vmul.f32 %v5060_v2, %v2813_v35  ;;  %v2789_v36 = vsub.f32 1.5, %v2788_v33  ;;  %v2774_v2 = vmul.f32 %v7421_v30, %v7382_v37  ;;  %v2574_v35 = vmul.f32 %v7411_v38, %v7411_v38 }
 0x39a   : > { %v2826_v27 = vmul.f32 %v5062_v42, %v2825_v31  ;;  %v2801_v7 = vsub.f32 1.5, %v2800_v41  ;;  %v2763_v42 = vmul.f32 %v7413_v29, %v2762_v58  ;;  %v2592_v31 = vmul.f32 %v7419_v15, %v7419_v15 }
 0x39b   : > { %v2815_v23 = vmul.f32 %v2814_v3, %v7339_v13  ;;  %v2790_v56 = vmul.f32 %v5064_v57, %v2789_v36  ;;  %v2807_v3 = vand.u32 2147483648, %v7366_v21  ;;  %v7445_v36 = vadd.f32 %v2591_v43, %v2573_v0 }
 0x39c   : > { %v2827_v33 = vmul.f32 %v2826_v27, %v7341_v5  ;;  %v2802_v41 = vmul.f32 %v5066_v16, %v2801_v7  ;;  %v2764_v7 = vmul.f32 0.5, %v2763_v42  ;;  %v7467_v16 = vadd.f32 %v2592_v31, %v2574_v35 }
 0x39d   : > { %v2817_v57 = vsel %vm2816_vm2, %v7339_v13, %v2815_v23  ;;  %v2791_v18 = vmul.f32 %v2790_v56, %v7347_v45  ;;  %v2775_v13 = vmul.f32 %v7421_v30, %v2774_v2  ;;  %v2771_v56 = vand.u32 2147483648, %v7380_v48 }
 0x39e   : > { %v2820_v27 = vsel %vm2818_vm3, %v2819_v1, %v2817_v57  ;;  %v2829_v58 = vsel %vm2828_vm4, %v7341_v5, %v2827_v33  ;;  %v2803_v43 = vmul.f32 %v2802_v41, %v7366_v21  ;;  %v7483_v35 = vmul.f32 %v7299_v19, %v7285_v49 }
 0x39f   : > { %v7456_v53 = vadd.f32 1e-08, %v2820_v27  ;;  %v2832_v23 = vsel %vm2830_vm5, %v2831_v54, %v2829_v58  ;;  %v2793_v0 = vsel %vm2792_vm6, %v7347_v45, %v2791_v18  ;;  %v7470_v52 = vadd.f32 %v7385_v26, %v2820_v27 }
 0x3a0   : > { %v7464_v1 = vadd.f32 1e-08, %v2832_v23  ;;  %v7474_v5 = vadd.f32 %v7389_v24, %v2832_v23  ;;  %v2796_v54 = vsel %vm2794_vm7, %v2795_v22, %v2793_v0  ;;  %v2776_v42 = vmul.f32 0.5, %v2775_v13 }
 0x3a1   : > { %5071 = vrcp.f32 %v7456_v53  ;;  %v3126_v33 = vand.u32 2147483647, %v7456_v53  ;;  %v7489_v31 = vmul.f32 %v7454_v61, %v7454_v61  ;;  %v3128_v45 = vand.u32 2147483648, %v7456_v53 }
 0x3a2   : > { %5073 = vrcp.f32 %v7464_v1  ;;  %v7492_v22 = vadd.f32 1e-08, %v2796_v54  ;;  %v2805_v57 = vsel %vm2804_vm8, %v7366_v21, %v2803_v43  ;;  %v2765_v18 = vsub.f32 1.5, %v2764_v7 }
 0x3a3   : > { %5075 = vrsqrt.f32 %v7445_v36  ;;  %v2808_v58 = vsel %vm2806_vm9, %v2807_v3, %v2805_v57  ;;  %vm3122_vm12 = vweird.f32 %v7456_v53  ;;  %v3140_v41 = vand.u32 2147483647, %v7464_v1 }
 0x3a4   : > { %5077 = vrsqrt.f32 %v7467_v16  ;;  %v3142_v23 = vand.u32 2147483648, %v7464_v1  ;;  %v7508_v0 = vadd.f32 %v7385_v26, %v2796_v54  ;;  %vm3136_vm13 = vweird.f32 %v7464_v1 }
 0x3a5   : > { %5079 = vrcp.f32 %v7492_v22  ;;  %v7512_v21 = vadd.f32 1e-08, %v2808_v58  ;;  %v2766_v3 = vmul.f32 %v7413_v29, %v2765_v18  ;;  %v2777_v43 = vsub.f32 1.5, %v2776_v42 }
 0x3a6   : > { %vm7516_vm14 = vcmp.eq.f32.partialorder %v3126_v33, 8.507059e+37  ;;  %v3129_v27 = vor.u32 1.1754944e-38, %v3128_v45  ;;  %v3100_v54 = vand.u32 2147483648, %v7492_v22  ;;  %v3098_v44 = vand.u32 2147483647, %v7492_v22 }
 0x3a7   : > { %v5072_v13 = vpop.eup %5071  ;;  %v7526_v32 = vadd.f32 %v7389_v24, %v2808_v58  ;;  %5081 = vrcp.f32 %v7512_v21  ;;  %vm7529_vm15 = vcmp.eq.f32.partialorder %v3140_v41, 8.507059e+37  ;;  %v3143_v42 = vor.u32 1.1754944e-38, %v3142_v23 }
 0x3a8   : > { %v5074_v7 = vpop.eup %5073  ;;  %v3118_v57 = vmul.f32 %v5072_v13, %v7456_v53  ;;  %v2871_v45 = vmax.f32 %v7508_v0, 0.0  ;;  %vm3094_vm1 = vweird.f32 %v7492_v22  ;;  %v2767_v58 = vmul.f32 %v2766_v3, %v7380_v48 }
 0x3a9   : > { %v7521_v49 = vpop.eup %5075  ;;  %v3132_v61 = vmul.f32 %v5074_v7, %v7464_v1  ;;  %v2778_v38 = vmul.f32 %v7421_v30, %v2777_v43  ;;  %vm3123_vm2 = vweird.f32 %v5072_v13  ;;  %vm3137_vm3 = vweird.f32 %v5074_v7 }
 0x3aa   : > { %v3119_v29 = vsub.f32 1.0, %v3118_v57  ;;  %v7535_v18 = vpop.eup %5077  ;;  %v3101_v41 = vor.u32 1.1754944e-38, %v3100_v54  ;;  %vm7541_vm4 = vcmp.eq.f32.partialorder %v3098_v44, 8.507059e+37  ;;  %v2769_v3 = vsel %vm2768_vm10, %v7380_v48, %v2767_v58  ;;  %vm3124_vm6 = vmor %vm3122_vm12, %vm3123_vm2 }
 0x3ab   : > { %v3133_v34 = vsub.f32 1.0, %v3132_v61  ;;  %v5080_v15 = vpop.eup %5079  ;;  %v2872_v61 = vmax.f32 %v7526_v32, 0.0  ;;  %vm2782_vm5 = vcmp.eq.f32.partialorder %v7382_v37, 0.0  ;;  %v3112_v43 = vand.u32 2147483647, %v7512_v21  ;;  %vm3138_vm7 = vmor %vm3136_vm13, %vm3137_vm3 }
 0x3ac   : > { %v3120_v57 = vmul.f32 %v5072_v13, %v3119_v29  ;;  %v3090_v23 = vmul.f32 %v5080_v15, %v7492_v22  ;;  %v2738_v44 = vmul.f32 %v7521_v49, %v7445_v36  ;;  %v2779_v58 = vmul.f32 %v2778_v38, %v7382_v37 }
 0x3ad   : > { %v3134_v55 = vmul.f32 %v5074_v7, %v3133_v34  ;;  %v2772_v34 = vsel %vm2770_vm11, %v2771_v56, %v2769_v3  ;;  %v5082_v54 = vpop.eup %5081  ;;  %v3114_v56 = vand.u32 2147483648, %v7512_v21  ;;  %vm3095_vm8 = vweird.f32 %v5080_v15 }
 0x3ae   : > { %v3121_v30 = vadd.f32 %v5072_v13, %v3120_v57  ;;  %v3091_v29 = vsub.f32 1.0, %v3090_v23  ;;  %v7557_v47 = vadd.f32 1e-08, %v2772_v34  ;;  %v3104_v48 = vmul.f32 %v5082_v54, %v7512_v21  ;;  %vm3096_vm9 = vmor %vm3094_vm1, %vm3095_vm8 }
 0x3af   : > { %v3135_v32 = vadd.f32 %v5074_v7, %v3134_v55  ;;  %v2750_v57 = vmul.f32 %v7535_v18, %v7467_v16  ;;  %v9293_v38 = vmax.f32 %v7470_v52, 0.0  ;;  %v2739_v2 = vmul.f32 %v7521_v49, %v2738_v44 }
 0x3b0   : > { %v3125_v10 = vsel %vm3124_vm6, %v5072_v13, %v3121_v30  ;;  %v3092_v23 = vmul.f32 %v5080_v15, %v3091_v29  ;;  %v3105_v3 = vsub.f32 1.0, %v3104_v48  ;;  %5083 = vrcp.f32 %v7557_v47 }
 0x3b1   : > { %v3130_v53 = vsel %vm7516_vm14, %v3129_v27, %v3125_v10  ;;  %v3139_v55 = vsel %vm3138_vm7, %v5074_v7, %v3135_v32  ;;  %v9294_v30 = vmax.f32 %v7474_v5, 0.0  ;;  %v2781_v10 = vsel %vm2780_vm0, %v7382_v37, %v2779_v58 }
 0x3b2   : > { %v3161_v13 = vmul.f32 %v3130_v53, %v9293_v38  ;;  %v3144_v1 = vsel %vm7529_vm15, %v3143_v42, %v3139_v55  ;;  %v3093_v59 = vadd.f32 %v5080_v15, %v3092_v23  ;;  %v3106_v7 = vmul.f32 %v5082_v54, %v3105_v3 }
 0x3b3   : > { %v3162_v11 = vmul.f32 %v3144_v1, %v9294_v30  ;;  %vm3109_vm10 = vweird.f32 %v5082_v54  ;;  %vm3108_vm11 = vweird.f32 %v7512_v21  ;;  %vm3113_vm12 = vcmp.eq.f32.partialorder %v3112_v43, 8.507059e+37 }
 0x3b4   : > { %v3197_v27 = vmul.f32 %v3161_v13, %v7307_v12  ;;  %v3179_v52 = vmul.f32 %v3161_v13, %v7304_v40  ;;  %v3097_v42 = vsel %vm3096_vm9, %v5080_v15, %v3093_v59  ;;  %v3107_v12 = vadd.f32 %v5082_v54, %v3106_v7  ;;  %vm3110_vm13 = vmor %vm3108_vm11, %vm3109_vm10 }
 0x3b5   : > { %v3198_v33 = vmul.f32 %v3162_v11, %v7313_v62  ;;  %v3180_v5 = vmul.f32 %v3162_v11, %v7310_v9  ;;  %v3102_v44 = vsel %vm7541_vm4, %v3101_v41, %v3097_v42  ;;  %v9295_v40 = vand.u32 2147483648, %v7382_v37 }
 0x3b6   : > { %3287 = vmatpush.msra.mxu2 %v3197_v27  ;;  %3465 = vmatpush.msrb.mxu0 %v3179_v52  ;;  %v3159_v62 = vmul.f32 %v3102_v44, %v2871_v45  ;;  %v3115_v11 = vor.u32 1.1754944e-38, %v3114_v56  ;;  %v2851_v59 = vadd.f32 %v7385_v26, %v2772_v34  ;;  %v5084_v15 = vpop.eup %5083  ;;  %v3111_v21 = vsel %vm3110_vm13, %v5082_v54, %v3107_v12 }
 0x3b7   : > { %v2784_v22 = vsel %vm2782_vm5, %v9295_v40, %v2781_v10  ;;  %3352 = vmatpush.msra.mxu3 %v3198_v33  ;;  %3530 = vmatpush.msrb.mxu1 %v3180_v5  ;;  %v2740_v0 = vmul.f32 0.5, %v2739_v2  ;;  %v2751_v41 = vmul.f32 %v7535_v18, %v2750_v57  ;;  %v2589_v43 = vmul.f32 %v7483_v35, %v7483_v35 }
 0x3b8   : > { %v7594_v9 = vadd.f32 1e-08, %v2784_v22  ;;  %v3195_v37 = vmul.f32 %v3159_v62, %v7319_v39  ;;  %v3116_v32 = vsel %vm3113_vm12, %v3115_v11, %v3111_v21  ;;  %v3177_v29 = vmul.f32 %v3159_v62, %v7316_v28 }
 0x3b9   : > { %v3062_v45 = vmul.f32 %v5084_v15, %v7557_v47  ;;  %vm2744_vm14 = vcmp.eq.f32.partialorder %v7445_v36, inf  ;;  %v3160_v34 = vmul.f32 %v3116_v32, %v2872_v61  ;;  %vm2746_vm15 = vcmp.eq.f32.partialorder %v7445_v36, 0.0 }
 0x3ba   : > { %5085 = vrcp.f32 %v7594_v9  ;;  %v2747_v54 = vand.u32 2147483648, %v7445_v36  ;;  %3288 = vmatpush.msra.mxu2 %v3195_v37  ;;  %3466 = vmatpush.msrb.mxu0 %v3177_v29  ;;  %v2869_v58 = vmax.f32 %v2851_v59, 0.0  ;;  %v3070_v39 = vand.u32 2147483647, %v7557_v47 }
 0x3bb   : > { %v3063_v48 = vsub.f32 1.0, %v3062_v45  ;;  %v3072_v56 = vand.u32 2147483648, %v7557_v47  ;;  %vm2756_vm0 = vcmp.eq.f32.partialorder %v7467_v16, inf  ;;  %v3196_v28 = vmul.f32 %v3160_v34, %v7325_v14 }
 0x3bc   : > { %v3178_v61 = vmul.f32 %v3160_v34, %v7322_v60  ;;  %v2741_v57 = vsub.f32 1.5, %v2740_v0  ;;  %v2752_v53 = vmul.f32 0.5, %v2751_v41  ;;  %vm2758_vm1 = vcmp.eq.f32.partialorder %v7467_v16, 0.0 }
 0x3bd   : > { %v3064_v55 = vmul.f32 %v5084_v15, %v3063_v48  ;;  %vm3066_vm2 = vweird.f32 %v7557_v47  ;;  %vm3067_vm3 = vweird.f32 %v5084_v15  ;;  %v7614_v23 = vadd.f32 %v2589_v43, %v7489_v31  ;;  %3353 = vmatpush.msra.mxu3 %v3196_v28 }
 0x3be   : > { %3531 = vmatpush.msrb.mxu1 %v3178_v61  ;;  %v2742_v38 = vmul.f32 %v7521_v49, %v2741_v57  ;;  %v2753_v13 = vsub.f32 1.5, %v2752_v53  ;;  %v7619_v14 = vmul.f32 %v7301_v8, %v7261_v46  ;;  %v7623_v60 = vmul.f32 %v7301_v8, %v7287_v20  ;;  %vm3068_vm5 = vmor %vm3066_vm2, %vm3067_vm3 }
 0x3bf   : > { %v3065_v1 = vadd.f32 %v5084_v15, %v3064_v55  ;;  %vm3071_vm4 = vcmp.eq.f32.partialorder %v3070_v39, 8.507059e+37  ;;  %v3073_v47 = vor.u32 1.1754944e-38, %v3072_v56  ;;  %5087 = vrsqrt.f32 %v7614_v23 }
 0x3c0   : > { %v5086_v31 = vpop.eup %5085  ;;  %v2852_v3 = vadd.f32 %v7389_v24, %v2784_v22  ;;  %v2743_v49 = vmul.f32 %v2742_v38, %v7445_v36  ;;  %v2754_v30 = vmul.f32 %v7535_v18, %v2753_v13  ;;  %v2572_v46 = vmul.f32 %v7619_v14, %v7619_v14 }
 0x3c1   : > { %v3069_v10 = vsel %vm3068_vm5, %v5084_v15, %v3065_v1  ;;  %v3076_v20 = vmul.f32 %v5086_v31, %v7594_v9  ;;  %v2759_v2 = vand.u32 2147483648, %v7467_v16  ;;  %v2590_v27 = vmul.f32 %v7623_v60, %v7623_v60 }
 0x3c2   : > { %v3074_v52 = vsel %vm3071_vm4, %v3073_v47, %v3069_v10  ;;  %v3084_v7 = vand.u32 2147483647, %v7594_v9  ;;  %v2745_v33 = vsel %vm2744_vm14, %v7445_v36, %v2743_v49  ;;  %v2755_v18 = vmul.f32 %v2754_v30, %v7467_v16 }
 0x3c3   : > { %v3157_v5 = vmul.f32 %v3074_v52, %v2869_v58  ;;  %v3077_v42 = vsub.f32 1.0, %v3076_v20  ;;  %v3086_v44 = vand.u32 2147483648, %v7594_v9  ;;  %v2748_v12 = vsel %vm2746_vm15, %v2747_v54, %v2745_v33 }
 0x3c4   : > { %vm3081_vm6 = vweird.f32 %v5086_v31  ;;  %v7643_v40 = vadd.f32 1e-08, %v2748_v12  ;;  %v2757_v22 = vsel %vm2756_vm0, %v7467_v16, %v2755_v18  ;;  %v7648_v62 = vadd.f32 %v2590_v27, %v2572_v46  ;;  %v9300_v46 = vld [vmem:[#allocation31_spill] sm:$0xff] }
 0x3c5   : > { %v5088_v11 = vpop.eup %5087  ;;  %v3193_v59 = vmul.f32 %v3157_v5, %v7354_v51  ;;  %v3078_v15 = vmul.f32 %v5086_v31, %v3077_v42  ;;  %v3175_v21 = vmul.f32 %v3157_v5, %v7351_v4  ;;  %v2760_v0 = vsel %vm2758_vm1, %v2759_v2, %v2757_v22 }
 0x3c6   : > { %v2870_v36 = vmax.f32 %v2852_v3, 0.0  ;;  %vm3080_vm7 = vweird.f32 %v7594_v9  ;;  %vm7655_vm8 = vcmp.eq.f32.partialorder %v3084_v7, 8.507059e+37  ;;  %5089 = vrcp.f32 %v7643_v40  ;;  %v9301_v7 = vld [vmem:[#allocation19_spill] sm:$0xff] }
 0x3c7   : > { %3289 = vmatpush.msra.mxu2 %v3193_v59  ;;  %v3079_v43 = vadd.f32 %v5086_v31, %v3078_v15  ;;  %v3087_v37 = vor.u32 1.1754944e-38, %v3086_v44  ;;  %3467 = vmatpush.msrb.mxu0 %v3175_v21  ;;  %v7660_v51 = vadd.f32 1e-08, %v2760_v0  ;;  %v7664_v4 = vmul.f32 %v7299_v19, %v7251_v50  ;;  %vm3082_vm9 = vmor %vm3080_vm7, %vm3081_vm6  ;;  %v9302_v44 = vld [vmem:[#allocation29_spill] sm:$0xff] }
 0x3c8   : > { %v7668_v16 = vadd.f32 %v7385_v26, %v2748_v12  ;;  %v2714_v9 = vmul.f32 %v5088_v11, %v7614_v23  ;;  %5091 = vrsqrt.f32 %v7648_v62  ;;  %v7674_v32 = vmul.f32 %v7299_v19, %v7281_v25 }
 0x3c9   : > { %v3083_v29 = vsel %vm3082_vm9, %v5086_v31, %v3079_v43  ;;  %v3042_v45 = vand.u32 2147483647, %v7643_v40  ;;  %v3044_v34 = vand.u32 2147483648, %v7643_v40  ;;  %5093 = vrcp.f32 %v7660_v51 }
 0x3ca   : > { %v3088_v50 = vsel %vm7655_vm8, %v3087_v37, %v3083_v29  ;;  %v7682_v54 = vadd.f32 %v7389_v24, %v2760_v0  ;;  %v2715_v48 = vmul.f32 %v5088_v11, %v2714_v9  ;;  %v2723_v39 = vand.u32 2147483648, %v7614_v23 }
 0x3cb   : > { %v3158_v58 = vmul.f32 %v3088_v50, %v2870_v36  ;;  %v2867_v25 = vmax.f32 %v7668_v16, 0.0  ;;  %vm3038_vm10 = vweird.f32 %v7643_v40  ;;  %v2569_v28 = vmul.f32 %v7664_v4, %v7664_v4 }
 0x3cc   : > { %v5090_v56 = vpop.eup %5089  ;;  %v2587_v61 = vmul.f32 %v7674_v32, %v7674_v32  ;;  %vm7694_vm11 = vcmp.eq.f32.partialorder %v3042_v45, 8.507059e+37  ;;  %v3045_v13 = vor.u32 1.1754944e-38, %v3044_v34  ;;  %vm2720_vm12 = vcmp.eq.f32.partialorder %v7614_v23, inf }
 0x3cd   : > { %v3194_v57 = vmul.f32 %v3158_v58, %v7362_v6  ;;  %v3176_v53 = vmul.f32 %v3158_v58, %v7358_v17  ;;  %v3034_v55 = vmul.f32 %v5090_v56, %v7643_v40  ;;  %v2868_v47 = vmax.f32 %v7682_v54, 0.0 }
 0x3ce   : > { %v5092_v1 = vpop.eup %5091  ;;  %v2716_v31 = vmul.f32 0.5, %v2715_v48  ;;  %vm2722_vm13 = vcmp.eq.f32.partialorder %v7614_v23, 0.0  ;;  %v7701_v3 = vadd.f32 %v2587_v61, %v2569_v28  ;;  %v7705_v17 = vmul.f32 %v7301_v8, %v7257_v63  ;;  %v9303_v61 = vld [vmem:[#allocation33_spill] sm:$0xff] }
 0x3cf   : > { %v5094_v6 = vpop.eup %5093  ;;  %3354 = vmatpush.msra.mxu3 %v3194_v57  ;;  %3532 = vmatpush.msrb.mxu1 %v3176_v53  ;;  %v3035_v49 = vsub.f32 1.0, %v3034_v55  ;;  %vm3052_vm14 = vweird.f32 %v7660_v51  ;;  %v2726_v30 = vmul.f32 %v5092_v1, %v7648_v62  ;;  %v7711_v10 = vmul.f32 %v7301_v8, %v9300_v46  ;;  %v9304_v55 = vld [vmem:[#allocation32_spill] sm:$0xff] }
 0x3d0   : > { %v3048_v20 = vmul.f32 %v5094_v6, %v7660_v51  ;;  %v3058_v2 = vand.u32 2147483648, %v7660_v51  ;;  %v2717_v27 = vsub.f32 1.5, %v2716_v31  ;;  %5095 = vrsqrt.f32 %v7701_v3  ;;  %v9305_v31 = vld [vmem:[#allocation35_spill] sm:$0xff] }
 0x3d1   : > { %v3036_v63 = vmul.f32 %v5090_v56, %v3035_v49  ;;  %vm3039_vm15 = vweird.f32 %v5090_v56  ;;  %v2727_v52 = vmul.f32 %v5092_v1, %v2726_v30  ;;  %v7718_v33 = vmul.f32 %v7299_v19, %v9301_v7  ;;  %v9306_v49 = vld [vmem:[#allocation34_spill] sm:$0xff] }
 0x3d2   : > { %v3049_v18 = vsub.f32 1.0, %v3048_v20  ;;  %v2718_v5 = vmul.f32 %v5088_v11, %v2717_v27  ;;  %vm2732_vm0 = vcmp.eq.f32.partialorder %v7648_v62, inf  ;;  %v2570_v42 = vmul.f32 %v7705_v17, %v7705_v17  ;;  %vm3040_vm1 = vmor %vm3038_vm10, %vm3039_vm15  ;;  %v9308_v7 = vld [vmem:[#allocation30_spill] sm:$0xff] }
 0x3d3   : > { %v7725_v12 = vmul.f32 %v7299_v19, %v9302_v44  ;;  %v3037_v22 = vadd.f32 %v5090_v56, %v3036_v63  ;;  %v3056_v59 = vand.u32 2147483647, %v7660_v51  ;;  %v2728_v15 = vmul.f32 0.5, %v2727_v52 }
 0x3d4   : > { %v2588_v21 = vmul.f32 %v7711_v10, %v7711_v10  ;;  %v3050_v11 = vmul.f32 %v5094_v6, %v3049_v18  ;;  %vm3053_vm2 = vweird.f32 %v5094_v6  ;;  %v3059_v0 = vor.u32 1.1754944e-38, %v3058_v2 }
 0x3d5   : > { %v2719_v36 = vmul.f32 %v2718_v5, %v7614_v23  ;;  %v3041_v41 = vsel %vm3040_vm1, %v5090_v56, %v3037_v22  ;;  %v2729_v43 = vsub.f32 1.5, %v2728_v15  ;;  %v2567_v16 = vmul.f32 %v7718_v33, %v7718_v33  ;;  %vm3054_vm3 = vmor %vm3052_vm14, %vm3053_vm2 }
 0x3d6   : > { %v7733_v37 = vadd.f32 %v2588_v21, %v2570_v42  ;;  %v5096_v9 = vpop.eup %5095  ;;  %v3046_v29 = vsel %vm7694_vm11, %v3045_v13, %v3041_v41  ;;  %v3051_v45 = vadd.f32 %v5094_v6, %v3050_v11  ;;  %v2585_v34 = vmul.f32 %v7725_v12, %v7725_v12 }
 0x3d7   : > { %v2721_v40 = vsel %vm2720_vm12, %v7614_v23, %v2719_v36  ;;  %v3155_v50 = vmul.f32 %v3046_v29, %v2867_v25  ;;  %v2730_v58 = vmul.f32 %v5092_v1, %v2729_v43  ;;  %v2690_v48 = vmul.f32 %v5096_v9, %v7701_v3 }
 0x3d8   : > { %v2724_v54 = vsel %vm2722_vm13, %v2723_v39, %v2721_v40  ;;  %v3055_v56 = vsel %vm3054_vm3, %v5094_v6, %v3051_v45  ;;  %vm3057_vm4 = vcmp.eq.f32.partialorder %v3056_v59, 8.507059e+37  ;;  %5097 = vrsqrt.f32 %v7733_v37 }
 0x3d9   : > { %v7749_v28 = vadd.f32 1e-08, %v2724_v54  ;;  %v3191_v57 = vmul.f32 %v3155_v50, %v9303_v61  ;;  %v3060_v53 = vsel %vm3057_vm4, %v3059_v0, %v3055_v56  ;;  %v3173_v25 = vmul.f32 %v3155_v50, %v9304_v55 }
 0x3da   : > { %v2731_v51 = vmul.f32 %v2730_v58, %v7648_v62  ;;  %v3156_v38 = vmul.f32 %v3060_v53, %v2868_v47  ;;  %v2735_v23 = vand.u32 2147483648, %v7648_v62  ;;  %v7757_v39 = vadd.f32 %v2585_v34, %v2567_v16 }
 0x3db   : > { %5099 = vrcp.f32 %v7749_v28  ;;  %3290 = vmatpush.msra.mxu2 %v3191_v57  ;;  %3468 = vmatpush.msrb.mxu0 %v3173_v25  ;;  %vm2734_vm5 = vcmp.eq.f32.partialorder %v7648_v62, 0.0  ;;  %v2691_v1 = vmul.f32 %v5096_v9, %v2690_v48  ;;  %v2847_v2 = vadd.f32 %v7385_v26, %v2724_v54 }
 0x3dc   : > { %v2733_v13 = vsel %vm2732_vm0, %v7648_v62, %v2731_v51  ;;  %v3192_v6 = vmul.f32 %v3156_v38, %v9305_v31  ;;  %v3174_v30 = vmul.f32 %v3156_v38, %v9306_v49  ;;  %5101 = vrsqrt.f32 %v7757_v39  ;;  %v9307_v62 = vld [vmem:[#allocation24_spill] sm:$0xff] }
 0x3dd   : > { %v2736_v47 = vsel %vm2734_vm5, %v2735_v23, %v2733_v13  ;;  %v2692_v27 = vmul.f32 0.5, %v2691_v1  ;;  %v3014_v63 = vand.u32 2147483647, %v7749_v28  ;;  %v7773_v52 = vmul.f32 %v7301_v8, %v9307_v62 }
 0x3de   : > { %v7765_v46 = vadd.f32 1e-08, %v2736_v47  ;;  %v5098_v20 = vpop.eup %5097  ;;  %3355 = vmatpush.msra.mxu3 %v3192_v6  ;;  %3533 = vmatpush.msrb.mxu1 %v3174_v30  ;;  %v7777_v18 = vmul.f32 %v7301_v8, %v9308_v7  ;;  %v3016_v42 = vand.u32 2147483648, %v7749_v28  ;;  %vm2696_vm6 = vcmp.eq.f32.partialorder %v7701_v3, inf  ;;  %v9311_v30 = vld [vmem:[#allocation22_spill] sm:$0xff] }
 0x3df   : > { %v2693_v44 = vsub.f32 1.5, %v2692_v27  ;;  %v2702_v22 = vmul.f32 %v5098_v20, %v7733_v37  ;;  %vm2698_vm7 = vcmp.eq.f32.partialorder %v7701_v3, 0.0  ;;  %v2699_v15 = vand.u32 2147483648, %v7701_v3 }
 0x3e0   : > { %5103 = vrcp.f32 %v7765_v46  ;;  %v2865_v21 = vmax.f32 %v2847_v2, 0.0  ;;  %vm3010_vm8 = vweird.f32 %v7749_v28  ;;  %vm7786_vm9 = vcmp.eq.f32.partialorder %v3014_v63, 8.507059e+37 }
 0x3e1   : > { %v5100_v5 = vpop.eup %5099  ;;  %v2694_v11 = vmul.f32 %v5096_v9, %v2693_v44  ;;  %v2703_v0 = vmul.f32 %v5098_v20, %v2702_v22  ;;  %v2568_v43 = vmul.f32 %v7773_v52, %v7773_v52  ;;  %v2586_v16 = vmul.f32 %v7777_v18, %v7777_v18 }
 0x3e2   : > { %v3006_v59 = vmul.f32 %v5100_v5, %v7749_v28  ;;  %v5102_v29 = vpop.eup %5101  ;;  %v3017_v45 = vor.u32 1.1754944e-38, %v3016_v42  ;;  %v2848_v40 = vadd.f32 %v7389_v24, %v2736_v47  ;;  %vm3011_vm10 = vweird.f32 %v5100_v5 }
 0x3e3   : > { %v2695_v34 = vmul.f32 %v2694_v11, %v7701_v3  ;;  %v2704_v50 = vmul.f32 0.5, %v2703_v0  ;;  %vm2708_vm11 = vcmp.eq.f32.partialorder %v7733_v37, inf  ;;  %v2666_v58 = vmul.f32 %v5102_v29, %v7757_v39  ;;  %vm3012_vm13 = vmor %vm3010_vm8, %vm3011_vm10 }
 0x3e4   : > { %v3007_v36 = vsub.f32 1.0, %v3006_v59  ;;  %v7798_v48 = vadd.f32 %v2586_v16, %v2568_v43  ;;  %vm2710_vm12 = vcmp.eq.f32.partialorder %v7733_v37, 0.0  ;;  %v2711_v53 = vand.u32 2147483648, %v7733_v37  ;;  %v9313_v59 = vld [vmem:[#allocation36_spill] sm:$0xff] }
 0x3e5   : > { %v2697_v61 = vsel %vm2696_vm6, %v7701_v3, %v2695_v34  ;;  %v2705_v57 = vsub.f32 1.5, %v2704_v50  ;;  %v2667_v51 = vmul.f32 %v5102_v29, %v2666_v58  ;;  %v3028_v23 = vand.u32 2147483647, %v7765_v46 }
 0x3e6   : > { %v5104_v9 = vpop.eup %5103  ;;  %v3008_v54 = vmul.f32 %v5100_v5, %v3007_v36  ;;  %v2700_v25 = vsel %vm2698_vm7, %v2699_v15, %v2697_v61  ;;  %5105 = vrsqrt.f32 %v7798_v48  ;;  %v3030_v6 = vand.u32 2147483648, %v7765_v46 }
 0x3e7   : > { %v3020_v56 = vmul.f32 %v5104_v9, %v7765_v46  ;;  %v7812_v13 = vadd.f32 1e-08, %v2700_v25  ;;  %v2706_v1 = vmul.f32 %v5098_v20, %v2705_v57  ;;  %v2668_v49 = vmul.f32 0.5, %v2667_v51  ;;  %v9312_v20 = vld [vmem:[#allocation27_spill] sm:$0xff] }
 0x3e8   : > { %v3009_v55 = vadd.f32 %v5100_v5, %v3008_v54  ;;  %v7817_v3 = vmul.f32 %v7299_v19, %v9311_v30  ;;  %vm3025_vm14 = vweird.f32 %v5104_v9  ;;  %v2866_v27 = vmax.f32 %v2848_v40, 0.0  ;;  %v9315_v30 = vld [vmem:[#allocation26_spill] sm:$0xff] }
 0x3e9   : > { %v3021_v38 = vsub.f32 1.0, %v3020_v56  ;;  %5107 = vrcp.f32 %v7812_v13  ;;  %vm3024_vm15 = vweird.f32 %v7765_v46  ;;  %v7825_v63 = vmul.f32 %v7299_v19, %v9312_v20 }
 0x3ea   : > { %v3013_v31 = vsel %vm3012_vm13, %v5100_v5, %v3009_v55  ;;  %vm3029_vm0 = vcmp.eq.f32.partialorder %v3028_v23, 8.507059e+37  ;;  %v2707_v7 = vmul.f32 %v2706_v1, %v7733_v37  ;;  %v2669_v5 = vsub.f32 1.5, %v2668_v49  ;;  %vm3026_vm1 = vmor %vm3024_vm15, %vm3025_vm14 }
 0x3eb   : > { %v3018_v47 = vsel %vm7786_vm9, %v3017_v45, %v3013_v31  ;;  %v3022_v2 = vmul.f32 %v5104_v9, %v3021_v38  ;;  %v3031_v22 = vor.u32 1.1754944e-38, %v3030_v6  ;;  %v2583_v43 = vmul.f32 %v7825_v63, %v7825_v63 }
 0x3ec   : > { %v3153_v28 = vmul.f32 %v3018_v47, %v2865_v21  ;;  %v5106_v42 = vpop.eup %5105  ;;  %v2565_v21 = vmul.f32 %v7817_v3, %v7817_v3  ;;  %v2709_v11 = vsel %vm2708_vm11, %v7733_v37, %v2707_v7  ;;  %v2670_v0 = vmul.f32 %v5102_v29, %v2669_v5 }
 0x3ed   : > { %v3023_v62 = vadd.f32 %v5104_v9, %v3022_v2  ;;  %v2678_v36 = vmul.f32 %v5106_v42, %v7798_v48  ;;  %vm2672_vm2 = vcmp.eq.f32.partialorder %v7757_v39, inf  ;;  %vm2674_vm3 = vcmp.eq.f32.partialorder %v7757_v39, 0.0 }
 0x3ee   : > { %v3189_v44 = vmul.f32 %v3153_v28, %v7483_v35  ;;  %v3171_v15 = vmul.f32 %v3153_v28, %v9313_v59  ;;  %v2712_v35 = vsel %vm2710_vm12, %v2711_v53, %v2709_v11  ;;  %v2671_v34 = vmul.f32 %v2670_v0, %v7757_v39  ;;  %v9314_v53 = vld [vmem:[#allocation23_spill] sm:$0xff] }
 0x3ef   : > { %v3027_v46 = vsel %vm3026_vm1, %v5104_v9, %v3023_v62  ;;  %v5108_v16 = vpop.eup %5107  ;;  %v7840_v40 = vadd.f32 1e-08, %v2712_v35  ;;  %v2679_v50 = vmul.f32 %v5106_v42, %v2678_v36  ;;  %v7846_v9 = vadd.f32 %v2583_v43, %v2565_v21  ;;  %v9316_v36 = vld [vmem:[#allocation20_spill] sm:$0xff] }
 0x3f0   : > { %3291 = vmatpush.msra.mxu2 %v3189_v44  ;;  %v3032_v41 = vsel %vm3029_vm0, %v3031_v22, %v3027_v46  ;;  %3469 = vmatpush.msrb.mxu0 %v3171_v15  ;;  %v2978_v29 = vmul.f32 %v5108_v16, %v7812_v13  ;;  %v2845_v58 = vadd.f32 %v7385_v26, %v2700_v25  ;;  %v2986_v61 = vand.u32 2147483647, %v7812_v13 }
 0x3f1   : > { %v3154_v45 = vmul.f32 %v3032_v41, %v2866_v27  ;;  %5109 = vrcp.f32 %v7840_v40  ;;  %v2675_v57 = vand.u32 2147483648, %v7757_v39  ;;  %v7856_v55 = vmul.f32 %v7301_v8, %v9314_v53 }
 0x3f2   : > { %v2979_v56 = vsub.f32 1.0, %v2978_v29  ;;  %v2988_v51 = vand.u32 2147483648, %v7812_v13  ;;  %5111 = vrsqrt.f32 %v7846_v9  ;;  %vm2983_vm4 = vweird.f32 %v5108_v16 }
 0x3f3   : > { %v3190_v37 = vmul.f32 %v3154_v45, %v7623_v60  ;;  %v3172_v54 = vmul.f32 %v3154_v45, %v7619_v14  ;;  %v2673_v14 = vsel %vm2672_vm2, %v7757_v39, %v2671_v34  ;;  %v2680_v60 = vmul.f32 0.5, %v2679_v50 }
 0x3f4   : > { %v2980_v25 = vmul.f32 %v5108_v16, %v2979_v56  ;;  %v2676_v38 = vsel %vm2674_vm3, %v2675_v57, %v2673_v14  ;;  %v2863_v23 = vmax.f32 %v2845_v58, 0.0  ;;  %vm2684_vm5 = vcmp.eq.f32.partialorder %v7798_v48, inf }
 0x3f5   : > { %3356 = vmatpush.msra.mxu3 %v3190_v37  ;;  %3534 = vmatpush.msrb.mxu1 %v3172_v54  ;;  %v7865_v1 = vadd.f32 1e-08, %v2676_v38  ;;  %v2681_v31 = vsub.f32 1.5, %v2680_v60  ;;  %vm2982_vm6 = vweird.f32 %v7812_v13  ;;  %v2687_v49 = vand.u32 2147483648, %v7798_v48 }
 0x3f6   : > { %v2981_v6 = vadd.f32 %v5108_v16, %v2980_v25  ;;  %v7872_v47 = vmul.f32 %v7301_v8, %v9315_v30  ;;  %vm2984_vm7 = vmor %vm2982_vm6, %vm2983_vm4  ;;  %vm2987_vm8 = vcmp.eq.f32.partialorder %v2986_v61, 8.507059e+37  ;;  %v2989_v39 = vor.u32 1.1754944e-38, %v2988_v51  ;;  %v9318_v30 = vld [vmem:[#allocation21_spill] sm:$0xff] }
 0x3f7   : > { %v5110_v2 = vpop.eup %5109  ;;  %5113 = vrcp.f32 %v7865_v1  ;;  %v2566_v28 = vmul.f32 %v7856_v55, %v7856_v55  ;;  %v2846_v20 = vadd.f32 %v7389_v24, %v2712_v35  ;;  %v3000_v62 = vand.u32 2147483647, %v7840_v40  ;;  %v9317_v35 = vld [vmem:[#allocation25_spill] sm:$0xff] }
 0x3f8   : > { %v2985_v27 = vsel %vm2984_vm7, %v5108_v16, %v2981_v6  ;;  %v2992_v13 = vmul.f32 %v5110_v2, %v7840_v40  ;;  %v5112_v7 = vpop.eup %5111  ;;  %v3002_v44 = vand.u32 2147483648, %v7840_v40  ;;  %v2682_v22 = vmul.f32 %v5106_v42, %v2681_v31 }
 0x3f9   : > { %v2990_v5 = vsel %vm2987_vm8, %v2989_v39, %v2985_v27  ;;  %v2584_v59 = vmul.f32 %v7872_v47, %v7872_v47  ;;  %vm2997_vm9 = vweird.f32 %v5110_v2  ;;  %v2642_v46 = vmul.f32 %v5112_v7, %v7846_v9  ;;  %v9319_v27 = vld [vmem:[#allocation28_spill] sm:$0xff] }
 0x3fa   : > { %v3151_v15 = vmul.f32 %v2990_v5, %v2863_v23  ;;  %v2993_v21 = vsub.f32 1.0, %v2992_v13  ;;  %v2683_v11 = vmul.f32 %v2682_v22, %v7798_v48  ;;  %v7889_v41 = vmul.f32 %v7299_v19, %v9316_v36 }
 0x3fb   : > { %v7885_v0 = vadd.f32 %v2584_v59, %v2566_v28  ;;  %v7893_v43 = vmul.f32 %v7299_v19, %v9317_v35  ;;  %v2643_v34 = vmul.f32 %v5112_v7, %v2642_v46  ;;  %v2864_v50 = vmax.f32 %v2846_v20, 0.0 }
 0x3fc   : > { %v3187_v42 = vmul.f32 %v3151_v15, %v7674_v32  ;;  %v2994_v16 = vmul.f32 %v5110_v2, %v2993_v21  ;;  %v3169_v45 = vmul.f32 %v3151_v15, %v7664_v4  ;;  %v2685_v37 = vsel %vm2684_vm5, %v7798_v48, %v2683_v11 }
 0x3fd   : > { %v5114_v29 = vpop.eup %5113  ;;  %vm2686_vm10 = vcmp.eq.f32.partialorder %v7798_v48, 0.0  ;;  %5115 = vrsqrt.f32 %v7885_v0  ;;  %vm2996_vm11 = vweird.f32 %v7840_v40  ;;  %vm3001_vm13 = vcmp.eq.f32.partialorder %v3000_v62, 8.507059e+37 }
 0x3fe   : > { %3292 = vmatpush.msra.mxu2 %v3187_v42  ;;  %v2995_v54 = vadd.f32 %v5110_v2, %v2994_v16  ;;  %3470 = vmatpush.msrb.mxu0 %v3169_v45  ;;  %v2950_v19 = vmul.f32 %v5114_v29, %v7865_v1  ;;  %v2688_v32 = vsel %vm2686_vm10, %v2687_v49, %v2685_v37  ;;  %vm2998_vm12 = vmor %vm2996_vm11, %vm2997_vm9  ;;  %v3003_v4 = vor.u32 1.1754944e-38, %v3002_v44 }
 0x3ff   : > { %v7905_v58 = vadd.f32 1e-08, %v2688_v32  ;;  %v2644_v56 = vmul.f32 0.5, %v2643_v34  ;;  %v2563_v48 = vmul.f32 %v7889_v41, %v7889_v41  ;;  %v2581_v53 = vmul.f32 %v7893_v43, %v7893_v43 }
 0x400   : > { %v2999_v61 = vsel %vm2998_vm12, %v5110_v2, %v2995_v54  ;;  %v2951_v57 = vsub.f32 1.0, %v2950_v19  ;;  %v2843_v51 = vadd.f32 %v7385_v26, %v2676_v38  ;;  %v2960_v14 = vand.u32 2147483648, %v7865_v1 }
 0x401   : > { %v3004_v40 = vsel %vm3001_vm13, %v3003_v4, %v2999_v61  ;;  %5117 = vrcp.f32 %v7905_v58  ;;  %vm2955_vm14 = vweird.f32 %v5114_v29  ;;  %v2958_v23 = vand.u32 2147483647, %v7865_v1 }
 0x402   : > { %v3152_v60 = vmul.f32 %v3004_v40, %v2864_v50  ;;  %v2952_v25 = vmul.f32 %v5114_v29, %v2951_v57  ;;  %vm2954_vm15 = vweird.f32 %v7865_v1  ;;  %v2645_v6 = vsub.f32 1.5, %v2644_v56 }
 0x403   : > { %v5116_v31 = vpop.eup %5115  ;;  %v7916_v49 = vadd.f32 %v2581_v53, %v2563_v48  ;;  %v7920_v2 = vmul.f32 %v7301_v8, %v9318_v30  ;;  %v7926_v20 = vmul.f32 %v7301_v8, %v9319_v27  ;;  %vm2956_vm0 = vmor %vm2954_vm15, %vm2955_vm14  ;;  %v2961_v13 = vor.u32 1.1754944e-38, %v2960_v14 }
 0x404   : > { %v3188_v38 = vmul.f32 %v3152_v60, %v7711_v10  ;;  %v3170_v39 = vmul.f32 %v3152_v60, %v7705_v17  ;;  %v2953_v28 = vadd.f32 %v5114_v29, %v2952_v25  ;;  %v2646_v62 = vmul.f32 %v5112_v7, %v2645_v6 }
 0x405   : > { %v2654_v1 = vmul.f32 %v5116_v31, %v7885_v0  ;;  %5119 = vrsqrt.f32 %v7916_v49  ;;  %v2861_v5 = vmax.f32 %v2843_v51, 0.0  ;;  %vm2959_vm1 = vcmp.eq.f32.partialorder %v2958_v23, 8.507059e+37 }
 0x406   : > { %3357 = vmatpush.msra.mxu3 %v3188_v38  ;;  %3535 = vmatpush.msrb.mxu1 %v3170_v39  ;;  %v2957_v44 = vsel %vm2956_vm0, %v5114_v29, %v2953_v28  ;;  %vm2648_vm2 = vcmp.eq.f32.partialorder %v7846_v9, inf  ;;  %v2647_v22 = vmul.f32 %v2646_v62, %v7846_v9  ;;  %v2564_v59 = vmul.f32 %v7920_v2, %v7920_v2 }
 0x407   : > { %v5118_v17 = vpop.eup %5117  ;;  %v2962_v10 = vsel %vm2959_vm1, %v2961_v13, %v2957_v44  ;;  %v2655_v8 = vmul.f32 %v5116_v31, %v2654_v1  ;;  %v2651_v21 = vand.u32 2147483648, %v7846_v9  ;;  %v2582_v46 = vmul.f32 %v7926_v20, %v7926_v20 }
 0x408   : > { %v3149_v7 = vmul.f32 %v2962_v10, %v2861_v5  ;;  %v2964_v15 = vmul.f32 %v5118_v17, %v7905_v58  ;;  %v2844_v11 = vadd.f32 %v7389_v24, %v2688_v32  ;;  %v2649_v36 = vsel %vm2648_vm2, %v7846_v9, %v2647_v22 }
 0x409   : > { %vm2650_vm3 = vcmp.eq.f32.partialorder %v7846_v9, 0.0  ;;  %v2656_v35 = vmul.f32 0.5, %v2655_v8  ;;  %v2974_v50 = vand.u32 2147483648, %v7905_v58  ;;  %v7944_v19 = vadd.f32 %v2582_v46, %v2564_v59 }
 0x40a   : > { %v3185_v42 = vmul.f32 %v3149_v7, %v7725_v12  ;;  %v2965_v16 = vsub.f32 1.0, %v2964_v15  ;;  %v3167_v45 = vmul.f32 %v3149_v7, %v7718_v33  ;;  %v2652_v34 = vsel %vm2650_vm3, %v2651_v21, %v2649_v36 }
 0x40b   : > { %v5120_v29 = vpop.eup %5119  ;;  %v2877_v37 = vadd.f32 1e-08, %v2652_v34  ;;  %v2657_v54 = vsub.f32 1.5, %v2656_v35  ;;  %vm2969_vm4 = vweird.f32 %v5118_v17  ;;  %v2972_v4 = vand.u32 2147483647, %v7905_v58 }
 0x40c   : > { %3293 = vmatpush.msra.mxu2 %v3185_v42  ;;  %v2966_v32 = vmul.f32 %v5118_v17, %v2965_v16  ;;  %3471 = vmatpush.msrb.mxu0 %v3167_v45  ;;  %v2618_v9 = vmul.f32 %v5120_v29, %v7916_v49  ;;  %vm2968_vm5 = vweird.f32 %v7905_v58  ;;  %v2862_v61 = vmax.f32 %v2844_v11, 0.0 }
 0x40d   : > { %5121 = vrcp.f32 %v2877_v37  ;;  %v2658_v33 = vmul.f32 %v5116_v31, %v2657_v54  ;;  %vm2970_vm6 = vmor %vm2968_vm5, %vm2969_vm4  ;;  %v2975_v57 = vor.u32 1.1754944e-38, %v2974_v50  ;;  %vm2973_vm7 = vcmp.eq.f32.partialorder %v2972_v4, 8.507059e+37 }
 0x40e   : > { %v2967_v12 = vadd.f32 %v5118_v17, %v2966_v32  ;;  %v2619_v56 = vmul.f32 %v5120_v29, %v2618_v9  ;;  %5123 = vrsqrt.f32 %v7944_v19  ;;  %vm2660_vm8 = vcmp.eq.f32.partialorder %v7885_v0, inf }
 0x40f   : > { %v2659_v53 = vmul.f32 %v2658_v33, %v7885_v0  ;;  %v2663_v14 = vand.u32 2147483648, %v7885_v0  ;;  %vm2662_vm9 = vcmp.eq.f32.partialorder %v7885_v0, 0.0  ;;  %v2841_v1 = vadd.f32 %v7385_v26, %v2652_v34 }
 0x410   : > { %v2971_v48 = vsel %vm2970_vm6, %v5118_v17, %v2967_v12  ;;  %v2620_v40 = vmul.f32 0.5, %v2619_v56  ;;  %v2930_v5 = vand.u32 2147483647, %v2877_v37  ;;  %vm2624_vm11 = vcmp.eq.f32.partialorder %v7916_v49, inf }
 0x411   : > { %v2976_v51 = vsel %vm2973_vm7, %v2975_v57, %v2971_v48  ;;  %v2661_v58 = vsel %vm2660_vm8, %v7885_v0, %v2659_v53  ;;  %v2932_v0 = vand.u32 2147483648, %v2877_v37  ;;  %vm2626_vm12 = vcmp.eq.f32.partialorder %v7916_v49, 0.0 }
 0x412   : > { %v3150_v60 = vmul.f32 %v2976_v51, %v2862_v61  ;;  %v2621_v25 = vsub.f32 1.5, %v2620_v40  ;;  %v2664_v31 = vsel %vm2662_vm9, %v2663_v14, %v2661_v58  ;;  %vm2926_vm13 = vweird.f32 %v2877_v37 }
 0x413   : > { %v5122_v23 = vpop.eup %5121  ;;  %v2878_v28 = vadd.f32 1e-08, %v2664_v31  ;;  %v2859_v59 = vmax.f32 %v2841_v1, 0.0  ;;  %v2933_v7 = vor.u32 1.1754944e-38, %v2932_v0  ;;  %vm2931_vm15 = vcmp.eq.f32.partialorder %v2930_v5, 8.507059e+37  ;;  %v3215_v1 = vld [vmem:[%s9117_s3] sm:$0xff] }
 0x414   : > { %v3186_v6 = vmul.f32 %v3150_v60, %v7777_v18  ;;  %v3168_v30 = vmul.f32 %v3150_v60, %v7773_v52  ;;  %v2922_v38 = vmul.f32 %v5122_v23, %v2877_v37  ;;  %v5124_v39 = vpop.eup %5123  ;;  %v2622_v27 = vmul.f32 %v5120_v29, %v2621_v25  ;;  %v3199_v5 = vld [vmem:[%s9116_s2] sm:$0xff] }
 0x415   : > { %v2630_v62 = vmul.f32 %v5124_v39, %v7944_v19  ;;  %5125 = vrcp.f32 %v2878_v28  ;;  %vm2927_vm10 = vweird.f32 %v5122_v23  ;;  %v2627_v52 = vand.u32 2147483648, %v7916_v49 }
 0x416   : > { %3358 = vmatpush.msra.mxu3 %v3186_v6  ;;  %3536 = vmatpush.msrb.mxu1 %v3168_v30  ;;  %v2923_v13 = vsub.f32 1.0, %v2922_v38  ;;  %v2623_v18 = vmul.f32 %v2622_v27, %v7916_v49  ;;  %vm2928_vm14 = vmor %vm2926_vm13, %vm2927_vm10  ;;  %v2842_v50 = vadd.f32 %v7389_v24, %v2664_v31  ;;  %v2946_v37 = vand.u32 2147483648, %v2878_v28 }
 0x417   : > { %v2631_v17 = vmul.f32 %v5124_v39, %v2630_v62  ;;  %v2944_v32 = vand.u32 2147483647, %v2878_v28  ;;  %vm2636_vm1 = vcmp.eq.f32.partialorder %v7944_v19, inf  ;;  %v2639_v9 = vand.u32 2147483648, %v7944_v19 }
 0x418   : > { %v2924_v44 = vmul.f32 %v5122_v23, %v2923_v13  ;;  %v2625_v22 = vsel %vm2624_vm11, %v7916_v49, %v2623_v18  ;;  %vm2940_vm2 = vweird.f32 %v2878_v28  ;;  %vm2638_vm3 = vcmp.eq.f32.partialorder %v7944_v19, 0.0 }
 0x419   : > { %v2632_v8 = vmul.f32 0.5, %v2631_v17  ;;  %v2628_v15 = vsel %vm2626_vm12, %v2627_v52, %v2625_v22  ;;  %v2947_v33 = vor.u32 1.1754944e-38, %v2946_v37  ;;  %v2860_v61 = vmax.f32 %v2842_v50, 0.0  ;;  %v7989_v52 = vld [vmem:[#allocation5 + $0xf8] sm:$0xff]  ;;  %v3201_v50 = vld [vmem:[%s9116_s2 + $0x10] sm:$0xff]  ;;  %v8040_v37 = vld [vmem:[#allocation5 + $0x1e0] sm:$0xff] }
 0x41a   : > { %v2925_v10 = vadd.f32 %v5122_v23, %v2924_v44  ;;  %v2875_v46 = vadd.f32 1e-08, %v2628_v15  ;;  %vm2945_vm5 = vcmp.eq.f32.partialorder %v2944_v32, 8.507059e+37  ;;  %v2839_v60 = vadd.f32 %v7385_v26, %v2628_v15  ;;  %v8046_v32 = vld [vmem:[#allocation5 + $0xa0] sm:$0xff] }
 0x41b   : > { %v2633_v11 = vsub.f32 1.5, %v2632_v8  ;;  %v5126_v36 = vpop.eup %5125  ;;  %vm3231_vm10 = vcmask 588800   ;;  %v7992_v8 = vld [vmem:[#allocation5 + $0xe0] sm:$0xff] }
 0x41c   : > { %v2929_v21 = vsel %vm2928_vm14, %v5122_v23, %v2925_v10  ;;  %v2936_v16 = vmul.f32 %v5126_v36, %v2878_v28  ;;  %5127 = vrcp.f32 %v2875_v46  ;;  %vm2941_vm0 = vweird.f32 %v5126_v36 }
 0x41d   : > { %v2934_v35 = vsel %vm2931_vm15, %v2933_v7, %v2929_v21  ;;  %v2634_v49 = vmul.f32 %v5124_v39, %v2633_v11  ;;  %vm2942_vm4 = vmor %vm2940_vm2, %vm2941_vm0  ;;  %v2902_v58 = vand.u32 2147483647, %v2875_v46  ;;  %v2904_v25 = vand.u32 2147483648, %v2875_v46  ;;  %v3216_v21 = vld [vmem:[%s9117_s3 + $0x8] sm:$0xff]  ;;  %v8004_v11 = vld [vmem:[#allocation5 + $0xd0] sm:$0xff] }
 0x41e   : > { %v3147_v42 = vmul.f32 %v2934_v35, %v2859_v59  ;;  %v2937_v34 = vsub.f32 1.0, %v2936_v16  ;;  %vm2898_vm7 = vweird.f32 %v2875_v46  ;;  %v2857_v38 = vmax.f32 %v2839_v60, 0.0  ;;  %v7995_v59 = vld [vmem:[#allocation5 + $0xe8] sm:$0xff]  ;;  %v8012_v16 = vld [vmem:[#allocation5 + $0xc0] sm:$0xff] }
 0x41f   : > { %v2635_v4 = vmul.f32 %v2634_v49, %v7944_v19  ;;  %v2905_v30 = vor.u32 1.1754944e-38, %v2904_v25  ;;  %vm2903_vm9 = vcmp.eq.f32.partialorder %v2902_v58, 8.507059e+37  ;;  %v3217_v49 = vld [vmem:[%s9117_s3 + $0x10] sm:$0xff]  ;;  %v8095_v60 = vld [vmem:[#allocation5 + $0x88] sm:$0xff]  ;;  %v8101_v25 = vld [vmem:[#allocation5 + $0x198] sm:$0xff] }
 0x420   : > { %v3183_v45 = vmul.f32 %v3147_v42, %v7825_v63  ;;  %v3165_v29 = vmul.f32 %v3147_v42, %v7817_v3  ;;  %v2938_v54 = vmul.f32 %v5126_v36, %v2937_v34  ;;  %v8028_v34 = vld [vmem:[#allocation5 + $0xb0] sm:$0xff] }
 0x421   : > { %v2637_v63 = vsel %vm2636_vm1, %v7944_v19, %v2635_v4  ;;  %v8049_v4 = vld [vmem:[#allocation5 + $0xa8] sm:$0xff]  ;;  %v8098_v58 = vld [vmem:[#allocation5 + $0x190] sm:$0xff] }
 0x422   : > { %3294 = vmatpush.msra.mxu2 %v3183_v45  ;;  %3472 = vmatpush.msrb.mxu0 %v3165_v29  ;;  %v2939_v12 = vadd.f32 %v5126_v36, %v2938_v54  ;;  %v5128_v3 = vpop.eup %5127  ;;  %v2640_v56 = vsel %vm2638_vm3, %v2639_v9, %v2637_v63  ;;  %v8015_v45 = vld [vmem:[#allocation5 + $0xc8] sm:$0xff]  ;;  %v8031_v29 = vld [vmem:[#allocation5 + $0xb8] sm:$0xff]  ;;  %v8052_v9 = vld [vmem:[#allocation5 + $0x1d0] sm:$0xff] }
 0x423   : > { %v2894_v48 = vmul.f32 %v5128_v3, %v2875_v46  ;;  %v2876_v40 = vadd.f32 1e-08, %v2640_v56  ;;  %vm2899_vm6 = vweird.f32 %v5128_v3  ;;  %v2840_v44 = vadd.f32 %v7389_v24, %v2640_v56  ;;  %v3200_v46 = vld [vmem:[%s9116_s2 + $0x8] sm:$0xff]  ;;  %v8060_v63 = vld [vmem:[#allocation5 + $0x1c0] sm:$0xff]  ;;  %v8071_v56 = vld [vmem:[#allocation5 + $0x1b8] sm:$0xff] }
 0x424   : > { %v2943_v57 = vsel %vm2942_vm4, %v5126_v36, %v2939_v12  ;;  %vm2900_vm8 = vmor %vm2898_vm7, %vm2899_vm6  ;;  %v8007_v36 = vld [vmem:[#allocation5 + $0xd8] sm:$0xff]  ;;  %v8043_v54 = vld [vmem:[#allocation5 + $0x1e8] sm:$0xff] }
 0x425   : > { %v2948_v53 = vsel %vm2945_vm5, %v2947_v33, %v2943_v57  ;;  %v2895_v14 = vsub.f32 1.0, %v2894_v48  ;;  %5129 = vrcp.f32 %v2876_v40  ;;  %v2918_v0 = vand.u32 2147483648, %v2876_v40  ;;  %v8055_v12 = vld [vmem:[#allocation5 + $0x1d8] sm:$0xff]  ;;  %v8068_v33 = vld [vmem:[#allocation5 + $0x1b0] sm:$0xff] }
 0x426   : > { %v3148_v51 = vmul.f32 %v2948_v53, %v2860_v61  ;;  %v2916_v17 = vand.u32 2147483647, %v2876_v40  ;;  %vm2912_vm12 = vweird.f32 %v2876_v40  ;;  %v2858_v10 = vmax.f32 %v2840_v44, 0.0  ;;  %v8074_v61 = vld [vmem:[#allocation5 + $0x90] sm:$0xff]  ;;  %v8077_v57 = vld [vmem:[#allocation5 + $0x98] sm:$0xff]  ;;  %v8163_v44 = vld [vmem:[#allocation5 + $0x140] sm:$0xff] }
 0x427   : > { %v2896_v31 = vmul.f32 %v5128_v3, %v2895_v14  ;;  %v2919_v24 = vor.u32 1.1754944e-38, %v2918_v0  ;;  %v3218_v48 = vld [vmem:[%s9117_s3 + $0x18] sm:$0xff]  ;;  %v8092_v14 = vld [vmem:[#allocation5 + $0x80] sm:$0xff] }
 0x428   : > { %v3184_v23 = vmul.f32 %v3148_v51, %v7872_v47  ;;  %v3166_v19 = vmul.f32 %v3148_v51, %v7856_v55  ;;  %vm2917_vm14 = vcmp.eq.f32.partialorder %v2916_v17, 8.507059e+37  ;;  %v3202_v53 = vld [vmem:[%s9116_s2 + $0x18] sm:$0xff]  ;;  %v8089_v51 = vld [vmem:[#allocation5 + $0x1a8] sm:$0xff]  ;;  %v8160_v0 = vld [vmem:[#allocation5 + $0x40] sm:$0xff] }
 0x429   : > { %v2897_v6 = vadd.f32 %v5128_v3, %v2896_v31  ;;  %v8114_v31 = vld [vmem:[#allocation5 + $0x170] sm:$0xff]  ;;  %v8169_v17 = vld [vmem:[#allocation5 + $0x148] sm:$0xff] }
 0x42a   : > { %3359 = vmatpush.msra.mxu3 %v3184_v23  ;;  %3537 = vmatpush.msrb.mxu1 %v3166_v19  ;;  %v8106_v23 = vld [vmem:[#allocation5 + $0x180] sm:$0xff]  ;;  %v8109_v19 = vld [vmem:[#allocation5 + $0x70] sm:$0xff] }
 0x42b   : > { %v2901_v39 = vsel %vm2900_vm8, %v5128_v3, %v2897_v6  ;;  %v5130_v28 = vpop.eup %5129  ;;  %v8063_v3 = vld [vmem:[#allocation5 + $0x1c8] sm:$0xff] }
 0x42c   : > { %v2906_v26 = vsel %vm2903_vm9, %v2905_v30, %v2901_v39  ;;  %v2908_v13 = vmul.f32 %v5130_v28, %v2876_v40  ;;  %vm2913_vm11 = vweird.f32 %v5130_v28  ;;  %v8086_v40 = vld [vmem:[#allocation5 + $0x1a0] sm:$0xff]  ;;  %v8117_v6 = vld [vmem:[#allocation5 + $0x188] sm:$0xff] }
 0x42d   : > { %v3145_v27 = vmul.f32 %v2906_v26, %v2857_v38  ;;  %vm2914_vm13 = vmor %vm2912_vm12, %vm2913_vm11  ;;  %v8120_v30 = vld [vmem:[#allocation5 + $0x60] sm:$0xff]  ;;  %v8123_v38 = vld [vmem:[#allocation5 + $0x78] sm:$0xff] }
 0x42e   : > { %v2909_v47 = vsub.f32 1.0, %v2908_v13  ;;  %v3219_v39 = vld [vmem:[%s9117_s3 + $0x20] sm:$0xff]  ;;  %v8138_v13 = vld [vmem:[#allocation5 + $0x68] sm:$0xff] }
 0x42f   : > { %v3181_v62 = vmul.f32 %v3145_v27, %v7893_v43  ;;  %v3163_v55 = vmul.f32 %v3145_v27, %v7889_v41  ;;  %v7986_v43 = vld [vmem:[#allocation5 + $0xf0] sm:$0xff]  ;;  %v8132_v26 = vld [vmem:[#allocation5 + $0x160] sm:$0xff]  ;;  %v8135_v27 = vld [vmem:[#allocation5 + $0x178] sm:$0xff] }
 0x430   : > { %v2910_v18 = vmul.f32 %v5130_v28, %v2909_v47  ;;  %v8144_v47 = vld [vmem:[#allocation5 + $0x168] sm:$0xff] }
 0x431   : > { %3295 = vmatpush.msra.mxu2 %v3181_v62  ;;  %3473 = vmatpush.msrb.mxu0 %v3163_v55  ;;  %v8141_v62 = vld [vmem:[#allocation5 + $0x50] sm:$0xff] }
 0x432   : > { %4797 = vmatmul.msk.f32.vlgmr.msra.gmra.mxu2 %vm3231_vm10, %v3215_v1  ;;  %4829 = vmatmul.msk.f32.vlgmr.msrb.gmra.mxu0 %vm3231_vm10, %v3199_v5  ;;  %v2911_v41 = vadd.f32 %v5130_v28, %v2910_v18  ;;  %v8147_v55 = vld [vmem:[#allocation5 + $0x150] sm:$0xff]  ;;  %v8166_v18 = vld [vmem:[#allocation5 + $0x48] sm:$0xff] }
 0x433   : > { %3622 = vmatpush.msrb.mxu2 %v7986_v43  ;;  %3752 = vmatpush.msra.mxu0 %v7989_v52 }
 0x434   : > { %v2915_v22 = vsel %vm2914_vm13, %v5130_v28, %v2911_v41  ;;  %v3203_v28 = vld [vmem:[%s9116_s2 + $0x20] sm:$0xff]  ;;  %v3220_v41 = vld [vmem:[%s9117_s3 + $0x28] sm:$0xff] }
 0x435   : > { %3623 = vmatpush.msrb.mxu2 %v7992_v8  ;;  %3753 = vmatpush.msra.mxu0 %v7995_v59  ;;  %v2920_v7 = vsel %vm2917_vm14, %v2919_v24, %v2915_v22  ;;  %v3204_v24 = vld [vmem:[%s9116_s2 + $0x28] sm:$0xff]  ;;  %v8181_v22 = vld [vmem:[#allocation5 + $0x130] sm:$0xff] }
 0x436   : > { %v3146_v15 = vmul.f32 %v2920_v7, %v2858_v10  ;;  %v8178_v10 = vld [vmem:[#allocation5 + $0x30] sm:$0xff]  ;;  %v8184_v7 = vld [vmem:[#allocation5 + $0x38] sm:$0xff] }
 0x437   : > { %3624 = vmatpush.msrb.mxu2 %v8004_v11  ;;  %3754 = vmatpush.msra.mxu0 %v8007_v36  ;;  %9320 = vst [vmem:[#allocation31_spill] sm:$0xff] %v8184_v7 }
 0x438   : > { %v3182_v35 = vmul.f32 %v3146_v15, %v7926_v20  ;;  %v3164_v42 = vmul.f32 %v3146_v15, %v7920_v2  ;;  %v8022_v20 = vld [vmem:[#allocation5 + $0x1f0] sm:$0xff]  ;;  %v8025_v2 = vld [vmem:[#allocation5 + $0x1f8] sm:$0xff] }
 0x439   : > { %3625 = vmatpush.msrb.mxu2 %v8012_v16  ;;  %3755 = vmatpush.msra.mxu0 %v8015_v45  ;;  %v8187_v15 = vld [vmem:[#allocation5 + $0x138] sm:$0xff] }
 0x43a   : > { %4798 = vmatmul.msk.f32.gmra.mxu2 %vm3231_vm10, %v3216_v21  ;;  %4830 = vmatmul.msk.f32.gmra.mxu0 %vm3231_vm10, %v3200_v46 }
 0x43b   : > { %3360 = vmatpush.msra.mxu3 %v3182_v35  ;;  %3538 = vmatpush.msrb.mxu1 %v3164_v42  ;;  %v8198_v35 = vld [vmem:[#allocation5 + $0x28] sm:$0xff] }
 0x43c   : > { %4813 = vmatmul.msk.f32.vlgmr.msra.gmra.mxu3 %vm3231_vm10, %v3215_v1  ;;  %4845 = vmatmul.msk.f32.vlgmr.msrb.gmra.mxu1 %vm3231_vm10, %v3199_v5  ;;  %v8152_v1 = vld [vmem:[#allocation5 + $0x58] sm:$0xff]  ;;  %9321 = vst [vmem:[#allocation19_spill] sm:$0xff] %v8198_v35  ;;  %v8201_v42 = vld [vmem:[#allocation5 + $0x128] sm:$0xff] }
 0x43d   : > { %3687 = vmatpush.msrb.mxu3 %v8022_v20  ;;  %3817 = vmatpush.msra.mxu1 %v8025_v2  ;;  %v8155_v5 = vld [vmem:[#allocation5 + $0x158] sm:$0xff] }
 0x43e   : > { %3626 = vmatpush.msrb.mxu2 %v8028_v34  ;;  %3756 = vmatpush.msra.mxu0 %v8031_v29 }
 0x43f   : > { %3688 = vmatpush.msrb.mxu3 %v8040_v37  ;;  %3818 = vmatpush.msra.mxu1 %v8043_v54 }
 0x440   : > { %3627 = vmatpush.msrb.mxu2 %v8046_v32  ;;  %3757 = vmatpush.msra.mxu0 %v8049_v4 }
 0x441   : > { %3689 = vmatpush.msrb.mxu3 %v8052_v9  ;;  %3819 = vmatpush.msra.mxu1 %v8055_v12 }
 0x442   : > { %4799 = vmatmul.msk.f32.gmra.mxu2 %vm3231_vm10, %v3217_v49  ;;  %4831 = vmatmul.msk.f32.gmra.mxu0 %vm3231_vm10, %v3201_v50 }
 0x443   : > { %3690 = vmatpush.msrb.mxu3 %v8060_v63  ;;  %3820 = vmatpush.msra.mxu1 %v8063_v3 }
 0x444   : > { %4814 = vmatmul.msk.f32.gmra.mxu3 %vm3231_vm10, %v3216_v21  ;;  %4846 = vmatmul.msk.f32.gmra.mxu1 %vm3231_vm10, %v3200_v46  ;;  %v8190_v21 = vld [vmem:[#allocation5 + $0x20] sm:$0xff] }
 0x445   : > { %3691 = vmatpush.msrb.mxu3 %v8068_v33  ;;  %3821 = vmatpush.msra.mxu1 %v8071_v56  ;;  %v8193_v46 = vld [vmem:[#allocation5 + $0x120] sm:$0xff] }
 0x446   : > { %3628 = vmatpush.msrb.mxu2 %v8074_v61  ;;  %3758 = vmatpush.msra.mxu0 %v8077_v57 }
 0x447   : > { %3692 = vmatpush.msrb.mxu3 %v8086_v40  ;;  %3822 = vmatpush.msra.mxu1 %v8089_v51 }
 0x448   : > { %3629 = vmatpush.msrb.mxu2 %v8092_v14  ;;  %3759 = vmatpush.msra.mxu0 %v8095_v60 }
 0x449   : > { %3693 = vmatpush.msrb.mxu3 %v8098_v58  ;;  %3823 = vmatpush.msra.mxu1 %v8101_v25 }
 0x44a   : > { %4800 = vmatmul.msk.f32.gmra.mxu2 %vm3231_vm10, %v3218_v48  ;;  %4832 = vmatmul.msk.f32.gmra.mxu0 %vm3231_vm10, %v3202_v53 }
 0x44b   : > { %3694 = vmatpush.msrb.mxu3 %v8106_v23  ;;  %3630 = vmatpush.msrb.mxu2 %v8109_v19 }
 0x44c   : > { %4815 = vmatmul.msk.f32.gmra.mxu3 %vm3231_vm10, %v3217_v49  ;;  %4847 = vmatmul.msk.f32.gmra.mxu1 %vm3231_vm10, %v3201_v50  ;;  %v8206_v49 = vld [vmem:[#allocation5 + $0x10] sm:$0xff] }
 0x44d   : > { %3695 = vmatpush.msrb.mxu3 %v8114_v31  ;;  %3824 = vmatpush.msra.mxu1 %v8117_v6  ;;  %9322 = vst [vmem:[#allocation29_spill] sm:$0xff] %v8206_v49  ;;  %v8209_v50 = vld [vmem:[#allocation5 + $0x110] sm:$0xff] }
 0x44e   : > { %3631 = vmatpush.msrb.mxu2 %v8120_v30  ;;  %3760 = vmatpush.msra.mxu0 %v8123_v38 }
 0x44f   : > { %3696 = vmatpush.msrb.mxu3 %v8132_v26  ;;  %3825 = vmatpush.msra.mxu1 %v8135_v27 }
 0x450   : > { %3761 = vmatpush.msra.mxu0 %v8138_v13  ;;  %3632 = vmatpush.msrb.mxu2 %v8141_v62 }
 0x451   : > { %3826 = vmatpush.msra.mxu1 %v8144_v47  ;;  %3697 = vmatpush.msrb.mxu3 %v8147_v55 }
 0x452   : > { %4801 = vmatmul.msk.f32.gmra.mxu2 %vm3231_vm10, %v3219_v39  ;;  %4833 = vmatmul.msk.f32.gmra.mxu0 %vm3231_vm10, %v3203_v28 }
 0x453   : > { %3762 = vmatpush.msra.mxu0 %v8152_v1  ;;  %3827 = vmatpush.msra.mxu1 %v8155_v5 }
 0x454   : > { %4816 = vmatmul.msk.f32.gmra.mxu3 %vm3231_vm10, %v3218_v48  ;;  %4848 = vmatmul.msk.f32.gmra.mxu1 %vm3231_vm10, %v3202_v53  ;;  %v8212_v48 = vld [vmem:[#allocation5 + $0x18] sm:$0xff] }
 0x455   : > { %3633 = vmatpush.msrb.mxu2 %v8160_v0  ;;  %3698 = vmatpush.msrb.mxu3 %v8163_v44  ;;  %9323 = vst [vmem:[#allocation33_spill] sm:$0xff] %v8212_v48  ;;  %v8215_v53 = vld [vmem:[#allocation5 + $0x118] sm:$0xff] }
 0x456   : > { %3763 = vmatpush.msra.mxu0 %v8166_v18  ;;  %3828 = vmatpush.msra.mxu1 %v8169_v17 }
 0x457   : > { %3634 = vmatpush.msrb.mxu2 %v8178_v10  ;;  %3699 = vmatpush.msrb.mxu3 %v8181_v22 }
 0x458   : > { %3764 = vmatpush.msra.mxu0 %v8184_v7  ;;  %3829 = vmatpush.msra.mxu1 %v8187_v15  ;;  %v8233_v7 = vld [vmem:[#allocation5 + $0x108] sm:$0xff] }
 0x459   : > { %3635 = vmatpush.msrb.mxu2 %v8190_v21  ;;  %3700 = vmatpush.msrb.mxu3 %v8193_v46 }
 0x45a   : > { %4802 = vmatmul.msk.f32.gmra.mxu2 %vm3231_vm10, %v3220_v41  ;;  %4834 = vmatmul.msk.f32.gmra.mxu0 %vm3231_vm10, %v3204_v24 }
 0x45b   : > { %3765 = vmatpush.msra.mxu0 %v8198_v35  ;;  %3830 = vmatpush.msra.mxu1 %v8201_v42  ;;  %v8224_v35 = vld [vmem:[#allocation5] sm:$0xff] }
 0x45c   : > { %4817 = vmatmul.msk.f32.gmra.mxu3 %vm3231_vm10, %v3219_v39  ;;  %4849 = vmatmul.msk.f32.gmra.mxu1 %vm3231_vm10, %v3203_v28  ;;  %v3221_v39 = vld [vmem:[%s9117_s3 + $0x30] sm:$0xff] }
 0x45d   : > { %3636 = vmatpush.msrb.mxu2 %v8206_v49  ;;  %3701 = vmatpush.msrb.mxu3 %v8209_v50  ;;  %v3205_v28 = vld [vmem:[%s9116_s2 + $0x30] sm:$0xff]  ;;  %v8227_v49 = vld [vmem:[#allocation5 + $0x100] sm:$0xff] }
 0x45e   : > { %3766 = vmatpush.msra.mxu0 %v8212_v48  ;;  %3831 = vmatpush.msra.mxu1 %v8215_v53  ;;  %v8230_v48 = vld [vmem:[#allocation5 + $0x8] sm:$0xff] }
 0x45f   : > { %3637 = vmatpush.msrb.mxu2 %v8224_v35  ;;  %3702 = vmatpush.msrb.mxu3 %v8227_v49 }
 0x460   : > { %3767 = vmatpush.msra.mxu0 %v8230_v48  ;;  %3832 = vmatpush.msra.mxu1 %v8233_v7 }
 0x461   : > { %3946 = vmatpush.msra.mxu2 %v7986_v43  ;;  %4011 = vmatpush.msra.mxu3 %v8022_v20  ;;  %v3222_v43 = vld [vmem:[%s9117_s3 + $0x38] sm:$0xff]  ;;  %v3224_v20 = vld [vmem:[%s9117_s3 + $0x48] sm:$0xff] }
 0x462   : > { %4803 = vmatmul.msk.f32.gmra.mxu2 %vm3231_vm10, %v3221_v39  ;;  %4835 = vmatmul.msk.f32.gmra.mxu0 %vm3231_vm10, %v3205_v28 }
 0x463   : > { %3947 = vmatpush.msra.mxu2 %v7992_v8  ;;  %4012 = vmatpush.msra.mxu3 %v8040_v37  ;;  %v3206_v8 = vld [vmem:[%s9116_s2 + $0x38] sm:$0xff]  ;;  %v3225_v37 = vld [vmem:[%s9117_s3 + $0x50] sm:$0xff] }
 0x464   : > { %4818 = vmatmul.msk.f32.gmra.mxu3 %vm3231_vm10, %v3220_v41  ;;  %4850 = vmatmul.msk.f32.gmra.mxu1 %vm3231_vm10, %v3204_v24 }
 0x465   : > { %3948 = vmatpush.msra.mxu2 %v8004_v11  ;;  %4013 = vmatpush.msra.mxu3 %v8052_v9  ;;  %v3223_v11 = vld [vmem:[%s9117_s3 + $0x40] sm:$0xff]  ;;  %v3226_v9 = vld [vmem:[%s9117_s3 + $0x58] sm:$0xff] }
 0x466   : > { %4076 = vmatpush.msrb.mxu0 %v7989_v52  ;;  %4141 = vmatpush.msrb.mxu1 %v8025_v2 }
 0x467   : > { %3949 = vmatpush.msra.mxu2 %v8012_v16  ;;  %4014 = vmatpush.msra.mxu3 %v8060_v63  ;;  %v3207_v16 = vld [vmem:[%s9116_s2 + $0x40] sm:$0xff]  ;;  %v3210_v63 = vld [vmem:[%s9116_s2 + $0x58] sm:$0xff] }
 0x468   : > { %4077 = vmatpush.msrb.mxu0 %v7995_v59  ;;  %4142 = vmatpush.msrb.mxu1 %v8043_v54 }
 0x469   : > { %3950 = vmatpush.msra.mxu2 %v8028_v34  ;;  %4015 = vmatpush.msra.mxu3 %v8068_v33  ;;  %v3208_v34 = vld [vmem:[%s9116_s2 + $0x48] sm:$0xff]  ;;  %v9324_v33 = vld [vmem:[#allocation31_spill] sm:$0xff] }
 0x46a   : > { %4804 = vmatmul.msk.f32.gmra.mxu2 %vm3231_vm10, %v3222_v43  ;;  %4836 = vmatmul.msk.f32.gmra.mxu0 %vm3231_vm10, %v3206_v8 }
 0x46b   : > { %4078 = vmatpush.msrb.mxu0 %v8007_v36  ;;  %3951 = vmatpush.msra.mxu2 %v8046_v32  ;;  %v3209_v32 = vld [vmem:[%s9116_s2 + $0x50] sm:$0xff] }
 0x46c   : > { %4819 = vmatmul.msk.f32.gmra.mxu3 %vm3231_vm10, %v3221_v39  ;;  %4851 = vmatmul.msk.f32.gmra.mxu1 %vm3231_vm10, %v3205_v28  ;;  %v5260_v28 = vld [vmem:[%s5704_s28 + $0x10] sm:$0xff] }
 0x46d   : > { %4143 = vmatpush.msrb.mxu1 %v8055_v12  ;;  %4016 = vmatpush.msra.mxu3 %v8086_v40  ;;  %v9326_v40 = vld [vmem:[#allocation19_spill] sm:$0xff] }
 0x46e   : > { %4079 = vmatpush.msrb.mxu0 %v8015_v45  ;;  %3952 = vmatpush.msra.mxu2 %v8074_v61  ;;  %v9325_v61 = vld [vmem:[#allocation29_spill] sm:$0xff] }
 0x46f   : > { %4144 = vmatpush.msrb.mxu1 %v8063_v3  ;;  %4017 = vmatpush.msra.mxu3 %v8098_v58  ;;  %v3227_v58 = vld [vmem:[%s9117_s3 + $0x60] sm:$0xff] }
 0x470   : > { %4080 = vmatpush.msrb.mxu0 %v8031_v29  ;;  %3953 = vmatpush.msra.mxu2 %v8092_v14  ;;  %v9327_v14 = vld [vmem:[#allocation33_spill] sm:$0xff] }
 0x471   : > { %4145 = vmatpush.msrb.mxu1 %v8071_v56  ;;  %4018 = vmatpush.msra.mxu3 %v8106_v23  ;;  %v3211_v23 = vld [vmem:[%s9116_s2 + $0x60] sm:$0xff] }
 0x472   : > { %4805 = vmatmul.msk.f32.gmra.mxu2 %vm3231_vm10, %v3223_v11  ;;  %4837 = vmatmul.msk.f32.gmra.mxu0 %vm3231_vm10, %v3207_v16 }
 0x473   : > { %4081 = vmatpush.msrb.mxu0 %v8049_v4  ;;  %3954 = vmatpush.msra.mxu2 %v8109_v19  ;;  %v3228_v19 = vld [vmem:[%s9117_s3 + $0x68] sm:$0xff] }
 0x474   : > { %4820 = vmatmul.msk.f32.gmra.mxu3 %vm3231_vm10, %v3222_v43  ;;  %4852 = vmatmul.msk.f32.gmra.mxu1 %vm3231_vm10, %v3206_v8 }
 0x475   : > { %4146 = vmatpush.msrb.mxu1 %v8089_v51  ;;  %4019 = vmatpush.msra.mxu3 %v8114_v31  ;;  %v3212_v31 = vld [vmem:[%s9116_s2 + $0x68] sm:$0xff] }
 0x476   : > { %4082 = vmatpush.msrb.mxu0 %v8077_v57  ;;  %3955 = vmatpush.msra.mxu2 %v8120_v30  ;;  %v3229_v30 = vld [vmem:[%s9117_s3 + $0x70] sm:$0xff] }
 0x477   : > { %4147 = vmatpush.msrb.mxu1 %v8101_v25  ;;  %4020 = vmatpush.msra.mxu3 %v8132_v26  ;;  %v3213_v26 = vld [vmem:[%s9116_s2 + $0x70] sm:$0xff] }
 0x478   : > { %4083 = vmatpush.msrb.mxu0 %v8095_v60  ;;  %3956 = vmatpush.msra.mxu2 %v8141_v62  ;;  %v3230_v62 = vld [vmem:[%s9117_s3 + $0x78] sm:$0xff] }
 0x479   : > { %4148 = vmatpush.msrb.mxu1 %v8117_v6  ;;  %4021 = vmatpush.msra.mxu3 %v8147_v55  ;;  %v3214_v55 = vld [vmem:[%s9116_s2 + $0x78] sm:$0xff] }
 0x47a   : > { %4806 = vmatmul.msk.f32.gmra.mxu2 %vm3231_vm10, %v3224_v20  ;;  %4838 = vmatmul.msk.f32.gmra.mxu0 %vm3231_vm10, %v3208_v34 }
 0x47b   : > { %4149 = vmatpush.msrb.mxu1 %v8135_v27  ;;  %4022 = vmatpush.msra.mxu3 %v8163_v44 }
 0x47c   : > { %4821 = vmatmul.msk.f32.gmra.mxu3 %vm3231_vm10, %v3223_v11  ;;  %4853 = vmatmul.msk.f32.gmra.mxu1 %vm3231_vm10, %v3207_v16  ;;  %v5261_v11 = vld [vmem:[%s5704_s28 + $0x8] sm:$0xff] }
 0x47d   : > { %4150 = vmatpush.msrb.mxu1 %v8144_v47  ;;  %4084 = vmatpush.msrb.mxu0 %v8123_v38 }
 0x47e   : > { %4023 = vmatpush.msra.mxu3 %v8181_v22  ;;  %3957 = vmatpush.msra.mxu2 %v8160_v0 }
 0x47f   : > { %4151 = vmatpush.msrb.mxu1 %v8155_v5  ;;  %4085 = vmatpush.msrb.mxu0 %v8138_v13 }
 0x480   : > { %4024 = vmatpush.msra.mxu3 %v8193_v46  ;;  %3958 = vmatpush.msra.mxu2 %v8178_v10  ;;  %v5259_v10 = vld [vmem:[%s5704_s28] sm:$0xff] }
 0x481   : > { %4152 = vmatpush.msrb.mxu1 %v8169_v17  ;;  %4086 = vmatpush.msrb.mxu0 %v8152_v1 }
 0x482   : > { %4807 = vmatmul.msk.f32.gmra.mxu2 %vm3231_vm10, %v3225_v37  ;;  %4839 = vmatmul.msk.f32.gmra.mxu0 %vm3231_vm10, %v3209_v32 }
 0x483   : > { %4153 = vmatpush.msrb.mxu1 %v8187_v15  ;;  %4025 = vmatpush.msra.mxu3 %v8209_v50 }
 0x484   : > { %4822 = vmatmul.msk.f32.gmra.mxu3 %vm3231_vm10, %v3224_v20  ;;  %4854 = vmatmul.msk.f32.gmra.mxu1 %vm3231_vm10, %v3208_v34  ;;  %v5262_v34 = vld [vmem:[%s5704_s28 + $0x20] sm:$0xff] }
 0x485   : > { %4154 = vmatpush.msrb.mxu1 %v8201_v42  ;;  %4087 = vmatpush.msrb.mxu0 %v8166_v18 }
 0x486   : > { %4026 = vmatpush.msra.mxu3 %v8227_v49  ;;  %3959 = vmatpush.msra.mxu2 %v8190_v21 }
 0x487   : > { %4155 = vmatpush.msrb.mxu1 %v8215_v53  ;;  %4088 = vmatpush.msrb.mxu0 %v9324_v33 }
 0x488   : > { %3960 = vmatpush.msra.mxu2 %v9325_v61 }
 0x489   : > { %4156 = vmatpush.msrb.mxu1 %v8233_v7  ;;  %4089 = vmatpush.msrb.mxu0 %v9326_v40 }
 0x48a   : > { %4808 = vmatmul.msk.f32.gmra.mxu2 %vm3231_vm10, %v3226_v9  ;;  %4840 = vmatmul.msk.f32.gmra.mxu0 %vm3231_vm10, %v3210_v63 }
 0x48b   : > { %4090 = vmatpush.msrb.mxu0 %v9327_v14  ;;  %3961 = vmatpush.msra.mxu2 %v8224_v35 }
 0x48c   : > { %4823 = vmatmul.msk.f32.gmra.mxu3 %vm3231_vm10, %v3225_v37  ;;  %4855 = vmatmul.msk.f32.gmra.mxu1 %vm3231_vm10, %v3209_v32  ;;  %v5263_v32 = vld [vmem:[%s5704_s28 + $0x18] sm:$0xff] }
 0x48d   : > { %4091 = vmatpush.msrb.mxu0 %v8230_v48 }
 0x492   : > { %4809 = vmatmul.msk.f32.gmra.mxu2 %vm3231_vm10, %v3227_v58  ;;  %4841 = vmatmul.msk.f32.gmra.mxu0 %vm3231_vm10, %v3211_v23 }
 0x494   : > { %4824 = vmatmul.msk.f32.gmra.mxu3 %vm3231_vm10, %v3226_v9  ;;  %4856 = vmatmul.msk.f32.gmra.mxu1 %vm3231_vm10, %v3210_v63  ;;  %v5265_v63 = vld [vmem:[%s5704_s28 + $0x28] sm:$0xff] }
 0x49a   : > { %4810 = vmatmul.msk.f32.gmra.mxu2 %vm3231_vm10, %v3228_v19  ;;  %4842 = vmatmul.msk.f32.gmra.mxu0 %vm3231_vm10, %v3212_v31 }
 0x49c   : > { %4825 = vmatmul.msk.f32.gmra.mxu3 %vm3231_vm10, %v3227_v58  ;;  %4857 = vmatmul.msk.f32.gmra.mxu1 %vm3231_vm10, %v3211_v23  ;;  %v5268_v23 = vld [vmem:[%s5704_s28 + $0x50] sm:$0xff] }
 0x4a2   : > { %4811 = vmatmul.msk.f32.gmra.mxu2 %vm3231_vm10, %v3229_v30  ;;  %4843 = vmatmul.msk.f32.gmra.mxu0 %vm3231_vm10, %v3213_v26 }
 0x4a4   : > { %4826 = vmatmul.msk.f32.gmra.mxu3 %vm3231_vm10, %v3228_v19  ;;  %4858 = vmatmul.msk.f32.gmra.mxu1 %vm3231_vm10, %v3212_v31 }
 0x4aa   : > { %4812 = vmatmul.msk.f32.gmra.mxu2 %vm3231_vm10, %v3230_v62  ;;  %4844 = vmatmul.msk.f32.gmra.mxu0 %vm3231_vm10, %v3214_v55 }
 0x4ac   : > { %4827 = vmatmul.msk.f32.gmra.mxu3 %vm3231_vm10, %v3229_v30  ;;  %4859 = vmatmul.msk.f32.gmra.mxu1 %vm3231_vm10, %v3213_v26 }
 0x4af   : > { %v3475_v0 = vpop.f32.mrf.mxu0 }
 0x4b4   : > { %4828 = vmatmul.msk.f32.gmra.mxu3 %vm3231_vm10, %v3230_v62  ;;  %4860 = vmatmul.msk.f32.gmra.mxu1 %vm3231_vm10, %v3214_v55  ;;  %v5270_v55 = vld [vmem:[%s5704_s28 + $0x60] sm:$0xff] }
 0x4b5   : > { %v3297_v44 = vpop.f32.mrf.mxu2 }
 0x4b6   : > { %v3476_v41 = vadd.f32 %v3475_v0, %v3297_v44 }
 0x4b7   : > { %v3478_v24 = vpop.f32.mrf.mxu0 }
 0x4b8   : > { %v8397_v22 = vadd.f32 %v5259_v10, %v3476_v41  ;;  %v5271_v41 = vld [vmem:[%s5704_s28 + $0x58] sm:$0xff] }
 0x4b9   : > { %v3540_v21 = vpop.f32.mrf.mxu1 }
 0x4ba   : > { %3638 = vmatmul.f32.vlgmr.msrb.gmra.mxu2 %v8397_v22  ;;  %3768 = vmatmul.f32.vlgmr.msra.gmra.mxu0 %v8397_v22 }
 0x4bb   : > { %4868 = vmatpush.msrb.mxu2 %v7989_v52 }
 0x4bd   : > { %v3300_v46 = vpop.f32.mrf.mxu2  ;;  %4869 = vmatpush.msrb.mxu2 %v7995_v59 }
 0x4be   : > { %v3479_v35 = vadd.f32 %v3478_v24, %v3300_v46 }
 0x4bf   : > { %v3362_v49 = vpop.f32.mrf.mxu3  ;;  %v3481_v50 = vpop.f32.mrf.mxu0  ;;  %4870 = vmatpush.msrb.mxu2 %v8007_v36 }
 0x4c0   : > { %v3541_v39 = vadd.f32 %v3540_v21, %v3362_v49  ;;  %v8405_v43 = vadd.f32 %v5260_v28, %v3479_v35  ;;  %v5272_v49 = vld [vmem:[%s5704_s28 + $0x70] sm:$0xff]  ;;  %v5273_v28 = vld [vmem:[%s5704_s28 + $0x68] sm:$0xff] }
 0x4c1   : > { %v3543_v8 = vpop.f32.mrf.mxu1  ;;  %4871 = vmatpush.msrb.mxu2 %v8015_v45 }
 0x4c2   : > { %v8409_v16 = vadd.f32 %v5261_v11, %v3541_v39  ;;  %3641 = vmatmul.f32.gmra.mxu2 %v8405_v43  ;;  %3771 = vmatmul.f32.gmra.mxu0 %v8405_v43 }
 0x4c3   : > { %4872 = vmatpush.msrb.mxu2 %v8031_v29 }
 0x4c4   : > { %3703 = vmatmul.f32.vlgmr.msrb.gmra.mxu3 %v8409_v16  ;;  %3833 = vmatmul.f32.vlgmr.msra.gmra.mxu1 %v8409_v16 }
 0x4c5   : > { %v3303_v52 = vpop.f32.mrf.mxu2  ;;  %4884 = vmatpush.msrb.mxu3 %v8025_v2  ;;  %4873 = vmatpush.msrb.mxu2 %v8049_v4 }
 0x4c6   : > { %v3482_v59 = vadd.f32 %v3481_v50, %v3303_v52 }
 0x4c7   : > { %v3365_v36 = vpop.f32.mrf.mxu3  ;;  %v3484_v45 = vpop.f32.mrf.mxu0  ;;  %4885 = vmatpush.msrb.mxu3 %v8043_v54  ;;  %4874 = vmatpush.msrb.mxu2 %v8077_v57 }
 0x4c8   : > { %v3544_v20 = vadd.f32 %v3543_v8, %v3365_v36  ;;  %v8421_v29 = vadd.f32 %v5262_v34, %v3482_v59 }
 0x4c9   : > { %v3546_v37 = vpop.f32.mrf.mxu1  ;;  %4886 = vmatpush.msrb.mxu3 %v8055_v12  ;;  %4875 = vmatpush.msrb.mxu2 %v8095_v60  ;;  %v5264_v60 = vld [vmem:[%s5704_s28 + $0x30] sm:$0xff] }
 0x4ca   : > { %v8426_v2 = vadd.f32 %v5263_v32, %v3544_v20  ;;  %3644 = vmatmul.f32.gmra.mxu2 %v8421_v29  ;;  %3774 = vmatmul.f32.gmra.mxu0 %v8421_v29  ;;  %v5274_v20 = vld [vmem:[%s5704_s28 + $0x80] sm:$0xff]  ;;  %v5275_v32 = vld [vmem:[%s5704_s28 + $0x78] sm:$0xff] }
 0x4cb   : > { %4887 = vmatpush.msrb.mxu3 %v8063_v3  ;;  %4876 = vmatpush.msrb.mxu2 %v8123_v38 }
 0x4cc   : > { %3706 = vmatmul.f32.gmra.mxu3 %v8426_v2  ;;  %3836 = vmatmul.f32.gmra.mxu1 %v8426_v2 }
 0x4cd   : > { %v3306_v54 = vpop.f32.mrf.mxu2  ;;  %4888 = vmatpush.msrb.mxu3 %v8071_v56  ;;  %4877 = vmatpush.msrb.mxu2 %v8138_v13 }
 0x4ce   : > { %v3485_v4 = vadd.f32 %v3484_v45, %v3306_v54 }
 0x4cf   : > { %v3368_v12 = vpop.f32.mrf.mxu3  ;;  %v3487_v57 = vpop.f32.mrf.mxu0  ;;  %4889 = vmatpush.msrb.mxu3 %v8089_v51  ;;  %4878 = vmatpush.msrb.mxu2 %v8152_v1 }
 0x4d0   : > { %v3547_v3 = vadd.f32 %v3546_v37, %v3368_v12  ;;  %v8439_v38 = vadd.f32 %v5264_v60, %v3485_v4 }
 0x4d1   : > { %v3549_v9 = vpop.f32.mrf.mxu1  ;;  %4890 = vmatpush.msrb.mxu3 %v8101_v25  ;;  %4879 = vmatpush.msrb.mxu2 %v8166_v18  ;;  %v5266_v18 = vld [vmem:[%s5704_s28 + $0x40] sm:$0xff] }
 0x4d2   : > { %v8444_v56 = vadd.f32 %v5265_v63, %v3547_v3  ;;  %3647 = vmatmul.f32.gmra.mxu2 %v8439_v38  ;;  %3777 = vmatmul.f32.gmra.mxu0 %v8439_v38 }
 0x4d3   : > { %4891 = vmatpush.msrb.mxu3 %v8117_v6  ;;  %4880 = vmatpush.msrb.mxu2 %v9324_v33 }
 0x4d4   : > { %3709 = vmatmul.f32.gmra.mxu3 %v8444_v56  ;;  %3839 = vmatmul.f32.gmra.mxu1 %v8444_v56 }
 0x4d5   : > { %v3309_v51 = vpop.f32.mrf.mxu2  ;;  %4892 = vmatpush.msrb.mxu3 %v8135_v27  ;;  %4881 = vmatpush.msrb.mxu2 %v9326_v40  ;;  %v5267_v27 = vld [vmem:[%s5704_s28 + $0x38] sm:$0xff] }
 0x4d6   : > { %v3488_v25 = vadd.f32 %v3487_v57, %v3309_v51 }
 0x4d7   : > { %v3371_v13 = vpop.f32.mrf.mxu3  ;;  %v3490_v1 = vpop.f32.mrf.mxu0  ;;  %4893 = vmatpush.msrb.mxu3 %v8144_v47  ;;  %4882 = vmatpush.msrb.mxu2 %v9327_v14 }
 0x4d8   : > { %v3550_v6 = vadd.f32 %v3549_v9, %v3371_v13  ;;  %v8457_v33 = vadd.f32 %v5266_v18, %v3488_v25  ;;  %v5276_v9 = vld [vmem:[%s5704_s28 + $0x90] sm:$0xff]  ;;  %v5277_v25 = vld [vmem:[%s5704_s28 + $0x88] sm:$0xff] }
 0x4d9   : > { %v3552_v61 = vpop.f32.mrf.mxu1  ;;  %4894 = vmatpush.msrb.mxu3 %v8155_v5  ;;  %4883 = vmatpush.msrb.mxu2 %v8230_v48 }
 0x4da   : > { %v8462_v58 = vadd.f32 %v5267_v27, %v3550_v6  ;;  %3650 = vmatmul.f32.gmra.mxu2 %v8457_v33  ;;  %3780 = vmatmul.f32.gmra.mxu0 %v8457_v33 }
 0x4db   : > { %4895 = vmatpush.msrb.mxu3 %v8169_v17  ;;  %v5269_v17 = vld [vmem:[%s5704_s28 + $0x48] sm:$0xff] }
 0x4dc   : > { %3712 = vmatmul.f32.gmra.mxu3 %v8462_v58  ;;  %3842 = vmatmul.f32.gmra.mxu1 %v8462_v58 }
 0x4dd   : > { %v3312_v47 = vpop.f32.mrf.mxu2  ;;  %4896 = vmatpush.msrb.mxu3 %v8187_v15 }
 0x4de   : > { %v3491_v5 = vadd.f32 %v3490_v1, %v3312_v47  ;;  %v5278_v47 = vld [vmem:[%s5704_s28 + $0xa0] sm:$0xff] }
 0x4df   : > { %v3374_v40 = vpop.f32.mrf.mxu3  ;;  %v3493_v48 = vpop.f32.mrf.mxu0  ;;  %4897 = vmatpush.msrb.mxu3 %v8201_v42 }
 0x4e0   : > { %v3553_v14 = vadd.f32 %v3552_v61, %v3374_v40  ;;  %v8472_v19 = vadd.f32 %v5268_v23, %v3491_v5 }
 0x4e1   : > { %v3555_v31 = vpop.f32.mrf.mxu1  ;;  %4898 = vmatpush.msrb.mxu3 %v8215_v53 }
 0x4e2   : > { %v8476_v30 = vadd.f32 %v5269_v17, %v3553_v14  ;;  %3653 = vmatmul.f32.gmra.mxu2 %v8472_v19  ;;  %3783 = vmatmul.f32.gmra.mxu0 %v8472_v19 }
 0x4e3   : > { %4899 = vmatpush.msrb.mxu3 %v8233_v7 }
 0x4e4   : > { %3715 = vmatmul.f32.gmra.mxu3 %v8476_v30  ;;  %3845 = vmatmul.f32.gmra.mxu1 %v8476_v30 }
 0x4e5   : > { %v3315_v15 = vpop.f32.mrf.mxu2 }
 0x4e6   : > { %v3494_v42 = vadd.f32 %v3493_v48, %v3315_v15  ;;  %v5279_v48 = vld [vmem:[%s5704_s28 + $0x98] sm:$0xff] }
 0x4e7   : > { %v3377_v26 = vpop.f32.mrf.mxu3  ;;  %v3496_v62 = vpop.f32.mrf.mxu0 }
 0x4e8   : > { %v3556_v53 = vadd.f32 %v3555_v31, %v3377_v26  ;;  %v8484_v0 = vadd.f32 %v5270_v55, %v3494_v42  ;;  %v5280_v26 = vld [vmem:[%s5704_s28 + $0xb0] sm:$0xff]  ;;  %v5281_v55 = vld [vmem:[%s5704_s28 + $0xa8] sm:$0xff] }
 0x4e9   : > { %v3558_v44 = vpop.f32.mrf.mxu1 }
 0x4ea   : > { %v8487_v24 = vadd.f32 %v5271_v41, %v3556_v53  ;;  %3656 = vmatmul.f32.gmra.mxu2 %v8484_v0  ;;  %3786 = vmatmul.f32.gmra.mxu0 %v8484_v0 }
 0x4ec   : > { %3718 = vmatmul.f32.gmra.mxu3 %v8487_v24  ;;  %3848 = vmatmul.f32.gmra.mxu1 %v8487_v24 }
 0x4ed   : > { %v3318_v7 = vpop.f32.mrf.mxu2 }
 0x4ee   : > { %v3497_v10 = vadd.f32 %v3496_v62, %v3318_v7 }
 0x4ef   : > { %v3380_v21 = vpop.f32.mrf.mxu3  ;;  %v3499_v46 = vpop.f32.mrf.mxu0 }
 0x4f0   : > { %v3559_v35 = vadd.f32 %v3558_v44, %v3380_v21  ;;  %v8494_v50 = vadd.f32 %v5272_v49, %v3497_v10 }
 0x4f1   : > { %v3561_v39 = vpop.f32.mrf.mxu1 }
 0x4f2   : > { %v8497_v8 = vadd.f32 %v5273_v28, %v3559_v35  ;;  %3659 = vmatmul.f32.gmra.mxu2 %v8494_v50  ;;  %3789 = vmatmul.f32.gmra.mxu0 %v8494_v50  ;;  %v5282_v35 = vld [vmem:[%s5704_s28 + $0xc0] sm:$0xff]  ;;  %v5283_v28 = vld [vmem:[%s5704_s28 + $0xb8] sm:$0xff] }
 0x4f4   : > { %3721 = vmatmul.f32.gmra.mxu3 %v8497_v8  ;;  %3851 = vmatmul.f32.gmra.mxu1 %v8497_v8 }
 0x4f5   : > { %v3321_v11 = vpop.f32.mrf.mxu2 }
 0x4f6   : > { %v3500_v52 = vadd.f32 %v3499_v46, %v3321_v11 }
 0x4f7   : > { %v3383_v59 = vpop.f32.mrf.mxu3  ;;  %v3502_v36 = vpop.f32.mrf.mxu0 }
 0x4f8   : > { %v3562_v45 = vadd.f32 %v3561_v39, %v3383_v59  ;;  %v8504_v34 = vadd.f32 %v5274_v20, %v3500_v52  ;;  %v5284_v20 = vld [vmem:[%s5704_s28 + $0xd0] sm:$0xff] }
 0x4f9   : > { %v3564_v37 = vpop.f32.mrf.mxu1 }
 0x4fa   : > { %v8507_v54 = vadd.f32 %v5275_v32, %v3562_v45  ;;  %3662 = vmatmul.f32.gmra.mxu2 %v8504_v34  ;;  %3792 = vmatmul.f32.gmra.mxu0 %v8504_v34 }
 0x4fc   : > { %3724 = vmatmul.f32.gmra.mxu3 %v8507_v54  ;;  %3854 = vmatmul.f32.gmra.mxu1 %v8507_v54 }
 0x4fd   : > { %v3324_v4 = vpop.f32.mrf.mxu2 }
 0x4fe   : > { %v3503_v12 = vadd.f32 %v3502_v36, %v3324_v4 }
 0x4ff   : > { %v3386_v57 = vpop.f32.mrf.mxu3  ;;  %v3505_v3 = vpop.f32.mrf.mxu0 }
 0x500   : > { %v3565_v60 = vadd.f32 %v3564_v37, %v3386_v57  ;;  %v8514_v63 = vadd.f32 %v5276_v9, %v3503_v12  ;;  %v5285_v12 = vld [vmem:[%s5704_s28 + $0xc8] sm:$0xff] }
 0x501   : > { %v3567_v51 = vpop.f32.mrf.mxu1 }
 0x502   : > { %v8517_v13 = vadd.f32 %v5277_v25, %v3565_v60  ;;  %3665 = vmatmul.f32.gmra.mxu2 %v8514_v63  ;;  %3795 = vmatmul.f32.gmra.mxu0 %v8514_v63  ;;  %v5286_v25 = vld [vmem:[%s5704_s28 + $0xe0] sm:$0xff] }
 0x504   : > { %3727 = vmatmul.f32.gmra.mxu3 %v8517_v13  ;;  %3857 = vmatmul.f32.gmra.mxu1 %v8517_v13 }
 0x505   : > { %v3327_v1 = vpop.f32.mrf.mxu2 }
 0x506   : > { %v3506_v6 = vadd.f32 %v3505_v3, %v3327_v1 }
 0x507   : > { %v3389_v18 = vpop.f32.mrf.mxu3  ;;  %v3508_v61 = vpop.f32.mrf.mxu0 }
 0x508   : > { %v3568_v27 = vadd.f32 %v3567_v51, %v3389_v18  ;;  %v8524_v5 = vadd.f32 %v5278_v47, %v3506_v6  ;;  %v5287_v6 = vld [vmem:[%s5704_s28 + $0xd8] sm:$0xff] }
 0x509   : > { %v3570_v40 = vpop.f32.mrf.mxu1 }
 0x50a   : > { %v8527_v14 = vadd.f32 %v5279_v48, %v3568_v27  ;;  %3668 = vmatmul.f32.gmra.mxu2 %v8524_v5  ;;  %3798 = vmatmul.f32.gmra.mxu0 %v8524_v5 }
 0x50c   : > { %3730 = vmatmul.f32.gmra.mxu3 %v8527_v14  ;;  %3860 = vmatmul.f32.gmra.mxu1 %v8527_v14 }
 0x50d   : > { %v3330_v23 = vpop.f32.mrf.mxu2 }
 0x50e   : > { %v3509_v31 = vadd.f32 %v3508_v61, %v3330_v23 }
 0x50f   : > { %v3392_v17 = vpop.f32.mrf.mxu3  ;;  %v3511_v15 = vpop.f32.mrf.mxu0 }
 0x510   : > { %v3571_v42 = vadd.f32 %v3570_v40, %v3392_v17  ;;  %v8534_v62 = vadd.f32 %v5280_v26, %v3509_v31  ;;  %v5288_v31 = vld [vmem:[%s5704_s28 + $0xf0] sm:$0xff] }
 0x511   : > { %v3573_v53 = vpop.f32.mrf.mxu1 }
 0x512   : > { %v8537_v44 = vadd.f32 %v5281_v55, %v3571_v42  ;;  %3671 = vmatmul.f32.gmra.mxu2 %v8534_v62  ;;  %3801 = vmatmul.f32.gmra.mxu0 %v8534_v62 }
 0x514   : > { %3733 = vmatmul.f32.gmra.mxu3 %v8537_v44  ;;  %3863 = vmatmul.f32.gmra.mxu1 %v8537_v44 }
 0x515   : > { %v3333_v41 = vpop.f32.mrf.mxu2 }
 0x516   : > { %v3512_v7 = vadd.f32 %v3511_v15, %v3333_v41  ;;  %v5289_v15 = vld [vmem:[%s5704_s28 + $0xe8] sm:$0xff] }
 0x517   : > { %v3395_v10 = vpop.f32.mrf.mxu3  ;;  %v3514_v21 = vpop.f32.mrf.mxu0 }
 0x518   : > { %v3574_v46 = vadd.f32 %v3573_v53, %v3395_v10  ;;  %v8544_v49 = vadd.f32 %v5282_v35, %v3512_v7  ;;  %v5290_v7 = vld [vmem:[%s5704_s28 + $0xf8] sm:$0xff]  ;;  %s5427_s28 = scalar_lea.hbm %s5426_s26, 256 }
 0x519   : > { %v3576_v39 = vpop.f32.mrf.mxu1  ;;  %p5428_p1 = scmp.ne.s32.totalorder %s5426_s26, %s5427_s28  ;;  %p5433_p9 = scmp.lt.s32.totalorder %s5431_s17, %s5427_s28 }
 0x51a   : > { %v8547_v11 = vadd.f32 %v5283_v28, %v3574_v46  ;;  %3674 = vmatmul.f32.gmra.mxu2 %v8544_v49  ;;  %3804 = vmatmul.f32.gmra.mxu0 %v8544_v49 }
 0x51b   : > { %p5429_p4 = pnand %p5428_p1, %p5668_p3  ;;  %p5434_p2 = por %p5433_p9, %p5432_p11 }
 0x51c   : > { %3736 = vmatmul.f32.gmra.mxu3 %v8547_v11  ;;  %3866 = vmatmul.f32.gmra.mxu1 %v8547_v11 }
 0x51d   : > { %v3336_v52 = vpop.f32.mrf.mxu2  ;;  %p5430_p8 = pneg %p5429_p4 }
 0x51e   : > { %v3515_v59 = vadd.f32 %v3514_v21, %v3336_v52 }
 0x51f   : > { %v3398_v36 = vpop.f32.mrf.mxu3  ;;  %v3517_v4 = vpop.f32.mrf.mxu0  ;;  %p5435_p10 = pnand %p5434_p2, %p5430_p8 }
 0x520   : > { %v3577_v45 = vadd.f32 %v3576_v39, %v3398_v36  ;;  %v8554_v37 = vadd.f32 %v5284_v20, %v3515_v59 }
 0x521   : > { %v3579_v32 = vpop.f32.mrf.mxu1 }
 0x522   : > { %v8557_v57 = vadd.f32 %v5285_v12, %v3577_v45  ;;  %3677 = vmatmul.f32.gmra.mxu2 %v8554_v37  ;;  %3807 = vmatmul.f32.gmra.mxu0 %v8554_v37 }
 0x524   : > { %3739 = vmatmul.f32.gmra.mxu3 %v8557_v57  ;;  %3869 = vmatmul.f32.gmra.mxu1 %v8557_v57 }
 0x525   : > { %v3339_v3 = vpop.f32.mrf.mxu2 }
 0x526   : > { %v3518_v60 = vadd.f32 %v3517_v4, %v3339_v3 }
 0x527   : > { %v3401_v9 = vpop.f32.mrf.mxu3  ;;  %v3520_v27 = vpop.f32.mrf.mxu0 }
 0x528   : > { %v3580_v51 = vadd.f32 %v3579_v32, %v3401_v9  ;;  %v8564_v1 = vadd.f32 %v5286_v25, %v3518_v60 }
 0x529   : > { %v3582_v61 = vpop.f32.mrf.mxu1 }
 0x52a   : > { %v8567_v18 = vadd.f32 %v5287_v6, %v3580_v51  ;;  %3680 = vmatmul.f32.gmra.mxu2 %v8564_v1  ;;  %3810 = vmatmul.f32.gmra.mxu0 %v8564_v1 }
 0x52c   : > { %3742 = vmatmul.f32.gmra.mxu3 %v8567_v18  ;;  %3872 = vmatmul.f32.gmra.mxu1 %v8567_v18 }
 0x52d   : > { %v3342_v47 = vpop.f32.mrf.mxu2 }
 0x52e   : > { %v3521_v40 = vadd.f32 %v3520_v27, %v3342_v47 }
 0x52f   : > { %v3404_v48 = vpop.f32.mrf.mxu3 }
 0x530   : > { %v3583_v23 = vadd.f32 %v3582_v61, %v3404_v48  ;;  %v8574_v17 = vadd.f32 %v5288_v31, %v3521_v40 }
 0x531   : > { %v3585_v26 = vpop.f32.mrf.mxu1 }
 0x532   : > { %v8577_v42 = vadd.f32 %v5289_v15, %v3583_v23  ;;  %3683 = vmatmul.f32.gmra.mxu2 %v8574_v17  ;;  %3813 = vmatmul.f32.gmra.mxu0 %v8574_v17 }
 0x534   : > { %3745 = vmatmul.f32.gmra.mxu3 %v8577_v42  ;;  %3875 = vmatmul.f32.gmra.mxu1 %v8577_v42 }
 0x537   : > { %v3407_v53 = vpop.f32.mrf.mxu3  ;;  %v3769_v55 = vpop.f32.mrf.mxu0 }
 0x538   : > { %v3586_v41 = vadd.f32 %v3585_v26, %v3407_v53 }
 0x53a   : > { %v8584_v10 = vadd.f32 %v5290_v7, %v3586_v41 }
 0x53c   : > { %3748 = vmatmul.f32.gmra.mxu3 %v8584_v10  ;;  %3878 = vmatmul.f32.gmra.mxu1 %v8584_v10 }
 0x53d   : > { %v3639_v21 = vpop.f32.mrf.mxu2 }
 0x53f   : > { %v3772_v46 = vpop.f32.mrf.mxu0 }
 0x541   : > { %v3834_v35 = vpop.f32.mrf.mxu1 }
 0x542   : > { %v3835_v39 = vadd.f32 %v3834_v35, %v3769_v55 }
 0x544   : > { %v8589_v28 = vsub.f32 %v8409_v16, %v3835_v39 }
 0x545   : > { %v3642_v52 = vpop.f32.mrf.mxu2 }
 0x546   : > { %v3915_v59 = vmul.f32 %v8589_v28, %v8589_v28 }
 0x547   : > { %v3704_v36 = vpop.f32.mrf.mxu3  ;;  %v3775_v45 = vpop.f32.mrf.mxu0 }
 0x548   : > { %v3705_v20 = vadd.f32 %v3704_v36, %v3639_v21  ;;  %4027 = vmatmul.f32.vlgmr.msra.gmra.mxu3 %v3915_v59  ;;  %4157 = vmatmul.f32.vlgmr.msrb.gmra.mxu1 %v3915_v59 }
 0x549   : > { %v3837_v32 = vpop.f32.mrf.mxu1 }
 0x54a   : > { %v8594_v4 = vsub.f32 %v8397_v22, %v3705_v20  ;;  %v3838_v12 = vadd.f32 %v3837_v32, %v3772_v46 }
 0x54c   : > { %v3914_v3 = vmul.f32 %v8594_v4, %v8594_v4  ;;  %v8599_v16 = vsub.f32 %v8426_v2, %v3838_v12 }
 0x54d   : > { %v3645_v60 = vpop.f32.mrf.mxu2 }
 0x54e   : > { %3962 = vmatmul.f32.vlgmr.msra.gmra.mxu2 %v3914_v3  ;;  %4092 = vmatmul.f32.vlgmr.msrb.gmra.mxu0 %v3914_v3  ;;  %v3917_v9 = vmul.f32 %v8599_v16, %v8599_v16 }
 0x54f   : > { %v3707_v51 = vpop.f32.mrf.mxu3  ;;  %v3778_v25 = vpop.f32.mrf.mxu0 }
 0x550   : > { %v3708_v6 = vadd.f32 %v3707_v51, %v3642_v52  ;;  %4030 = vmatmul.f32.gmra.mxu3 %v3917_v9  ;;  %4160 = vmatmul.f32.gmra.mxu1 %v3917_v9 }
 0x551   : > { %v3840_v22 = vpop.f32.mrf.mxu1 }
 0x552   : > { %v8604_v61 = vsub.f32 %v8405_v43, %v3708_v6  ;;  %v3841_v27 = vadd.f32 %v3840_v22, %v3775_v45 }
 0x554   : > { %v8607_v47 = vsub.f32 %v8444_v56, %v3841_v27  ;;  %v3916_v2 = vmul.f32 %v8604_v61, %v8604_v61 }
 0x555   : > { %v3648_v40 = vpop.f32.mrf.mxu2 }
 0x556   : > { %3965 = vmatmul.f32.gmra.mxu2 %v3916_v2  ;;  %4095 = vmatmul.f32.gmra.mxu0 %v3916_v2  ;;  %v3919_v48 = vmul.f32 %v8607_v47, %v8607_v47 }
 0x557   : > { %v3710_v23 = vpop.f32.mrf.mxu3  ;;  %v3781_v31 = vpop.f32.mrf.mxu0 }
 0x558   : > { %v3711_v15 = vadd.f32 %v3710_v23, %v3645_v60  ;;  %4033 = vmatmul.f32.gmra.mxu3 %v3919_v48  ;;  %4163 = vmatmul.f32.gmra.mxu1 %v3919_v48 }
 0x559   : > { %v3843_v43 = vpop.f32.mrf.mxu1 }
 0x55a   : > { %v8614_v26 = vsub.f32 %v8421_v29, %v3711_v15  ;;  %v3844_v56 = vadd.f32 %v3843_v43, %v3778_v25 }
 0x55c   : > { %v8617_v53 = vsub.f32 %v8462_v58, %v3844_v56  ;;  %v3918_v55 = vmul.f32 %v8614_v26, %v8614_v26 }
 0x55d   : > { %v3651_v41 = vpop.f32.mrf.mxu2 }
 0x55e   : > { %3968 = vmatmul.f32.gmra.mxu2 %v3918_v55  ;;  %4098 = vmatmul.f32.gmra.mxu0 %v3918_v55  ;;  %v3921_v7 = vmul.f32 %v8617_v53, %v8617_v53 }
 0x55f   : > { %v3713_v21 = vpop.f32.mrf.mxu3  ;;  %v3784_v46 = vpop.f32.mrf.mxu0 }
 0x560   : > { %v3714_v35 = vadd.f32 %v3713_v21, %v3648_v40  ;;  %4036 = vmatmul.f32.gmra.mxu3 %v3921_v7  ;;  %4166 = vmatmul.f32.gmra.mxu1 %v3921_v7 }
 0x561   : > { %v3846_v29 = vpop.f32.mrf.mxu1 }
 0x562   : > { %v8624_v39 = vsub.f32 %v8439_v38, %v3714_v35  ;;  %v3847_v58 = vadd.f32 %v3846_v29, %v3781_v31 }
 0x564   : > { %v8627_v52 = vsub.f32 %v8476_v30, %v3847_v58  ;;  %v3920_v59 = vmul.f32 %v8624_v39, %v8624_v39 }
 0x565   : > { %v3654_v36 = vpop.f32.mrf.mxu2 }
 0x566   : > { %3971 = vmatmul.f32.gmra.mxu2 %v3920_v59  ;;  %4101 = vmatmul.f32.gmra.mxu0 %v3920_v59  ;;  %v3923_v45 = vmul.f32 %v8627_v52, %v8627_v52 }
 0x567   : > { %v3716_v20 = vpop.f32.mrf.mxu3  ;;  %v3787_v32 = vpop.f32.mrf.mxu0 }
 0x568   : > { %v3717_v12 = vadd.f32 %v3716_v20, %v3651_v41  ;;  %4039 = vmatmul.f32.gmra.mxu3 %v3923_v45  ;;  %4169 = vmatmul.f32.gmra.mxu1 %v3923_v45 }
 0x569   : > { %v3849_v38 = vpop.f32.mrf.mxu1 }
 0x56a   : > { %v8634_v3 = vsub.f32 %v8457_v33, %v3717_v12  ;;  %v3850_v30 = vadd.f32 %v3849_v38, %v3784_v46 }
 0x56c   : > { %v8637_v60 = vsub.f32 %v8487_v24, %v3850_v30  ;;  %v3922_v9 = vmul.f32 %v8634_v3, %v8634_v3 }
 0x56d   : > { %v3657_v51 = vpop.f32.mrf.mxu2 }
 0x56e   : > { %3974 = vmatmul.f32.gmra.mxu2 %v3922_v9  ;;  %4104 = vmatmul.f32.gmra.mxu0 %v3922_v9  ;;  %v3925_v25 = vmul.f32 %v8637_v60, %v8637_v60 }
 0x56f   : > { %v3719_v6 = vpop.f32.mrf.mxu3  ;;  %v3790_v22 = vpop.f32.mrf.mxu0 }
 0x570   : > { %v3720_v27 = vadd.f32 %v3719_v6, %v3654_v36  ;;  %4042 = vmatmul.f32.gmra.mxu3 %v3925_v25  ;;  %4172 = vmatmul.f32.gmra.mxu1 %v3925_v25 }
 0x571   : > { %v3852_v33 = vpop.f32.mrf.mxu1 }
 0x572   : > { %v8644_v2 = vsub.f32 %v8472_v19, %v3720_v27  ;;  %v3853_v24 = vadd.f32 %v3852_v33, %v3787_v32 }
 0x574   : > { %v8647_v40 = vsub.f32 %v8497_v8, %v3853_v24  ;;  %v3924_v48 = vmul.f32 %v8644_v2, %v8644_v2 }
 0x575   : > { %v3660_v23 = vpop.f32.mrf.mxu2 }
 0x576   : > { %3977 = vmatmul.f32.gmra.mxu2 %v3924_v48  ;;  %4107 = vmatmul.f32.gmra.mxu0 %v3924_v48  ;;  %v3927_v31 = vmul.f32 %v8647_v40, %v8647_v40 }
 0x577   : > { %v3722_v15 = vpop.f32.mrf.mxu3  ;;  %v3793_v43 = vpop.f32.mrf.mxu0 }
 0x578   : > { %v3723_v56 = vadd.f32 %v3722_v15, %v3657_v51  ;;  %4045 = vmatmul.f32.gmra.mxu3 %v3927_v31  ;;  %4175 = vmatmul.f32.gmra.mxu1 %v3927_v31 }
 0x579   : > { %v3855_v19 = vpop.f32.mrf.mxu1 }
 0x57a   : > { %v8654_v55 = vsub.f32 %v8484_v0, %v3723_v56  ;;  %v3856_v8 = vadd.f32 %v3855_v19, %v3790_v22 }
 0x57c   : > { %v8657_v41 = vsub.f32 %v8507_v54, %v3856_v8  ;;  %v3926_v7 = vmul.f32 %v8654_v55, %v8654_v55 }
 0x57d   : > { %v3663_v21 = vpop.f32.mrf.mxu2 }
 0x57e   : > { %3980 = vmatmul.f32.gmra.mxu2 %v3926_v7  ;;  %4110 = vmatmul.f32.gmra.mxu0 %v3926_v7  ;;  %v3929_v46 = vmul.f32 %v8657_v41, %v8657_v41 }
 0x57f   : > { %v3725_v35 = vpop.f32.mrf.mxu3  ;;  %v3796_v29 = vpop.f32.mrf.mxu0 }
 0x580   : > { %v3726_v58 = vadd.f32 %v3725_v35, %v3660_v23  ;;  %4048 = vmatmul.f32.gmra.mxu3 %v3929_v46  ;;  %4178 = vmatmul.f32.gmra.mxu1 %v3929_v46 }
 0x581   : > { %v3858_v0 = vpop.f32.mrf.mxu1 }
 0x582   : > { %v8664_v59 = vsub.f32 %v8494_v50, %v3726_v58  ;;  %v3859_v54 = vadd.f32 %v3858_v0, %v3793_v43 }
 0x584   : > { %v8667_v36 = vsub.f32 %v8517_v13, %v3859_v54  ;;  %v3928_v45 = vmul.f32 %v8664_v59, %v8664_v59 }
 0x585   : > { %v3666_v20 = vpop.f32.mrf.mxu2 }
 0x586   : > { %3983 = vmatmul.f32.gmra.mxu2 %v3928_v45  ;;  %4113 = vmatmul.f32.gmra.mxu0 %v3928_v45  ;;  %v3931_v32 = vmul.f32 %v8667_v36, %v8667_v36 }
 0x587   : > { %v3728_v12 = vpop.f32.mrf.mxu3  ;;  %v3799_v38 = vpop.f32.mrf.mxu0 }
 0x588   : > { %v3729_v30 = vadd.f32 %v3728_v12, %v3663_v21  ;;  %4051 = vmatmul.f32.gmra.mxu3 %v3931_v32  ;;  %4181 = vmatmul.f32.gmra.mxu1 %v3931_v32 }
 0x589   : > { %v3861_v50 = vpop.f32.mrf.mxu1 }
 0x58a   : > { %v8674_v9 = vsub.f32 %v8504_v34, %v3729_v30  ;;  %v3862_v13 = vadd.f32 %v3861_v50, %v3796_v29 }
 0x58c   : > { %v8677_v51 = vsub.f32 %v8527_v14, %v3862_v13  ;;  %v3930_v25 = vmul.f32 %v8674_v9, %v8674_v9 }
 0x58d   : > { %v3669_v6 = vpop.f32.mrf.mxu2 }
 0x58e   : > { %3986 = vmatmul.f32.gmra.mxu2 %v3930_v25  ;;  %4116 = vmatmul.f32.gmra.mxu0 %v3930_v25  ;;  %v3933_v22 = vmul.f32 %v8677_v51, %v8677_v51 }
 0x58f   : > { %v3731_v27 = vpop.f32.mrf.mxu3  ;;  %v3802_v33 = vpop.f32.mrf.mxu0 }
 0x590   : > { %v3732_v24 = vadd.f32 %v3731_v27, %v3666_v20  ;;  %4054 = vmatmul.f32.gmra.mxu3 %v3933_v22  ;;  %4184 = vmatmul.f32.gmra.mxu1 %v3933_v22 }
 0x591   : > { %v3864_v34 = vpop.f32.mrf.mxu1 }
 0x592   : > { %v8684_v48 = vsub.f32 %v8514_v63, %v3732_v24  ;;  %v3865_v14 = vadd.f32 %v3864_v34, %v3799_v38 }
 0x594   : > { %v8687_v23 = vsub.f32 %v8537_v44, %v3865_v14  ;;  %v3932_v31 = vmul.f32 %v8684_v48, %v8684_v48 }
 0x595   : > { %v3672_v15 = vpop.f32.mrf.mxu2 }
 0x596   : > { %3989 = vmatmul.f32.gmra.mxu2 %v3932_v31  ;;  %4119 = vmatmul.f32.gmra.mxu0 %v3932_v31  ;;  %v3935_v43 = vmul.f32 %v8687_v23, %v8687_v23 }
 0x597   : > { %v3734_v56 = vpop.f32.mrf.mxu3  ;;  %v3805_v63 = vpop.f32.mrf.mxu0 }
 0x598   : > { %v3735_v19 = vadd.f32 %v3734_v56, %v3669_v6  ;;  %4057 = vmatmul.f32.gmra.mxu3 %v3935_v43  ;;  %4187 = vmatmul.f32.gmra.mxu1 %v3935_v43 }
 0x599   : > { %v3867_v8 = vpop.f32.mrf.mxu1 }
 0x59a   : > { %v8694_v7 = vsub.f32 %v8524_v5, %v3735_v19  ;;  %v3868_v44 = vadd.f32 %v3867_v8, %v3802_v33 }
 0x59c   : > { %v8697_v21 = vsub.f32 %v8547_v11, %v3868_v44  ;;  %v3934_v46 = vmul.f32 %v8694_v7, %v8694_v7 }
 0x59d   : > { %v3675_v58 = vpop.f32.mrf.mxu2 }
 0x59e   : > { %3992 = vmatmul.f32.gmra.mxu2 %v3934_v46  ;;  %4122 = vmatmul.f32.gmra.mxu0 %v3934_v46  ;;  %v3937_v35 = vmul.f32 %v8697_v21, %v8697_v21 }
 0x59f   : > { %v3737_v29 = vpop.f32.mrf.mxu3  ;;  %v3808_v11 = vpop.f32.mrf.mxu0 }
 0x5a0   : > { %v3738_v0 = vadd.f32 %v3737_v29, %v3672_v15  ;;  %4060 = vmatmul.f32.gmra.mxu3 %v3937_v35  ;;  %4190 = vmatmul.f32.gmra.mxu1 %v3937_v35 }
 0x5a1   : > { %v3870_v54 = vpop.f32.mrf.mxu1 }
 0x5a2   : > { %v8704_v5 = vsub.f32 %v8534_v62, %v3738_v0  ;;  %v3871_v45 = vadd.f32 %v3870_v54, %v3805_v63 }
 0x5a4   : > { %v8707_v20 = vsub.f32 %v8557_v57, %v3871_v45  ;;  %v3936_v32 = vmul.f32 %v8704_v5, %v8704_v5 }
 0x5a5   : > { %v3678_v62 = vpop.f32.mrf.mxu2 }
 0x5a6   : > { %3995 = vmatmul.f32.gmra.mxu2 %v3936_v32  ;;  %4125 = vmatmul.f32.gmra.mxu0 %v3936_v32  ;;  %v3939_v12 = vmul.f32 %v8707_v20, %v8707_v20 }
 0x5a7   : > { %v3740_v38 = vpop.f32.mrf.mxu3  ;;  %v3811_v22 = vpop.f32.mrf.mxu0 }
 0x5a8   : > { %v3741_v30 = vadd.f32 %v3740_v38, %v3675_v58  ;;  %4063 = vmatmul.f32.gmra.mxu3 %v3939_v12  ;;  %4193 = vmatmul.f32.gmra.mxu1 %v3939_v12 }
 0x5a9   : > { %v3873_v50 = vpop.f32.mrf.mxu1 }
 0x5aa   : > { %v8714_v13 = vsub.f32 %v8544_v49, %v3741_v30  ;;  %v3874_v25 = vadd.f32 %v3873_v50, %v3808_v11 }
 0x5ac   : > { %v8717_v57 = vsub.f32 %v8567_v18, %v3874_v25  ;;  %v3938_v6 = vmul.f32 %v8714_v13, %v8714_v13 }
 0x5ad   : > { %v3681_v18 = vpop.f32.mrf.mxu2 }
 0x5ae   : > { %3998 = vmatmul.f32.gmra.mxu2 %v3938_v6  ;;  %4128 = vmatmul.f32.gmra.mxu0 %v3938_v6  ;;  %v3941_v27 = vmul.f32 %v8717_v57, %v8717_v57 }
 0x5af   : > { %v3743_v33 = vpop.f32.mrf.mxu3  ;;  %v3814_v19 = vpop.f32.mrf.mxu0 }
 0x5b0   : > { %v3744_v24 = vadd.f32 %v3743_v33, %v3678_v62  ;;  %4066 = vmatmul.f32.gmra.mxu3 %v3941_v27  ;;  %4196 = vmatmul.f32.gmra.mxu1 %v3941_v27 }
 0x5b1   : > { %v3876_v34 = vpop.f32.mrf.mxu1 }
 0x5b2   : > { %v8724_v49 = vsub.f32 %v8554_v37, %v3744_v24  ;;  %v3877_v14 = vadd.f32 %v3876_v34, %v3811_v22 }
 0x5b4   : > { %v8727_v31 = vsub.f32 %v8577_v42, %v3877_v14  ;;  %v3940_v15 = vmul.f32 %v8724_v49, %v8724_v49 }
 0x5b5   : > { %v3684_v35 = vpop.f32.mrf.mxu2 }
 0x5b6   : > { %4001 = vmatmul.f32.gmra.mxu2 %v3940_v15  ;;  %4131 = vmatmul.f32.gmra.mxu0 %v3940_v15  ;;  %v3943_v43 = vmul.f32 %v8727_v31, %v8727_v31 }
 0x5b7   : > { %v3746_v56 = vpop.f32.mrf.mxu3 }
 0x5b8   : > { %v3747_v8 = vadd.f32 %v3746_v56, %v3681_v18  ;;  %4069 = vmatmul.f32.gmra.mxu3 %v3943_v43  ;;  %4199 = vmatmul.f32.gmra.mxu1 %v3943_v43 }
 0x5b9   : > { %v3879_v37 = vpop.f32.mrf.mxu1 }
 0x5ba   : > { %v8734_v63 = vsub.f32 %v8564_v1, %v3747_v8  ;;  %v3880_v44 = vadd.f32 %v3879_v37, %v3814_v19 }
 0x5bc   : > { %v8737_v42 = vsub.f32 %v8584_v10, %v3880_v44  ;;  %v3942_v46 = vmul.f32 %v8734_v63, %v8734_v63  ;;  %v3620_v44 = vld [vmem:[%s9328_s30] sm:$0x3] }
 0x5be   : > { %4004 = vmatmul.f32.gmra.mxu2 %v3942_v46  ;;  %4134 = vmatmul.f32.gmra.mxu0 %v3942_v46  ;;  %v3945_v29 = vmul.f32 %v8737_v42, %v8737_v42 }
 0x5bf   : > { %v3749_v58 = vpop.f32.mrf.mxu3 }
 0x5c0   : > { %v3750_v0 = vadd.f32 %v3749_v58, %v3684_v35  ;;  %4072 = vmatmul.f32.gmra.mxu3 %v3945_v29 }
 0x5c2   : > { %v8744_v54 = vsub.f32 %v8574_v17, %v3750_v0 }
 0x5c4   : > { %v3944_v1 = vmul.f32 %v8744_v54, %v8744_v54 }
 0x5c5   : > { %v4158_v10 = vpop.f32.mrf.mxu1 }
 0x5c6   : > { %4007 = vmatmul.f32.gmra.mxu2 %v3944_v1 }
 0x5c8   : > { %4202 = vmatmul.f32.vlgmr.msrb.gmra.mxu3 %v3945_v29 }
 0x5cb   : > { %v4028_v45 = vpop.f32.mrf.mxu3  ;;  %v4093_v11 = vpop.f32.mrf.mxu0 }
 0x5cc   : > { %v4094_v32 = vadd.f32 1e-05, %v4093_v11 }
 0x5cd   : > { %v4161_v12 = vpop.f32.mrf.mxu1 }
 0x5ce   : > { %v4159_v38 = vadd.f32 %v4158_v10, %v4094_v32  ;;  %4137 = vmatmul.f32.vlgmr.msrb.gmra.mxu2 %v3944_v1  ;;  %v3621_v1 = vld [vmem:[%s9329_s7] sm:$0x3]  ;;  %v8763_v32 = vperm.slane %v3620_v44, 1 }
 0x5d0   : > { %5131 = vrsqrt.f32 %v4159_v38  ;;  %vm4222_vm0 = vweird.f32 %v4159_v38 }
 0x5d1   : > { %v3963_v30 = vpop.f32.mrf.mxu2 }
 0x5d2   : > { %v3964_v50 = vadd.f32 1e-05, %v3963_v30 }
 0x5d3   : > { %v4031_v62 = vpop.f32.mrf.mxu3  ;;  %v4096_v25 = vpop.f32.mrf.mxu0 }
 0x5d4   : > { %v4029_v6 = vadd.f32 %v4028_v45, %v3964_v50  ;;  %v4097_v17 = vadd.f32 1e-05, %v4096_v25 }
 0x5d5   : > { %v4164_v22 = vpop.f32.mrf.mxu1 }
 0x5d6   : > { %v5132_v27 = vpop.eup %5131  ;;  %5133 = vrsqrt.f32 %v4029_v6  ;;  %v8748_v33 = vadd.f32 %v4161_v12, %v4097_v17  ;;  %v8767_v17 = vperm.slane %v3621_v1, 1  ;;  %vm4212_vm3 = vweird.f32 %v4029_v6 }
 0x5d7   : > { %v4217_v24 = vmul.f32 %v5132_v27, %v4159_v38  ;;  %vm4223_vm15 = vweird.f32 %v5132_v27  ;;  %v8769_v38 = vperm.slane %v3620_v44, 0 }
 0x5d8   : > { %5135 = vrsqrt.f32 %v8748_v33  ;;  %vm4224_vm1 = vmor %vm4222_vm0, %vm4223_vm15  ;;  %vm4242_vm6 = vweird.f32 %v8748_v33 }
 0x5d9   : > { %v4218_v34 = vmul.f32 %v5132_v27, %v4217_v24  ;;  %v3966_v14 = vpop.f32.mrf.mxu2 }
 0x5da   : > { %v3967_v18 = vadd.f32 1e-05, %v3966_v14 }
 0x5db   : > { %v4219_v15 = vmul.f32 0.5, %v4218_v34  ;;  %v4034_v43 = vpop.f32.mrf.mxu3  ;;  %v4099_v56 = vpop.f32.mrf.mxu0 }
 0x5dc   : > { %v5134_v19 = vpop.eup %5133  ;;  %v8751_v8 = vadd.f32 %v4031_v62, %v3967_v18  ;;  %v4100_v37 = vadd.f32 1e-05, %v4099_v56 }
 0x5dd   : > { %v4220_v46 = vsub.f32 1.5, %v4219_v15  ;;  %v4207_v35 = vmul.f32 %v5134_v19, %v4029_v6  ;;  %v4167_v29 = vpop.f32.mrf.mxu1  ;;  %vm4213_vm2 = vweird.f32 %v5134_v19 }
 0x5de   : > { %v5136_v58 = vpop.eup %5135  ;;  %5137 = vrsqrt.f32 %v8751_v8  ;;  %v8757_v0 = vadd.f32 %v4164_v22, %v4100_v37  ;;  %vm4214_vm5 = vmor %vm4212_vm3, %vm4213_vm2  ;;  %vm4232_vm8 = vweird.f32 %v8751_v8 }
 0x5df   : > { %v4221_v10 = vmul.f32 %v5132_v27, %v4220_v46  ;;  %v4208_v45 = vmul.f32 %v5134_v19, %v4207_v35  ;;  %v4237_v11 = vmul.f32 %v5136_v58, %v8748_v33  ;;  %vm4243_vm4 = vweird.f32 %v5136_v58 }
 0x5e0   : > { %5139 = vrsqrt.f32 %v8757_v0  ;;  %vm4244_vm7 = vmor %vm4242_vm6, %vm4243_vm4  ;;  %vm4262_vm12 = vweird.f32 %v8757_v0 }
 0x5e1   : > { %v4225_v12 = vsel %vm4224_vm1, %v5132_v27, %v4221_v10  ;;  %v4209_v30 = vmul.f32 0.5, %v4208_v45  ;;  %v4238_v50 = vmul.f32 %v5136_v58, %v4237_v11  ;;  %v3969_v62 = vpop.f32.mrf.mxu2 }
 0x5e2   : > { %v4527_v25 = vmul.f32 %v4225_v12, %v8589_v28  ;;  %v3970_v22 = vadd.f32 1e-05, %v3969_v62  ;;  %v8788_v62 = vperm.slane %v3621_v1, 0 }
 0x5e3   : > { %v4210_v24 = vsub.f32 1.5, %v4209_v30  ;;  %v4239_v34 = vmul.f32 0.5, %v4238_v50  ;;  %v4037_v14 = vpop.f32.mrf.mxu3  ;;  %v4102_v18 = vpop.f32.mrf.mxu0 }
 0x5e4   : > { %v5138_v15 = vpop.eup %5137  ;;  %v4564_v56 = vmul.f32 %v8763_v32, %v4527_v25  ;;  %v8772_v27 = vadd.f32 %v4034_v43, %v3970_v22  ;;  %v4103_v37 = vadd.f32 1e-05, %v4102_v18 }
 0x5e5   : > { %v4211_v46 = vmul.f32 %v5134_v19, %v4210_v24  ;;  %v4240_v28 = vsub.f32 1.5, %v4239_v34  ;;  %v4227_v35 = vmul.f32 %v5138_v15, %v8751_v8  ;;  %v4170_v10 = vpop.f32.mrf.mxu1  ;;  %vm4233_vm9 = vweird.f32 %v5138_v15 }
 0x5e6   : > { %v5140_v45 = vpop.eup %5139  ;;  %v4601_v44 = vadd.f32 %v8767_v17, %v4564_v56  ;;  %5141 = vrsqrt.f32 %v8772_v27  ;;  %v8779_v6 = vadd.f32 %v4167_v29, %v4103_v37  ;;  %vm4234_vm11 = vmor %vm4232_vm8, %vm4233_vm9  ;;  %vm4252_vm14 = vweird.f32 %v8772_v27 }
 0x5e7   : > { %v4215_v43 = vsel %vm4214_vm5, %v5134_v19, %v4211_v46  ;;  %v4241_v11 = vmul.f32 %v5136_v58, %v4240_v28  ;;  %v4228_v12 = vmul.f32 %v5138_v15, %v4227_v35  ;;  %v4257_v30 = vmul.f32 %v5140_v45, %v8757_v0 }
 0x5e8   : > { %4633 = vst [vmem:[%s8784_s4 + $0x8] sm:$0xff] %v4601_v44  ;;  %v4526_v50 = vmul.f32 %v4215_v43, %v8594_v4  ;;  %5143 = vrsqrt.f32 %v8779_v6  ;;  %vm4263_vm10 = vweird.f32 %v5140_v45  ;;  %vm4282_vm2 = vweird.f32 %v8779_v6 }
 0x5e9   : > { %v4245_v33 = vsel %vm4244_vm7, %v5136_v58, %v4241_v11  ;;  %v4229_v29 = vmul.f32 0.5, %v4228_v12  ;;  %v4258_v19 = vmul.f32 %v5140_v45, %v4257_v30  ;;  %v3972_v25 = vpop.f32.mrf.mxu2  ;;  %vm4264_vm13 = vmor %vm4262_vm12, %vm4263_vm10 }
 0x5ea   : > { %v4563_v22 = vmul.f32 %v8769_v38, %v4526_v50  ;;  %v4529_v24 = vmul.f32 %v4245_v33, %v8599_v16  ;;  %v3973_v34 = vadd.f32 1e-05, %v3972_v25 }
 0x5eb   : > { %v4230_v18 = vsub.f32 1.5, %v4229_v29  ;;  %v4259_v4 = vmul.f32 0.5, %v4258_v19  ;;  %v4040_v1 = vpop.f32.mrf.mxu3  ;;  %v4105_v56 = vpop.f32.mrf.mxu0 }
 0x5ec   : > { %v5142_v37 = vpop.eup %5141  ;;  %v4600_v46 = vadd.f32 %v8788_v62, %v4563_v22  ;;  %v4566_v58 = vmul.f32 %v8763_v32, %v4529_v24  ;;  %v8797_v28 = vadd.f32 %v4037_v14, %v3973_v34  ;;  %v4106_v35 = vadd.f32 1e-05, %v4105_v56 }
 0x5ed   : > { %v4231_v44 = vmul.f32 %v5138_v15, %v4230_v18  ;;  %v4260_v16 = vsub.f32 1.5, %v4259_v4  ;;  %v4247_v43 = vmul.f32 %v5142_v37, %v8772_v27  ;;  %v4173_v11 = vpop.f32.mrf.mxu1  ;;  %vm4253_vm15 = vweird.f32 %v5142_v37 }
 0x5ee   : > { %v5144_v12 = vpop.eup %5143  ;;  %4632 = vst [vmem:[%s8784_s4] sm:$0xff] %v4600_v46  ;;  %v4603_v30 = vadd.f32 %v8767_v17, %v4566_v58  ;;  %5145 = vrsqrt.f32 %v8797_v28  ;;  %v8807_v14 = vadd.f32 %v4170_v10, %v4106_v35  ;;  %vm4254_vm1 = vmor %vm4252_vm14, %vm4253_vm15  ;;  %vm4272_vm4 = vweird.f32 %v8797_v28 }
 0x5ef   : > { %v4235_v50 = vsel %vm4234_vm11, %v5138_v15, %v4231_v44  ;;  %v4261_v33 = vmul.f32 %v5140_v45, %v4260_v16  ;;  %v4248_v29 = vmul.f32 %v5142_v37, %v4247_v43  ;;  %v4277_v19 = vmul.f32 %v5144_v12, %v8779_v6 }
 0x5f0   : > { %4635 = vst [vmem:[%s8784_s4 + $0x18] sm:$0xff] %v4603_v30  ;;  %v4528_v25 = vmul.f32 %v4235_v50, %v8604_v61  ;;  %5147 = vrsqrt.f32 %v8807_v14  ;;  %vm4283_vm0 = vweird.f32 %v5144_v12  ;;  %vm4302_vm8 = vweird.f32 %v8807_v14 }
 0x5f1   : > { %v4265_v8 = vsel %vm4264_vm13, %v5140_v45, %v4261_v33  ;;  %v4249_v22 = vmul.f32 0.5, %v4248_v29  ;;  %v4278_v24 = vmul.f32 %v5144_v12, %v4277_v19  ;;  %v3975_v0 = vpop.f32.mrf.mxu2  ;;  %vm4284_vm3 = vmor %vm4282_vm2, %vm4283_vm0 }
 0x5f2   : > { %v4565_v34 = vmul.f32 %v8769_v38, %v4528_v25  ;;  %v4531_v10 = vmul.f32 %v4265_v8, %v8607_v47  ;;  %v3976_v15 = vadd.f32 1e-05, %v3975_v0 }
 0x5f3   : > { %v4250_v18 = vsub.f32 1.5, %v4249_v22  ;;  %v4279_v4 = vmul.f32 0.5, %v4278_v24  ;;  %v4043_v61 = vpop.f32.mrf.mxu3  ;;  %v4108_v56 = vpop.f32.mrf.mxu0 }
 0x5f4   : > { %v5146_v46 = vpop.eup %5145  ;;  %v4602_v58 = vadd.f32 %v8788_v62, %v4565_v34  ;;  %v4568_v45 = vmul.f32 %v8763_v32, %v4531_v10  ;;  %v8819_v35 = vadd.f32 %v4040_v1, %v3976_v15  ;;  %v4109_v44 = vadd.f32 1e-05, %v4108_v56 }
 0x5f5   : > { %v4251_v16 = vmul.f32 %v5142_v37, %v4250_v18  ;;  %v4280_v47 = vsub.f32 1.5, %v4279_v4  ;;  %v4267_v43 = vmul.f32 %v5146_v46, %v8797_v28  ;;  %v4176_v30 = vpop.f32.mrf.mxu1  ;;  %vm4273_vm5 = vweird.f32 %v5146_v46 }
 0x5f6   : > { %v5148_v50 = vpop.eup %5147  ;;  %4634 = vst [vmem:[%s8784_s4 + $0x10] sm:$0xff] %v4602_v58  ;;  %v4605_v33 = vadd.f32 %v8767_v17, %v4568_v45  ;;  %5149 = vrsqrt.f32 %v8819_v35  ;;  %v8829_v1 = vadd.f32 %v4173_v11, %v4109_v44  ;;  %vm4274_vm7 = vmor %vm4272_vm4, %vm4273_vm5  ;;  %vm4292_vm10 = vweird.f32 %v8819_v35 }
 0x5f7   : > { %v4255_v29 = vsel %vm4254_vm1, %v5142_v37, %v4251_v16  ;;  %v4281_v19 = vmul.f32 %v5144_v12, %v4280_v47  ;;  %v4268_v25 = vmul.f32 %v5146_v46, %v4267_v43  ;;  %v4297_v8 = vmul.f32 %v5148_v50, %v8807_v14 }
 0x5f8   : > { %4637 = vst [vmem:[%s8784_s4 + $0x28] sm:$0xff] %v4605_v33  ;;  %v4530_v22 = vmul.f32 %v4255_v29, %v8614_v26  ;;  %5151 = vrsqrt.f32 %v8829_v1  ;;  %vm4303_vm6 = vweird.f32 %v5148_v50  ;;  %vm4322_vm14 = vweird.f32 %v8829_v1 }
 0x5f9   : > { %v4285_v27 = vsel %vm4284_vm3, %v5144_v12, %v4281_v19  ;;  %v4269_v24 = vmul.f32 0.5, %v4268_v25  ;;  %v4298_v0 = vmul.f32 %v5148_v50, %v4297_v8  ;;  %v3978_v6 = vpop.f32.mrf.mxu2  ;;  %vm4304_vm9 = vmor %vm4302_vm8, %vm4303_vm6 }
 0x5fa   : > { %v4567_v34 = vmul.f32 %v8769_v38, %v4530_v22  ;;  %v4533_v11 = vmul.f32 %v4285_v27, %v8617_v53  ;;  %v3979_v37 = vadd.f32 1e-05, %v3978_v6 }
 0x5fb   : > { %v4270_v10 = vsub.f32 1.5, %v4269_v24  ;;  %v4299_v15 = vmul.f32 0.5, %v4298_v0  ;;  %v4046_v26 = vpop.f32.mrf.mxu3  ;;  %v4111_v18 = vpop.f32.mrf.mxu0 }
 0x5fc   : > { %v5150_v4 = vpop.eup %5149  ;;  %v4604_v56 = vadd.f32 %v8788_v62, %v4567_v34  ;;  %v4570_v12 = vmul.f32 %v8763_v32, %v4533_v11  ;;  %v8841_v58 = vadd.f32 %v4043_v61, %v3979_v37  ;;  %v4112_v45 = vadd.f32 1e-05, %v4111_v18 }
 0x5fd   : > { %v4271_v44 = vmul.f32 %v5146_v46, %v4270_v10  ;;  %v4300_v53 = vsub.f32 1.5, %v4299_v15  ;;  %v4287_v16 = vmul.f32 %v5150_v4, %v8819_v35  ;;  %v4179_v47 = vpop.f32.mrf.mxu1  ;;  %vm4293_vm11 = vweird.f32 %v5150_v4 }
 0x5fe   : > { %v5152_v43 = vpop.eup %5151  ;;  %4636 = vst [vmem:[%s8784_s4 + $0x20] sm:$0xff] %v4604_v56  ;;  %v4607_v33 = vadd.f32 %v8767_v17, %v4570_v12  ;;  %5153 = vrsqrt.f32 %v8841_v58  ;;  %v8851_v61 = vadd.f32 %v4176_v30, %v4112_v45  ;;  %vm4294_vm13 = vmor %vm4292_vm10, %vm4293_vm11  ;;  %vm4312_vm0 = vweird.f32 %v8841_v58 }
 0x5ff   : > { %v4275_v29 = vsel %vm4274_vm7, %v5146_v46, %v4271_v44  ;;  %v4301_v19 = vmul.f32 %v5148_v50, %v4300_v53  ;;  %v4288_v25 = vmul.f32 %v5150_v4, %v4287_v16  ;;  %v4317_v8 = vmul.f32 %v5152_v43, %v8829_v1 }
 0x600   : > { %4639 = vst [vmem:[%s8784_s4 + $0x38] sm:$0xff] %v4607_v33  ;;  %v4532_v22 = vmul.f32 %v4275_v29, %v8624_v39  ;;  %5155 = vrsqrt.f32 %v8851_v61  ;;  %vm4323_vm12 = vweird.f32 %v5152_v43  ;;  %vm4342_vm4 = vweird.f32 %v8851_v61 }
 0x601   : > { %v4305_v28 = vsel %vm4304_vm9, %v5148_v50, %v4301_v19  ;;  %v4289_v27 = vmul.f32 0.5, %v4288_v25  ;;  %v4318_v24 = vmul.f32 %v5152_v43, %v4317_v8  ;;  %v3981_v14 = vpop.f32.mrf.mxu2  ;;  %vm4324_vm15 = vmor %vm4322_vm14, %vm4323_vm12 }
 0x602   : > { %v4569_v0 = vmul.f32 %v8769_v38, %v4532_v22  ;;  %v4535_v30 = vmul.f32 %v4305_v28, %v8627_v52  ;;  %v3982_v46 = vadd.f32 1e-05, %v3981_v14 }
 0x603   : > { %v4290_v6 = vsub.f32 1.5, %v4289_v27  ;;  %v4319_v34 = vmul.f32 0.5, %v4318_v24  ;;  %v4049_v39 = vpop.f32.mrf.mxu3  ;;  %v4114_v11 = vpop.f32.mrf.mxu0 }
 0x604   : > { %v5154_v37 = vpop.eup %5153  ;;  %v4606_v10 = vadd.f32 %v8788_v62, %v4569_v0  ;;  %v4572_v50 = vmul.f32 %v8763_v32, %v4535_v30  ;;  %v8863_v15 = vadd.f32 %v4046_v26, %v3982_v46  ;;  %v4115_v18 = vadd.f32 1e-05, %v4114_v11 }
 0x605   : > { %v4291_v56 = vmul.f32 %v5150_v4, %v4290_v6  ;;  %v4320_v52 = vsub.f32 1.5, %v4319_v34  ;;  %v4307_v12 = vmul.f32 %v5154_v37, %v8841_v58  ;;  %v4182_v45 = vpop.f32.mrf.mxu1  ;;  %vm4313_vm1 = vweird.f32 %v5154_v37 }
 0x606   : > { %v5156_v44 = vpop.eup %5155  ;;  %4638 = vst [vmem:[%s8784_s4 + $0x30] sm:$0xff] %v4606_v10  ;;  %v4609_v53 = vadd.f32 %v8767_v17, %v4572_v50  ;;  %5157 = vrsqrt.f32 %v8863_v15  ;;  %v8873_v26 = vadd.f32 %v4179_v47, %v4115_v18  ;;  %vm4314_vm3 = vmor %vm4312_vm0, %vm4313_vm1  ;;  %vm4332_vm6 = vweird.f32 %v8863_v15 }
 0x607   : > { %v4295_v16 = vsel %vm4294_vm13, %v5150_v4, %v4291_v56  ;;  %v4321_v33 = vmul.f32 %v5152_v43, %v4320_v52  ;;  %v4308_v29 = vmul.f32 %v5154_v37, %v4307_v12  ;;  %v4337_v19 = vmul.f32 %v5156_v44, %v8851_v61 }
 0x608   : > { %4641 = vst [vmem:[%s8784_s4 + $0x48] sm:$0xff] %v4609_v53  ;;  %v4534_v25 = vmul.f32 %v4295_v16, %v8634_v3  ;;  %5159 = vrsqrt.f32 %v8873_v26  ;;  %vm4343_vm2 = vweird.f32 %v5156_v44  ;;  %vm4362_vm10 = vweird.f32 %v8873_v26 }
 0x609   : > { %v4325_v35 = vsel %vm4324_vm15, %v5152_v43, %v4321_v33  ;;  %v4309_v8 = vmul.f32 0.5, %v4308_v29  ;;  %v4338_v22 = vmul.f32 %v5156_v44, %v4337_v19  ;;  %v3984_v1 = vpop.f32.mrf.mxu2  ;;  %vm4344_vm5 = vmor %vm4342_vm4, %vm4343_vm2 }
 0x60a   : > { %v4571_v28 = vmul.f32 %v8769_v38, %v4534_v25  ;;  %v4537_v47 = vmul.f32 %v4325_v35, %v8637_v60  ;;  %v3985_v4 = vadd.f32 1e-05, %v3984_v1 }
 0x60b   : > { %v4310_v27 = vsub.f32 1.5, %v4309_v8  ;;  %v4339_v24 = vmul.f32 0.5, %v4338_v22  ;;  %v4052_v3 = vpop.f32.mrf.mxu3  ;;  %v4117_v14 = vpop.f32.mrf.mxu0 }
 0x60c   : > { %v5158_v0 = vpop.eup %5157  ;;  %v4608_v30 = vadd.f32 %v8788_v62, %v4571_v28  ;;  %v4574_v43 = vmul.f32 %v8763_v32, %v4537_v47  ;;  %v8885_v46 = vadd.f32 %v4049_v39, %v3985_v4  ;;  %v4118_v6 = vadd.f32 1e-05, %v4117_v14 }
 0x60d   : > { %v4311_v34 = vmul.f32 %v5154_v37, %v4310_v27  ;;  %v4340_v60 = vsub.f32 1.5, %v4339_v24  ;;  %v4327_v11 = vmul.f32 %v5158_v0, %v8863_v15  ;;  %v4185_v10 = vpop.f32.mrf.mxu1  ;;  %vm4333_vm7 = vweird.f32 %v5158_v0 }
 0x60e   : > { %v5160_v50 = vpop.eup %5159  ;;  %4640 = vst [vmem:[%s8784_s4 + $0x40] sm:$0xff] %v4608_v30  ;;  %v4611_v18 = vadd.f32 %v8767_v17, %v4574_v43  ;;  %5161 = vrsqrt.f32 %v8885_v46  ;;  %v8895_v39 = vadd.f32 %v4182_v45, %v4118_v6  ;;  %vm4334_vm9 = vmor %vm4332_vm6, %vm4333_vm7  ;;  %vm4352_vm12 = vweird.f32 %v8885_v46 }
 0x60f   : > { %v4315_v56 = vsel %vm4314_vm3, %v5154_v37, %v4311_v34  ;;  %v4341_v52 = vmul.f32 %v5156_v44, %v4340_v60  ;;  %v4328_v12 = vmul.f32 %v5158_v0, %v4327_v11  ;;  %v4357_v53 = vmul.f32 %v5160_v50, %v8873_v26 }
 0x610   : > { %4643 = vst [vmem:[%s8784_s4 + $0x58] sm:$0xff] %v4611_v18  ;;  %v4536_v16 = vmul.f32 %v4315_v56, %v8644_v2  ;;  %5163 = vrsqrt.f32 %v8895_v39  ;;  %vm4363_vm8 = vweird.f32 %v5160_v50  ;;  %vm4382_vm0 = vweird.f32 %v8895_v39 }
 0x611   : > { %v4345_v58 = vsel %vm4344_vm5, %v5156_v44, %v4341_v52  ;;  %v4329_v33 = vmul.f32 0.5, %v4328_v12  ;;  %v4358_v29 = vmul.f32 %v5160_v50, %v4357_v53  ;;  %v3987_v61 = vpop.f32.mrf.mxu2  ;;  %vm4364_vm11 = vmor %vm4362_vm10, %vm4363_vm8 }
 0x612   : > { %v4573_v19 = vmul.f32 %v8769_v38, %v4536_v16  ;;  %v4539_v45 = vmul.f32 %v4345_v58, %v8647_v40  ;;  %v3988_v37 = vadd.f32 1e-05, %v3987_v61 }
 0x613   : > { %v4330_v25 = vsub.f32 1.5, %v4329_v33  ;;  %v4359_v35 = vmul.f32 0.5, %v4358_v29  ;;  %v4055_v2 = vpop.f32.mrf.mxu3  ;;  %v4120_v8 = vpop.f32.mrf.mxu0 }
 0x614   : > { %v5162_v22 = vpop.eup %5161  ;;  %v4610_v1 = vadd.f32 %v8788_v62, %v4573_v19  ;;  %v4576_v44 = vmul.f32 %v8763_v32, %v4539_v45  ;;  %v8907_v28 = vadd.f32 %v4052_v3, %v3988_v37  ;;  %v4121_v47 = vadd.f32 1e-05, %v4120_v8 }
 0x615   : > { %v4331_v4 = vmul.f32 %v5158_v0, %v4330_v25  ;;  %v4360_v40 = vsub.f32 1.5, %v4359_v35  ;;  %v4347_v27 = vmul.f32 %v5162_v22, %v8885_v46  ;;  %v4188_v24 = vpop.f32.mrf.mxu1  ;;  %vm4353_vm13 = vweird.f32 %v5162_v22 }
 0x616   : > { %v5164_v14 = vpop.eup %5163  ;;  %4642 = vst [vmem:[%s8784_s4 + $0x50] sm:$0xff] %v4610_v1  ;;  %v4613_v30 = vadd.f32 %v8767_v17, %v4576_v44  ;;  %5165 = vrsqrt.f32 %v8907_v28  ;;  %v8917_v3 = vadd.f32 %v4185_v10, %v4121_v47  ;;  %vm4354_vm15 = vmor %vm4352_vm12, %vm4353_vm13  ;;  %vm4372_vm2 = vweird.f32 %v8907_v28 }
 0x617   : > { %v4335_v43 = vsel %vm4334_vm9, %v5158_v0, %v4331_v4  ;;  %v4361_v6 = vmul.f32 %v5160_v50, %v4360_v40  ;;  %v4348_v34 = vmul.f32 %v5162_v22, %v4347_v27  ;;  %v4377_v60 = vmul.f32 %v5164_v14, %v8895_v39 }
 0x618   : > { %4645 = vst [vmem:[%s8784_s4 + $0x68] sm:$0xff] %v4613_v30  ;;  %v4538_v11 = vmul.f32 %v4335_v43, %v8654_v55  ;;  %5167 = vrsqrt.f32 %v8917_v3  ;;  %vm4383_vm14 = vweird.f32 %v5164_v14  ;;  %vm4402_vm6 = vweird.f32 %v8917_v3 }
 0x619   : > { %v4365_v15 = vsel %vm4364_vm11, %v5160_v50, %v4361_v6  ;;  %v4349_v18 = vmul.f32 0.5, %v4348_v34  ;;  %v4378_v56 = vmul.f32 %v5164_v14, %v4377_v60  ;;  %v3990_v26 = vpop.f32.mrf.mxu2  ;;  %vm4384_vm1 = vmor %vm4382_vm0, %vm4383_vm14 }
 0x61a   : > { %v4575_v52 = vmul.f32 %v8769_v38, %v4538_v11  ;;  %v4541_v10 = vmul.f32 %v4365_v15, %v8657_v41  ;;  %v3991_v0 = vadd.f32 1e-05, %v3990_v26 }
 0x61b   : > { %v4350_v12 = vsub.f32 1.5, %v4349_v18  ;;  %v4379_v53 = vmul.f32 0.5, %v4378_v56  ;;  %v4058_v55 = vpop.f32.mrf.mxu3  ;;  %v4123_v16 = vpop.f32.mrf.mxu0 }
 0x61c   : > { %v5166_v58 = vpop.eup %5165  ;;  %v4612_v33 = vadd.f32 %v8788_v62, %v4575_v52  ;;  %v4578_v50 = vmul.f32 %v8763_v32, %v4541_v10  ;;  %v8929_v29 = vadd.f32 %v4055_v2, %v3991_v0  ;;  %v4124_v61 = vadd.f32 1e-05, %v4123_v16 }
 0x61d   : > { %v4351_v19 = vmul.f32 %v5162_v22, %v4350_v12  ;;  %v4380_v41 = vsub.f32 1.5, %v4379_v53  ;;  %v4367_v45 = vmul.f32 %v5166_v58, %v8907_v28  ;;  %v4191_v47 = vpop.f32.mrf.mxu1  ;;  %vm4373_vm3 = vweird.f32 %v5166_v58 }
 0x61e   : > { %v5168_v37 = vpop.eup %5167  ;;  %4644 = vst [vmem:[%s8784_s4 + $0x60] sm:$0xff] %v4612_v33  ;;  %v4615_v25 = vadd.f32 %v8767_v17, %v4578_v50  ;;  %5169 = vrsqrt.f32 %v8929_v29  ;;  %v8939_v35 = vadd.f32 %v4188_v24, %v4124_v61  ;;  %vm4374_vm5 = vmor %vm4372_vm2, %vm4373_vm3  ;;  %vm4392_vm8 = vweird.f32 %v8929_v29 }
 0x61f   : > { %v4355_v2 = vsel %vm4354_vm15, %v5162_v22, %v4351_v19  ;;  %v4381_v8 = vmul.f32 %v5164_v14, %v4380_v41  ;;  %v4368_v1 = vmul.f32 %v5166_v58, %v4367_v45  ;;  %v4397_v44 = vmul.f32 %v5168_v37, %v8917_v3 }
 0x620   : > { %4647 = vst [vmem:[%s8784_s4 + $0x78] sm:$0xff] %v4615_v25  ;;  %v4540_v4 = vmul.f32 %v4355_v2, %v8664_v59  ;;  %5171 = vrsqrt.f32 %v8939_v35  ;;  %vm4403_vm4 = vweird.f32 %v5168_v37  ;;  %vm4422_vm12 = vweird.f32 %v8939_v35 }
 0x621   : > { %v4385_v46 = vsel %vm4384_vm1, %v5164_v14, %v4381_v8  ;;  %v4369_v40 = vmul.f32 0.5, %v4368_v1  ;;  %v4398_v39 = vmul.f32 %v5168_v37, %v4397_v44  ;;  %v3993_v27 = vpop.f32.mrf.mxu2  ;;  %vm4404_vm7 = vmor %vm4402_vm6, %vm4403_vm4 }
 0x622   : > { %v4577_v24 = vmul.f32 %v8769_v38, %v4540_v4  ;;  %v4543_v22 = vmul.f32 %v4385_v46, %v8667_v36  ;;  %v3994_v30 = vadd.f32 1e-05, %v3993_v27 }
 0x623   : > { %v4370_v43 = vsub.f32 1.5, %v4369_v40  ;;  %v4399_v6 = vmul.f32 0.5, %v4398_v39  ;;  %v4061_v59 = vpop.f32.mrf.mxu3  ;;  %v4126_v34 = vpop.f32.mrf.mxu0 }
 0x624   : > { %v5170_v60 = vpop.eup %5169  ;;  %v4614_v11 = vadd.f32 %v8788_v62, %v4577_v24  ;;  %v4580_v14 = vmul.f32 %v8763_v32, %v4543_v22  ;;  %v8951_v15 = vadd.f32 %v4058_v55, %v3994_v30  ;;  %v4127_v18 = vadd.f32 1e-05, %v4126_v34 }
 0x625   : > { %v4371_v56 = vmul.f32 %v5166_v58, %v4370_v43  ;;  %v4400_v36 = vsub.f32 1.5, %v4399_v6  ;;  %v4387_v26 = vmul.f32 %v5170_v60, %v8929_v29  ;;  %v4194_v3 = vpop.f32.mrf.mxu1  ;;  %vm4393_vm9 = vweird.f32 %v5170_v60 }
 0x626   : > { %v5172_v52 = vpop.eup %5171  ;;  %4646 = vst [vmem:[%s8784_s4 + $0x70] sm:$0xff] %v4614_v11  ;;  %v4617_v10 = vadd.f32 %v8767_v17, %v4580_v14  ;;  %5173 = vrsqrt.f32 %v8951_v15  ;;  %v8961_v0 = vadd.f32 %v4191_v47, %v4127_v18  ;;  %vm4394_vm11 = vmor %vm4392_vm8, %vm4393_vm9  ;;  %vm4412_vm14 = vweird.f32 %v8951_v15 }
 0x627   : > { %v4375_v12 = vsel %vm4374_vm5, %v5166_v58, %v4371_v56  ;;  %v4401_v53 = vmul.f32 %v5168_v37, %v4400_v36  ;;  %v4388_v55 = vmul.f32 %v5170_v60, %v4387_v26  ;;  %v4417_v16 = vmul.f32 %v5172_v52, %v8939_v35 }
 0x628   : > { %4649 = vst [vmem:[%s8784_s4 + $0x88] sm:$0xff] %v4617_v10  ;;  %v4542_v33 = vmul.f32 %v4375_v12, %v8674_v9  ;;  %5175 = vrsqrt.f32 %v8961_v0  ;;  %vm4423_vm10 = vweird.f32 %v5172_v52  ;;  %vm4442_vm2 = vweird.f32 %v8961_v0 }
 0x629   : > { %v4405_v28 = vsel %vm4404_vm7, %v5168_v37, %v4401_v53  ;;  %v4389_v50 = vmul.f32 0.5, %v4388_v55  ;;  %v4418_v61 = vmul.f32 %v5172_v52, %v4417_v16  ;;  %v3996_v19 = vpop.f32.mrf.mxu2  ;;  %vm4424_vm13 = vmor %vm4422_vm12, %vm4423_vm10 }
 0x62a   : > { %v4579_v41 = vmul.f32 %v8769_v38, %v4542_v33  ;;  %v4545_v58 = vmul.f32 %v4405_v28, %v8677_v51  ;;  %v3997_v45 = vadd.f32 1e-05, %v3996_v19 }
 0x62b   : > { %v4390_v25 = vsub.f32 1.5, %v4389_v50  ;;  %v4419_v9 = vmul.f32 0.5, %v4418_v61  ;;  %v4064_v2 = vpop.f32.mrf.mxu3  ;;  %v4129_v8 = vpop.f32.mrf.mxu0 }
 0x62c   : > { %v5174_v1 = vpop.eup %5173  ;;  %v4616_v37 = vadd.f32 %v8788_v62, %v4579_v41  ;;  %v4582_v44 = vmul.f32 %v8763_v32, %v4545_v58  ;;  %v8973_v47 = vadd.f32 %v4061_v59, %v3997_v45  ;;  %v4130_v4 = vadd.f32 1e-05, %v4129_v8 }
 0x62d   : > { %v4391_v46 = vmul.f32 %v5170_v60, %v4390_v25  ;;  %v4420_v51 = vsub.f32 1.5, %v4419_v9  ;;  %v4407_v40 = vmul.f32 %v5174_v1, %v8951_v15  ;;  %vm4413_vm15 = vweird.f32 %v5174_v1 }
 0x62e   : > { %v5176_v39 = vpop.eup %5175  ;;  %4648 = vst [vmem:[%s8784_s4 + $0x80] sm:$0xff] %v4616_v37  ;;  %v4619_v27 = vadd.f32 %v8767_v17, %v4582_v44  ;;  %5177 = vrsqrt.f32 %v8973_v47  ;;  %v8983_v24 = vadd.f32 %v4194_v3, %v4130_v4  ;;  %vm4414_vm1 = vmor %vm4412_vm14, %vm4413_vm15  ;;  %vm4432_vm4 = vweird.f32 %v8973_v47 }
 0x62f   : > { %v4395_v22 = vsel %vm4394_vm11, %v5170_v60, %v4391_v46  ;;  %v4421_v30 = vmul.f32 %v5172_v52, %v4420_v51  ;;  %v4408_v43 = vmul.f32 %v5174_v1, %v4407_v40  ;;  %v4437_v6 = vmul.f32 %v5176_v39, %v8961_v0 }
 0x630   : > { %4651 = vst [vmem:[%s8784_s4 + $0x98] sm:$0xff] %v4619_v27  ;;  %v4544_v59 = vmul.f32 %v4395_v22, %v8684_v48  ;;  %5179 = vrsqrt.f32 %v8983_v24  ;;  %v4197_v48 = vpop.f32.mrf.mxu1  ;;  %vm4443_vm0 = vweird.f32 %v5176_v39  ;;  %vm4462_vm8 = vweird.f32 %v8983_v24 }
 0x631   : > { %v4425_v29 = vsel %vm4424_vm13, %v5172_v52, %v4421_v30  ;;  %v4409_v34 = vmul.f32 0.5, %v4408_v43  ;;  %v4438_v11 = vmul.f32 %v5176_v39, %v4437_v6  ;;  %v3999_v35 = vpop.f32.mrf.mxu2  ;;  %vm4444_vm3 = vmor %vm4442_vm2, %vm4443_vm0 }
 0x632   : > { %v4581_v14 = vmul.f32 %v8769_v38, %v4544_v59  ;;  %v4547_v18 = vmul.f32 %v4425_v29, %v8687_v23  ;;  %v4000_v60 = vadd.f32 1e-05, %v3999_v35 }
 0x633   : > { %v4410_v56 = vsub.f32 1.5, %v4409_v34  ;;  %v4439_v36 = vmul.f32 0.5, %v4438_v11  ;;  %v4132_v26 = vpop.f32.mrf.mxu0  ;;  %v4067_v28 = vpop.f32.mrf.mxu3 }
 0x634   : > { %v5178_v10 = vpop.eup %5177  ;;  %v4618_v12 = vadd.f32 %v8788_v62, %v4581_v14  ;;  %v4584_v52 = vmul.f32 %v8763_v32, %v4547_v18  ;;  %v8995_v53 = vadd.f32 %v4064_v2, %v4000_v60  ;;  %v4133_v55 = vadd.f32 1e-05, %v4132_v26 }
 0x635   : > { %v4411_v16 = vmul.f32 %v5174_v1, %v4410_v56  ;;  %v4440_v23 = vsub.f32 1.5, %v4439_v36  ;;  %v4427_v33 = vmul.f32 %v5178_v10, %v8973_v47  ;;  %vm4433_vm5 = vweird.f32 %v5178_v10 }
 0x636   : > { %v5180_v50 = vpop.eup %5179  ;;  %4650 = vst [vmem:[%s8784_s4 + $0x90] sm:$0xff] %v4618_v12  ;;  %v4621_v61 = vadd.f32 %v8767_v17, %v4584_v52  ;;  %5181 = vrsqrt.f32 %v8995_v53  ;;  %v9005_v3 = vadd.f32 %v4197_v48, %v4133_v55  ;;  %vm4434_vm7 = vmor %vm4432_vm4, %vm4433_vm5  ;;  %vm4452_vm11 = vweird.f32 %v8995_v53 }
 0x637   : > { %v4415_v19 = vsel %vm4414_vm1, %v5174_v1, %v4411_v16  ;;  %v4441_v41 = vmul.f32 %v5176_v39, %v4440_v23  ;;  %v4428_v58 = vmul.f32 %v5178_v10, %v4427_v33  ;;  %v4457_v45 = vmul.f32 %v5180_v50, %v8983_v24 }
 0x638   : > { %4653 = vst [vmem:[%s8784_s4 + $0xa8] sm:$0xff] %v4621_v61  ;;  %v4546_v25 = vmul.f32 %v4415_v19, %v8694_v7  ;;  %5183 = vrsqrt.f32 %v9005_v3  ;;  %vm4463_vm6 = vweird.f32 %v5180_v50  ;;  %v4200_v43 = vpop.f32.mrf.mxu1  ;;  %vm4482_vm14 = vweird.f32 %v9005_v3 }
 0x639   : > { %v4445_v15 = vsel %vm4444_vm3, %v5176_v39, %v4441_v41  ;;  %v4429_v9 = vmul.f32 0.5, %v4428_v58  ;;  %v4458_v2 = vmul.f32 %v5180_v50, %v4457_v45  ;;  %v4002_v0 = vpop.f32.mrf.mxu2  ;;  %vm4464_vm9 = vmor %vm4462_vm8, %vm4463_vm6 }
 0x63a   : > { %v4583_v8 = vmul.f32 %v8769_v38, %v4546_v25  ;;  %v4549_v37 = vmul.f32 %v4445_v15, %v8697_v21  ;;  %v4003_v1 = vadd.f32 1e-05, %v4002_v0 }
 0x63b   : > { %v4430_v44 = vsub.f32 1.5, %v4429_v9  ;;  %v4459_v4 = vmul.f32 0.5, %v4458_v2  ;;  %v4135_v7 = vpop.f32.mrf.mxu0  ;;  %v4070_v18 = vpop.f32.mrf.mxu3 }
 0x63c   : > { %v5182_v46 = vpop.eup %5181  ;;  %v4620_v51 = vadd.f32 %v8788_v62, %v4583_v8  ;;  %v4586_v40 = vmul.f32 %v8763_v32, %v4549_v37  ;;  %v9017_v39 = vadd.f32 %v4067_v28, %v4003_v1  ;;  %v4136_v27 = vadd.f32 1e-05, %v4135_v7 }
 0x63d   : > { %v4431_v22 = vmul.f32 %v5178_v10, %v4430_v44  ;;  %v4460_v30 = vsub.f32 1.5, %v4459_v4  ;;  %v4447_v21 = vmul.f32 %v5182_v46, %v8995_v53  ;;  %vm4453_vm10 = vweird.f32 %v5182_v46 }
 0x63e   : > { %v5184_v6 = vpop.eup %5183  ;;  %4652 = vst [vmem:[%s8784_s4 + $0xa0] sm:$0xff] %v4620_v51  ;;  %v4623_v59 = vadd.f32 %v8767_v17, %v4586_v40  ;;  %5185 = vrsqrt.f32 %v9017_v39  ;;  %v9027_v29 = vadd.f32 %v4200_v43, %v4136_v27  ;;  %vm4454_vm13 = vmor %vm4452_vm11, %vm4453_vm10  ;;  %vm4472_vm1 = vweird.f32 %v9017_v39 }
 0x63f   : > { %v4435_v34 = vsel %vm4434_vm7, %v5178_v10, %v4431_v22  ;;  %v4461_v11 = vmul.f32 %v5180_v50, %v4460_v30  ;;  %v4448_v35 = vmul.f32 %v5182_v46, %v4447_v21  ;;  %v4477_v14 = vmul.f32 %v5184_v6, %v9005_v3 }
 0x640   : > { %4655 = vst [vmem:[%s8784_s4 + $0xb8] sm:$0xff] %v4623_v59  ;;  %v4548_v60 = vmul.f32 %v4435_v34, %v8704_v5  ;;  %5187 = vrsqrt.f32 %v9027_v29  ;;  %vm4483_vm12 = vweird.f32 %v5184_v6  ;;  %vm4502_vm4 = vweird.f32 %v9027_v29 }
 0x641   : > { %v4465_v47 = vsel %vm4464_vm9, %v5180_v50, %v4461_v11  ;;  %v4449_v56 = vmul.f32 0.5, %v4448_v35  ;;  %v4478_v24 = vmul.f32 %v5184_v6, %v4477_v14  ;;  %v4005_v36 = vpop.f32.mrf.mxu2  ;;  %vm4484_vm15 = vmor %vm4482_vm14, %vm4483_vm12 }
 0x642   : > { %v4585_v48 = vmul.f32 %v8769_v38, %v4548_v60  ;;  %v4551_v26 = vmul.f32 %v4465_v47, %v8707_v20  ;;  %v4006_v10 = vadd.f32 1e-05, %v4005_v36 }
 0x643   : > { %v4450_v12 = vsub.f32 1.5, %v4449_v56  ;;  %v4479_v52 = vmul.f32 0.5, %v4478_v24  ;;  %v4073_v2 = vpop.f32.mrf.mxu3 }
 0x644   : > { %v5186_v55 = vpop.eup %5185  ;;  %v4622_v5 = vadd.f32 %v8788_v62, %v4585_v48  ;;  %v4588_v16 = vmul.f32 %v8763_v32, %v4551_v26  ;;  %v9039_v23 = vadd.f32 %v4070_v18, %v4006_v10 }
 0x645   : > { %v4451_v33 = vmul.f32 %v5182_v46, %v4450_v12  ;;  %v4480_v28 = vsub.f32 1.5, %v4479_v52  ;;  %v4467_v50 = vmul.f32 %v5186_v55, %v9017_v39  ;;  %vm4473_vm0 = vweird.f32 %v5186_v55 }
 0x646   : > { %v5188_v20 = vpop.eup %5187  ;;  %4654 = vst [vmem:[%s8784_s4 + $0xb0] sm:$0xff] %v4622_v5  ;;  %v4625_v61 = vadd.f32 %v8767_v17, %v4588_v16  ;;  %5189 = vrsqrt.f32 %v9039_v23  ;;  %vm4474_vm3 = vmor %vm4472_vm1, %vm4473_vm0  ;;  %vm4492_vm7 = vweird.f32 %v9039_v23 }
 0x647   : > { %v4455_v19 = vsel %vm4454_vm13, %v5182_v46, %v4451_v33  ;;  %v4481_v41 = vmul.f32 %v5184_v6, %v4480_v28  ;;  %v4468_v53 = vmul.f32 %v5186_v55, %v4467_v50  ;;  %v4497_v58 = vmul.f32 %v5188_v20, %v9027_v29 }
 0x648   : > { %4657 = vst [vmem:[%s8784_s4 + $0xc8] sm:$0xff] %v4625_v61  ;;  %v4550_v45 = vmul.f32 %v4455_v19, %v8714_v13  ;;  %vm4503_vm2 = vweird.f32 %v5188_v20 }
 0x649   : > { %v4485_v25 = vsel %vm4484_vm15, %v5184_v6, %v4481_v41  ;;  %v4469_v15 = vmul.f32 0.5, %v4468_v53  ;;  %v4498_v9 = vmul.f32 %v5188_v20, %v4497_v58  ;;  %v4008_v0 = vpop.f32.mrf.mxu2  ;;  %vm4504_vm5 = vmor %vm4502_vm4, %vm4503_vm2 }
 0x64a   : > { %v4587_v8 = vmul.f32 %v8769_v38, %v4550_v45  ;;  %v4553_v3 = vmul.f32 %v4485_v25, %v8717_v57  ;;  %v4009_v37 = vadd.f32 1e-05, %v4008_v0 }
 0x64b   : > { %v4470_v1 = vsub.f32 1.5, %v4469_v15  ;;  %v4499_v44 = vmul.f32 0.5, %v4498_v9  ;;  %v4203_v18 = vpop.f32.mrf.mxu3 }
 0x64c   : > { %v5190_v4 = vpop.eup %5189  ;;  %v4624_v7 = vadd.f32 %v8788_v62, %v4587_v8  ;;  %v4590_v13 = vmul.f32 %v8763_v32, %v4553_v3  ;;  %v4074_v46 = vadd.f32 %v4073_v2, %v4009_v37 }
 0x64d   : > { %v4471_v51 = vmul.f32 %v5186_v55, %v4470_v1  ;;  %v4500_v40 = vsub.f32 1.5, %v4499_v44  ;;  %v4487_v27 = vmul.f32 %v5190_v4, %v9039_v23  ;;  %vm4493_vm6 = vweird.f32 %v5190_v4 }
 0x64e   : > { %4656 = vst [vmem:[%s8784_s4 + $0xc0] sm:$0xff] %v4624_v7  ;;  %v4627_v57 = vadd.f32 %v8767_v17, %v4590_v13  ;;  %5191 = vrsqrt.f32 %v4074_v46  ;;  %vm4494_vm8 = vmor %vm4492_vm7, %vm4493_vm6  ;;  %vm4512_vm10 = vweird.f32 %v4074_v46 }
 0x64f   : > { %v4475_v22 = vsel %vm4474_vm3, %v5186_v55, %v4471_v51  ;;  %v4501_v30 = vmul.f32 %v5188_v20, %v4500_v40  ;;  %v4488_v21 = vmul.f32 %v5190_v4, %v4487_v27 }
 0x650   : > { %4659 = vst [vmem:[%s8784_s4 + $0xd8] sm:$0xff] %v4627_v57  ;;  %v4552_v43 = vmul.f32 %v4475_v22, %v8724_v49 }
 0x651   : > { %v4505_v39 = vsel %vm4504_vm5, %v5188_v20, %v4501_v30  ;;  %v4489_v6 = vmul.f32 0.5, %v4488_v21  ;;  %v4138_v59 = vpop.f32.mrf.mxu2 }
 0x652   : > { %v4589_v34 = vmul.f32 %v8769_v38, %v4552_v43  ;;  %v4555_v11 = vmul.f32 %v4505_v39, %v8727_v31  ;;  %v4139_v35 = vadd.f32 1e-05, %v4138_v59 }
 0x653   : > { %v4490_v14 = vsub.f32 1.5, %v4489_v6 }
 0x654   : > { %v5192_v60 = vpop.eup %5191  ;;  %v4626_v29 = vadd.f32 %v8788_v62, %v4589_v34  ;;  %v4592_v47 = vmul.f32 %v8763_v32, %v4555_v11  ;;  %v4204_v49 = vadd.f32 %v4203_v18, %v4139_v35 }
 0x655   : > { %v4491_v56 = vmul.f32 %v5190_v4, %v4490_v14  ;;  %v4507_v24 = vmul.f32 %v5192_v60, %v4074_v46  ;;  %vm4513_vm9 = vweird.f32 %v5192_v60 }
 0x656   : > { %4658 = vst [vmem:[%s8784_s4 + $0xd0] sm:$0xff] %v4626_v29  ;;  %v4629_v36 = vadd.f32 %v8767_v17, %v4592_v47  ;;  %5193 = vrsqrt.f32 %v4204_v49  ;;  %vm4514_vm11 = vmor %vm4512_vm10, %vm4513_vm9  ;;  %vm4522_vm13 = vweird.f32 %v4204_v49 }
 0x657   : > { %v4495_v31 = vsel %vm4494_vm8, %v5190_v4, %v4491_v56  ;;  %v4508_v48 = vmul.f32 %v5192_v60, %v4507_v24 }
 0x658   : > { %4661 = vst [vmem:[%s8784_s4 + $0xe8] sm:$0xff] %v4629_v36  ;;  %v4554_v26 = vmul.f32 %v4495_v31, %v8734_v63 }
 0x659   : > { %v4509_v10 = vmul.f32 0.5, %v4508_v48 }
 0x65a   : > { %v4591_v12 = vmul.f32 %v8769_v38, %v4554_v26 }
 0x65b   : > { %v4510_v52 = vsub.f32 1.5, %v4509_v10 }
 0x65c   : > { %v5194_v55 = vpop.eup %5193  ;;  %v4628_v5 = vadd.f32 %v8788_v62, %v4591_v12 }
 0x65d   : > { %v4511_v16 = vmul.f32 %v5192_v60, %v4510_v52  ;;  %v4517_v23 = vmul.f32 %v5194_v55, %v4204_v49  ;;  %vm4523_vm12 = vweird.f32 %v5194_v55 }
 0x65e   : > { %4660 = vst [vmem:[%s8784_s4 + $0xe0] sm:$0xff] %v4628_v5  ;;  %vm4524_vm14 = vmor %vm4522_vm13, %vm4523_vm12 }
 0x65f   : > { %v4515_v33 = vsel %vm4514_vm11, %v5192_v60, %v4511_v16  ;;  %v4518_v28 = vmul.f32 %v5194_v55, %v4517_v23 }
 0x660   : > { %v4556_v63 = vmul.f32 %v4515_v33, %v8744_v54 }
 0x661   : > { %v4519_v50 = vmul.f32 0.5, %v4518_v28 }
 0x662   : > { %v4593_v20 = vmul.f32 %v8769_v38, %v4556_v63 }
 0x663   : > { %v4520_v61 = vsub.f32 1.5, %v4519_v50 }
 0x664   : > { %v4630_v19 = vadd.f32 %v8788_v62, %v4593_v20 }
 0x665   : > { %v4521_v41 = vmul.f32 %v5194_v55, %v4520_v61 }
 0x666   : > { %4662 = vst [vmem:[%s8784_s4 + $0xf0] sm:$0xff] %v4630_v19 }
 0x667   : > { %v4525_v54 = vsel %vm4524_vm14, %v5194_v55, %v4521_v41 }
 0x668   : > { %v4557_v38 = vmul.f32 %v4525_v54, %v8737_v42 }
 0x66a   : > { %v4594_v53 = vmul.f32 %v8763_v32, %v4557_v38 }
 0x66c   : > { %v4631_v62 = vadd.f32 %v8767_v17, %v4594_v53 }
 0x66e   : > { %4663 = vst [vmem:[%s8784_s4 + $0xf8] sm:$0xff] %v4631_v62 }
 0x66f   : > { %5438 = shalt.err (!%p5435_p10)
}
 0x670   : > { %s5495_s27 = smov 256   ;;  %s5496_s4 = smov 512  }
 0x671   : > { %s5497_s9 = smov 16  }
 0x672   : > { %4914 = dma.vmem_to_hbm [thread:$0]  (%p5668_p3), %s4678_s23, 4096, %s4680_s22, %s4665_s18, %s5495_s27, %s5496_s4, %s5497_s9  }
 0x673 PF: > { %s9331_s20 = sld [smem:[#allocation15_spill]]  ;;  %p9333_p12 = scmp.ge.s32.totalorder %s5485_s21, 2 }
 0x675   : > { %p4931_p13 = pnand %p9333_p12, %p5613_p6 }
 0x677   : > { %p4932_p0 = pneg %p4931_p13 }
 0x679   : > { %s4694_s29 = sand.u32 1, %s9331_s20  }
 0x67a   : > { %s4695_s26 = scalar_lea.sflag [#allocation4], %s4694_s29 }
 0x67b   : > { %5468 = dma.done.wait (%p4932_p0), %s4695_s26, 4096  }
 0x67c   : > { %5470 = vsyncadd (%p4932_p0), %s4695_s26, 4294963200  ;;  %s9334_s28 = sld [smem:[#allocation16_spill]]  ;;  %p30_p5 = scmp.ge.s32.totalorder %s5655_s14, 4  }
 0x67d   : > { %s9335_s20 = sld [smem:[#allocation18_spill]]  ;;  %s9336_s18 = smov %s5477_s19 }
 0x67e   : > { %s9338_s21 = smov %s5655_s14  ;;  %32 = sbr.rel (!%p30_p5) target bundleno = 14 (0xe), region = 137 }
 0x682   : > { %s9337_s19 = smov %s9334_s28 }
 0x683   :  { %4701 = vsyncpa [#allocation3], 1 }
 0x684   :  { %4703 = vsyncpa [#allocation3 + $0x1], 1 }
 0x685   :  { %4704 = vsyncpa [#allocation6], 1 }
 0x686   :  { %4705 = vsyncpa [#allocation9], 1 }
 0x687   :  { %4706 = vsyncpa [#allocation4], 1 }
 0x688   :  { %4708 = vsyncpa [#allocation4 + $0x1], 1 }

</bundles_post_ra>
